<compile_context>
chip_gen: v7x
topology: tpu7x:2x2x1
jax: 0.10.0
libtpu: 0.0.40
codegen_flags: <defaults>
</compile_context>

<pallas_src>
import jax
import jax.numpy as jnp
from jax.experimental import pallas as pl
from jax.experimental.pallas import tpu as pltpu


# ------------------------------ Pallas kernel ------------------------------ #
def _make_prefix_mlp_kernel(tn):
    def kernel(x_ref, w1_ref, b1_ref, w2_ref, b2_ref, o_ref):
        # h = tanh(x @ W1 + b1): tiny (T rows), recomputed per tile; fully
        # hidden under the multi-MB W2 tile DMA.
        h = jnp.tanh(
            jnp.dot(x_ref[...], w1_ref[...], preferred_element_type=jnp.float32)
            + b1_ref[...]
        )
        j = pl.program_id(0)
        b2_tile = b2_ref[pl.ds(j, 1), :]                      # (1, tn), resident
        o_ref[...] = (
            jnp.dot(h.astype(w2_ref.dtype), w2_ref[...],
                    preferred_element_type=jnp.float32)
            + b2_tile
        ).astype(o_ref.dtype)

    return kernel


# ------------------------------ HW budgeting ------------------------------- #
def _hw_budget():
    """(max W2 double-buffer bytes, vmem_limit_bytes, min grid length)."""
    vmem = None
    try:
        vmem = int(pltpu.get_tpu_info().vmem_capacity_bytes)
    except Exception:
        vmem = None
    kind = ""
    try:
        kind = jax.devices()[0].device_kind.lower()
    except Exception:
        pass
    small_vmem = (vmem is not None and vmem <= (64 << 20)) or "v7" in kind or "7x" in kind
    if small_vmem:
        # v7x: 64 MiB VMEM shared by 2 TensorCores running the parallel grid.
        # Keep per-core working set small and give each core >= 2 tiles.
        return 10 << 20, 28 << 20, 4
    # v5e / v6e: 128 MiB VMEM, single TensorCore -> big tiles, few grid steps.
    # (v5e's default scoped limit is small, so raise vmem_limit explicitly.)
    return 32 << 20, 80 << 20, 1


def _pick_tn(out_dim_p, mid, w2_itemsize, max_w2_bytes, min_grid):
    """Largest lane-dense (multiple-of-128) output tile such that the
    double-buffered W2 stream fits the budget; on multi-TC parts also require
    an even grid with >= min_grid steps (balanced megacore split)."""
    fallback, have_fallback = 128, False
    for tn in range(out_dim_p, 127, -128):
        if out_dim_p % tn:
            continue
        if mid * tn * w2_itemsize * 2 > max_w2_bytes:   # 2 = double buffering
            continue
        if not have_fallback:
            fallback, have_fallback = tn, True
        grid = out_dim_p // tn
        if min_grid <= 1 or (grid >= min_grid and grid % 2 == 0):
            return tn
    return fallback


# --------------------------- one-time MLP builder --------------------------- #
def build_prefix_mlp(params, *, compute_dtype=jnp.bfloat16, out_dtype=jnp.float32,
                     min_pallas_out_dim=512, min_pallas_elems=1 << 16):
    """One-time setup: cast/pad/reshape weights, pick tiles, build the kernel.

    Returns a zero-arg callable producing the (T, n_layer*2*d_model) f32 MLP
    output. Small toy configs get a pure-jnp fast path.
    """
    wte, w1, b1, w2, b2 = (params["wte"], params["w1"], params["b1"],
                           params["w2"], params["b2"])
    T, D = wte.shape
    mid = w1.shape[1]
    out_dim = w2.shape[1]

    if out_dim < min_pallas_out_dim or T * out_dim < min_pallas_elems:
        def run_jnp():
            h = jnp.tanh(wte @ w1 + b1.reshape(1, -1))
            return (h @ w2 + b2.reshape(1, -1)).astype(out_dtype)
        return run_jnp

    # ---- hoisted one-time prep (NOT in the per-batch hot path) -------------
    pad = (-out_dim) % 128
    out_dim_p = out_dim + pad
    x_c = wte.astype(compute_dtype)
    w1_c = w1.astype(compute_dtype)
    b1_f = b1.reshape(1, mid).astype(jnp.float32)
    w2_c = w2.astype(compute_dtype)
    b2_f = b2.reshape(1, out_dim).astype(jnp.float32)
    if pad:
        w2_c = jnp.pad(w2_c, ((0, 0), (0, pad)))
        b2_f = jnp.pad(b2_f, ((0, 0), (0, pad)))

    max_w2_bytes, vmem_limit, min_grid = _hw_budget()
    tn = _pick_tn(out_dim_p, mid, jnp.dtype(compute_dtype).itemsize,
                  max_w2_bytes, min_grid)
    n_tiles = out_dim_p // tn
    b2_f = b2_f.reshape(n_tiles, tn)          # resident bias slab, row j = tile j

    out_isize = jnp.dtype(out_dtype).itemsize
    cost = pl.CostEstimate(
        flops=2 * T * mid * out_dim_p + n_tiles * 2 * T * D * mid,
        transcendentals=n_tiles * T * mid,
        bytes_accessed=int(w2_c.size * w2_c.dtype.itemsize        # the real stream
                           + T * out_dim_p * out_isize
                           + x_c.size * x_c.dtype.itemsize
                           + w1_c.size * w1_c.dtype.itemsize
                           + b1_f.size * 4 + b2_f.size * 4),
    )

    call = pl.pallas_call(
        _make_prefix_mlp_kernel(tn),
        out_shape=jax.ShapeDtypeStruct((T, out_dim_p), out_dtype),
        grid_spec=pltpu.PrefetchScalarGridSpec(
            num_scalar_prefetch=0,
            grid=(n_tiles,),
            in_specs=[
                pl.BlockSpec((T, D), lambda j: (0, 0)),          # x   resident
                pl.BlockSpec((D, mid), lambda j: (0, 0)),        # W1  resident
                pl.BlockSpec((1, mid), lambda j: (0, 0)),        # b1  resident
                pl.BlockSpec((mid, tn), lambda j: (0, j)),       # W2  streamed (2-deep)
                pl.BlockSpec((n_tiles, tn), lambda j: (0, 0)),   # b2  resident slab
            ],
            out_specs=pl.BlockSpec((T, tn), lambda j: (0, j)),
        ),
        compiler_params=pltpu.CompilerParams(
            dimension_semantics=("parallel",),   # shard column tiles across TCs (v7x)
            vmem_limit_bytes=vmem_limit,
        ),
        cost_estimate=cost,
    )

    def run_pallas():
        out = call(x_c, w1_c, b1_f, w2_c, b2_f)
        return out[:, :out_dim] if pad else out

    return run_pallas


# --------------------------- JAX-side module glue -------------------------- #
def make_params(key, num_token, d_model, mid_dim, n_layer):
    out_dim = n_layer * 2 * d_model
    k = jax.random.split(key, 10)
    scale = 0.02
    enc = dict(
        wte=scale * jax.random.normal(k[0], (num_token, d_model), jnp.float32),
        w1=scale * jax.random.normal(k[1], (d_model, mid_dim), jnp.float32),
        b1=scale * jax.random.normal(k[2], (mid_dim,), jnp.float32),
        w2=scale * jax.random.normal(k[3], (mid_dim, out_dim), jnp.float32),
        b2=scale * jax.random.normal(k[4], (out_dim,), jnp.float32),
    )
    # decoder_wte / decoder_mlp are initialized (as in __init__) but, exactly
    # like the reference process_batch(), never used in the forward path.
    dec = dict(
        wte=scale * jax.random.normal(k[5], (num_token, d_model), jnp.float32),
        w1=scale * jax.random.normal(k[6], (d_model, mid_dim), jnp.float32),
        b1=scale * jax.random.normal(k[7], (mid_dim,), jnp.float32),
        w2=scale * jax.random.normal(k[8], (mid_dim, out_dim), jnp.float32),
        b2=scale * jax.random.normal(k[9], (out_dim,), jnp.float32),
    )
    return enc, dec


def _reshape_permute_split(flat, num_token, n_layer, n_head, n_embed):
    """view(1,T,2L,H,E) -> permute([2,0,3,1,4]) -> split(2)."""
    pkv = flat.reshape(1, num_token, n_layer * 2, n_head, n_embed)
    # dropout(prefix_dropout): identity at inference.
    # TODO(synk): training-mode dropout (Bernoulli mask via pltpu.prng_*) omitted.
    pkv = jnp.transpose(pkv, (2, 0, 3, 1, 4))  # (2L, 1, H, T, E)
    return tuple(pkv[2 * i: 2 * i + 2] for i in range(n_layer))


def process_batch(prefix_mlp_fn, num_token, n_layer, n_head, n_embed):
    # Encoder branch: wte(arange(T)) == the embedding table itself.
    flat = prefix_mlp_fn()
    pkv = _reshape_permute_split(flat, num_token, n_layer, n_head, n_embed)
    # Decoder branch re-uses self.wte / self.mlp in the reference, so its
    # output is bit-identical -> reuse (no 2nd MLP pass, no 2nd transpose).
    return [pkv, pkv]


def expand_to_batchsize_for_layer(tup, batch_size, layer_id):
    x = tup[layer_id]  # (2, 1, H, T, E)
    return jnp.broadcast_to(x, (x.shape[0], batch_size) + x.shape[2:])


def _ref_flat(p):
    """Pure-f32 JAX reference of the MLP hot path."""
    return (
        jnp.tanh(p["wte"] @ p["w1"] + p["b1"].reshape(1, -1)) @ p["w2"]
        + p["b2"].reshape(1, -1)
    )


# --------------------------------- main ------------------------------------ #
if __name__ == "__main__":
    key = jax.random.PRNGKey(0)

    # --- Realistic T5-small-like config: exercises the Pallas path. ---------
    num_token, d_model, n_head, n_layer, mid_dim, bsz = 16, 512, 8, 6, 512, 2
    n_embed = d_model // n_head
    enc_params, dec_params = make_params(key, num_token, d_model, mid_dim, n_layer)

    enc_mlp = build_prefix_mlp(enc_params)      # one-time setup (cast/pad hoisted)
    past_key_values = process_batch(enc_mlp, num_token, n_layer, n_head, n_embed)
    jax.block_until_ready(past_key_values)

    ref_pkv = _reshape_permute_split(
        _ref_flat(enc_params), num_token, n_layer, n_head, n_embed
    )
    for side in range(2):
        for layer in range(n_layer):
            got = past_key_values[side][layer]
            want = ref_pkv[layer]
            assert got.shape == (2, 1, n_head, num_token, n_embed), got.shape
            # bf16 matmul operands, f32 accumulation -> loose-ish tolerance.
            assert jnp.allclose(got, want, atol=2e-3, rtol=3e-2), float(
                jnp.max(jnp.abs(got - want))
            )

    expanded = expand_to_batchsize_for_layer(past_key_values[0], bsz, 0)
    jax.block_until_ready(expanded)
    assert expanded.shape == (2, bsz, n_head, num_token, n_embed)

    # --- Toy config: exercises the pure-jnp fast path (size guard). ---------
    t_num_token, t_d_model, t_n_head, t_n_layer, t_mid = 8, 32, 4, 2, 16
    t_n_embed = t_d_model // t_n_head
    t_enc, t_dec = make_params(jax.random.PRNGKey(1), t_num_token, t_d_model,
                               t_mid, t_n_layer)
    t_mlp = build_prefix_mlp(t_enc)
    t_pkv = process_batch(t_mlp, t_num_token, t_n_layer, t_n_head, t_n_embed)
    jax.block_until_ready(t_pkv)
    t_ref = _reshape_permute_split(_ref_flat(t_enc), t_num_token, t_n_layer,
                                   t_n_head, t_n_embed)
    for layer in range(t_n_layer):
        assert jnp.allclose(t_pkv[0][layer], t_ref[layer], atol=1e-5, rtol=1e-5)

    print("KERNEL_OK")
</pallas_src>

<mosaic_0001>
module attributes {stable_mosaic.version = 11 : i64} {
  func.func @kernel(%arg0: i32, %arg1: memref<16x512xbf16, #tpu.memory_space<vmem>>, %arg2: memref<512x512xbf16, #tpu.memory_space<vmem>>, %arg3: memref<1x512xf32, #tpu.memory_space<vmem>>, %arg4: memref<512x6144xbf16, #tpu.memory_space<vmem>>, %arg5: memref<1x6144xf32, #tpu.memory_space<vmem>>, %arg6: memref<16x6144xf32, #tpu.memory_space<vmem>>) attributes {dimension_semantics = [#tpu.dimension_semantics<parallel>], iteration_bounds = array<i64: 1>, scalar_prefetch = 0 : i64, scratch_operands = 0 : i64, tpu.core_type = #tpu.core_type<tc>, window_params = [{pipeline_mode = #tpu.pipeline_mode<synchronous>, transform_indices = @transform_0, window_bounds = array<i64: 16, 512>}, {pipeline_mode = #tpu.pipeline_mode<synchronous>, transform_indices = @transform_1, window_bounds = array<i64: 512, 512>}, {pipeline_mode = #tpu.pipeline_mode<synchronous>, transform_indices = @transform_2, window_bounds = array<i64: 1, 512>}, {transform_indices = @transform_3, window_bounds = array<i64: 512, 6144>}, {pipeline_mode = #tpu.pipeline_mode<synchronous>, transform_indices = @transform_4, window_bounds = array<i64: 1, 6144>}, {transform_indices = @transform_5, window_bounds = array<i64: 16, 6144>}]} {
    %c0 = arith.constant 0 : index
    %c0_0 = arith.constant 0 : index
    %0 = vector.load %arg1[%c0, %c0_0] : memref<16x512xbf16, #tpu.memory_space<vmem>>, vector<16x512xbf16>
    %c0_1 = arith.constant 0 : index
    %c0_2 = arith.constant 0 : index
    %1 = vector.load %arg2[%c0_1, %c0_2] : memref<512x512xbf16, #tpu.memory_space<vmem>>, vector<512x512xbf16>
    %cst = arith.constant dense<0.000000e+00> : vector<16x512xf32>
    %2 = tpu.matmul %0, %1, %cst {dimension_numbers = #tpu.dot_dimension_numbers<[1], [0], [0], [1], [0, 0, 1, 1], [], []>} : vector<16x512xbf16>, vector<512x512xbf16>, vector<16x512xf32> -> vector<16x512xf32>
    %c0_3 = arith.constant 0 : index
    %c0_4 = arith.constant 0 : index
    %3 = vector.load %arg3[%c0_3, %c0_4] : memref<1x512xf32, #tpu.memory_space<vmem>>, vector<1x512xf32>
    %4 = vector.broadcast %3 : vector<1x512xf32> to vector<16x512xf32>
    %5 = arith.addf %2, %4 : vector<16x512xf32>
    %6 = math.tanh %5 : vector<16x512xf32>
    %7 = arith.index_cast %arg0 : i32 to index
    %c0_5 = arith.constant 0 : index
    %8 = vector.load %arg5[%7, %c0_5] : memref<1x6144xf32, #tpu.memory_space<vmem>>, vector<1x6144xf32>
    %9 = arith.truncf %6 : vector<16x512xf32> to vector<16x512xbf16>
    %c0_6 = arith.constant 0 : index
    %c0_7 = arith.constant 0 : index
    %10 = vector.load %arg4[%c0_6, %c0_7] : memref<512x6144xbf16, #tpu.memory_space<vmem>>, vector<512x6144xbf16>
    %cst_8 = arith.constant dense<0.000000e+00> : vector<16x6144xf32>
    %11 = tpu.matmul %9, %10, %cst_8 {dimension_numbers = #tpu.dot_dimension_numbers<[1], [0], [0], [1], [0, 0, 1, 1], [], []>} : vector<16x512xbf16>, vector<512x6144xbf16>, vector<16x6144xf32> -> vector<16x6144xf32>
    %12 = vector.broadcast %8 : vector<1x6144xf32> to vector<16x6144xf32>
    %13 = arith.addf %11, %12 : vector<16x6144xf32>
    %c0_9 = arith.constant 0 : index
    %c0_10 = arith.constant 0 : index
    %14 = vector.load %arg6[%c0_9, %c0_10] : memref<16x6144xf32, #tpu.memory_space<vmem>>, vector<16x6144xf32>
    tpu.vector_store %arg6[%c0_9, %c0_10], %13 {strides = array<i32>} : memref<16x6144xf32, #tpu.memory_space<vmem>>, vector<16x6144xf32>,
    return
  }
  func.func @transform_0(%arg0: i32) -> (i32, i32) {
    %c0_i32 = arith.constant 0 : i32
    %c0_i32_0 = arith.constant 0 : i32
    %c0_i32_1 = arith.constant 0 : i32
    return %c0_i32, %c0_i32_0 : i32, i32
  }
  func.func @transform_1(%arg0: i32) -> (i32, i32) {
    %c0_i32 = arith.constant 0 : i32
    %c0_i32_0 = arith.constant 0 : i32
    %c0_i32_1 = arith.constant 0 : i32
    return %c0_i32, %c0_i32_0 : i32, i32
  }
  func.func @transform_2(%arg0: i32) -> (i32, i32) {
    %c0_i32 = arith.constant 0 : i32
    %c0_i32_0 = arith.constant 0 : i32
    %c0_i32_1 = arith.constant 0 : i32
    return %c0_i32, %c0_i32_0 : i32, i32
  }
  func.func @transform_3(%arg0: i32) -> (i32, i32) {
    %c0_i32 = arith.constant 0 : i32
    %c0_i32_0 = arith.constant 0 : i32
    return %c0_i32, %arg0 : i32, i32
  }
  func.func @transform_4(%arg0: i32) -> (i32, i32) {
    %c0_i32 = arith.constant 0 : i32
    %c0_i32_0 = arith.constant 0 : i32
    %c0_i32_1 = arith.constant 0 : i32
    return %c0_i32, %c0_i32_0 : i32, i32
  }
  func.func @transform_5(%arg0: i32) -> (i32, i32) {
    %c0_i32 = arith.constant 0 : i32
    %c0_i32_0 = arith.constant 0 : i32
    return %c0_i32, %arg0 : i32, i32
  }
}

</mosaic_0001>

<bundles_post_ra>
// kernel: tpu_custom_call.1
= control target key start
LH: loop header
LB: loop body
LE: loop exit
PB: predicated region body
PF: predicated region fallthrough
CT: control target
= control target key end

     0   :  { %10 = vsyncpa [#allocation3], 0  ;;  %s15355_s0 = inlined_call_operand.hbm [shape: bf16[16,512], index: 0, kind: input, shape index: {}]   ;;  %s15356_s1 = inlined_call_operand.hbm [shape: bf16[512,512], index: 1, kind: input, shape index: {}]   ;;  %s15357_s2 = inlined_call_operand.hbm [shape: f32[1,512], index: 2, kind: input, shape index: {}]   ;;  %s15358_s3 = inlined_call_operand.hbm [shape: bf16[512,6144], index: 3, kind: input, shape index: {}]   ;;  %s15359_s4 = inlined_call_operand.hbm [shape: f32[1,6144], index: 4, kind: input, shape index: {}]   ;;  %s15360_s5 = inlined_call_operand.hbm [shape: f32[16,6144], index: 5, kind: output, shape index: {}]  }
   0x1   :  { %11 = vsyncpa [#allocation6], 0 }
   0x2   :  { %12 = vsyncpa [#allocation9], 0 }
   0x3   :  { %13 = vsyncpa [#allocation4], 0  ;;  %s14974_s18 = smov [#allocation5]   ;;  %s14975_s20 = smov [#allocation8]  }
   0x4   :  { %s31_s19 = sshll.u32 %s14974_s18, 4  ;;  %s53_s21 = sshll.u32 %s14975_s20, 4  ;;  %s32_s19 = int_to_ptr.vmem [resolvable:$true] %s31_s19  ;;  %s15016_s21 = int_to_ptr.vmem [resolvable:$true] %s53_s21 }
   0x5   :  { %s14834_s24 = scalar_lea.hbm %s15356_s1, 16384 }
   0x6   :  { %p14835_p0 = scmp.ne.s32.totalorder %s15356_s1, %s14834_s24  ;;  %p14838_p1 = scmp.lt.u32.totalorder %s14834_s24, %s15356_s1 }
   0x8   :  { %p14840_p2 = pnand %p14838_p1, %p14835_p0 }
   0xa   :  { %14843 = shalt.err (!%p14840_p2)
}
   0xb   :  { %s14844_s29 = scalar_lea.vmem %s32_s19, 16384  ;;  %p14849_p4 = scmp.lt.s32.totalorder %s32_s19, %s32_s19 }
   0xc   :  { %p14845_p3 = scmp.ne.s32.totalorder %s32_s19, %s14844_s29  ;;  %p14850_p5 = scmp.lt.s32.totalorder %s14844_s29, %s14844_s29 }
   0xe   :  { %p14851_p6 = por %p14850_p5, %p14849_p4 }
  0x10   :  { %p14852_p7 = pnand %p14851_p6, %p14845_p3 }
  0x12   :  { %14855 = shalt.err (!%p14852_p7)
}
  0x13   :  { %s14976_s30 = smov 256   ;;  %s14977_s6 = smov 16  }
  0x14   :  { %37 = dma.hbm_to_vmem [thread:$0]  %s15356_s1, 16384, %s32_s19, [#allocation6], %s14976_s30, %s14976_s30, %s14977_s6  }
  0x15   :  { %s14856_s11 = scalar_lea.hbm %s15358_s3, 196608 }
  0x16   :  { %p14857_p8 = scmp.ne.s32.totalorder %s15358_s3, %s14856_s11  ;;  %p14860_p9 = scmp.lt.u32.totalorder %s14856_s11, %s15358_s3 }
  0x18   :  { %p14862_p10 = pnand %p14860_p9, %p14857_p8 }
  0x1a   :  { %14865 = shalt.err (!%p14862_p10)
}
  0x1b   :  { %s14866_s16 = scalar_lea.vmem %s15016_s21, 196608  ;;  %p14871_p12 = scmp.lt.s32.totalorder %s15016_s21, %s15016_s21 }
  0x1c   :  { %p14867_p11 = scmp.ne.s32.totalorder %s15016_s21, %s14866_s16  ;;  %p14872_p13 = scmp.lt.s32.totalorder %s14866_s16, %s14866_s16 }
  0x1e   :  { %p14873_p0 = por %p14872_p13, %p14871_p12 }
  0x20   :  { %p14874_p1 = pnand %p14873_p0, %p14867_p11 }
  0x22   :  { %14877 = shalt.err (!%p14874_p1)
}
  0x23   :  { %s14978_s1 = smov 3072   ;;  %s14979_s17 = smov 192  }
  0x24   :  { %59 = dma.hbm_to_vmem [thread:$0]  %s15358_s3, 196608, %s15016_s21, [#allocation9], %s14978_s1, %s14978_s1, %s14979_s17  }
  0x25   :  { %s14980_s20 = smov [#allocation2]   ;;  %s14981_s23 = smov [#allocation7]  }
  0x26   :  { %s19_s22 = sshll.u32 %s14980_s20, 4  ;;  %s44_s24 = sshll.u32 %s14981_s23, 4  ;;  %s20_s22 = int_to_ptr.vmem [resolvable:$true] %s19_s22  ;;  %s45_s24 = int_to_ptr.vmem [resolvable:$true] %s44_s24 }
  0x27   :  { %s14878_s27 = scalar_lea.hbm %s15355_s0, 512 }
  0x28   :  { %p14879_p2 = scmp.ne.s32.totalorder %s15355_s0, %s14878_s27  ;;  %p14882_p3 = scmp.lt.u32.totalorder %s14878_s27, %s15355_s0 }
  0x2a   :  { %p14884_p4 = pnand %p14882_p3, %p14879_p2 }
  0x2c   :  { %14887 = shalt.err (!%p14884_p4)
}
  0x2d   :  { %s14888_s3 = scalar_lea.vmem %s20_s22, 512  ;;  %p14893_p6 = scmp.lt.s32.totalorder %s20_s22, %s20_s22 }
  0x2e   :  { %p14889_p5 = scmp.ne.s32.totalorder %s20_s22, %s14888_s3  ;;  %p14894_p7 = scmp.lt.s32.totalorder %s14888_s3, %s14888_s3 }
  0x30   :  { %p14895_p8 = por %p14894_p7, %p14893_p6 }
  0x32   :  { %p14896_p9 = pnand %p14895_p8, %p14889_p5 }
  0x34   :  { %14899 = shalt.err (!%p14896_p9)
}
  0x35   :  { %25 = dma.hbm_to_vmem [thread:$0]  %s15355_s0, 512, %s20_s22, [#allocation3], %s14976_s30, %s14976_s30, %s14977_s6  }
  0x36   :  { %s14900_s12 = scalar_lea.hbm %s15357_s2, 64 }
  0x37   :  { %p14901_p10 = scmp.ne.s32.totalorder %s15357_s2, %s14900_s12  ;;  %p14904_p11 = scmp.lt.u32.totalorder %s14900_s12, %s15357_s2 }
  0x39   :  { %p14906_p12 = pnand %p14904_p11, %p14901_p10 }
  0x3b   :  { %14909 = shalt.err (!%p14906_p12)
}
  0x3c   :  { %s14910_s1 = scalar_lea.vmem %s45_s24, 64  ;;  %p14915_p0 = scmp.lt.s32.totalorder %s45_s24, %s45_s24 }
  0x3d   :  { %p14911_p13 = scmp.ne.s32.totalorder %s45_s24, %s14910_s1  ;;  %p14916_p1 = scmp.lt.s32.totalorder %s14910_s1, %s14910_s1 }
  0x3f   :  { %p14917_p2 = por %p14916_p1, %p14915_p0 }
  0x41   :  { %p14918_p3 = pnand %p14917_p2, %p14911_p13 }
  0x43   :  { %14921 = shalt.err (!%p14918_p3)
}
  0x44   :  { %47 = dma.hbm_to_vmem [thread:$0]  %s15357_s2, 64, %s45_s24, [#allocation6]  }
  0x45   :  { %s14982_s6 = smov [#allocation10]   ;;  %s14922_s20 = scalar_lea.hbm %s15359_s4, 768 }
  0x46   :  { %s66_s17 = sshll.u32 %s14982_s6, 4  ;;  %p14923_p4 = scmp.ne.s32.totalorder %s15359_s4, %s14922_s20  ;;  %s67_s17 = int_to_ptr.vmem [resolvable:$true] %s66_s17 }
  0x47   :  { %p14926_p5 = scmp.lt.u32.totalorder %s14922_s20, %s15359_s4 }
  0x49   :  { %p14928_p6 = pnand %p14926_p5, %p14923_p4 }
  0x4b   :  { %14931 = shalt.err (!%p14928_p6)
}
  0x4c   :  { %s14932_s27 = scalar_lea.vmem %s67_s17, 768  ;;  %p14937_p8 = scmp.lt.s32.totalorder %s67_s17, %s67_s17 }
  0x4d   :  { %p14933_p7 = scmp.ne.s32.totalorder %s67_s17, %s14932_s27  ;;  %p14938_p9 = scmp.lt.s32.totalorder %s14932_s27, %s14932_s27 }
  0x4f   :  { %p14939_p10 = por %p14938_p9, %p14937_p8 }
  0x51   :  { %p14940_p11 = pnand %p14939_p10, %p14933_p7 }
  0x53   :  { %14943 = shalt.err (!%p14940_p11)
}
  0x54   :  { %69 = dma.hbm_to_vmem [thread:$0]  %s15359_s4, 768, %s67_s17, [#allocation9]  }
  0x55   :  { %14966 = dma.done.wait [#allocation3], 512  }
  0x56   :  { %14967 = vsyncadd [#allocation3], 4294966784 }
  0x57   :  { %14968 = dma.done.wait [#allocation6], 16448  }
  0x58   :  { %14969 = vsyncadd [#allocation6], 4294950848 }
  0x59   :  { %14970 = dma.done.wait [#allocation9], 197376  }
  0x5a   :  { %14971 = vsyncadd [#allocation9], 4294769920  ;;  %v14620_v0 = vld [vmem:[#allocation5 + $0x4] ss:$16 sps:$4 sm:$0xff]   ;;  %v14622_v1 = vld [vmem:[#allocation5 + $0xc] ss:$16 sps:$4 sm:$0xff]  }
  0x5b   :  { %899 = vmatprep.subr.bf16.mxu0 %v14620_v0  ;;  %v14624_v2 = vld [vmem:[#allocation5] ss:$16 sps:$4 sm:$0xff]   ;;  %v14625_v3 = vld [vmem:[#allocation5 + $0x8] ss:$16 sps:$4 sm:$0xff]   ;;  %985 = vmatprep.subr.bf16.mxu1 %v14622_v1  ;;  %v14626_v4 = vld [vmem:[#allocation5 + $0x24] ss:$16 sps:$4 sm:$0xff]  }
  0x5c   :  { %900 = vmatpush1.bf16.msra.mxu0 %v14624_v2  ;;  %986 = vmatpush1.bf16.msra.mxu1 %v14625_v3  ;;  %v14628_v5 = vld [vmem:[#allocation5 + $0x2c] ss:$16 sps:$4 sm:$0xff]   ;;  %v14630_v6 = vld [vmem:[#allocation5 + $0x20] ss:$16 sps:$4 sm:$0xff]   ;;  %v14631_v7 = vld [vmem:[#allocation5 + $0x28] ss:$16 sps:$4 sm:$0xff]  }
  0x5d   :  { %901 = vmatprep.subr.bf16.mxu0 %v14626_v4  ;;  %987 = vmatprep.subr.bf16.mxu1 %v14628_v5  ;;  %v14632_v8 = vld [vmem:[#allocation5 + $0x44] ss:$16 sps:$4 sm:$0xff]   ;;  %v14634_v9 = vld [vmem:[#allocation5 + $0x4c] ss:$16 sps:$4 sm:$0xff]   ;;  %v14636_v10 = vld [vmem:[#allocation5 + $0x40] ss:$16 sps:$4 sm:$0xff]  }
  0x5e   :  { %v14637_v11 = vld [vmem:[#allocation5 + $0x48] ss:$16 sps:$4 sm:$0xff]   ;;  %v14638_v12 = vld [vmem:[#allocation5 + $0x64] ss:$16 sps:$4 sm:$0xff]   ;;  %v14640_v13 = vld [vmem:[#allocation5 + $0x6c] ss:$16 sps:$4 sm:$0xff]  }
  0x5f   :  { %v14642_v14 = vld [vmem:[#allocation5 + $0x60] ss:$16 sps:$4 sm:$0xff]   ;;  %v14643_v15 = vld [vmem:[#allocation5 + $0x68] ss:$16 sps:$4 sm:$0xff]   ;;  %v14644_v16 = vld [vmem:[#allocation5 + $0x84] ss:$16 sps:$4 sm:$0xff]  }
  0x60   :  { %902 = vmatpush1.bf16.msra.mxu0 %v14630_v6  ;;  %988 = vmatpush1.bf16.msra.mxu1 %v14631_v7  ;;  %v14646_v17 = vld [vmem:[#allocation5 + $0x8c] ss:$16 sps:$4 sm:$0xff]   ;;  %v14648_v18 = vld [vmem:[#allocation5 + $0x80] ss:$16 sps:$4 sm:$0xff]   ;;  %v14649_v19 = vld [vmem:[#allocation5 + $0x88] ss:$16 sps:$4 sm:$0xff]  }
  0x61   :  { %903 = vmatprep.subr.bf16.mxu0 %v14632_v8  ;;  %989 = vmatprep.subr.bf16.mxu1 %v14634_v9  ;;  %v14650_v20 = vld [vmem:[#allocation5 + $0xa4] ss:$16 sps:$4 sm:$0xff]   ;;  %v14652_v21 = vld [vmem:[#allocation5 + $0xac] ss:$16 sps:$4 sm:$0xff]   ;;  %v14654_v22 = vld [vmem:[#allocation5 + $0xa0] ss:$16 sps:$4 sm:$0xff]  }
  0x62   :  { %v14655_v23 = vld [vmem:[#allocation5 + $0xa8] ss:$16 sps:$4 sm:$0xff]   ;;  %v14656_v24 = vld [vmem:[#allocation5 + $0xc4] ss:$16 sps:$4 sm:$0xff]   ;;  %v14658_v25 = vld [vmem:[#allocation5 + $0xcc] ss:$16 sps:$4 sm:$0xff]  }
  0x63   :  { %v14660_v26 = vld [vmem:[#allocation5 + $0xc0] ss:$16 sps:$4 sm:$0xff]   ;;  %v14661_v27 = vld [vmem:[#allocation5 + $0xc8] ss:$16 sps:$4 sm:$0xff]   ;;  %v14662_v28 = vld [vmem:[#allocation5 + $0xe4] ss:$16 sps:$4 sm:$0xff]  }
  0x64   :  { %904 = vmatpush1.bf16.msra.mxu0 %v14636_v10  ;;  %990 = vmatpush1.bf16.msra.mxu1 %v14637_v11  ;;  %v14664_v29 = vld [vmem:[#allocation5 + $0xec] ss:$16 sps:$4 sm:$0xff]   ;;  %v14666_v30 = vld [vmem:[#allocation5 + $0xe0] ss:$16 sps:$4 sm:$0xff]   ;;  %v14667_v31 = vld [vmem:[#allocation5 + $0xe8] ss:$16 sps:$4 sm:$0xff]  }
  0x65   :  { %905 = vmatprep.subr.bf16.mxu0 %v14638_v12  ;;  %991 = vmatprep.subr.bf16.mxu1 %v14640_v13  ;;  %v14668_v32 = vld [vmem:[#allocation5 + $0x104] ss:$16 sps:$4 sm:$0xff]   ;;  %v14670_v33 = vld [vmem:[#allocation5 + $0x10c] ss:$16 sps:$4 sm:$0xff]   ;;  %v14672_v34 = vld [vmem:[#allocation5 + $0x100] ss:$16 sps:$4 sm:$0xff]  }
  0x66   :  { %v14673_v35 = vld [vmem:[#allocation5 + $0x108] ss:$16 sps:$4 sm:$0xff]   ;;  %v14674_v36 = vld [vmem:[#allocation5 + $0x124] ss:$16 sps:$4 sm:$0xff]   ;;  %v14676_v37 = vld [vmem:[#allocation5 + $0x12c] ss:$16 sps:$4 sm:$0xff]  }
  0x67   :  { %v14678_v38 = vld [vmem:[#allocation5 + $0x120] ss:$16 sps:$4 sm:$0xff]   ;;  %v14679_v39 = vld [vmem:[#allocation5 + $0x128] ss:$16 sps:$4 sm:$0xff]   ;;  %v14680_v40 = vld [vmem:[#allocation5 + $0x144] ss:$16 sps:$4 sm:$0xff]  }
  0x68   :  { %906 = vmatpush1.bf16.msra.mxu0 %v14642_v14  ;;  %992 = vmatpush1.bf16.msra.mxu1 %v14643_v15  ;;  %v14682_v41 = vld [vmem:[#allocation5 + $0x14c] ss:$16 sps:$4 sm:$0xff]   ;;  %v14684_v42 = vld [vmem:[#allocation5 + $0x140] ss:$16 sps:$4 sm:$0xff]   ;;  %v14685_v43 = vld [vmem:[#allocation5 + $0x148] ss:$16 sps:$4 sm:$0xff]  }
  0x69   :  { %907 = vmatprep.subr.bf16.mxu0 %v14644_v16  ;;  %993 = vmatprep.subr.bf16.mxu1 %v14646_v17  ;;  %v14686_v44 = vld [vmem:[#allocation5 + $0x164] ss:$16 sps:$4 sm:$0xff]   ;;  %v14688_v45 = vld [vmem:[#allocation5 + $0x16c] ss:$16 sps:$4 sm:$0xff]   ;;  %v14690_v46 = vld [vmem:[#allocation5 + $0x160] ss:$16 sps:$4 sm:$0xff]  }
  0x6a   :  { %v14691_v47 = vld [vmem:[#allocation5 + $0x168] ss:$16 sps:$4 sm:$0xff]   ;;  %v14718_v48 = vld [vmem:[#allocation2 + $0x4] ss:$16 sps:$4 sm:$0xff]   ;;  %v14694_v50 = vld [vmem:[#allocation5 + $0x18c] ss:$16 sps:$4 sm:$0xff]  }
  0x6b   :  { %v14692_v49 = vld [vmem:[#allocation5 + $0x184] ss:$16 sps:$4 sm:$0xff]   ;;  %931 = vmatprep.mubr.bf16.mxu0 %v14718_v48  ;;  %1017 = vmatprep.mubr.bf16.mxu1 %v14718_v48  ;;  %v14696_v51 = vld [vmem:[#allocation5 + $0x180] ss:$16 sps:$4 sm:$0xff]   ;;  %v14697_v52 = vld [vmem:[#allocation5 + $0x188] ss:$16 sps:$4 sm:$0xff]  }
  0x6c   :  { %908 = vmatpush1.bf16.msra.mxu0 %v14648_v18  ;;  %994 = vmatpush1.bf16.msra.mxu1 %v14649_v19  ;;  %v14698_v53 = vld [vmem:[#allocation5 + $0x1a4] ss:$16 sps:$4 sm:$0xff]   ;;  %v14700_v54 = vld [vmem:[#allocation5 + $0x1ac] ss:$16 sps:$4 sm:$0xff]   ;;  %v14702_v55 = vld [vmem:[#allocation5 + $0x1a0] ss:$16 sps:$4 sm:$0xff]  }
  0x6d   :  { %909 = vmatprep.subr.bf16.mxu0 %v14650_v20  ;;  %995 = vmatprep.subr.bf16.mxu1 %v14652_v21  ;;  %v14703_v56 = vld [vmem:[#allocation5 + $0x1a8] ss:$16 sps:$4 sm:$0xff]   ;;  %v14704_v57 = vld [vmem:[#allocation5 + $0x1c4] ss:$16 sps:$4 sm:$0xff]   ;;  %v14706_v58 = vld [vmem:[#allocation5 + $0x1cc] ss:$16 sps:$4 sm:$0xff]  }
  0x6e   :  { %v14708_v59 = vld [vmem:[#allocation5 + $0x1c0] ss:$16 sps:$4 sm:$0xff]   ;;  %v14709_v60 = vld [vmem:[#allocation5 + $0x1c8] ss:$16 sps:$4 sm:$0xff]   ;;  %v14710_v61 = vld [vmem:[#allocation5 + $0x1e4] ss:$16 sps:$4 sm:$0xff]  }
  0x6f   :  { %v14712_v62 = vld [vmem:[#allocation5 + $0x1ec] ss:$16 sps:$4 sm:$0xff]   ;;  %v14714_v63 = vld [vmem:[#allocation5 + $0x1e0] ss:$16 sps:$4 sm:$0xff]   ;;  %v14715_v0 = vld [vmem:[#allocation5 + $0x1e8] ss:$16 sps:$4 sm:$0xff]  }
  0x70   :  { %910 = vmatpush1.bf16.msra.mxu0 %v14654_v22  ;;  %996 = vmatpush1.bf16.msra.mxu1 %v14655_v23  ;;  %v14721_v1 = vld [vmem:[#allocation5 + $0x204] ss:$16 sps:$4 sm:$0xff]   ;;  %v14724_v2 = vld [vmem:[#allocation5 + $0x20c] ss:$16 sps:$4 sm:$0xff]   ;;  %v14716_v3 = vld [vmem:[#allocation2] ss:$16 sps:$4 sm:$0xff]  }
  0x71   :  { %911 = vmatprep.subr.bf16.mxu0 %v14656_v24  ;;  %997 = vmatprep.subr.bf16.mxu1 %v14658_v25  ;;  %v14719_v4 = vld [vmem:[#allocation5 + $0x200] ss:$16 sps:$4 sm:$0xff]   ;;  %v14722_v5 = vld [vmem:[#allocation5 + $0x208] ss:$16 sps:$4 sm:$0xff]   ;;  %v14727_v6 = vld [vmem:[#allocation5 + $0x224] ss:$16 sps:$4 sm:$0xff]  }
  0x72   :  { %v14730_v7 = vld [vmem:[#allocation5 + $0x22c] ss:$16 sps:$4 sm:$0xff]   ;;  %v14725_v8 = vld [vmem:[#allocation5 + $0x220] ss:$16 sps:$4 sm:$0xff]   ;;  %v14728_v9 = vld [vmem:[#allocation5 + $0x228] ss:$16 sps:$4 sm:$0xff]  }
  0x73   :  { %v14733_v10 = vld [vmem:[#allocation5 + $0x244] ss:$16 sps:$4 sm:$0xff]   ;;  %v14736_v11 = vld [vmem:[#allocation5 + $0x24c] ss:$16 sps:$4 sm:$0xff]   ;;  %v14731_v12 = vld [vmem:[#allocation5 + $0x240] ss:$16 sps:$4 sm:$0xff]  }
  0x74   :  { %912 = vmatpush1.bf16.msra.mxu0 %v14660_v26  ;;  %998 = vmatpush1.bf16.msra.mxu1 %v14661_v27  ;;  %v14734_v13 = vld [vmem:[#allocation5 + $0x248] ss:$16 sps:$4 sm:$0xff]   ;;  %v14739_v14 = vld [vmem:[#allocation5 + $0x264] ss:$16 sps:$4 sm:$0xff]   ;;  %v14742_v15 = vld [vmem:[#allocation5 + $0x26c] ss:$16 sps:$4 sm:$0xff]  }
  0x75   :  { %913 = vmatprep.subr.bf16.mxu0 %v14662_v28  ;;  %999 = vmatprep.subr.bf16.mxu1 %v14664_v29  ;;  %v14737_v16 = vld [vmem:[#allocation5 + $0x260] ss:$16 sps:$4 sm:$0xff]   ;;  %v14740_v17 = vld [vmem:[#allocation5 + $0x268] ss:$16 sps:$4 sm:$0xff]   ;;  %v14745_v18 = vld [vmem:[#allocation5 + $0x284] ss:$16 sps:$4 sm:$0xff]  }
  0x76   :  { %v14748_v19 = vld [vmem:[#allocation5 + $0x28c] ss:$16 sps:$4 sm:$0xff]   ;;  %v14743_v20 = vld [vmem:[#allocation5 + $0x280] ss:$16 sps:$4 sm:$0xff]   ;;  %v14746_v21 = vld [vmem:[#allocation5 + $0x288] ss:$16 sps:$4 sm:$0xff]  }
  0x77   :  { %v14751_v22 = vld [vmem:[#allocation5 + $0x2a4] ss:$16 sps:$4 sm:$0xff]   ;;  %v14754_v23 = vld [vmem:[#allocation5 + $0x2ac] ss:$16 sps:$4 sm:$0xff]   ;;  %v14749_v24 = vld [vmem:[#allocation5 + $0x2a0] ss:$16 sps:$4 sm:$0xff]  }
  0x78   :  { %914 = vmatpush1.bf16.msra.mxu0 %v14666_v30  ;;  %1000 = vmatpush1.bf16.msra.mxu1 %v14667_v31  ;;  %v14752_v25 = vld [vmem:[#allocation5 + $0x2a8] ss:$16 sps:$4 sm:$0xff]   ;;  %v14757_v26 = vld [vmem:[#allocation5 + $0x2c4] ss:$16 sps:$4 sm:$0xff]   ;;  %v14760_v27 = vld [vmem:[#allocation5 + $0x2cc] ss:$16 sps:$4 sm:$0xff]  }
  0x79   :  { %915 = vmatprep.subr.bf16.mxu0 %v14668_v32  ;;  %1001 = vmatprep.subr.bf16.mxu1 %v14670_v33  ;;  %v14817_v28 = vld [vmem:[#allocation2 + $0xc] ss:$16 sps:$4 sm:$0xff]   ;;  %v14755_v29 = vld [vmem:[#allocation5 + $0x2c0] ss:$16 sps:$4 sm:$0xff]   ;;  %v14758_v30 = vld [vmem:[#allocation5 + $0x2c8] ss:$16 sps:$4 sm:$0xff]  }
  0x7a   :  { %v14763_v31 = vld [vmem:[#allocation5 + $0x2e4] ss:$16 sps:$4 sm:$0xff]   ;;  %v14766_v32 = vld [vmem:[#allocation5 + $0x2ec] ss:$16 sps:$4 sm:$0xff]   ;;  %v14761_v33 = vld [vmem:[#allocation5 + $0x2e0] ss:$16 sps:$4 sm:$0xff]  }
  0x7b   :  { %v14790_v48 = vld [vmem:[#allocation5 + $0x36c] ss:$16 sps:$4 sm:$0xff]   ;;  %s14983_s4 = smov [#allocation11]  }
  0x7c   :  { %916 = vmatpush1.bf16.msra.mxu0 %v14672_v34  ;;  %1002 = vmatpush1.bf16.msra.mxu1 %v14673_v35  ;;  %v14764_v34 = vld [vmem:[#allocation5 + $0x2e8] ss:$16 sps:$4 sm:$0xff]   ;;  %v14769_v35 = vld [vmem:[#allocation5 + $0x304] ss:$16 sps:$4 sm:$0xff]   ;;  %s12718_s28 = sshll.u32 %s14983_s4, 4  ;;  %s12719_s28 = int_to_ptr.vmem [resolvable:$true] %s12718_s28 }
  0x7d   :  { %917 = vmatprep.subr.bf16.mxu0 %v14674_v36  ;;  %1003 = vmatprep.subr.bf16.mxu1 %v14676_v37  ;;  %v14772_v36 = vld [vmem:[#allocation5 + $0x30c] ss:$16 sps:$4 sm:$0xff]   ;;  %v14767_v37 = vld [vmem:[#allocation5 + $0x300] ss:$16 sps:$4 sm:$0xff]   ;;  %s14944_s29 = scalar_lea.vmem %s12719_s28, 12288  ;;  %p14949_p13 = scmp.lt.s32.totalorder %s12719_s28, %s12719_s28 }
  0x7e   :  { %p14945_p12 = scmp.ne.s32.totalorder %s12719_s28, %s14944_s29  ;;  %p14950_p0 = scmp.lt.s32.totalorder %s14944_s29, %s14944_s29 }
  0x80   :  { %918 = vmatpush1.bf16.msra.mxu0 %v14678_v38  ;;  %1004 = vmatpush1.bf16.msra.mxu1 %v14679_v39  ;;  %v14770_v38 = vld [vmem:[#allocation5 + $0x308] ss:$16 sps:$4 sm:$0xff]   ;;  %v14775_v39 = vld [vmem:[#allocation5 + $0x324] ss:$16 sps:$4 sm:$0xff]   ;;  %p14951_p1 = por %p14950_p0, %p14949_p13 }
  0x81   :  { %919 = vmatprep.subr.bf16.mxu0 %v14680_v40  ;;  %1005 = vmatprep.subr.bf16.mxu1 %v14682_v41  ;;  %v14778_v40 = vld [vmem:[#allocation5 + $0x32c] ss:$16 sps:$4 sm:$0xff]   ;;  %v14773_v41 = vld [vmem:[#allocation5 + $0x320] ss:$16 sps:$4 sm:$0xff]  }
  0x82   :  { %p14952_p2 = pnand %p14951_p1, %p14945_p12 }
  0x84   :  { %920 = vmatpush1.bf16.msra.mxu0 %v14684_v42  ;;  %1006 = vmatpush1.bf16.msra.mxu1 %v14685_v43  ;;  %v14776_v42 = vld [vmem:[#allocation5 + $0x328] ss:$16 sps:$4 sm:$0xff]   ;;  %v14781_v43 = vld [vmem:[#allocation5 + $0x344] ss:$16 sps:$4 sm:$0xff]  }
  0x85   :  { %921 = vmatprep.subr.bf16.mxu0 %v14686_v44  ;;  %1007 = vmatprep.subr.bf16.mxu1 %v14688_v45  ;;  %v14784_v44 = vld [vmem:[#allocation5 + $0x34c] ss:$16 sps:$4 sm:$0xff]   ;;  %v14779_v45 = vld [vmem:[#allocation5 + $0x340] ss:$16 sps:$4 sm:$0xff]  }
  0x88   :  { %922 = vmatpush1.bf16.msra.mxu0 %v14690_v46  ;;  %1008 = vmatpush1.bf16.msra.mxu1 %v14691_v47  ;;  %v14782_v46 = vld [vmem:[#allocation5 + $0x348] ss:$16 sps:$4 sm:$0xff]   ;;  %v14787_v47 = vld [vmem:[#allocation5 + $0x364] ss:$16 sps:$4 sm:$0xff]  }
  0x89   :  { %923 = vmatprep.subr.bf16.mxu0 %v14692_v49  ;;  %1009 = vmatprep.subr.bf16.mxu1 %v14694_v50  ;;  %v14785_v49 = vld [vmem:[#allocation5 + $0x360] ss:$16 sps:$4 sm:$0xff]   ;;  %v14788_v50 = vld [vmem:[#allocation5 + $0x368] ss:$16 sps:$4 sm:$0xff]  }
  0x8c   :  { %924 = vmatpush1.bf16.msra.mxu0 %v14696_v51  ;;  %1010 = vmatpush1.bf16.msra.mxu1 %v14697_v52  ;;  %v14793_v51 = vld [vmem:[#allocation5 + $0x384] ss:$16 sps:$4 sm:$0xff]   ;;  %v14796_v52 = vld [vmem:[#allocation5 + $0x38c] ss:$16 sps:$4 sm:$0xff]  }
  0x8d   :  { %925 = vmatprep.subr.bf16.mxu0 %v14698_v53  ;;  %1011 = vmatprep.subr.bf16.mxu1 %v14700_v54  ;;  %v14791_v53 = vld [vmem:[#allocation5 + $0x380] ss:$16 sps:$4 sm:$0xff]   ;;  %v14794_v54 = vld [vmem:[#allocation5 + $0x388] ss:$16 sps:$4 sm:$0xff]  }
  0x90   :  { %926 = vmatpush1.bf16.msra.mxu0 %v14702_v55  ;;  %1012 = vmatpush1.bf16.msra.mxu1 %v14703_v56  ;;  %v14799_v55 = vld [vmem:[#allocation5 + $0x3a4] ss:$16 sps:$4 sm:$0xff]   ;;  %v14802_v56 = vld [vmem:[#allocation5 + $0x3ac] ss:$16 sps:$4 sm:$0xff]  }
  0x91   :  { %927 = vmatprep.subr.bf16.mxu0 %v14704_v57  ;;  %1013 = vmatprep.subr.bf16.mxu1 %v14706_v58  ;;  %v14797_v57 = vld [vmem:[#allocation5 + $0x3a0] ss:$16 sps:$4 sm:$0xff]   ;;  %v14800_v58 = vld [vmem:[#allocation5 + $0x3a8] ss:$16 sps:$4 sm:$0xff]  }
  0x94   :  { %928 = vmatpush1.bf16.msra.mxu0 %v14708_v59  ;;  %1014 = vmatpush1.bf16.msra.mxu1 %v14709_v60  ;;  %v14805_v59 = vld [vmem:[#allocation5 + $0x3c4] ss:$16 sps:$4 sm:$0xff]   ;;  %v14808_v60 = vld [vmem:[#allocation5 + $0x3cc] ss:$16 sps:$4 sm:$0xff]  }
  0x95   :  { %929 = vmatprep.subr.bf16.mxu0 %v14710_v61  ;;  %1015 = vmatprep.subr.bf16.mxu1 %v14712_v62  ;;  %v14803_v61 = vld [vmem:[#allocation5 + $0x3c0] ss:$16 sps:$4 sm:$0xff]   ;;  %v14806_v62 = vld [vmem:[#allocation5 + $0x3c8] ss:$16 sps:$4 sm:$0xff]  }
  0x98   :  { %930 = vmatpush1.bf16.msra.mxu0 %v14714_v63  ;;  %1016 = vmatpush1.bf16.msra.mxu1 %v14715_v0  ;;  %v14811_v63 = vld [vmem:[#allocation5 + $0x3e4] ss:$16 sps:$4 sm:$0xff]   ;;  %v14814_v0 = vld [vmem:[#allocation5 + $0x3ec] ss:$16 sps:$4 sm:$0xff]  }
  0x99   :  { %942 = vmatprep.subr.bf16.mxu0 %v14721_v1  ;;  %1028 = vmatprep.subr.bf16.mxu1 %v14724_v2  ;;  %v1091_v1 = vld [vmem:[#allocation8] sm:$0xff] }
  0x9a   :  { %v1115_v2 = vld [vmem:[#allocation8 + $0xc0] sm:$0xff] }
  0x9b   :  { %932 = vmatmul.mubr.bf16.vlgmr.msra.gmra.mrb[0].mxu0 %v14716_v3  ;;  %1018 = vmatmul.mubr.bf16.vlgmr.msra.gmra.mrb[0].mxu1 %v14716_v3  ;;  %v1092_v3 = vld [vmem:[#allocation8 + $0x8] sm:$0xff] }
  0x9c   :  { %943 = vmatpush1.bf16.msra.mxu0 %v14719_v4  ;;  %1029 = vmatpush1.bf16.msra.mxu1 %v14722_v5  ;;  %v1116_v4 = vld [vmem:[#allocation8 + $0xc8] sm:$0xff] }
  0x9d   :  { %944 = vmatprep.subr.bf16.mxu0 %v14727_v6  ;;  %1030 = vmatprep.subr.bf16.mxu1 %v14730_v7  ;;  %v14809_v5 = vld [vmem:[#allocation5 + $0x3e0] ss:$16 sps:$4 sm:$0xff]   ;;  %v14812_v6 = vld [vmem:[#allocation5 + $0x3e8] ss:$16 sps:$4 sm:$0xff]   ;;  %v12865_v7 = vcombine.high %v1091_v1, %v1115_v2 }
  0x9e   :  { %974 = vmatprep.mubr.bf16.mxu0 %v14817_v28  ;;  %1060 = vmatprep.mubr.bf16.mxu1 %v14817_v28  ;;  %v1236_v28 = vld [vmem:[#allocation8 + $0x488] sm:$0xff] }
  0xa0   :  { %945 = vmatpush1.bf16.msra.mxu0 %v14725_v8  ;;  %1031 = vmatpush1.bf16.msra.mxu1 %v14728_v9  ;;  %v12867_v8 = vcombine.high %v1092_v3, %v1116_v4  ;;  %v1139_v9 = vld [vmem:[#allocation8 + $0x180] sm:$0xff] }
  0xa1   :  { %946 = vmatprep.subr.bf16.mxu0 %v14733_v10  ;;  %1032 = vmatprep.subr.bf16.mxu1 %v14736_v11  ;;  %v1163_v10 = vld [vmem:[#allocation8 + $0x240] sm:$0xff]  ;;  %v1140_v11 = vld [vmem:[#allocation8 + $0x188] sm:$0xff] }
  0xa4   :  { %947 = vmatpush1.bf16.msra.mxu0 %v14731_v12  ;;  %1033 = vmatpush1.bf16.msra.mxu1 %v14734_v13  ;;  %v1164_v12 = vld [vmem:[#allocation8 + $0x248] sm:$0xff]  ;;  %v14815_v13 = vld [vmem:[#allocation2 + $0x8] ss:$16 sps:$4 sm:$0xff]  }
  0xa5   :  { %948 = vmatprep.subr.bf16.mxu0 %v14739_v14  ;;  %1034 = vmatprep.subr.bf16.mxu1 %v14742_v15  ;;  %v12864_v14 = vcombine.low %v1091_v1, %v1115_v2  ;;  %v12866_v15 = vcombine.low %v1092_v3, %v1116_v4  ;;  %v1475_v2 = vld [vmem:[#allocation8 + $0xc00] sm:$0xff]  ;;  %v1476_v4 = vld [vmem:[#allocation8 + $0xc08] sm:$0xff] }
  0xa6   :  { %v1499_v3 = vld [vmem:[#allocation8 + $0xcc0] sm:$0xff] }
  0xa8   :  { %949 = vmatpush1.bf16.msra.mxu0 %v14737_v16  ;;  %1035 = vmatpush1.bf16.msra.mxu1 %v14740_v17  ;;  %v12913_v16 = vcombine.high %v1139_v9, %v1163_v10  ;;  %v12915_v17 = vcombine.high %v1140_v11, %v1164_v12 }
  0xa9   :  { %950 = vmatprep.subr.bf16.mxu0 %v14745_v18  ;;  %1036 = vmatprep.subr.bf16.mxu1 %v14748_v19  ;;  %v1187_v18 = vld [vmem:[#allocation8 + $0x300] sm:$0xff] }
  0xaa   :  { %v1211_v19 = vld [vmem:[#allocation8 + $0x3c0] sm:$0xff] }
  0xac   :  { %951 = vmatpush1.bf16.msra.mxu0 %v14743_v20  ;;  %1037 = vmatpush1.bf16.msra.mxu1 %v14746_v21  ;;  %v1188_v20 = vld [vmem:[#allocation8 + $0x308] sm:$0xff] }
  0xad   :  { %952 = vmatprep.subr.bf16.mxu0 %v14751_v22  ;;  %1038 = vmatprep.subr.bf16.mxu1 %v14754_v23  ;;  %v1212_v21 = vld [vmem:[#allocation8 + $0x3c8] sm:$0xff]  ;;  %v12912_v22 = vcombine.low %v1139_v9, %v1163_v10  ;;  %v12914_v23 = vcombine.low %v1140_v11, %v1164_v12  ;;  %v1523_v10 = vld [vmem:[#allocation8 + $0xd80] sm:$0xff] }
  0xae   :  { %v1547_v11 = vld [vmem:[#allocation8 + $0xe40] sm:$0xff]  ;;  %v1524_v12 = vld [vmem:[#allocation8 + $0xd88] sm:$0xff] }
  0xb0   :  { %953 = vmatpush1.bf16.msra.mxu0 %v14749_v24  ;;  %1039 = vmatpush1.bf16.msra.mxu1 %v14752_v25  ;;  %v12961_v24 = vcombine.high %v1187_v18, %v1211_v19  ;;  %v12963_v25 = vcombine.high %v1188_v20, %v1212_v21 }
  0xb1   :  { %954 = vmatprep.subr.bf16.mxu0 %v14757_v26  ;;  %1040 = vmatprep.subr.bf16.mxu1 %v14760_v27  ;;  %v1235_v26 = vld [vmem:[#allocation8 + $0x480] sm:$0xff] }
  0xb2   :  { %v1259_v27 = vld [vmem:[#allocation8 + $0x540] sm:$0xff] }
  0xb4   :  { %955 = vmatpush1.bf16.msra.mxu0 %v14755_v29  ;;  %1041 = vmatpush1.bf16.msra.mxu1 %v14758_v30  ;;  %v1260_v29 = vld [vmem:[#allocation8 + $0x548] sm:$0xff]  ;;  %v12960_v30 = vcombine.low %v1187_v18, %v1211_v19  ;;  %v1571_v18 = vld [vmem:[#allocation8 + $0xf00] sm:$0xff] }
  0xb5   :  { %956 = vmatprep.subr.bf16.mxu0 %v14763_v31  ;;  %1042 = vmatprep.subr.bf16.mxu1 %v14766_v32  ;;  %v12962_v31 = vcombine.low %v1188_v20, %v1212_v21  ;;  %v13009_v32 = vcombine.high %v1235_v26, %v1259_v27  ;;  %v1595_v19 = vld [vmem:[#allocation8 + $0xfc0] sm:$0xff]  ;;  %v1572_v20 = vld [vmem:[#allocation8 + $0xf08] sm:$0xff] }
  0xb6   :  { %v1596_v21 = vld [vmem:[#allocation8 + $0xfc8] sm:$0xff] }
  0xb8   :  { %957 = vmatpush1.bf16.msra.mxu0 %v14761_v33  ;;  %1043 = vmatpush1.bf16.msra.mxu1 %v14764_v34  ;;  %v13011_v33 = vcombine.high %v1236_v28, %v1260_v29  ;;  %v1283_v34 = vld [vmem:[#allocation8 + $0x600] sm:$0xff] }
  0xb9   :  { %958 = vmatprep.subr.bf16.mxu0 %v14769_v35  ;;  %1044 = vmatprep.subr.bf16.mxu1 %v14772_v36  ;;  %v1307_v35 = vld [vmem:[#allocation8 + $0x6c0] sm:$0xff]  ;;  %v1284_v36 = vld [vmem:[#allocation8 + $0x608] sm:$0xff] }
  0xbc   :  { %959 = vmatpush1.bf16.msra.mxu0 %v14767_v37  ;;  %1045 = vmatpush1.bf16.msra.mxu1 %v14770_v38  ;;  %v1308_v37 = vld [vmem:[#allocation8 + $0x6c8] sm:$0xff]  ;;  %v13008_v38 = vcombine.low %v1235_v26, %v1259_v27  ;;  %v1619_v26 = vld [vmem:[#allocation8 + $0x1080] sm:$0xff] }
  0xbd   :  { %960 = vmatprep.subr.bf16.mxu0 %v14775_v39  ;;  %1046 = vmatprep.subr.bf16.mxu1 %v14778_v40  ;;  %v13010_v39 = vcombine.low %v1236_v28, %v1260_v29  ;;  %v13057_v40 = vcombine.high %v1283_v34, %v1307_v35  ;;  %v1643_v27 = vld [vmem:[#allocation8 + $0x1140] sm:$0xff]  ;;  %v1620_v28 = vld [vmem:[#allocation8 + $0x1088] sm:$0xff] }
  0xbe   :  { %v1644_v29 = vld [vmem:[#allocation8 + $0x1148] sm:$0xff] }
  0xc0   :  { %961 = vmatpush1.bf16.msra.mxu0 %v14773_v41  ;;  %1047 = vmatpush1.bf16.msra.mxu1 %v14776_v42  ;;  %v13059_v41 = vcombine.high %v1284_v36, %v1308_v37  ;;  %v1331_v42 = vld [vmem:[#allocation8 + $0x780] sm:$0xff] }
  0xc1   :  { %962 = vmatprep.subr.bf16.mxu0 %v14781_v43  ;;  %1048 = vmatprep.subr.bf16.mxu1 %v14784_v44  ;;  %v1355_v43 = vld [vmem:[#allocation8 + $0x840] sm:$0xff]  ;;  %v1332_v44 = vld [vmem:[#allocation8 + $0x788] sm:$0xff] }
  0xc4   :  { %963 = vmatpush1.bf16.msra.mxu0 %v14779_v45  ;;  %1049 = vmatpush1.bf16.msra.mxu1 %v14782_v46  ;;  %v1356_v45 = vld [vmem:[#allocation8 + $0x848] sm:$0xff]  ;;  %v13056_v46 = vcombine.low %v1283_v34, %v1307_v35  ;;  %v13392_v34 = vcombine.low %v1619_v26, %v1643_v27  ;;  %v13394_v35 = vcombine.low %v1620_v28, %v1644_v29 }
  0xc5   :  { %964 = vmatprep.subr.bf16.mxu0 %v14787_v47  ;;  %1050 = vmatprep.subr.bf16.mxu1 %v14790_v48  ;;  %v13058_v47 = vcombine.low %v1284_v36, %v1308_v37  ;;  %v13105_v48 = vcombine.high %v1331_v42, %v1355_v43  ;;  %v1667_v36 = vld [vmem:[#allocation8 + $0x1200] sm:$0xff] }
  0xc6   :  { %v1691_v37 = vld [vmem:[#allocation8 + $0x12c0] sm:$0xff] }
  0xc8   :  { %965 = vmatpush1.bf16.msra.mxu0 %v14785_v49  ;;  %1051 = vmatpush1.bf16.msra.mxu1 %v14788_v50  ;;  %v13107_v49 = vcombine.high %v1332_v44, %v1356_v45  ;;  %v1379_v50 = vld [vmem:[#allocation8 + $0x900] sm:$0xff] }
  0xc9   :  { %966 = vmatprep.subr.bf16.mxu0 %v14793_v51  ;;  %1052 = vmatprep.subr.bf16.mxu1 %v14796_v52  ;;  %v1403_v51 = vld [vmem:[#allocation8 + $0x9c0] sm:$0xff]  ;;  %v1380_v52 = vld [vmem:[#allocation8 + $0x908] sm:$0xff] }
  0xcc   :  { %967 = vmatpush1.bf16.msra.mxu0 %v14791_v53  ;;  %1053 = vmatpush1.bf16.msra.mxu1 %v14794_v54  ;;  %v1404_v53 = vld [vmem:[#allocation8 + $0x9c8] sm:$0xff]  ;;  %v13104_v54 = vcombine.low %v1331_v42, %v1355_v43 }
  0xcd   :  { %968 = vmatprep.subr.bf16.mxu0 %v14799_v55  ;;  %1054 = vmatprep.subr.bf16.mxu1 %v14802_v56  ;;  %v13106_v55 = vcombine.low %v1332_v44, %v1356_v45  ;;  %v13153_v56 = vcombine.high %v1379_v50, %v1403_v51  ;;  %v1715_v44 = vld [vmem:[#allocation8 + $0x1380] sm:$0xff] }
  0xce   :  { %v1739_v45 = vld [vmem:[#allocation8 + $0x1440] sm:$0xff] }
  0xd0   :  { %969 = vmatpush1.bf16.msra.mxu0 %v14797_v57  ;;  %1055 = vmatpush1.bf16.msra.mxu1 %v14800_v58  ;;  %v13155_v57 = vcombine.high %v1380_v52, %v1404_v53  ;;  %v1427_v58 = vld [vmem:[#allocation8 + $0xa80] sm:$0xff] }
  0xd1   :  { %970 = vmatprep.subr.bf16.mxu0 %v14805_v59  ;;  %1056 = vmatprep.subr.bf16.mxu1 %v14808_v60  ;;  %v1451_v59 = vld [vmem:[#allocation8 + $0xb40] sm:$0xff]  ;;  %v1428_v60 = vld [vmem:[#allocation8 + $0xa88] sm:$0xff] }
  0xd4   :  { %971 = vmatpush1.bf16.msra.mxu0 %v14803_v61  ;;  %1057 = vmatpush1.bf16.msra.mxu1 %v14806_v62  ;;  %v1452_v61 = vld [vmem:[#allocation8 + $0xb48] sm:$0xff]  ;;  %v13152_v62 = vcombine.low %v1379_v50, %v1403_v51 }
  0xd5   :  { %972 = vmatprep.subr.bf16.mxu0 %v14811_v63  ;;  %1058 = vmatprep.subr.bf16.mxu1 %v14814_v0  ;;  %v13154_v63 = vcombine.low %v1380_v52, %v1404_v53  ;;  %v13201_v0 = vcombine.high %v1427_v58, %v1451_v59  ;;  %v13203_v1 = vcombine.high %v1428_v60, %v1452_v61  ;;  %v1763_v52 = vld [vmem:[#allocation8 + $0x1500] sm:$0xff] }
  0xd6   :  { %v1787_v53 = vld [vmem:[#allocation8 + $0x15c0] sm:$0xff] }
  0xd8   :  { %973 = vmatpush1.bf16.msra.mxu0 %v14809_v5  ;;  %1059 = vmatpush1.bf16.msra.mxu1 %v14812_v6  ;;  %v1500_v5 = vld [vmem:[#allocation8 + $0xcc8] sm:$0xff]  ;;  %v13200_v6 = vcombine.low %v1427_v58, %v1451_v59 }
  0xd9   :  { %10553 = vmatprep.subr.bf16.mxu0 %v12865_v7  ;;  %10639 = vmatprep.subr.bf16.mxu1 %v12867_v8  ;;  %v13202_v7 = vcombine.low %v1428_v60, %v1452_v61  ;;  %v13249_v8 = vcombine.high %v1475_v2, %v1499_v3  ;;  %v13251_v9 = vcombine.high %v1476_v4, %v1500_v5  ;;  %v1811_v60 = vld [vmem:[#allocation8 + $0x1680] sm:$0xff] }
  0xda   :  { %v1835_v61 = vld [vmem:[#allocation8 + $0x1740] sm:$0xff] }
  0xdb   :  { %975 = vmatmul.mubr.bf16.vlgmr.msra.gmra.mrb[0].mxu0 %v14815_v13  ;;  %1061 = vmatmul.mubr.bf16.vlgmr.msra.gmra.mrb[0].mxu1 %v14815_v13  ;;  %v1548_v13 = vld [vmem:[#allocation8 + $0xe48] sm:$0xff] }
  0xdc   :  { %10554 = vmatpush1.bf16.msra.mxu0 %v12864_v14  ;;  %10640 = vmatpush1.bf16.msra.mxu1 %v12866_v15  ;;  %v13248_v14 = vcombine.low %v1475_v2, %v1499_v3  ;;  %v13250_v15 = vcombine.low %v1476_v4, %v1500_v5  ;;  %v15089_v4 = vld [vmem:[#allocation8 + $0x1800] sm:$0xff] }
  0xdd   :  { %10555 = vmatprep.subr.bf16.mxu0 %v12913_v16  ;;  %10641 = vmatprep.subr.bf16.mxu1 %v12915_v17  ;;  %v13297_v16 = vcombine.high %v1523_v10, %v1547_v11  ;;  %v13299_v17 = vcombine.high %v1524_v12, %v1548_v13  ;;  %v15091_v5 = vld [vmem:[#allocation8 + $0x18c0] sm:$0xff] }
  0xe0   :  { %10556 = vmatpush1.bf16.msra.mxu0 %v12912_v22  ;;  %10642 = vmatpush1.bf16.msra.mxu1 %v12914_v23  ;;  %v13296_v22 = vcombine.low %v1523_v10, %v1547_v11  ;;  %v13298_v23 = vcombine.low %v1524_v12, %v1548_v13  ;;  %v219_v12 = vlaneseq }
  0xe1   :  { %10557 = vmatprep.subr.bf16.mxu0 %v12961_v24  ;;  %10643 = vmatprep.subr.bf16.mxu1 %v12963_v25  ;;  %v13345_v24 = vcombine.high %v1571_v18, %v1595_v19  ;;  %v13347_v25 = vcombine.high %v1572_v20, %v1596_v21 }
  0xe2   :  { %v15105_v13 = vshrl.u32 %v219_v12, 7  ;;  %v2076_v12 = vld [vmem:[#allocation8 + $0x1ec8] sm:$0xff] }
  0xe4   :  { %10558 = vmatpush1.bf16.msra.mxu0 %v12960_v30  ;;  %10644 = vmatpush1.bf16.msra.mxu1 %v12962_v31  ;;  %v13344_v30 = vcombine.low %v1571_v18, %v1595_v19  ;;  %v13346_v31 = vcombine.low %v1572_v20, %v1596_v21  ;;  %v15117_v18 = vsub.s32 3, %v15105_v13 }
  0xe5   :  { %10559 = vmatprep.subr.bf16.mxu0 %v13009_v32  ;;  %10645 = vmatprep.subr.bf16.mxu1 %v13011_v33  ;;  %v13393_v32 = vcombine.high %v1619_v26, %v1643_v27  ;;  %v13395_v33 = vcombine.high %v1620_v28, %v1644_v29 }
  0xe8   :  { %10560 = vmatpush1.bf16.msra.mxu0 %v13008_v38  ;;  %10646 = vmatpush1.bf16.msra.mxu1 %v13010_v39  ;;  %v1668_v38 = vld [vmem:[#allocation8 + $0x1208] sm:$0xff]  ;;  %v13441_v39 = vcombine.high %v1667_v36, %v1691_v37 }
  0xe9   :  { %10561 = vmatprep.subr.bf16.mxu0 %v13057_v40  ;;  %10647 = vmatprep.subr.bf16.mxu1 %v13059_v41  ;;  %v1692_v40 = vld [vmem:[#allocation8 + $0x12c8] sm:$0xff]  ;;  %v13440_v41 = vcombine.low %v1667_v36, %v1691_v37 }
  0xea   :  { %v13442_v42 = vcombine.low %v1668_v38, %v1692_v40  ;;  %v13443_v43 = vcombine.high %v1668_v38, %v1692_v40 }
  0xec   :  { %10562 = vmatpush1.bf16.msra.mxu0 %v13056_v46  ;;  %10648 = vmatpush1.bf16.msra.mxu1 %v13058_v47  ;;  %v1716_v46 = vld [vmem:[#allocation8 + $0x1388] sm:$0xff]  ;;  %v13489_v47 = vcombine.high %v1715_v44, %v1739_v45 }
  0xed   :  { %10563 = vmatprep.subr.bf16.mxu0 %v13105_v48  ;;  %10649 = vmatprep.subr.bf16.mxu1 %v13107_v49  ;;  %v1740_v48 = vld [vmem:[#allocation8 + $0x1448] sm:$0xff]  ;;  %v13488_v49 = vcombine.low %v1715_v44, %v1739_v45 }
  0xee   :  { %v13490_v50 = vcombine.low %v1716_v46, %v1740_v48  ;;  %v13491_v51 = vcombine.high %v1716_v46, %v1740_v48  ;;  %v1907_v46 = vld [vmem:[#allocation8 + $0x1980] sm:$0xff] }
  0xf0   :  { %10564 = vmatpush1.bf16.msra.mxu0 %v13104_v54  ;;  %10650 = vmatpush1.bf16.msra.mxu1 %v13106_v55  ;;  %v1764_v54 = vld [vmem:[#allocation8 + $0x1508] sm:$0xff]  ;;  %v13537_v55 = vcombine.high %v1763_v52, %v1787_v53 }
  0xf1   :  { %10565 = vmatprep.subr.bf16.mxu0 %v13153_v56  ;;  %10651 = vmatprep.subr.bf16.mxu1 %v13155_v57  ;;  %v1788_v56 = vld [vmem:[#allocation8 + $0x15c8] sm:$0xff]  ;;  %v13536_v57 = vcombine.low %v1763_v52, %v1787_v53 }
  0xf2   :  { %v13538_v58 = vcombine.low %v1764_v54, %v1788_v56  ;;  %v13539_v59 = vcombine.high %v1764_v54, %v1788_v56 }
  0xf4   :  { %10566 = vmatpush1.bf16.msra.mxu0 %v13152_v62  ;;  %10652 = vmatpush1.bf16.msra.mxu1 %v13154_v63  ;;  %v1812_v62 = vld [vmem:[#allocation8 + $0x1688] sm:$0xff]  ;;  %v13585_v63 = vcombine.high %v1811_v60, %v1835_v61 }
  0xf5   :  { %10567 = vmatprep.subr.bf16.mxu0 %v13201_v0  ;;  %10653 = vmatprep.subr.bf16.mxu1 %v13203_v1  ;;  %v1836_v0 = vld [vmem:[#allocation8 + $0x1748] sm:$0xff]  ;;  %v13584_v1 = vcombine.low %v1811_v60, %v1835_v61 }
  0xf6   :  { %v13586_v2 = vcombine.low %v1812_v62, %v1836_v0  ;;  %v13587_v3 = vcombine.high %v1812_v62, %v1836_v0  ;;  %v1980_v60 = vld [vmem:[#allocation8 + $0x1bc8] sm:$0xff] }
  0xf8   :  { %10568 = vmatpush1.bf16.msra.mxu0 %v13200_v6  ;;  %10654 = vmatpush1.bf16.msra.mxu1 %v13202_v7  ;;  %v15093_v6 = vld [vmem:[#allocation8 + $0x1808] sm:$0xff]  ;;  %v13633_v7 = vcombine.high %v15089_v4, %v15091_v5 }
  0xf9   :  { %10569 = vmatprep.subr.bf16.mxu0 %v13249_v8  ;;  %10655 = vmatprep.subr.bf16.mxu1 %v13251_v9  ;;  %v15097_v8 = vld [vmem:[#allocation8 + $0x18c8] sm:$0xff]  ;;  %v13632_v9 = vcombine.low %v15089_v4, %v15091_v5 }
  0xfa   :  { %v13634_v10 = vcombine.low %v15093_v6, %v15097_v8  ;;  %v13635_v11 = vcombine.high %v15093_v6, %v15097_v8 }
  0xfc   :  { %10570 = vmatpush1.bf16.msra.mxu0 %v13248_v14  ;;  %10656 = vmatpush1.bf16.msra.mxu1 %v13250_v15  ;;  %v15108_v14 = vsub.s32 0, %v15105_v13  ;;  %v15111_v15 = vsub.s32 2, %v15105_v13 }
  0xfd   :  { %10571 = vmatprep.subr.bf16.mxu0 %v13297_v16  ;;  %10657 = vmatprep.subr.bf16.mxu1 %v13299_v17  ;;  %v217_v16 = vld [vmem:[#allocation7] sm:$0xf]  ;;  %v15114_v17 = vsub.s32 1, %v15105_v13 }
  0xfe   :  { %v222_v19 = vrot.slane %v217_v16, %v15108_v14  ;;  %v230_v20 = vrot.slane %v217_v16, %v15111_v15 }
  0xff   :  { %v226_v21 = vrot.slane %v217_v16, %v15114_v17 }
 0x100   :  { %10572 = vmatpush1.bf16.msra.mxu0 %v13296_v22  ;;  %10658 = vmatpush1.bf16.msra.mxu1 %v13298_v23  ;;  %v234_v22 = vrot.slane %v217_v16, %v15117_v18 }
 0x101   :  { %10573 = vmatprep.subr.bf16.mxu0 %v13345_v24  ;;  %10659 = vmatprep.subr.bf16.mxu1 %v13347_v25 }
 0x104   :  { %10574 = vmatpush1.bf16.msra.mxu0 %v13344_v30  ;;  %10660 = vmatpush1.bf16.msra.mxu1 %v13346_v31 }
 0x105   :  { %10575 = vmatprep.subr.bf16.mxu0 %v13393_v32  ;;  %10661 = vmatprep.subr.bf16.mxu1 %v13395_v33 }
 0x108   :  { %10576 = vmatpush1.bf16.msra.mxu0 %v13392_v34  ;;  %10662 = vmatpush1.bf16.msra.mxu1 %v13394_v35 }
 0x109   :  { %10577 = vmatprep.subr.bf16.mxu0 %v13441_v39  ;;  %10663 = vmatprep.subr.bf16.mxu1 %v13443_v43 }
 0x10c   :  { %10578 = vmatpush1.bf16.msra.mxu0 %v13440_v41  ;;  %10664 = vmatpush1.bf16.msra.mxu1 %v13442_v42 }
 0x10d   :  { %10579 = vmatprep.subr.bf16.mxu0 %v13489_v47  ;;  %10665 = vmatprep.subr.bf16.mxu1 %v13491_v51  ;;  %v1932_v51 = vld [vmem:[#allocation8 + $0x1a48] sm:$0xff] }
 0x110   :  { %10580 = vmatpush1.bf16.msra.mxu0 %v13488_v49  ;;  %10666 = vmatpush1.bf16.msra.mxu1 %v13490_v50  ;;  %v1931_v49 = vld [vmem:[#allocation8 + $0x1a40] sm:$0xff]  ;;  %v1908_v50 = vld [vmem:[#allocation8 + $0x1988] sm:$0xff] }
 0x111   :  { %10581 = vmatprep.subr.bf16.mxu0 %v13537_v55  ;;  %10667 = vmatprep.subr.bf16.mxu1 %v13539_v59  ;;  %v1955_v55 = vld [vmem:[#allocation8 + $0x1b00] sm:$0xff]  ;;  %v13681_v56 = vcombine.high %v1907_v46, %v1931_v49  ;;  %v1956_v59 = vld [vmem:[#allocation8 + $0x1b08] sm:$0xff]  ;;  %v13680_v61 = vcombine.low %v1907_v46, %v1931_v49  ;;  %v13682_v62 = vcombine.low %v1908_v50, %v1932_v51 }
 0x112   :  { %v13731_v0 = vcombine.high %v1956_v59, %v1980_v60  ;;  %v13730_v5 = vcombine.low %v1956_v59, %v1980_v60  ;;  %v2267_v49 = vld [vmem:[#allocation8 + $0x24c0] sm:$0xff]  ;;  %v2292_v60 = vld [vmem:[#allocation8 + $0x2588] sm:$0xff] }
 0x113   :  { %v2315_v59 = vld [vmem:[#allocation8 + $0x2640] sm:$0xff] }
 0x114   :  { %10582 = vmatpush1.bf16.msra.mxu0 %v13536_v57  ;;  %10668 = vmatpush1.bf16.msra.mxu1 %v13538_v58  ;;  %v13683_v57 = vcombine.high %v1908_v50, %v1932_v51  ;;  %v1979_v58 = vld [vmem:[#allocation8 + $0x1bc0] sm:$0xff]  ;;  %v2244_v50 = vld [vmem:[#allocation8 + $0x2408] sm:$0xff] }
 0x115   :  { %10583 = vmatprep.subr.bf16.mxu0 %v13585_v63  ;;  %10669 = vmatprep.subr.bf16.mxu1 %v13587_v3  ;;  %v13729_v63 = vcombine.high %v1955_v55, %v1979_v58  ;;  %v2004_v3 = vld [vmem:[#allocation8 + $0x1c88] sm:$0xff]  ;;  %v13728_v4 = vcombine.low %v1955_v55, %v1979_v58  ;;  %v2291_v58 = vld [vmem:[#allocation8 + $0x2580] sm:$0xff] }
 0x116   :  { %v2268_v51 = vld [vmem:[#allocation8 + $0x24c8] sm:$0xff] }
 0x118   :  { %10584 = vmatpush1.bf16.msra.mxu0 %v13584_v1  ;;  %10670 = vmatpush1.bf16.msra.mxu1 %v13586_v2  ;;  %v2003_v1 = vld [vmem:[#allocation8 + $0x1c80] sm:$0xff] }
 0x119   :  { %10596 = vmatprep.subr.bf16.mxu0 %v13633_v7  ;;  %10682 = vmatprep.subr.bf16.mxu1 %v13635_v11  ;;  %v2027_v2 = vld [vmem:[#allocation8 + $0x1d40] sm:$0xff]  ;;  %v2028_v7 = vld [vmem:[#allocation8 + $0x1d48] sm:$0xff] }
 0x11a   :  { %v13777_v6 = vcombine.high %v2003_v1, %v2027_v2  ;;  %v13779_v8 = vcombine.high %v2004_v3, %v2028_v7  ;;  %v2052_v11 = vld [vmem:[#allocation8 + $0x1e08] sm:$0xff]  ;;  %v13776_v16 = vcombine.low %v2003_v1, %v2027_v2  ;;  %v2339_v2 = vld [vmem:[#allocation8 + $0x2700] sm:$0xff] }
 0x1ae   :  { %v976_v23 = vpop.f32.mrb[0].mxu0  ;;  %v1062_v24 = vpop.f32.mrb[0].mxu1 }
 0x1af   :  { %v14400_v25 = vadd.f32 %v976_v23, %v222_v19  ;;  %v14404_v26 = vadd.f32 %v1062_v24, %v230_v20  ;;  %v978_v27 = vpop.f32.mrb[1].mxu0  ;;  %v1064_v28 = vpop.f32.mrb[1].mxu1  ;;  %v2123_v23 = vld [vmem:[#allocation8 + $0x2040] sm:$0xff]  ;;  %v2100_v24 = vld [vmem:[#allocation8 + $0x1f88] sm:$0xff] }
 0x1b0   :  { %v14401_v29 = vadd.f32 %v978_v27, %v226_v21  ;;  %v14405_v30 = vadd.f32 %v1064_v28, %v234_v22  ;;  %v980_v31 = vpop.f32.mrb[2].mxu0  ;;  %v1066_v32 = vpop.f32.mrb[2].mxu1  ;;  %v13826_v27 = vcombine.low %v2052_v11, %v2076_v12 }
 0x1b1   :  { %14818 = vtanh.f32 %v14400_v25  ;;  %v14402_v33 = vadd.f32 %v980_v31, %v222_v19  ;;  %v982_v34 = vpop.f32.mrb[3].mxu0  ;;  %v1068_v35 = vpop.f32.mrb[3].mxu1  ;;  %v14406_v36 = vadd.f32 %v1066_v32, %v230_v20  ;;  %v13778_v19 = vcombine.low %v2004_v3, %v2028_v7  ;;  %v2124_v25 = vld [vmem:[#allocation8 + $0x2048] sm:$0xff]  ;;  %v2171_v31 = vld [vmem:[#allocation8 + $0x21c0] sm:$0xff] }
 0x1b2   :  { %14820 = vtanh.f32 %v14404_v26  ;;  %v14403_v37 = vadd.f32 %v982_v34, %v226_v21  ;;  %v14407_v38 = vadd.f32 %v1068_v35, %v234_v22  ;;  %v13827_v21 = vcombine.high %v2052_v11, %v2076_v12  ;;  %v2099_v22 = vld [vmem:[#allocation8 + $0x1f80] sm:$0xff]  ;;  %v2148_v32 = vld [vmem:[#allocation8 + $0x2108] sm:$0xff] }
 0x1b3   :  { %14822 = vtanh.f32 %v14401_v29  ;;  %v13873_v28 = vcombine.high %v2099_v22, %v2123_v23  ;;  %v13875_v29 = vcombine.high %v2100_v24, %v2124_v25  ;;  %v13872_v34 = vcombine.low %v2099_v22, %v2123_v23  ;;  %v2363_v3 = vld [vmem:[#allocation8 + $0x27c0] sm:$0xff]  ;;  %v2340_v7 = vld [vmem:[#allocation8 + $0x2708] sm:$0xff] }
 0x1b4   :  { %14824 = vtanh.f32 %v14405_v30  ;;  %v2147_v30 = vld [vmem:[#allocation8 + $0x2100] sm:$0xff]  ;;  %v13874_v35 = vcombine.low %v2100_v24, %v2124_v25  ;;  %v2388_v12 = vld [vmem:[#allocation8 + $0x2888] sm:$0xff] }
 0x1b5   :  { %14826 = vtanh.f32 %v14402_v33  ;;  %v2172_v33 = vld [vmem:[#allocation8 + $0x21c8] sm:$0xff]  ;;  %v2411_v11 = vld [vmem:[#allocation8 + $0x2940] sm:$0xff] }
 0x1b6   :  { %14828 = vtanh.f32 %v14406_v36  ;;  %v13921_v36 = vcombine.high %v2147_v30, %v2171_v31  ;;  %v2435_v23 = vld [vmem:[#allocation8 + $0x2a00] sm:$0xff]  ;;  %v2436_v25 = vld [vmem:[#allocation8 + $0x2a08] sm:$0xff] }
 0x1b7   :  { %14830 = vtanh.f32 %v14403_v37  ;;  %v13923_v37 = vcombine.high %v2148_v32, %v2172_v33  ;;  %v2459_v24 = vld [vmem:[#allocation8 + $0x2ac0] sm:$0xff] }
 0x1b8   :  { %14832 = vtanh.f32 %v14407_v38  ;;  %v2195_v38 = vld [vmem:[#allocation8 + $0x2280] sm:$0xff] }
 0x1bb   :  { %v14819_v39 = vpop.eup %14818 }
 0x1bc   :  { %v14821_v40 = vpop.eup %14820 }
 0x1bd   :  { %v14823_v41 = vpop.eup %14822 }
 0x1be   :  { %v14825_v42 = vpop.eup %14824 }
 0x1bf   :  { %v14827_v43 = vpop.eup %14826 }
 0x1c0   :  { %v14829_v44 = vpop.eup %14828  ;;  %v15123_v45 = vpack.c.bf16 %v14827_v43, %v14819_v39  ;;  %v2219_v39 = vld [vmem:[#allocation8 + $0x2340] sm:$0xff]  ;;  %v13922_v43 = vcombine.low %v2148_v32, %v2172_v33  ;;  %v2484_v33 = vld [vmem:[#allocation8 + $0x2b88] sm:$0xff] }
 0x1c1   :  { %v14831_v47 = vpop.eup %14830  ;;  %v15125_v48 = vpack.c.bf16 %v14829_v44, %v14821_v40  ;;  %v2196_v40 = vld [vmem:[#allocation8 + $0x2288] sm:$0xff]  ;;  %v13969_v44 = vcombine.high %v2195_v38, %v2219_v39  ;;  %v2507_v32 = vld [vmem:[#allocation8 + $0x2c40] sm:$0xff] }
 0x1c2   :  { %v14833_v52 = vpop.eup %14832  ;;  %v15127_v53 = vpack.c.bf16 %v14831_v47, %v14823_v41  ;;  %v2220_v41 = vld [vmem:[#allocation8 + $0x2348] sm:$0xff]  ;;  %v2243_v47 = vld [vmem:[#allocation8 + $0x2400] sm:$0xff] }
 0x1c3   :  { %v15129_v54 = vpack.c.bf16 %v14833_v52, %v14825_v42  ;;  %v13920_v42 = vcombine.low %v2147_v30, %v2171_v31  ;;  %v13971_v46 = vcombine.high %v2196_v40, %v2220_v41  ;;  %v13968_v52 = vcombine.low %v2195_v38, %v2219_v39  ;;  %v2483_v31 = vld [vmem:[#allocation8 + $0x2b80] sm:$0xff] }
 0x1c4   :  { %10585 = vmatprep.mubr.bf16.mxu0 %v15127_v53  ;;  %10671 = vmatprep.mubr.bf16.mxu1 %v15127_v53  ;;  %v13970_v55 = vcombine.low %v2196_v40, %v2220_v41  ;;  %v2531_v39 = vld [vmem:[#allocation8 + $0x2d00] sm:$0xff]  ;;  %v2532_v41 = vld [vmem:[#allocation8 + $0x2d08] sm:$0xff] }
 0x1c5   :  { %10586 = vmatmul.mubr.bf16.vlgmr.msra.gmra.mrb[4].mxu0 %v15123_v45  ;;  %10672 = vmatmul.mubr.bf16.vlgmr.msra.gmra.mrb[4].mxu1 %v15123_v45  ;;  %v2555_v40 = vld [vmem:[#allocation8 + $0x2dc0] sm:$0xff] }
 0x1c6   :  { %10597 = vmatpush1.bf16.msra.mxu0 %v13632_v9  ;;  %10683 = vmatpush1.bf16.msra.mxu1 %v13634_v10  ;;  %v2051_v9 = vld [vmem:[#allocation8 + $0x1e00] sm:$0xff] }
 0x1c7   :  { %10628 = vmatprep.mubr.bf16.mxu0 %v15129_v54  ;;  %10714 = vmatprep.mubr.bf16.mxu1 %v15129_v54  ;;  %v2075_v10 = vld [vmem:[#allocation8 + $0x1ec0] sm:$0xff] }
 0x1c8   :  { %10598 = vmatprep.subr.bf16.mxu0 %v13681_v56  ;;  %10684 = vmatprep.subr.bf16.mxu1 %v13683_v57  ;;  %v13825_v20 = vcombine.high %v2051_v9, %v2075_v10  ;;  %v13824_v26 = vcombine.low %v2051_v9, %v2075_v10  ;;  %v14017_v56 = vcombine.high %v2243_v47, %v2267_v49  ;;  %v2387_v10 = vld [vmem:[#allocation8 + $0x2880] sm:$0xff] }
 0x1c9   :  { %v14019_v57 = vcombine.high %v2244_v50, %v2268_v51 }
 0x1ca   :  { %10599 = vmatpush1.bf16.msra.mxu0 %v13680_v61  ;;  %10685 = vmatpush1.bf16.msra.mxu1 %v13682_v62  ;;  %v2316_v61 = vld [vmem:[#allocation8 + $0x2648] sm:$0xff]  ;;  %v14016_v62 = vcombine.low %v2243_v47, %v2267_v49  ;;  %v2579_v49 = vld [vmem:[#allocation8 + $0x2e80] sm:$0xff] }
 0x1cb   :  { %10600 = vmatprep.subr.bf16.mxu0 %v13729_v63  ;;  %10686 = vmatprep.subr.bf16.mxu1 %v13731_v0  ;;  %v14018_v63 = vcombine.low %v2244_v50, %v2268_v51  ;;  %v14065_v0 = vcombine.high %v2291_v58, %v2315_v59  ;;  %v14067_v1 = vcombine.high %v2292_v60, %v2316_v61  ;;  %v2603_v50 = vld [vmem:[#allocation8 + $0x2f40] sm:$0xff]  ;;  %v2580_v51 = vld [vmem:[#allocation8 + $0x2e88] sm:$0xff] }
 0x1ce   :  { %10601 = vmatpush1.bf16.msra.mxu0 %v13728_v4  ;;  %10687 = vmatpush1.bf16.msra.mxu1 %v13730_v5  ;;  %v2364_v4 = vld [vmem:[#allocation8 + $0x27c8] sm:$0xff]  ;;  %v14064_v5 = vcombine.low %v2291_v58, %v2315_v59  ;;  %v1093_v59 = vld [vmem:[#allocation8 + $0x10] sm:$0xff] }
 0x1cf   :  { %10602 = vmatprep.subr.bf16.mxu0 %v13777_v6  ;;  %10688 = vmatprep.subr.bf16.mxu1 %v13779_v8  ;;  %v14066_v6 = vcombine.low %v2292_v60, %v2316_v61  ;;  %v14113_v8 = vcombine.high %v2339_v2, %v2363_v3  ;;  %v14115_v9 = vcombine.high %v2340_v7, %v2364_v4  ;;  %v1117_v60 = vld [vmem:[#allocation8 + $0xd0] sm:$0xff]  ;;  %v1094_v61 = vld [vmem:[#allocation8 + $0x18] sm:$0xff] }
 0x1d2   :  { %10603 = vmatpush1.bf16.msra.mxu0 %v13776_v16  ;;  %10689 = vmatpush1.bf16.msra.mxu1 %v13778_v19  ;;  %v2412_v16 = vld [vmem:[#allocation8 + $0x2948] sm:$0xff]  ;;  %v14112_v19 = vcombine.low %v2339_v2, %v2363_v3  ;;  %v1141_v3 = vld [vmem:[#allocation8 + $0x190] sm:$0xff] }
 0x1d3   :  { %10604 = vmatprep.subr.bf16.mxu0 %v13825_v20  ;;  %10690 = vmatprep.subr.bf16.mxu1 %v13827_v21  ;;  %v14114_v20 = vcombine.low %v2340_v7, %v2364_v4  ;;  %v14161_v21 = vcombine.high %v2387_v10, %v2411_v11  ;;  %v14163_v22 = vcombine.high %v2388_v12, %v2412_v16  ;;  %v1165_v7 = vld [vmem:[#allocation8 + $0x250] sm:$0xff]  ;;  %v1142_v4 = vld [vmem:[#allocation8 + $0x198] sm:$0xff] }
 0x1d6   :  { %10605 = vmatpush1.bf16.msra.mxu0 %v13824_v26  ;;  %10691 = vmatpush1.bf16.msra.mxu1 %v13826_v27  ;;  %v2460_v26 = vld [vmem:[#allocation8 + $0x2ac8] sm:$0xff]  ;;  %v14160_v27 = vcombine.low %v2387_v10, %v2411_v11  ;;  %v1189_v11 = vld [vmem:[#allocation8 + $0x310] sm:$0xff] }
 0x1d7   :  { %10606 = vmatprep.subr.bf16.mxu0 %v13873_v28  ;;  %10692 = vmatprep.subr.bf16.mxu1 %v13875_v29  ;;  %v14162_v28 = vcombine.low %v2388_v12, %v2412_v16  ;;  %v14209_v29 = vcombine.high %v2435_v23, %v2459_v24  ;;  %v14211_v30 = vcombine.high %v2436_v25, %v2460_v26  ;;  %v1213_v12 = vld [vmem:[#allocation8 + $0x3d0] sm:$0xff]  ;;  %v1190_v16 = vld [vmem:[#allocation8 + $0x318] sm:$0xff] }
 0x1da   :  { %10607 = vmatpush1.bf16.msra.mxu0 %v13872_v34  ;;  %10693 = vmatpush1.bf16.msra.mxu1 %v13874_v35  ;;  %v2508_v34 = vld [vmem:[#allocation8 + $0x2c48] sm:$0xff]  ;;  %v14208_v35 = vcombine.low %v2435_v23, %v2459_v24  ;;  %v1237_v24 = vld [vmem:[#allocation8 + $0x490] sm:$0xff] }
 0x1db   :  { %10608 = vmatprep.subr.bf16.mxu0 %v13921_v36  ;;  %10694 = vmatprep.subr.bf16.mxu1 %v13923_v37  ;;  %v14210_v36 = vcombine.low %v2436_v25, %v2460_v26  ;;  %v14257_v37 = vcombine.high %v2483_v31, %v2507_v32  ;;  %v14259_v38 = vcombine.high %v2484_v33, %v2508_v34  ;;  %v1261_v25 = vld [vmem:[#allocation8 + $0x550] sm:$0xff]  ;;  %v1238_v26 = vld [vmem:[#allocation8 + $0x498] sm:$0xff] }
 0x1de   :  { %10609 = vmatpush1.bf16.msra.mxu0 %v13920_v42  ;;  %10695 = vmatpush1.bf16.msra.mxu1 %v13922_v43  ;;  %v2556_v42 = vld [vmem:[#allocation8 + $0x2dc8] sm:$0xff]  ;;  %v14256_v43 = vcombine.low %v2483_v31, %v2507_v32  ;;  %v1285_v32 = vld [vmem:[#allocation8 + $0x610] sm:$0xff] }
 0x1df   :  { %10610 = vmatprep.subr.bf16.mxu0 %v13969_v44  ;;  %10696 = vmatprep.subr.bf16.mxu1 %v13971_v46  ;;  %v14258_v44 = vcombine.low %v2484_v33, %v2508_v34  ;;  %v14305_v46 = vcombine.high %v2531_v39, %v2555_v40  ;;  %v14307_v47 = vcombine.high %v2532_v41, %v2556_v42  ;;  %v1309_v33 = vld [vmem:[#allocation8 + $0x6d0] sm:$0xff]  ;;  %v1286_v34 = vld [vmem:[#allocation8 + $0x618] sm:$0xff] }
 0x1e2   :  { %10611 = vmatpush1.bf16.msra.mxu0 %v13968_v52  ;;  %10697 = vmatpush1.bf16.msra.mxu1 %v13970_v55  ;;  %v2604_v52 = vld [vmem:[#allocation8 + $0x2f48] sm:$0xff]  ;;  %v14304_v55 = vcombine.low %v2531_v39, %v2555_v40  ;;  %v1333_v40 = vld [vmem:[#allocation8 + $0x790] sm:$0xff] }
 0x1e3   :  { %10612 = vmatprep.subr.bf16.mxu0 %v14017_v56  ;;  %10698 = vmatprep.subr.bf16.mxu1 %v14019_v57  ;;  %v14306_v56 = vcombine.low %v2532_v41, %v2556_v42  ;;  %v14353_v57 = vcombine.high %v2579_v49, %v2603_v50  ;;  %v14355_v58 = vcombine.high %v2580_v51, %v2604_v52  ;;  %v1357_v41 = vld [vmem:[#allocation8 + $0x850] sm:$0xff]  ;;  %v1334_v42 = vld [vmem:[#allocation8 + $0x798] sm:$0xff] }
 0x1e6   :  { %10613 = vmatpush1.bf16.msra.mxu0 %v14016_v62  ;;  %10699 = vmatpush1.bf16.msra.mxu1 %v14018_v63  ;;  %v1118_v62 = vld [vmem:[#allocation8 + $0xd8] sm:$0xff]  ;;  %v14352_v63 = vcombine.low %v2579_v49, %v2603_v50  ;;  %v1381_v50 = vld [vmem:[#allocation8 + $0x910] sm:$0xff] }
 0x1e7   :  { %10614 = vmatprep.subr.bf16.mxu0 %v14065_v0  ;;  %10700 = vmatprep.subr.bf16.mxu1 %v14067_v1  ;;  %v14354_v0 = vcombine.low %v2580_v51, %v2604_v52  ;;  %v12869_v1 = vcombine.high %v1093_v59, %v1117_v60  ;;  %v12871_v2 = vcombine.high %v1094_v61, %v1118_v62  ;;  %v1405_v51 = vld [vmem:[#allocation8 + $0x9d0] sm:$0xff]  ;;  %v1382_v52 = vld [vmem:[#allocation8 + $0x918] sm:$0xff] }
 0x1ea   :  { %10615 = vmatpush1.bf16.msra.mxu0 %v14064_v5  ;;  %10701 = vmatpush1.bf16.msra.mxu1 %v14066_v6  ;;  %v1166_v5 = vld [vmem:[#allocation8 + $0x258] sm:$0xff]  ;;  %v12868_v6 = vcombine.low %v1093_v59, %v1117_v60  ;;  %v1429_v60 = vld [vmem:[#allocation8 + $0xa90] sm:$0xff] }
 0x1eb   :  { %10616 = vmatprep.subr.bf16.mxu0 %v14113_v8  ;;  %10702 = vmatprep.subr.bf16.mxu1 %v14115_v9  ;;  %v12870_v8 = vcombine.low %v1094_v61, %v1118_v62  ;;  %v12917_v9 = vcombine.high %v1141_v3, %v1165_v7  ;;  %v12919_v10 = vcombine.high %v1142_v4, %v1166_v5  ;;  %v1453_v61 = vld [vmem:[#allocation8 + $0xb50] sm:$0xff]  ;;  %v1430_v62 = vld [vmem:[#allocation8 + $0xa98] sm:$0xff] }
 0x1ee   :  { %10617 = vmatpush1.bf16.msra.mxu0 %v14112_v19  ;;  %10703 = vmatpush1.bf16.msra.mxu1 %v14114_v20  ;;  %v1214_v19 = vld [vmem:[#allocation8 + $0x3d8] sm:$0xff]  ;;  %v12916_v20 = vcombine.low %v1141_v3, %v1165_v7  ;;  %v1477_v7 = vld [vmem:[#allocation8 + $0xc10] sm:$0xff] }
 0x1ef   :  { %10618 = vmatprep.subr.bf16.mxu0 %v14161_v21  ;;  %10704 = vmatprep.subr.bf16.mxu1 %v14163_v22  ;;  %v12918_v21 = vcombine.low %v1142_v4, %v1166_v5  ;;  %v12965_v22 = vcombine.high %v1189_v11, %v1213_v12  ;;  %v12967_v23 = vcombine.high %v1190_v16, %v1214_v19  ;;  %v1501_v4 = vld [vmem:[#allocation8 + $0xcd0] sm:$0xff]  ;;  %v1478_v5 = vld [vmem:[#allocation8 + $0xc18] sm:$0xff] }
 0x1f2   :  { %10619 = vmatpush1.bf16.msra.mxu0 %v14160_v27  ;;  %10705 = vmatpush1.bf16.msra.mxu1 %v14162_v28  ;;  %v1262_v27 = vld [vmem:[#allocation8 + $0x558] sm:$0xff]  ;;  %v12964_v28 = vcombine.low %v1189_v11, %v1213_v12  ;;  %v1525_v12 = vld [vmem:[#allocation8 + $0xd90] sm:$0xff] }
 0x1f3   :  { %10620 = vmatprep.subr.bf16.mxu0 %v14209_v29  ;;  %10706 = vmatprep.subr.bf16.mxu1 %v14211_v30  ;;  %v12966_v29 = vcombine.low %v1190_v16, %v1214_v19  ;;  %v13013_v30 = vcombine.high %v1237_v24, %v1261_v25  ;;  %v13015_v31 = vcombine.high %v1238_v26, %v1262_v27  ;;  %v1549_v16 = vld [vmem:[#allocation8 + $0xe50] sm:$0xff]  ;;  %v1526_v19 = vld [vmem:[#allocation8 + $0xd98] sm:$0xff] }
 0x1f6   :  { %10621 = vmatpush1.bf16.msra.mxu0 %v14208_v35  ;;  %10707 = vmatpush1.bf16.msra.mxu1 %v14210_v36  ;;  %v1310_v35 = vld [vmem:[#allocation8 + $0x6d8] sm:$0xff]  ;;  %v13012_v36 = vcombine.low %v1237_v24, %v1261_v25  ;;  %v1573_v25 = vld [vmem:[#allocation8 + $0xf10] sm:$0xff] }
 0x1f7   :  { %10622 = vmatprep.subr.bf16.mxu0 %v14257_v37  ;;  %10708 = vmatprep.subr.bf16.mxu1 %v14259_v38  ;;  %v13014_v37 = vcombine.low %v1238_v26, %v1262_v27  ;;  %v13061_v38 = vcombine.high %v1285_v32, %v1309_v33  ;;  %v13063_v39 = vcombine.high %v1286_v34, %v1310_v35  ;;  %v1597_v26 = vld [vmem:[#allocation8 + $0xfd0] sm:$0xff]  ;;  %v1574_v27 = vld [vmem:[#allocation8 + $0xf18] sm:$0xff] }
 0x1fa   :  { %10623 = vmatpush1.bf16.msra.mxu0 %v14256_v43  ;;  %10709 = vmatpush1.bf16.msra.mxu1 %v14258_v44  ;;  %v1358_v43 = vld [vmem:[#allocation8 + $0x858] sm:$0xff]  ;;  %v13060_v44 = vcombine.low %v1285_v32, %v1309_v33  ;;  %v1621_v33 = vld [vmem:[#allocation8 + $0x1090] sm:$0xff] }
 0x1fb   :  { %10624 = vmatprep.subr.bf16.mxu0 %v14305_v46  ;;  %10710 = vmatprep.subr.bf16.mxu1 %v14307_v47  ;;  %v13062_v46 = vcombine.low %v1286_v34, %v1310_v35  ;;  %v13109_v47 = vcombine.high %v1333_v40, %v1357_v41  ;;  %v13111_v49 = vcombine.high %v1334_v42, %v1358_v43  ;;  %v1645_v34 = vld [vmem:[#allocation8 + $0x1150] sm:$0xff]  ;;  %v1622_v35 = vld [vmem:[#allocation8 + $0x1098] sm:$0xff] }
 0x1fe   :  { %10625 = vmatpush1.bf16.msra.mxu0 %v14304_v55  ;;  %10711 = vmatpush1.bf16.msra.mxu1 %v14306_v56  ;;  %v1406_v55 = vld [vmem:[#allocation8 + $0x9d8] sm:$0xff]  ;;  %v13108_v56 = vcombine.low %v1333_v40, %v1357_v41  ;;  %v1669_v41 = vld [vmem:[#allocation8 + $0x1210] sm:$0xff] }
 0x1ff   :  { %10626 = vmatprep.subr.bf16.mxu0 %v14353_v57  ;;  %10712 = vmatprep.subr.bf16.mxu1 %v14355_v58  ;;  %v13110_v57 = vcombine.low %v1334_v42, %v1358_v43  ;;  %v13157_v58 = vcombine.high %v1381_v50, %v1405_v51  ;;  %v13159_v59 = vcombine.high %v1382_v52, %v1406_v55  ;;  %v1693_v42 = vld [vmem:[#allocation8 + $0x12d0] sm:$0xff]  ;;  %v1670_v43 = vld [vmem:[#allocation8 + $0x1218] sm:$0xff] }
 0x202   :  { %10627 = vmatpush1.bf16.msra.mxu0 %v14352_v63  ;;  %10713 = vmatpush1.bf16.msra.mxu1 %v14354_v0  ;;  %v1454_v63 = vld [vmem:[#allocation8 + $0xb58] sm:$0xff]  ;;  %v13156_v0 = vcombine.low %v1381_v50, %v1405_v51  ;;  %v1717_v51 = vld [vmem:[#allocation8 + $0x1390] sm:$0xff] }
 0x203   :  { %10725 = vmatprep.subr.bf16.mxu0 %v12869_v1  ;;  %10811 = vmatprep.subr.bf16.mxu1 %v12871_v2  ;;  %v13158_v1 = vcombine.low %v1382_v52, %v1406_v55  ;;  %v13205_v2 = vcombine.high %v1429_v60, %v1453_v61  ;;  %v13207_v3 = vcombine.high %v1430_v62, %v1454_v63  ;;  %v1741_v52 = vld [vmem:[#allocation8 + $0x1450] sm:$0xff]  ;;  %v1718_v55 = vld [vmem:[#allocation8 + $0x1398] sm:$0xff] }
 0x205   :  { %10629 = vmatmul.mubr.bf16.vlgmr.msra.gmra.mrb[4].mxu0 %v15125_v48  ;;  %10715 = vmatmul.mubr.bf16.vlgmr.msra.gmra.mrb[4].mxu1 %v15125_v48 }
 0x206   :  { %10726 = vmatpush1.bf16.msra.mxu0 %v12868_v6  ;;  %10757 = vmatprep.mubr.bf16.mxu0 %v15127_v53  ;;  %v1502_v6 = vld [vmem:[#allocation8 + $0xcd8] sm:$0xff] }
 0x207   :  { %10812 = vmatpush1.bf16.msra.mxu1 %v12870_v8  ;;  %10843 = vmatprep.mubr.bf16.mxu1 %v15127_v53  ;;  %v13204_v8 = vcombine.low %v1429_v60, %v1453_v61  ;;  %v13255_v11 = vcombine.high %v1478_v5, %v1502_v6  ;;  %v1765_v61 = vld [vmem:[#allocation8 + $0x1510] sm:$0xff] }
 0x208   :  { %10727 = vmatprep.subr.bf16.mxu0 %v12917_v9  ;;  %10813 = vmatprep.subr.bf16.mxu1 %v12919_v10  ;;  %v13206_v9 = vcombine.low %v1430_v62, %v1454_v63  ;;  %v13253_v10 = vcombine.high %v1477_v7, %v1501_v4  ;;  %v1789_v62 = vld [vmem:[#allocation8 + $0x15d0] sm:$0xff]  ;;  %v1766_v63 = vld [vmem:[#allocation8 + $0x1518] sm:$0xff] }
 0x20a   :  { %10728 = vmatpush1.bf16.msra.mxu0 %v12916_v20  ;;  %v1550_v20 = vld [vmem:[#allocation8 + $0xe58] sm:$0xff] }
 0x20b   :  { %10814 = vmatpush1.bf16.msra.mxu1 %v12918_v21  ;;  %10729 = vmatprep.subr.bf16.mxu0 %v12965_v22  ;;  %v13252_v21 = vcombine.low %v1477_v7, %v1501_v4  ;;  %v13254_v22 = vcombine.low %v1478_v5, %v1502_v6  ;;  %v13303_v24 = vcombine.high %v1526_v19, %v1550_v20  ;;  %v1813_v4 = vld [vmem:[#allocation8 + $0x1690] sm:$0xff]  ;;  %v1814_v6 = vld [vmem:[#allocation8 + $0x1698] sm:$0xff] }
 0x20c   :  { %10815 = vmatprep.subr.bf16.mxu1 %v12967_v23  ;;  %v13301_v23 = vcombine.high %v1525_v12, %v1549_v16  ;;  %v1837_v5 = vld [vmem:[#allocation8 + $0x1750] sm:$0xff] }
 0x20e   :  { %10730 = vmatpush1.bf16.msra.mxu0 %v12964_v28  ;;  %v1598_v28 = vld [vmem:[#allocation8 + $0xfd8] sm:$0xff] }
 0x20f   :  { %10816 = vmatpush1.bf16.msra.mxu1 %v12966_v29  ;;  %10731 = vmatprep.subr.bf16.mxu0 %v13013_v30  ;;  %v13300_v29 = vcombine.low %v1525_v12, %v1549_v16  ;;  %v13302_v30 = vcombine.low %v1526_v19, %v1550_v20  ;;  %v13351_v32 = vcombine.high %v1574_v27, %v1598_v28  ;;  %v1861_v16 = vld [vmem:[#allocation8 + $0x1810] sm:$0xff]  ;;  %v1862_v20 = vld [vmem:[#allocation8 + $0x1818] sm:$0xff] }
 0x210   :  { %10817 = vmatprep.subr.bf16.mxu1 %v13015_v31  ;;  %v13349_v31 = vcombine.high %v1573_v25, %v1597_v26  ;;  %v1885_v19 = vld [vmem:[#allocation8 + $0x18d0] sm:$0xff] }
 0x212   :  { %10732 = vmatpush1.bf16.msra.mxu0 %v13012_v36  ;;  %v1646_v36 = vld [vmem:[#allocation8 + $0x1158] sm:$0xff] }
 0x213   :  { %10818 = vmatpush1.bf16.msra.mxu1 %v13014_v37  ;;  %10733 = vmatprep.subr.bf16.mxu0 %v13061_v38  ;;  %v13348_v37 = vcombine.low %v1573_v25, %v1597_v26  ;;  %v13350_v38 = vcombine.low %v1574_v27, %v1598_v28  ;;  %v13399_v40 = vcombine.high %v1622_v35, %v1646_v36  ;;  %v1909_v26 = vld [vmem:[#allocation8 + $0x1990] sm:$0xff] }
 0x214   :  { %10819 = vmatprep.subr.bf16.mxu1 %v13063_v39  ;;  %v13397_v39 = vcombine.high %v1621_v33, %v1645_v34  ;;  %v1933_v27 = vld [vmem:[#allocation8 + $0x1a50] sm:$0xff]  ;;  %v13636_v28 = vcombine.low %v1861_v16, %v1885_v19 }
 0x216   :  { %10734 = vmatpush1.bf16.msra.mxu0 %v13060_v44  ;;  %v1694_v44 = vld [vmem:[#allocation8 + $0x12d8] sm:$0xff] }
 0x217   :  { %10820 = vmatpush1.bf16.msra.mxu1 %v13062_v46  ;;  %10735 = vmatprep.subr.bf16.mxu0 %v13109_v47  ;;  %v13396_v46 = vcombine.low %v1621_v33, %v1645_v34  ;;  %v13398_v47 = vcombine.low %v1622_v35, %v1646_v36  ;;  %v13447_v50 = vcombine.high %v1670_v43, %v1694_v44  ;;  %v1957_v33 = vld [vmem:[#allocation8 + $0x1b10] sm:$0xff]  ;;  %v1958_v36 = vld [vmem:[#allocation8 + $0x1b18] sm:$0xff] }
 0x218   :  { %10821 = vmatprep.subr.bf16.mxu1 %v13111_v49  ;;  %v13445_v49 = vcombine.high %v1669_v41, %v1693_v42  ;;  %v1981_v34 = vld [vmem:[#allocation8 + $0x1bd0] sm:$0xff] }
 0x21a   :  { %10736 = vmatpush1.bf16.msra.mxu0 %v13108_v56  ;;  %v1742_v56 = vld [vmem:[#allocation8 + $0x1458] sm:$0xff] }
 0x21b   :  { %10822 = vmatpush1.bf16.msra.mxu1 %v13110_v57  ;;  %10737 = vmatprep.subr.bf16.mxu0 %v13157_v58  ;;  %v13444_v57 = vcombine.low %v1669_v41, %v1693_v42  ;;  %v13446_v58 = vcombine.low %v1670_v43, %v1694_v44  ;;  %v13495_v60 = vcombine.high %v1718_v55, %v1742_v56  ;;  %v2005_v42 = vld [vmem:[#allocation8 + $0x1c90] sm:$0xff]  ;;  %v2006_v44 = vld [vmem:[#allocation8 + $0x1c98] sm:$0xff] }
 0x21c   :  { %10823 = vmatprep.subr.bf16.mxu1 %v13159_v59  ;;  %v13493_v59 = vcombine.high %v1717_v51, %v1741_v52  ;;  %v2029_v43 = vld [vmem:[#allocation8 + $0x1d50] sm:$0xff] }
 0x21e   :  { %10738 = vmatpush1.bf16.msra.mxu0 %v13156_v0  ;;  %v1790_v0 = vld [vmem:[#allocation8 + $0x15d8] sm:$0xff] }
 0x21f   :  { %10824 = vmatpush1.bf16.msra.mxu1 %v13158_v1  ;;  %10739 = vmatprep.subr.bf16.mxu0 %v13205_v2  ;;  %v13492_v1 = vcombine.low %v1717_v51, %v1741_v52  ;;  %v13494_v2 = vcombine.low %v1718_v55, %v1742_v56  ;;  %v13543_v7 = vcombine.high %v1766_v63, %v1790_v0  ;;  %v2053_v52 = vld [vmem:[#allocation8 + $0x1e10] sm:$0xff]  ;;  %v2054_v56 = vld [vmem:[#allocation8 + $0x1e18] sm:$0xff] }
 0x220   :  { %10825 = vmatprep.subr.bf16.mxu1 %v13207_v3  ;;  %v13541_v3 = vcombine.high %v1765_v61, %v1789_v62  ;;  %v2077_v55 = vld [vmem:[#allocation8 + $0x1ed0] sm:$0xff] }
 0x222   :  { %10740 = vmatpush1.bf16.msra.mxu0 %v13204_v8  ;;  %v1838_v8 = vld [vmem:[#allocation8 + $0x1758] sm:$0xff] }
 0x223   :  { %10826 = vmatpush1.bf16.msra.mxu1 %v13206_v9  ;;  %10741 = vmatprep.subr.bf16.mxu0 %v13253_v10  ;;  %v13540_v9 = vcombine.low %v1765_v61, %v1789_v62  ;;  %v13542_v10 = vcombine.low %v1766_v63, %v1790_v0  ;;  %v13591_v12 = vcombine.high %v1814_v6, %v1838_v8  ;;  %v2101_v62 = vld [vmem:[#allocation8 + $0x1f90] sm:$0xff]  ;;  %v2102_v0 = vld [vmem:[#allocation8 + $0x1f98] sm:$0xff] }
 0x224   :  { %10827 = vmatprep.subr.bf16.mxu1 %v13255_v11  ;;  %v13589_v11 = vcombine.high %v1813_v4, %v1837_v5  ;;  %v2125_v63 = vld [vmem:[#allocation8 + $0x2050] sm:$0xff] }
 0x226   :  { %10742 = vmatpush1.bf16.msra.mxu0 %v13252_v21  ;;  %v1886_v21 = vld [vmem:[#allocation8 + $0x18d8] sm:$0xff] }
 0x227   :  { %10828 = vmatpush1.bf16.msra.mxu1 %v13254_v22  ;;  %10743 = vmatprep.subr.bf16.mxu0 %v13301_v23  ;;  %v13588_v22 = vcombine.low %v1813_v4, %v1837_v5  ;;  %v13590_v23 = vcombine.low %v1814_v6, %v1838_v8  ;;  %v13639_v25 = vcombine.high %v1862_v20, %v1886_v21  ;;  %v2149_v5 = vld [vmem:[#allocation8 + $0x2110] sm:$0xff]  ;;  %v2150_v8 = vld [vmem:[#allocation8 + $0x2118] sm:$0xff] }
 0x228   :  { %10829 = vmatprep.subr.bf16.mxu1 %v13303_v24  ;;  %v13637_v24 = vcombine.high %v1861_v16, %v1885_v19  ;;  %v2173_v6 = vld [vmem:[#allocation8 + $0x21d0] sm:$0xff] }
 0x229   :  { %v2197_v19 = vld [vmem:[#allocation8 + $0x2290] sm:$0xff] }
 0x22a   :  { %10744 = vmatpush1.bf16.msra.mxu0 %v13300_v29  ;;  %v1910_v29 = vld [vmem:[#allocation8 + $0x1998] sm:$0xff] }
 0x22b   :  { %10830 = vmatpush1.bf16.msra.mxu1 %v13302_v30  ;;  %10745 = vmatprep.subr.bf16.mxu0 %v13349_v31  ;;  %v1934_v30 = vld [vmem:[#allocation8 + $0x1a58] sm:$0xff]  ;;  %v13638_v31 = vcombine.low %v1862_v20, %v1886_v21  ;;  %v2221_v20 = vld [vmem:[#allocation8 + $0x2350] sm:$0xff] }
 0x22c   :  { %10831 = vmatprep.subr.bf16.mxu1 %v13351_v32  ;;  %v13685_v32 = vcombine.high %v1909_v26, %v1933_v27  ;;  %v13687_v35 = vcombine.high %v1910_v29, %v1934_v30  ;;  %v2198_v21 = vld [vmem:[#allocation8 + $0x2298] sm:$0xff] }
 0x22e   :  { %10746 = vmatpush1.bf16.msra.mxu0 %v13348_v37  ;;  %v1982_v37 = vld [vmem:[#allocation8 + $0x1bd8] sm:$0xff] }
 0x22f   :  { %10832 = vmatpush1.bf16.msra.mxu1 %v13350_v38  ;;  %10747 = vmatprep.subr.bf16.mxu0 %v13397_v39  ;;  %v13684_v38 = vcombine.low %v1909_v26, %v1933_v27  ;;  %v13686_v39 = vcombine.low %v1910_v29, %v1934_v30  ;;  %v13735_v41 = vcombine.high %v1958_v36, %v1982_v37  ;;  %v2245_v27 = vld [vmem:[#allocation8 + $0x2410] sm:$0xff]  ;;  %v2246_v29 = vld [vmem:[#allocation8 + $0x2418] sm:$0xff] }
 0x230   :  { %10833 = vmatprep.subr.bf16.mxu1 %v13399_v40  ;;  %v13733_v40 = vcombine.high %v1957_v33, %v1981_v34  ;;  %v2270_v30 = vld [vmem:[#allocation8 + $0x24d8] sm:$0xff] }
 0x232   :  { %10748 = vmatpush1.bf16.msra.mxu0 %v13396_v46  ;;  %v2030_v46 = vld [vmem:[#allocation8 + $0x1d58] sm:$0xff] }
 0x233   :  { %10834 = vmatpush1.bf16.msra.mxu1 %v13398_v47  ;;  %10749 = vmatprep.subr.bf16.mxu0 %v13445_v49  ;;  %v13732_v47 = vcombine.low %v1957_v33, %v1981_v34  ;;  %v13734_v49 = vcombine.low %v1958_v36, %v1982_v37  ;;  %v13783_v51 = vcombine.high %v2006_v44, %v2030_v46  ;;  %v2317_v36 = vld [vmem:[#allocation8 + $0x2650] sm:$0xff]  ;;  %v2294_v37 = vld [vmem:[#allocation8 + $0x2598] sm:$0xff] }
 0x234   :  { %10835 = vmatprep.subr.bf16.mxu1 %v13447_v50  ;;  %v13781_v50 = vcombine.high %v2005_v42, %v2029_v43  ;;  %v14023_v34 = vcombine.high %v2246_v29, %v2270_v30 }
 0x236   :  { %10750 = vmatpush1.bf16.msra.mxu0 %v13444_v57  ;;  %v2078_v57 = vld [vmem:[#allocation8 + $0x1ed8] sm:$0xff] }
 0x237   :  { %10836 = vmatpush1.bf16.msra.mxu1 %v13446_v58  ;;  %10751 = vmatprep.subr.bf16.mxu0 %v13493_v59  ;;  %v13780_v58 = vcombine.low %v2005_v42, %v2029_v43  ;;  %v13782_v59 = vcombine.low %v2006_v44, %v2030_v46  ;;  %v13831_v61 = vcombine.high %v2054_v56, %v2078_v57  ;;  %v2341_v43 = vld [vmem:[#allocation8 + $0x2710] sm:$0xff]  ;;  %v2342_v46 = vld [vmem:[#allocation8 + $0x2718] sm:$0xff] }
 0x238   :  { %10837 = vmatprep.subr.bf16.mxu1 %v13495_v60  ;;  %v13829_v60 = vcombine.high %v2053_v52, %v2077_v55  ;;  %v2365_v44 = vld [vmem:[#allocation8 + $0x27d0] sm:$0xff] }
 0x23a   :  { %10752 = vmatpush1.bf16.msra.mxu0 %v13492_v1  ;;  %v2126_v1 = vld [vmem:[#allocation8 + $0x2058] sm:$0xff] }
 0x23b   :  { %10838 = vmatpush1.bf16.msra.mxu1 %v13494_v2  ;;  %10753 = vmatprep.subr.bf16.mxu0 %v13541_v3  ;;  %v13828_v2 = vcombine.low %v2053_v52, %v2077_v55  ;;  %v13830_v3 = vcombine.low %v2054_v56, %v2078_v57  ;;  %v13879_v4 = vcombine.high %v2102_v0, %v2126_v1  ;;  %v2389_v55 = vld [vmem:[#allocation8 + $0x2890] sm:$0xff]  ;;  %v2390_v57 = vld [vmem:[#allocation8 + $0x2898] sm:$0xff] }
 0x23c   :  { %10839 = vmatprep.subr.bf16.mxu1 %v13543_v7  ;;  %v13877_v7 = vcombine.high %v2101_v62, %v2125_v63  ;;  %v2413_v56 = vld [vmem:[#allocation8 + $0x2950] sm:$0xff] }
 0x23e   :  { %10754 = vmatpush1.bf16.msra.mxu0 %v13540_v9  ;;  %v2174_v9 = vld [vmem:[#allocation8 + $0x21d8] sm:$0xff] }
 0x23f   :  { %10840 = vmatpush1.bf16.msra.mxu1 %v13542_v10  ;;  %10755 = vmatprep.subr.bf16.mxu0 %v13589_v11  ;;  %v13876_v10 = vcombine.low %v2101_v62, %v2125_v63  ;;  %v13878_v11 = vcombine.low %v2102_v0, %v2126_v1  ;;  %v13927_v16 = vcombine.high %v2150_v8, %v2174_v9  ;;  %v2437_v63 = vld [vmem:[#allocation8 + $0x2a10] sm:$0xff]  ;;  %v2438_v1 = vld [vmem:[#allocation8 + $0x2a18] sm:$0xff] }
 0x240   :  { %10841 = vmatprep.subr.bf16.mxu1 %v13591_v12  ;;  %v13925_v12 = vcombine.high %v2149_v5, %v2173_v6  ;;  %v2461_v0 = vld [vmem:[#allocation8 + $0x2ad0] sm:$0xff] }
 0x242   :  { %10756 = vmatpush1.bf16.msra.mxu0 %v13588_v22  ;;  %v2222_v22 = vld [vmem:[#allocation8 + $0x2358] sm:$0xff] }
 0x243   :  { %10842 = vmatpush1.bf16.msra.mxu1 %v13590_v23  ;;  %10768 = vmatprep.subr.bf16.mxu0 %v13637_v24  ;;  %v13924_v23 = vcombine.low %v2149_v5, %v2173_v6  ;;  %v13926_v24 = vcombine.low %v2150_v8, %v2174_v9  ;;  %v13975_v26 = vcombine.high %v2198_v21, %v2222_v22  ;;  %v2485_v6 = vld [vmem:[#allocation8 + $0x2b90] sm:$0xff]  ;;  %v2486_v9 = vld [vmem:[#allocation8 + $0x2b98] sm:$0xff] }
 0x244   :  { %10854 = vmatprep.subr.bf16.mxu1 %v13639_v25  ;;  %v13973_v25 = vcombine.high %v2197_v19, %v2221_v20  ;;  %v2509_v8 = vld [vmem:[#allocation8 + $0x2c50] sm:$0xff] }
 0x245   :  { %10758 = vmatmul.mubr.bf16.vlgmr.msra.gmra.mrb[8].mxu0 %v15123_v45 }
 0x246   :  { %10844 = vmatmul.mubr.bf16.vlgmr.msra.gmra.mrb[8].mxu1 %v15123_v45  ;;  %10769 = vmatpush1.bf16.msra.mxu0 %v13636_v28  ;;  %v2269_v28 = vld [vmem:[#allocation8 + $0x24d0] sm:$0xff] }
 0x247   :  { %10800 = vmatprep.mubr.bf16.mxu0 %v15129_v54  ;;  %10855 = vmatpush1.bf16.msra.mxu1 %v13638_v31  ;;  %v13972_v31 = vcombine.low %v2197_v19, %v2221_v20  ;;  %v14021_v33 = vcombine.high %v2245_v27, %v2269_v28  ;;  %v2533_v20 = vld [vmem:[#allocation8 + $0x2d10] sm:$0xff] }
 0x248   :  { %10886 = vmatprep.mubr.bf16.mxu1 %v15129_v54  ;;  %10770 = vmatprep.subr.bf16.mxu0 %v13685_v32  ;;  %v13974_v32 = vcombine.low %v2198_v21, %v2222_v22  ;;  %v2557_v21 = vld [vmem:[#allocation8 + $0x2dd0] sm:$0xff]  ;;  %v2534_v22 = vld [vmem:[#allocation8 + $0x2d18] sm:$0xff] }
 0x249   :  { %10856 = vmatprep.subr.bf16.mxu1 %v13687_v35  ;;  %v2293_v35 = vld [vmem:[#allocation8 + $0x2590] sm:$0xff] }
 0x24a   :  { %10771 = vmatpush1.bf16.msra.mxu0 %v13684_v38  ;;  %v2318_v38 = vld [vmem:[#allocation8 + $0x2658] sm:$0xff] }
 0x24b   :  { %10857 = vmatpush1.bf16.msra.mxu1 %v13686_v39  ;;  %10772 = vmatprep.subr.bf16.mxu0 %v13733_v40  ;;  %v14020_v39 = vcombine.low %v2245_v27, %v2269_v28  ;;  %v14022_v40 = vcombine.low %v2246_v29, %v2270_v30  ;;  %v14071_v42 = vcombine.high %v2294_v37, %v2318_v38  ;;  %v2581_v28 = vld [vmem:[#allocation8 + $0x2e90] sm:$0xff]  ;;  %v2582_v30 = vld [vmem:[#allocation8 + $0x2e98] sm:$0xff] }
 0x24c   :  { %10858 = vmatprep.subr.bf16.mxu1 %v13735_v41  ;;  %v14069_v41 = vcombine.high %v2293_v35, %v2317_v36  ;;  %v2605_v29 = vld [vmem:[#allocation8 + $0x2f50] sm:$0xff] }
 0x24e   :  { %10773 = vmatpush1.bf16.msra.mxu0 %v13732_v47  ;;  %v2366_v47 = vld [vmem:[#allocation8 + $0x27d8] sm:$0xff] }
 0x24f   :  { %10859 = vmatpush1.bf16.msra.mxu1 %v13734_v49  ;;  %10774 = vmatprep.subr.bf16.mxu0 %v13781_v50  ;;  %v14068_v49 = vcombine.low %v2293_v35, %v2317_v36  ;;  %v14070_v50 = vcombine.low %v2294_v37, %v2318_v38  ;;  %v14119_v52 = vcombine.high %v2342_v46, %v2366_v47  ;;  %v1095_v36 = vld [vmem:[#allocation8 + $0x20] sm:$0xff]  ;;  %v1096_v38 = vld [vmem:[#allocation8 + $0x28] sm:$0xff] }
 0x250   :  { %10860 = vmatprep.subr.bf16.mxu1 %v13783_v51  ;;  %v14117_v51 = vcombine.high %v2341_v43, %v2365_v44  ;;  %v1119_v37 = vld [vmem:[#allocation8 + $0xe0] sm:$0xff] }
 0x252   :  { %10775 = vmatpush1.bf16.msra.mxu0 %v13780_v58  ;;  %v2414_v58 = vld [vmem:[#allocation8 + $0x2958] sm:$0xff] }
 0x253   :  { %10861 = vmatpush1.bf16.msra.mxu1 %v13782_v59  ;;  %10776 = vmatprep.subr.bf16.mxu0 %v13829_v60  ;;  %v14116_v59 = vcombine.low %v2341_v43, %v2365_v44  ;;  %v14118_v60 = vcombine.low %v2342_v46, %v2366_v47  ;;  %v14167_v62 = vcombine.high %v2390_v57, %v2414_v58  ;;  %v1143_v44 = vld [vmem:[#allocation8 + $0x1a0] sm:$0xff] }
 0x254   :  { %10862 = vmatprep.subr.bf16.mxu1 %v13831_v61  ;;  %v14165_v61 = vcombine.high %v2389_v55, %v2413_v56  ;;  %v1167_v46 = vld [vmem:[#allocation8 + $0x260] sm:$0xff]  ;;  %v12872_v47 = vcombine.low %v1095_v36, %v1119_v37 }
 0x256   :  { %10777 = vmatpush1.bf16.msra.mxu0 %v13828_v2  ;;  %v2462_v2 = vld [vmem:[#allocation8 + $0x2ad8] sm:$0xff] }
 0x257   :  { %10863 = vmatpush1.bf16.msra.mxu1 %v13830_v3  ;;  %10778 = vmatprep.subr.bf16.mxu0 %v13877_v7  ;;  %v14164_v3 = vcombine.low %v2389_v55, %v2413_v56  ;;  %v14166_v7 = vcombine.low %v2390_v57, %v2414_v58  ;;  %v14215_v5 = vcombine.high %v2438_v1, %v2462_v2  ;;  %v1191_v55 = vld [vmem:[#allocation8 + $0x320] sm:$0xff]  ;;  %v1192_v58 = vld [vmem:[#allocation8 + $0x328] sm:$0xff] }
 0x258   :  { %10864 = vmatprep.subr.bf16.mxu1 %v13879_v4  ;;  %v14213_v4 = vcombine.high %v2437_v63, %v2461_v0  ;;  %v1215_v56 = vld [vmem:[#allocation8 + $0x3e0] sm:$0xff] }
 0x25a   :  { %10779 = vmatpush1.bf16.msra.mxu0 %v13876_v10  ;;  %v2510_v10 = vld [vmem:[#allocation8 + $0x2c58] sm:$0xff] }
 0x25b   :  { %10865 = vmatpush1.bf16.msra.mxu1 %v13878_v11  ;;  %10780 = vmatprep.subr.bf16.mxu0 %v13925_v12  ;;  %v14212_v11 = vcombine.low %v2437_v63, %v2461_v0  ;;  %v14214_v12 = vcombine.low %v2438_v1, %v2462_v2  ;;  %v14263_v19 = vcombine.high %v2486_v9, %v2510_v10  ;;  %v1239_v0 = vld [vmem:[#allocation8 + $0x4a0] sm:$0xff]  ;;  %v1240_v2 = vld [vmem:[#allocation8 + $0x4a8] sm:$0xff] }
 0x25c   :  { %10866 = vmatprep.subr.bf16.mxu1 %v13927_v16  ;;  %v14261_v16 = vcombine.high %v2485_v6, %v2509_v8  ;;  %v1263_v1 = vld [vmem:[#allocation8 + $0x560] sm:$0xff] }
 0x25e   :  { %10781 = vmatpush1.bf16.msra.mxu0 %v13924_v23  ;;  %v2558_v23 = vld [vmem:[#allocation8 + $0x2dd8] sm:$0xff] }
 0x25f   :  { %10867 = vmatpush1.bf16.msra.mxu1 %v13926_v24  ;;  %10782 = vmatprep.subr.bf16.mxu0 %v13973_v25  ;;  %v14260_v24 = vcombine.low %v2485_v6, %v2509_v8  ;;  %v14262_v25 = vcombine.low %v2486_v9, %v2510_v10  ;;  %v14311_v27 = vcombine.high %v2534_v22, %v2558_v23  ;;  %v1287_v8 = vld [vmem:[#allocation8 + $0x620] sm:$0xff]  ;;  %v1288_v10 = vld [vmem:[#allocation8 + $0x628] sm:$0xff] }
 0x260   :  { %10868 = vmatprep.subr.bf16.mxu1 %v13975_v26  ;;  %v14309_v26 = vcombine.high %v2533_v20, %v2557_v21  ;;  %v1311_v9 = vld [vmem:[#allocation8 + $0x6e0] sm:$0xff] }
 0x262   :  { %10783 = vmatpush1.bf16.msra.mxu0 %v13972_v31  ;;  %v2606_v31 = vld [vmem:[#allocation8 + $0x2f58] sm:$0xff] }
 0x263   :  { %10869 = vmatpush1.bf16.msra.mxu1 %v13974_v32  ;;  %10784 = vmatprep.subr.bf16.mxu0 %v14021_v33  ;;  %v14308_v32 = vcombine.low %v2533_v20, %v2557_v21  ;;  %v14310_v33 = vcombine.low %v2534_v22, %v2558_v23  ;;  %v14359_v35 = vcombine.high %v2582_v30, %v2606_v31  ;;  %v1335_v21 = vld [vmem:[#allocation8 + $0x7a0] sm:$0xff]  ;;  %v1336_v23 = vld [vmem:[#allocation8 + $0x7a8] sm:$0xff] }
 0x264   :  { %10870 = vmatprep.subr.bf16.mxu1 %v14023_v34  ;;  %v14357_v34 = vcombine.high %v2581_v28, %v2605_v29  ;;  %v1359_v22 = vld [vmem:[#allocation8 + $0x860] sm:$0xff] }
 0x266   :  { %10785 = vmatpush1.bf16.msra.mxu0 %v14020_v39  ;;  %v1120_v39 = vld [vmem:[#allocation8 + $0xe8] sm:$0xff] }
 0x267   :  { %10871 = vmatpush1.bf16.msra.mxu1 %v14022_v40  ;;  %10786 = vmatprep.subr.bf16.mxu0 %v14069_v41  ;;  %v14356_v40 = vcombine.low %v2581_v28, %v2605_v29  ;;  %v14358_v41 = vcombine.low %v2582_v30, %v2606_v31  ;;  %v12875_v43 = vcombine.high %v1096_v38, %v1120_v39  ;;  %v1383_v29 = vld [vmem:[#allocation8 + $0x920] sm:$0xff]  ;;  %v1384_v31 = vld [vmem:[#allocation8 + $0x928] sm:$0xff] }
 0x268   :  { %10872 = vmatprep.subr.bf16.mxu1 %v14071_v42  ;;  %v12873_v42 = vcombine.high %v1095_v36, %v1119_v37  ;;  %v1407_v30 = vld [vmem:[#allocation8 + $0x9e0] sm:$0xff] }
 0x269   :  { %v1431_v37 = vld [vmem:[#allocation8 + $0xaa0] sm:$0xff] }
 0x26a   :  { %10787 = vmatpush1.bf16.msra.mxu0 %v14068_v49  ;;  %v1144_v49 = vld [vmem:[#allocation8 + $0x1a8] sm:$0xff] }
 0x26b   :  { %10873 = vmatpush1.bf16.msra.mxu1 %v14070_v50  ;;  %10788 = vmatprep.subr.bf16.mxu0 %v14117_v51  ;;  %v1168_v50 = vld [vmem:[#allocation8 + $0x268] sm:$0xff]  ;;  %v12874_v51 = vcombine.low %v1096_v38, %v1120_v39  ;;  %v1455_v38 = vld [vmem:[#allocation8 + $0xb60] sm:$0xff] }
 0x26c   :  { %10874 = vmatprep.subr.bf16.mxu1 %v14119_v52  ;;  %v12921_v52 = vcombine.high %v1143_v44, %v1167_v46  ;;  %v12923_v57 = vcombine.high %v1144_v49, %v1168_v50  ;;  %v1432_v39 = vld [vmem:[#allocation8 + $0xaa8] sm:$0xff] }
 0x26e   :  { %10789 = vmatpush1.bf16.msra.mxu0 %v14116_v59  ;;  %v1216_v59 = vld [vmem:[#allocation8 + $0x3e8] sm:$0xff] }
 0x26f   :  { %10875 = vmatpush1.bf16.msra.mxu1 %v14118_v60  ;;  %10790 = vmatprep.subr.bf16.mxu0 %v14165_v61  ;;  %v12920_v60 = vcombine.low %v1143_v44, %v1167_v46  ;;  %v12922_v61 = vcombine.low %v1144_v49, %v1168_v50  ;;  %v12971_v63 = vcombine.high %v1192_v58, %v1216_v59  ;;  %v1479_v46 = vld [vmem:[#allocation8 + $0xc20] sm:$0xff]  ;;  %v1480_v49 = vld [vmem:[#allocation8 + $0xc28] sm:$0xff] }
 0x270   :  { %10876 = vmatprep.subr.bf16.mxu1 %v14167_v62  ;;  %v12969_v62 = vcombine.high %v1191_v55, %v1215_v56  ;;  %v1504_v50 = vld [vmem:[#allocation8 + $0xce8] sm:$0xff] }
 0x272   :  { %10791 = vmatpush1.bf16.msra.mxu0 %v14164_v3  ;;  %v1264_v3 = vld [vmem:[#allocation8 + $0x568] sm:$0xff] }
 0x273   :  { %10877 = vmatpush1.bf16.msra.mxu1 %v14166_v7  ;;  %10792 = vmatprep.subr.bf16.mxu0 %v14213_v4  ;;  %v12968_v7 = vcombine.low %v1191_v55, %v1215_v56  ;;  %v12970_v4 = vcombine.low %v1192_v58, %v1216_v59  ;;  %v13019_v6 = vcombine.high %v1240_v2, %v1264_v3  ;;  %v1551_v58 = vld [vmem:[#allocation8 + $0xe60] sm:$0xff]  ;;  %v1528_v59 = vld [vmem:[#allocation8 + $0xda8] sm:$0xff] }
 0x274   :  { %10878 = vmatprep.subr.bf16.mxu1 %v14215_v5  ;;  %v13017_v5 = vcombine.high %v1239_v0, %v1263_v1  ;;  %v13259_v56 = vcombine.high %v1480_v49, %v1504_v50 }
 0x276   :  { %10793 = vmatpush1.bf16.msra.mxu0 %v14212_v11  ;;  %v1312_v11 = vld [vmem:[#allocation8 + $0x6e8] sm:$0xff] }
 0x277   :  { %10879 = vmatpush1.bf16.msra.mxu1 %v14214_v12  ;;  %10794 = vmatprep.subr.bf16.mxu0 %v14261_v16  ;;  %v13016_v12 = vcombine.low %v1239_v0, %v1263_v1  ;;  %v13018_v16 = vcombine.low %v1240_v2, %v1264_v3  ;;  %v13067_v20 = vcombine.high %v1288_v10, %v1312_v11  ;;  %v1575_v1 = vld [vmem:[#allocation8 + $0xf20] sm:$0xff]  ;;  %v1576_v3 = vld [vmem:[#allocation8 + $0xf28] sm:$0xff] }
 0x278   :  { %10880 = vmatprep.subr.bf16.mxu1 %v14263_v19  ;;  %v13065_v19 = vcombine.high %v1287_v8, %v1311_v9  ;;  %v1599_v2 = vld [vmem:[#allocation8 + $0xfe0] sm:$0xff] }
 0x27a   :  { %10795 = vmatpush1.bf16.msra.mxu0 %v14260_v24  ;;  %v1360_v24 = vld [vmem:[#allocation8 + $0x868] sm:$0xff] }
 0x27b   :  { %10881 = vmatpush1.bf16.msra.mxu1 %v14262_v25  ;;  %10796 = vmatprep.subr.bf16.mxu0 %v14309_v26  ;;  %v13064_v25 = vcombine.low %v1287_v8, %v1311_v9  ;;  %v13066_v26 = vcombine.low %v1288_v10, %v1312_v11  ;;  %v13115_v28 = vcombine.high %v1336_v23, %v1360_v24  ;;  %v1623_v9 = vld [vmem:[#allocation8 + $0x10a0] sm:$0xff]  ;;  %v1624_v11 = vld [vmem:[#allocation8 + $0x10a8] sm:$0xff] }
 0x27c   :  { %10882 = vmatprep.subr.bf16.mxu1 %v14311_v27  ;;  %v13113_v27 = vcombine.high %v1335_v21, %v1359_v22  ;;  %v1647_v10 = vld [vmem:[#allocation8 + $0x1160] sm:$0xff] }
 0x27e   :  { %10797 = vmatpush1.bf16.msra.mxu0 %v14308_v32  ;;  %v1408_v32 = vld [vmem:[#allocation8 + $0x9e8] sm:$0xff] }
 0x27f   :  { %10883 = vmatpush1.bf16.msra.mxu1 %v14310_v33  ;;  %10798 = vmatprep.subr.bf16.mxu0 %v14357_v34  ;;  %v13112_v33 = vcombine.low %v1335_v21, %v1359_v22  ;;  %v13114_v34 = vcombine.low %v1336_v23, %v1360_v24  ;;  %v13163_v36 = vcombine.high %v1384_v31, %v1408_v32  ;;  %v1671_v22 = vld [vmem:[#allocation8 + $0x1220] sm:$0xff]  ;;  %v1672_v24 = vld [vmem:[#allocation8 + $0x1228] sm:$0xff] }
 0x280   :  { %10884 = vmatprep.subr.bf16.mxu1 %v14359_v35  ;;  %v13161_v35 = vcombine.high %v1383_v29, %v1407_v30  ;;  %v1695_v23 = vld [vmem:[#allocation8 + $0x12e0] sm:$0xff] }
 0x282   :  { %10799 = vmatpush1.bf16.msra.mxu0 %v14356_v40  ;;  %v1456_v40 = vld [vmem:[#allocation8 + $0xb68] sm:$0xff] }
 0x283   :  { %10885 = vmatpush1.bf16.msra.mxu1 %v14358_v41  ;;  %10897 = vmatprep.subr.bf16.mxu0 %v12873_v42  ;;  %v13160_v41 = vcombine.low %v1383_v29, %v1407_v30  ;;  %v13162_v42 = vcombine.low %v1384_v31, %v1408_v32  ;;  %v13211_v44 = vcombine.high %v1432_v39, %v1456_v40  ;;  %v1719_v30 = vld [vmem:[#allocation8 + $0x13a0] sm:$0xff]  ;;  %v1720_v32 = vld [vmem:[#allocation8 + $0x13a8] sm:$0xff] }
 0x284   :  { %10983 = vmatprep.subr.bf16.mxu1 %v12875_v43  ;;  %v13209_v43 = vcombine.high %v1431_v37, %v1455_v38  ;;  %v1743_v31 = vld [vmem:[#allocation8 + $0x1460] sm:$0xff] }
 0x285   :  { %10801 = vmatmul.mubr.bf16.vlgmr.msra.gmra.mrb[8].mxu0 %v15125_v48 }
 0x286   :  { %10887 = vmatmul.mubr.bf16.vlgmr.msra.gmra.mrb[8].mxu1 %v15125_v48  ;;  %10898 = vmatpush1.bf16.msra.mxu0 %v12872_v47  ;;  %v1503_v47 = vld [vmem:[#allocation8 + $0xce0] sm:$0xff] }
 0x287   :  { %10929 = vmatprep.mubr.bf16.mxu0 %v15127_v53  ;;  %10984 = vmatpush1.bf16.msra.mxu1 %v12874_v51  ;;  %v13208_v51 = vcombine.low %v1431_v37, %v1455_v38  ;;  %v13257_v55 = vcombine.high %v1479_v46, %v1503_v47  ;;  %v1767_v38 = vld [vmem:[#allocation8 + $0x1520] sm:$0xff] }
 0x288   :  { %11015 = vmatprep.mubr.bf16.mxu1 %v15127_v53  ;;  %10899 = vmatprep.subr.bf16.mxu0 %v12921_v52  ;;  %v13210_v52 = vcombine.low %v1432_v39, %v1456_v40  ;;  %v1791_v39 = vld [vmem:[#allocation8 + $0x15e0] sm:$0xff]  ;;  %v1768_v40 = vld [vmem:[#allocation8 + $0x1528] sm:$0xff] }
 0x289   :  { %10985 = vmatprep.subr.bf16.mxu1 %v12923_v57  ;;  %v1527_v57 = vld [vmem:[#allocation8 + $0xda0] sm:$0xff] }
 0x28a   :  { %10900 = vmatpush1.bf16.msra.mxu0 %v12920_v60  ;;  %v1552_v60 = vld [vmem:[#allocation8 + $0xe68] sm:$0xff] }
 0x28b   :  { %10986 = vmatpush1.bf16.msra.mxu1 %v12922_v61  ;;  %10901 = vmatprep.subr.bf16.mxu0 %v12969_v62  ;;  %v13256_v61 = vcombine.low %v1479_v46, %v1503_v47  ;;  %v13258_v62 = vcombine.low %v1480_v49, %v1504_v50  ;;  %v13307_v0 = vcombine.high %v1528_v59, %v1552_v60  ;;  %v1815_v47 = vld [vmem:[#allocation8 + $0x16a0] sm:$0xff]  ;;  %v1816_v50 = vld [vmem:[#allocation8 + $0x16a8] sm:$0xff] }
 0x28c   :  { %10987 = vmatprep.subr.bf16.mxu1 %v12971_v63  ;;  %v13305_v63 = vcombine.high %v1527_v57, %v1551_v58  ;;  %v1839_v49 = vld [vmem:[#allocation8 + $0x1760] sm:$0xff] }
 0x28e   :  { %10902 = vmatpush1.bf16.msra.mxu0 %v12968_v7  ;;  %v1600_v7 = vld [vmem:[#allocation8 + $0xfe8] sm:$0xff] }
 0x28f   :  { %10988 = vmatpush1.bf16.msra.mxu1 %v12970_v4  ;;  %10903 = vmatprep.subr.bf16.mxu0 %v13017_v5  ;;  %v13304_v4 = vcombine.low %v1527_v57, %v1551_v58  ;;  %v13306_v5 = vcombine.low %v1528_v59, %v1552_v60  ;;  %v13355_v8 = vcombine.high %v1576_v3, %v1600_v7  ;;  %v1863_v58 = vld [vmem:[#allocation8 + $0x1820] sm:$0xff]  ;;  %v1864_v60 = vld [vmem:[#allocation8 + $0x1828] sm:$0xff] }
 0x290   :  { %10989 = vmatprep.subr.bf16.mxu1 %v13019_v6  ;;  %v13353_v6 = vcombine.high %v1575_v1, %v1599_v2  ;;  %v1887_v59 = vld [vmem:[#allocation8 + $0x18e0] sm:$0xff] }
 0x292   :  { %10904 = vmatpush1.bf16.msra.mxu0 %v13016_v12  ;;  %v1648_v12 = vld [vmem:[#allocation8 + $0x1168] sm:$0xff] }
 0x293   :  { %10990 = vmatpush1.bf16.msra.mxu1 %v13018_v16  ;;  %10905 = vmatprep.subr.bf16.mxu0 %v13065_v19  ;;  %v13352_v16 = vcombine.low %v1575_v1, %v1599_v2  ;;  %v13354_v19 = vcombine.low %v1576_v3, %v1600_v7  ;;  %v13403_v21 = vcombine.high %v1624_v11, %v1648_v12  ;;  %v1911_v2 = vld [vmem:[#allocation8 + $0x19a0] sm:$0xff] }
 0x294   :  { %10991 = vmatprep.subr.bf16.mxu1 %v13067_v20  ;;  %v13401_v20 = vcombine.high %v1623_v9, %v1647_v10  ;;  %v1935_v3 = vld [vmem:[#allocation8 + $0x1a60] sm:$0xff]  ;;  %v13640_v7 = vcombine.low %v1863_v58, %v1887_v59 }
 0x296   :  { %10906 = vmatpush1.bf16.msra.mxu0 %v13064_v25  ;;  %v1696_v25 = vld [vmem:[#allocation8 + $0x12e8] sm:$0xff] }
 0x297   :  { %10992 = vmatpush1.bf16.msra.mxu1 %v13066_v26  ;;  %10907 = vmatprep.subr.bf16.mxu0 %v13113_v27  ;;  %v13400_v26 = vcombine.low %v1623_v9, %v1647_v10  ;;  %v13402_v27 = vcombine.low %v1624_v11, %v1648_v12  ;;  %v13451_v29 = vcombine.high %v1672_v24, %v1696_v25  ;;  %v1959_v9 = vld [vmem:[#allocation8 + $0x1b20] sm:$0xff]  ;;  %v1960_v12 = vld [vmem:[#allocation8 + $0x1b28] sm:$0xff] }
 0x298   :  { %10993 = vmatprep.subr.bf16.mxu1 %v13115_v28  ;;  %v13449_v28 = vcombine.high %v1671_v22, %v1695_v23  ;;  %v1983_v10 = vld [vmem:[#allocation8 + $0x1be0] sm:$0xff] }
 0x29a   :  { %10908 = vmatpush1.bf16.msra.mxu0 %v13112_v33  ;;  %v1744_v33 = vld [vmem:[#allocation8 + $0x1468] sm:$0xff] }
 0x29b   :  { %10994 = vmatpush1.bf16.msra.mxu1 %v13114_v34  ;;  %10909 = vmatprep.subr.bf16.mxu0 %v13161_v35  ;;  %v13448_v34 = vcombine.low %v1671_v22, %v1695_v23  ;;  %v13450_v35 = vcombine.low %v1672_v24, %v1696_v25  ;;  %v13499_v37 = vcombine.high %v1720_v32, %v1744_v33  ;;  %v2007_v23 = vld [vmem:[#allocation8 + $0x1ca0] sm:$0xff]  ;;  %v2008_v25 = vld [vmem:[#allocation8 + $0x1ca8] sm:$0xff] }
 0x29c   :  { %10995 = vmatprep.subr.bf16.mxu1 %v13163_v36  ;;  %v13497_v36 = vcombine.high %v1719_v30, %v1743_v31  ;;  %v2031_v24 = vld [vmem:[#allocation8 + $0x1d60] sm:$0xff] }
 0x29e   :  { %10910 = vmatpush1.bf16.msra.mxu0 %v13160_v41  ;;  %v1792_v41 = vld [vmem:[#allocation8 + $0x15e8] sm:$0xff] }
 0x29f   :  { %10996 = vmatpush1.bf16.msra.mxu1 %v13162_v42  ;;  %10911 = vmatprep.subr.bf16.mxu0 %v13209_v43  ;;  %v13496_v42 = vcombine.low %v1719_v30, %v1743_v31  ;;  %v13498_v43 = vcombine.low %v1720_v32, %v1744_v33  ;;  %v13547_v46 = vcombine.high %v1768_v40, %v1792_v41  ;;  %v2055_v31 = vld [vmem:[#allocation8 + $0x1e20] sm:$0xff]  ;;  %v2056_v33 = vld [vmem:[#allocation8 + $0x1e28] sm:$0xff] }
 0x2a0   :  { %10997 = vmatprep.subr.bf16.mxu1 %v13211_v44  ;;  %v13545_v44 = vcombine.high %v1767_v38, %v1791_v39  ;;  %v2079_v32 = vld [vmem:[#allocation8 + $0x1ee0] sm:$0xff] }
 0x2a2   :  { %10912 = vmatpush1.bf16.msra.mxu0 %v13208_v51  ;;  %v1840_v51 = vld [vmem:[#allocation8 + $0x1768] sm:$0xff] }
 0x2a3   :  { %10998 = vmatpush1.bf16.msra.mxu1 %v13210_v52  ;;  %10913 = vmatprep.subr.bf16.mxu0 %v13257_v55  ;;  %v13544_v52 = vcombine.low %v1767_v38, %v1791_v39  ;;  %v13546_v55 = vcombine.low %v1768_v40, %v1792_v41  ;;  %v13595_v57 = vcombine.high %v1816_v50, %v1840_v51  ;;  %v2103_v39 = vld [vmem:[#allocation8 + $0x1fa0] sm:$0xff]  ;;  %v2104_v41 = vld [vmem:[#allocation8 + $0x1fa8] sm:$0xff] }
 0x2a4   :  { %10999 = vmatprep.subr.bf16.mxu1 %v13259_v56  ;;  %v13593_v56 = vcombine.high %v1815_v47, %v1839_v49  ;;  %v2127_v40 = vld [vmem:[#allocation8 + $0x2060] sm:$0xff] }
 0x2a6   :  { %10914 = vmatpush1.bf16.msra.mxu0 %v13256_v61  ;;  %v1888_v61 = vld [vmem:[#allocation8 + $0x18e8] sm:$0xff] }
 0x2a7   :  { %11000 = vmatpush1.bf16.msra.mxu1 %v13258_v62  ;;  %10915 = vmatprep.subr.bf16.mxu0 %v13305_v63  ;;  %v13592_v62 = vcombine.low %v1815_v47, %v1839_v49  ;;  %v13594_v63 = vcombine.low %v1816_v50, %v1840_v51  ;;  %v13643_v1 = vcombine.high %v1864_v60, %v1888_v61  ;;  %v2151_v50 = vld [vmem:[#allocation8 + $0x2120] sm:$0xff] }
 0x2a8   :  { %11001 = vmatprep.subr.bf16.mxu1 %v13307_v0  ;;  %v13641_v0 = vcombine.high %v1863_v58, %v1887_v59  ;;  %v13881_v47 = vcombine.high %v2103_v39, %v2127_v40  ;;  %v2175_v51 = vld [vmem:[#allocation8 + $0x21e0] sm:$0xff] }
 0x2aa   :  { %10916 = vmatpush1.bf16.msra.mxu0 %v13304_v4  ;;  %v1912_v4 = vld [vmem:[#allocation8 + $0x19a8] sm:$0xff] }
 0x2ab   :  { %11002 = vmatpush1.bf16.msra.mxu1 %v13306_v5  ;;  %10917 = vmatprep.subr.bf16.mxu0 %v13353_v6  ;;  %v1936_v5 = vld [vmem:[#allocation8 + $0x1a68] sm:$0xff]  ;;  %v13642_v6 = vcombine.low %v1864_v60, %v1888_v61  ;;  %v13880_v60 = vcombine.low %v2103_v39, %v2127_v40 }
 0x2ac   :  { %11003 = vmatprep.subr.bf16.mxu1 %v13355_v8  ;;  %v13689_v8 = vcombine.high %v1911_v2, %v1935_v3  ;;  %v13691_v11 = vcombine.high %v1912_v4, %v1936_v5  ;;  %v2296_v39 = vld [vmem:[#allocation8 + $0x25a8] sm:$0xff] }
 0x2ad   :  { %v2320_v40 = vld [vmem:[#allocation8 + $0x2668] sm:$0xff] }
 0x2ae   :  { %10918 = vmatpush1.bf16.msra.mxu0 %v13352_v16  ;;  %v1984_v16 = vld [vmem:[#allocation8 + $0x1be8] sm:$0xff] }
 0x2af   :  { %11004 = vmatpush1.bf16.msra.mxu1 %v13354_v19  ;;  %10919 = vmatprep.subr.bf16.mxu0 %v13401_v20  ;;  %v13688_v19 = vcombine.low %v1911_v2, %v1935_v3  ;;  %v13690_v20 = vcombine.low %v1912_v4, %v1936_v5  ;;  %v13739_v22 = vcombine.high %v1960_v12, %v1984_v16  ;;  %v2199_v2 = vld [vmem:[#allocation8 + $0x22a0] sm:$0xff] }
 0x2b0   :  { %11005 = vmatprep.subr.bf16.mxu1 %v13403_v21  ;;  %v13737_v21 = vcombine.high %v1959_v9, %v1983_v10  ;;  %v2223_v3 = vld [vmem:[#allocation8 + $0x2360] sm:$0xff] }
 0x2b2   :  { %10920 = vmatpush1.bf16.msra.mxu0 %v13400_v26  ;;  %v2032_v26 = vld [vmem:[#allocation8 + $0x1d68] sm:$0xff] }
 0x2b3   :  { %11006 = vmatpush1.bf16.msra.mxu1 %v13402_v27  ;;  %10921 = vmatprep.subr.bf16.mxu0 %v13449_v28  ;;  %v13736_v27 = vcombine.low %v1959_v9, %v1983_v10  ;;  %v13738_v28 = vcombine.low %v1960_v12, %v1984_v16  ;;  %v13787_v30 = vcombine.high %v2008_v25, %v2032_v26  ;;  %v2224_v9 = vld [vmem:[#allocation8 + $0x2368] sm:$0xff] }
 0x2b4   :  { %11007 = vmatprep.subr.bf16.mxu1 %v13451_v29  ;;  %v13785_v29 = vcombine.high %v2007_v23, %v2031_v24 }
 0x2b6   :  { %10922 = vmatpush1.bf16.msra.mxu0 %v13448_v34  ;;  %v2080_v34 = vld [vmem:[#allocation8 + $0x1ee8] sm:$0xff] }
 0x2b7   :  { %11008 = vmatpush1.bf16.msra.mxu1 %v13450_v35  ;;  %10923 = vmatprep.subr.bf16.mxu0 %v13497_v36  ;;  %v13784_v35 = vcombine.low %v2007_v23, %v2031_v24  ;;  %v13786_v36 = vcombine.low %v2008_v25, %v2032_v26  ;;  %v13835_v38 = vcombine.high %v2056_v33, %v2080_v34 }
 0x2b8   :  { %11009 = vmatprep.subr.bf16.mxu1 %v13499_v37  ;;  %v13833_v37 = vcombine.high %v2055_v31, %v2079_v32  ;;  %v13977_v25 = vcombine.high %v2199_v2, %v2223_v3 }
 0x2ba   :  { %10924 = vmatpush1.bf16.msra.mxu0 %v13496_v42  ;;  %v2128_v42 = vld [vmem:[#allocation8 + $0x2068] sm:$0xff] }
 0x2bb   :  { %11010 = vmatpush1.bf16.msra.mxu1 %v13498_v43  ;;  %10925 = vmatprep.subr.bf16.mxu0 %v13545_v44  ;;  %v13832_v43 = vcombine.low %v2055_v31, %v2079_v32  ;;  %v15159_v44 = vld [vmem:[#allocation10] sm:$0xff]  ;;  %v13883_v49 = vcombine.high %v2104_v41, %v2128_v42  ;;  %v13882_v61 = vcombine.low %v2104_v41, %v2128_v42  ;;  %v2248_v31 = vld [vmem:[#allocation8 + $0x2428] sm:$0xff] }
 0x2bc   :  { %11011 = vmatprep.subr.bf16.mxu1 %v13547_v46  ;;  %v13834_v46 = vcombine.low %v2056_v33, %v2080_v34  ;;  %v2640_v58 = vrot.slane %v15159_v44, %v15114_v17  ;;  %v2648_v59 = vrot.slane %v15159_v44, %v15117_v18  ;;  %v2272_v32 = vld [vmem:[#allocation8 + $0x24e8] sm:$0xff]  ;;  %v13976_v33 = vcombine.low %v2199_v2, %v2223_v3  ;;  %v2439_v2 = vld [vmem:[#allocation8 + $0x2a20] sm:$0xff] }
 0x2bd   :  { %v14026_v42 = vcombine.low %v2248_v31, %v2272_v32  ;;  %v2463_v3 = vld [vmem:[#allocation8 + $0x2ae0] sm:$0xff] }
 0x2be   :  { %10926 = vmatpush1.bf16.msra.mxu0 %v13544_v52  ;;  %v2636_v52 = vrot.slane %v15159_v44, %v15108_v14 }
 0x2bf   :  { %11012 = vmatpush1.bf16.msra.mxu1 %v13546_v55  ;;  %10927 = vmatprep.subr.bf16.mxu0 %v13593_v56  ;;  %v2644_v55 = vrot.slane %v15159_v44, %v15111_v15  ;;  %v2152_v56 = vld [vmem:[#allocation8 + $0x2128] sm:$0xff] }
 0x2c0   :  { %11013 = vmatprep.subr.bf16.mxu1 %v13595_v57  ;;  %v2176_v57 = vld [vmem:[#allocation8 + $0x21e8] sm:$0xff] }
 0x2c2   :  { %10928 = vmatpush1.bf16.msra.mxu0 %v13592_v62  ;;  %v13929_v62 = vcombine.high %v2151_v50, %v2175_v51 }
 0x2c3   :  { %11014 = vmatpush1.bf16.msra.mxu1 %v13594_v63  ;;  %10940 = vmatprep.subr.bf16.mxu0 %v13641_v0 }
 0x2c4   :  { %11026 = vmatprep.subr.bf16.mxu1 %v13643_v1  ;;  %v13931_v1 = vcombine.high %v2152_v56, %v2176_v57 }
 0x2c5   :  { %10930 = vmatmul.mubr.bf16.vlgmr.msra.gmra.mrb[12].mxu0 %v15123_v45 }
 0x2c6   :  { %11016 = vmatmul.mubr.bf16.vlgmr.msra.gmra.mrb[12].mxu1 %v15123_v45  ;;  %10941 = vmatpush1.bf16.msra.mxu0 %v13640_v7 }
 0x2c7   :  { %10972 = vmatprep.mubr.bf16.mxu0 %v15129_v54  ;;  %11027 = vmatpush1.bf16.msra.mxu1 %v13642_v6 }
 0x2c8   :  { %11058 = vmatprep.mubr.bf16.mxu1 %v15129_v54  ;;  %10942 = vmatprep.subr.bf16.mxu0 %v13689_v8  ;;  %v2200_v8 = vld [vmem:[#allocation8 + $0x22a8] sm:$0xff] }
 0x2c9   :  { %11028 = vmatprep.subr.bf16.mxu1 %v13691_v11  ;;  %v13978_v34 = vcombine.low %v2200_v8, %v2224_v9 }
 0x2ca   :  { %10943 = vmatpush1.bf16.msra.mxu0 %v13688_v19  ;;  %v13928_v19 = vcombine.low %v2151_v50, %v2175_v51  ;;  %v2344_v50 = vld [vmem:[#allocation8 + $0x2728] sm:$0xff] }
 0x2cb   :  { %11029 = vmatpush1.bf16.msra.mxu1 %v13690_v20  ;;  %10944 = vmatprep.subr.bf16.mxu0 %v13737_v21  ;;  %v13930_v20 = vcombine.low %v2152_v56, %v2176_v57  ;;  %v2368_v51 = vld [vmem:[#allocation8 + $0x27e8] sm:$0xff] }
 0x2cc   :  { %11030 = vmatprep.subr.bf16.mxu1 %v13739_v22  ;;  %v14123_v57 = vcombine.high %v2344_v50, %v2368_v51 }
 0x2ce   :  { %10945 = vmatpush1.bf16.msra.mxu0 %v13736_v27 }
 0x2cf   :  { %11031 = vmatpush1.bf16.msra.mxu1 %v13738_v28  ;;  %10946 = vmatprep.subr.bf16.mxu0 %v13785_v29  ;;  %v13979_v28 = vcombine.high %v2200_v8, %v2224_v9  ;;  %v2247_v29 = vld [vmem:[#allocation8 + $0x2420] sm:$0xff]  ;;  %v14217_v8 = vcombine.high %v2439_v2, %v2463_v3 }
 0x2d0   :  { %11032 = vmatprep.subr.bf16.mxu1 %v13787_v30  ;;  %v2271_v30 = vld [vmem:[#allocation8 + $0x24e0] sm:$0xff] }
 0x2d1   :  { %v14024_v41 = vcombine.low %v2247_v29, %v2271_v30 }
 0x2d2   :  { %10947 = vmatpush1.bf16.msra.mxu0 %v13784_v35  ;;  %v14025_v35 = vcombine.high %v2247_v29, %v2271_v30 }
 0x2d3   :  { %11033 = vmatpush1.bf16.msra.mxu1 %v13786_v36  ;;  %10948 = vmatprep.subr.bf16.mxu0 %v13833_v37  ;;  %v14027_v36 = vcombine.high %v2248_v31, %v2272_v32  ;;  %v2295_v37 = vld [vmem:[#allocation8 + $0x25a0] sm:$0xff] }
 0x2d4   :  { %11034 = vmatprep.subr.bf16.mxu1 %v13835_v38  ;;  %v2319_v38 = vld [vmem:[#allocation8 + $0x2660] sm:$0xff] }
 0x2d5   :  { %v2583_v31 = vld [vmem:[#allocation8 + $0x2ea0] sm:$0xff] }
 0x2d6   :  { %10949 = vmatpush1.bf16.msra.mxu0 %v13832_v43  ;;  %v14073_v43 = vcombine.high %v2295_v37, %v2319_v38  ;;  %v2607_v32 = vld [vmem:[#allocation8 + $0x2f60] sm:$0xff] }
 0x2d7   :  { %11035 = vmatpush1.bf16.msra.mxu1 %v13834_v46  ;;  %10950 = vmatprep.subr.bf16.mxu0 %v13881_v47  ;;  %v14075_v46 = vcombine.high %v2296_v39, %v2320_v40  ;;  %v2343_v47 = vld [vmem:[#allocation8 + $0x2720] sm:$0xff] }
 0x2d8   :  { %v10630_v63 = vpop.f32.mrb[4].mxu0  ;;  %v10716_v0 = vpop.f32.mrb[4].mxu1  ;;  %11036 = vmatprep.subr.bf16.mxu1 %v13883_v49  ;;  %v2367_v49 = vld [vmem:[#allocation8 + $0x27e0] sm:$0xff] }
 0x2d9   :  { %v14408_v7 = vadd.f32 %v10630_v63, %v2636_v52  ;;  %v14412_v4 = vadd.f32 %v10716_v0, %v2644_v55  ;;  %v10632_v5 = vpop.f32.mrb[5].mxu0  ;;  %v10718_v6 = vpop.f32.mrb[5].mxu1  ;;  %v14121_v56 = vcombine.high %v2343_v47, %v2367_v49  ;;  %v14122_v63 = vcombine.low %v2344_v50, %v2368_v51  ;;  %v1145_v50 = vld [vmem:[#allocation8 + $0x1b0] sm:$0xff] }
 0x2da   :  { %v14409_v10 = vadd.f32 %v10632_v5, %v2640_v58  ;;  %v14413_v11 = vadd.f32 %v10718_v6, %v2648_v59  ;;  %v10634_v12 = vpop.f32.mrb[6].mxu0  ;;  %v10720_v16 = vpop.f32.mrb[6].mxu1  ;;  %10951 = vmatpush1.bf16.msra.mxu0 %v13880_v60  ;;  %v2392_v60 = vld [vmem:[#allocation8 + $0x28a8] sm:$0xff]  ;;  %v1169_v51 = vld [vmem:[#allocation8 + $0x270] sm:$0xff] }
 0x2db   :  { %12617 = vst [vmem:[#allocation11] sm:$0xff] %v14408_v7  ;;  %12619 = vst [vmem:[#allocation11 + $0x10] sm:$0xff] %v14412_v4  ;;  %v14410_v21 = vadd.f32 %v10634_v12, %v2636_v52  ;;  %v14414_v22 = vadd.f32 %v10720_v16, %v2644_v55  ;;  %11037 = vmatpush1.bf16.msra.mxu1 %v13882_v61  ;;  %v10636_v23 = vpop.f32.mrb[7].mxu0  ;;  %v10722_v24 = vpop.f32.mrb[7].mxu1  ;;  %10952 = vmatprep.subr.bf16.mxu0 %v13929_v62  ;;  %v2416_v61 = vld [vmem:[#allocation8 + $0x2968] sm:$0xff] }
 0x2dc   :  { %12618 = vst [vmem:[#allocation11 + $0x8] sm:$0xff] %v14409_v10  ;;  %12620 = vst [vmem:[#allocation11 + $0x18] sm:$0xff] %v14413_v11  ;;  %v14411_v26 = vadd.f32 %v10636_v23, %v2640_v58  ;;  %v14415_v27 = vadd.f32 %v10722_v24, %v2648_v59  ;;  %11038 = vmatprep.subr.bf16.mxu1 %v13931_v1  ;;  %v14072_v52 = vcombine.low %v2295_v37, %v2319_v38  ;;  %v2391_v58 = vld [vmem:[#allocation8 + $0x28a0] sm:$0xff]  ;;  %v2440_v7 = vld [vmem:[#allocation8 + $0x2a28] sm:$0xff] }
 0x2dd   :  { %12665 = vst [vmem:[#allocation11 + $0x180] sm:$0xff] %v14410_v21  ;;  %12667 = vst [vmem:[#allocation11 + $0x190] sm:$0xff] %v14414_v22  ;;  %v14074_v55 = vcombine.low %v2296_v39, %v2320_v40  ;;  %v2415_v59 = vld [vmem:[#allocation8 + $0x2960] sm:$0xff]  ;;  %v14120_v62 = vcombine.low %v2343_v47, %v2367_v49  ;;  %v14171_v1 = vcombine.high %v2392_v60, %v2416_v61  ;;  %v2464_v4 = vld [vmem:[#allocation8 + $0x2ae8] sm:$0xff] }
 0x2de   :  { %12666 = vst [vmem:[#allocation11 + $0x188] sm:$0xff] %v14411_v26  ;;  %12668 = vst [vmem:[#allocation11 + $0x198] sm:$0xff] %v14415_v27  ;;  %10953 = vmatpush1.bf16.msra.mxu0 %v13928_v19  ;;  %v14169_v0 = vcombine.high %v2391_v58, %v2415_v59  ;;  %v14168_v5 = vcombine.low %v2391_v58, %v2415_v59  ;;  %v14170_v6 = vcombine.low %v2392_v60, %v2416_v61  ;;  %v2487_v10 = vld [vmem:[#allocation8 + $0x2ba0] sm:$0xff]  ;;  %v2488_v12 = vld [vmem:[#allocation8 + $0x2ba8] sm:$0xff] }
 0x2df   :  { %11039 = vmatpush1.bf16.msra.mxu1 %v13930_v20  ;;  %10954 = vmatprep.subr.bf16.mxu0 %v13977_v25  ;;  %v14219_v9 = vcombine.high %v2440_v7, %v2464_v4  ;;  %v2511_v11 = vld [vmem:[#allocation8 + $0x2c60] sm:$0xff]  ;;  %v2512_v16 = vld [vmem:[#allocation8 + $0x2c68] sm:$0xff]  ;;  %v14216_v19 = vcombine.low %v2439_v2, %v2463_v3  ;;  %v14218_v20 = vcombine.low %v2440_v7, %v2464_v4  ;;  %v1097_v39 = vld [vmem:[#allocation8 + $0x30] sm:$0xff] }
 0x2e0   :  { %11040 = vmatprep.subr.bf16.mxu1 %v13979_v28  ;;  %v14265_v21 = vcombine.high %v2487_v10, %v2511_v11  ;;  %v14267_v22 = vcombine.high %v2488_v12, %v2512_v16  ;;  %v2535_v23 = vld [vmem:[#allocation8 + $0x2d20] sm:$0xff]  ;;  %v2536_v25 = vld [vmem:[#allocation8 + $0x2d28] sm:$0xff]  ;;  %v14264_v27 = vcombine.low %v2487_v10, %v2511_v11  ;;  %v14266_v28 = vcombine.low %v2488_v12, %v2512_v16  ;;  %v1121_v40 = vld [vmem:[#allocation8 + $0xf0] sm:$0xff] }
 0x2e1   :  { %v2559_v24 = vld [vmem:[#allocation8 + $0x2de0] sm:$0xff]  ;;  %v2560_v26 = vld [vmem:[#allocation8 + $0x2de8] sm:$0xff]  ;;  %v14361_v37 = vcombine.high %v2583_v31, %v2607_v32  ;;  %v12877_v47 = vcombine.high %v1097_v39, %v1121_v40  ;;  %v12925_v58 = vcombine.high %v1145_v50, %v1169_v51  ;;  %v1193_v59 = vld [vmem:[#allocation8 + $0x330] sm:$0xff] }
 0x2e2   :  { %10955 = vmatpush1.bf16.msra.mxu0 %v13976_v33  ;;  %v14313_v29 = vcombine.high %v2535_v23, %v2559_v24  ;;  %v14315_v30 = vcombine.high %v2536_v25, %v2560_v26  ;;  %v2584_v33 = vld [vmem:[#allocation8 + $0x2ea8] sm:$0xff]  ;;  %v1217_v60 = vld [vmem:[#allocation8 + $0x3f0] sm:$0xff] }
 0x2e3   :  { %11041 = vmatpush1.bf16.msra.mxu1 %v13978_v34  ;;  %10956 = vmatprep.subr.bf16.mxu0 %v14025_v35  ;;  %v2608_v34 = vld [vmem:[#allocation8 + $0x2f68] sm:$0xff]  ;;  %v14312_v35 = vcombine.low %v2535_v23, %v2559_v24  ;;  %v12973_v2 = vcombine.high %v1193_v59, %v1217_v60  ;;  %v1241_v7 = vld [vmem:[#allocation8 + $0x4b0] sm:$0xff] }
 0x2e4   :  { %11042 = vmatprep.subr.bf16.mxu1 %v14027_v36  ;;  %v14314_v36 = vcombine.low %v2536_v25, %v2560_v26  ;;  %v14363_v38 = vcombine.high %v2584_v33, %v2608_v34  ;;  %v1265_v4 = vld [vmem:[#allocation8 + $0x570] sm:$0xff] }
 0x2e5   :  { %v13021_v10 = vcombine.high %v1241_v7, %v1265_v4  ;;  %v1289_v12 = vld [vmem:[#allocation8 + $0x630] sm:$0xff] }
 0x2e6   :  { %10957 = vmatpush1.bf16.msra.mxu0 %v14024_v41  ;;  %v1098_v41 = vld [vmem:[#allocation8 + $0x38] sm:$0xff]  ;;  %v1313_v16 = vld [vmem:[#allocation8 + $0x6f0] sm:$0xff] }
 0x2e7   :  { %11043 = vmatpush1.bf16.msra.mxu1 %v14026_v42  ;;  %10958 = vmatprep.subr.bf16.mxu0 %v14073_v43  ;;  %v1122_v42 = vld [vmem:[#allocation8 + $0xf8] sm:$0xff]  ;;  %v14360_v43 = vcombine.low %v2583_v31, %v2607_v32  ;;  %v13069_v23 = vcombine.high %v1289_v12, %v1313_v16  ;;  %v1337_v25 = vld [vmem:[#allocation8 + $0x7b0] sm:$0xff] }
 0x2e8   :  { %11044 = vmatprep.subr.bf16.mxu1 %v14075_v46  ;;  %v14362_v46 = vcombine.low %v2584_v33, %v2608_v34  ;;  %v12879_v49 = vcombine.high %v1098_v41, %v1122_v42  ;;  %v1361_v26 = vld [vmem:[#allocation8 + $0x870] sm:$0xff] }
 0x2e9   :  { %v13117_v31 = vcombine.high %v1337_v25, %v1361_v26  ;;  %v1385_v33 = vld [vmem:[#allocation8 + $0x930] sm:$0xff] }
 0x2ea   :  { %10959 = vmatpush1.bf16.msra.mxu0 %v14072_v52  ;;  %v12876_v52 = vcombine.low %v1097_v39, %v1121_v40  ;;  %v1409_v34 = vld [vmem:[#allocation8 + $0x9f0] sm:$0xff] }
 0x2eb   :  { %11045 = vmatpush1.bf16.msra.mxu1 %v14074_v55  ;;  %10960 = vmatprep.subr.bf16.mxu0 %v14121_v56  ;;  %v1146_v55 = vld [vmem:[#allocation8 + $0x1b8] sm:$0xff]  ;;  %v13165_v39 = vcombine.high %v1385_v33, %v1409_v34 }
 0x2ec   :  { %11046 = vmatprep.subr.bf16.mxu1 %v14123_v57  ;;  %v1170_v56 = vld [vmem:[#allocation8 + $0x278] sm:$0xff]  ;;  %v12878_v57 = vcombine.low %v1098_v41, %v1122_v42  ;;  %v1433_v41 = vld [vmem:[#allocation8 + $0xab0] sm:$0xff] }
 0x2ed   :  { %v12927_v61 = vcombine.high %v1146_v55, %v1170_v56  ;;  %v1457_v42 = vld [vmem:[#allocation8 + $0xb70] sm:$0xff] }
 0x2ee   :  { %10961 = vmatpush1.bf16.msra.mxu0 %v14120_v62  ;;  %v1194_v62 = vld [vmem:[#allocation8 + $0x338] sm:$0xff] }
 0x2ef   :  { %11047 = vmatpush1.bf16.msra.mxu1 %v14122_v63  ;;  %10962 = vmatprep.subr.bf16.mxu0 %v14169_v0  ;;  %v1218_v63 = vld [vmem:[#allocation8 + $0x3f8] sm:$0xff]  ;;  %v12924_v0 = vcombine.low %v1145_v50, %v1169_v51  ;;  %v13213_v50 = vcombine.high %v1433_v41, %v1457_v42 }
 0x2f0   :  { %11048 = vmatprep.subr.bf16.mxu1 %v14171_v1  ;;  %v12926_v1 = vcombine.low %v1146_v55, %v1170_v56  ;;  %v12975_v3 = vcombine.high %v1194_v62, %v1218_v63  ;;  %v1505_v55 = vld [vmem:[#allocation8 + $0xcf0] sm:$0xff]  ;;  %v1482_v56 = vld [vmem:[#allocation8 + $0xc38] sm:$0xff] }
 0x2f2   :  { %10963 = vmatpush1.bf16.msra.mxu0 %v14168_v5  ;;  %v1242_v5 = vld [vmem:[#allocation8 + $0x4b8] sm:$0xff] }
 0x2f3   :  { %11049 = vmatpush1.bf16.msra.mxu1 %v14170_v6  ;;  %10964 = vmatprep.subr.bf16.mxu0 %v14217_v8  ;;  %v1266_v6 = vld [vmem:[#allocation8 + $0x578] sm:$0xff]  ;;  %v12972_v8 = vcombine.low %v1193_v59, %v1217_v60 }
 0x2f4   :  { %11050 = vmatprep.subr.bf16.mxu1 %v14219_v9  ;;  %v12974_v9 = vcombine.low %v1194_v62, %v1218_v63  ;;  %v13023_v11 = vcombine.high %v1242_v5, %v1266_v6  ;;  %v1529_v62 = vld [vmem:[#allocation8 + $0xdb0] sm:$0xff] }
 0x2f5   :  { %v1553_v63 = vld [vmem:[#allocation8 + $0xe70] sm:$0xff] }
 0x2f6   :  { %10965 = vmatpush1.bf16.msra.mxu0 %v14216_v19  ;;  %v1290_v19 = vld [vmem:[#allocation8 + $0x638] sm:$0xff] }
 0x2f7   :  { %11051 = vmatpush1.bf16.msra.mxu1 %v14218_v20  ;;  %10966 = vmatprep.subr.bf16.mxu0 %v14265_v21  ;;  %v1314_v20 = vld [vmem:[#allocation8 + $0x6f8] sm:$0xff]  ;;  %v13020_v21 = vcombine.low %v1241_v7, %v1265_v4  ;;  %v13309_v7 = vcombine.high %v1529_v62, %v1553_v63 }
 0x2f8   :  { %11052 = vmatprep.subr.bf16.mxu1 %v14267_v22  ;;  %v13022_v22 = vcombine.low %v1242_v5, %v1266_v6  ;;  %v13071_v24 = vcombine.high %v1290_v19, %v1314_v20  ;;  %v1577_v5 = vld [vmem:[#allocation8 + $0xf30] sm:$0xff] }
 0x2f9   :  { %v1601_v6 = vld [vmem:[#allocation8 + $0xff0] sm:$0xff] }
 0x2fa   :  { %10967 = vmatpush1.bf16.msra.mxu0 %v14264_v27  ;;  %v1338_v27 = vld [vmem:[#allocation8 + $0x7b8] sm:$0xff] }
 0x2fb   :  { %11053 = vmatpush1.bf16.msra.mxu1 %v14266_v28  ;;  %10968 = vmatprep.subr.bf16.mxu0 %v14313_v29  ;;  %v1362_v28 = vld [vmem:[#allocation8 + $0x878] sm:$0xff]  ;;  %v13068_v29 = vcombine.low %v1289_v12, %v1313_v16  ;;  %v13357_v12 = vcombine.high %v1577_v5, %v1601_v6 }
 0x2fc   :  { %11054 = vmatprep.subr.bf16.mxu1 %v14315_v30  ;;  %v13070_v30 = vcombine.low %v1290_v19, %v1314_v20  ;;  %v13119_v32 = vcombine.high %v1338_v27, %v1362_v28  ;;  %v1625_v19 = vld [vmem:[#allocation8 + $0x10b0] sm:$0xff] }
 0x2fd   :  { %v1649_v20 = vld [vmem:[#allocation8 + $0x1170] sm:$0xff] }
 0x2fe   :  { %10969 = vmatpush1.bf16.msra.mxu0 %v14312_v35  ;;  %v1386_v35 = vld [vmem:[#allocation8 + $0x938] sm:$0xff] }
 0x2ff   :  { %11055 = vmatpush1.bf16.msra.mxu1 %v14314_v36  ;;  %10970 = vmatprep.subr.bf16.mxu0 %v14361_v37  ;;  %v1410_v36 = vld [vmem:[#allocation8 + $0x9f8] sm:$0xff]  ;;  %v13116_v37 = vcombine.low %v1337_v25, %v1361_v26  ;;  %v13405_v25 = vcombine.high %v1625_v19, %v1649_v20 }
 0x300   :  { %11056 = vmatprep.subr.bf16.mxu1 %v14363_v38  ;;  %v13118_v38 = vcombine.low %v1338_v27, %v1362_v28  ;;  %v13167_v40 = vcombine.high %v1386_v35, %v1410_v36  ;;  %v1673_v27 = vld [vmem:[#allocation8 + $0x1230] sm:$0xff] }
 0x301   :  { %v1697_v28 = vld [vmem:[#allocation8 + $0x12f0] sm:$0xff] }
 0x302   :  { %10971 = vmatpush1.bf16.msra.mxu0 %v14360_v43  ;;  %v1434_v43 = vld [vmem:[#allocation8 + $0xab8] sm:$0xff] }
 0x303   :  { %11057 = vmatpush1.bf16.msra.mxu1 %v14362_v46  ;;  %11069 = vmatprep.subr.bf16.mxu0 %v12877_v47  ;;  %v1458_v46 = vld [vmem:[#allocation8 + $0xb78] sm:$0xff]  ;;  %v13164_v47 = vcombine.low %v1385_v33, %v1409_v34  ;;  %v13453_v33 = vcombine.high %v1673_v27, %v1697_v28 }
 0x304   :  { %11155 = vmatprep.subr.bf16.mxu1 %v12879_v49  ;;  %v13166_v49 = vcombine.low %v1386_v35, %v1410_v36  ;;  %v13215_v51 = vcombine.high %v1434_v43, %v1458_v46  ;;  %v13214_v59 = vcombine.low %v1434_v43, %v1458_v46  ;;  %v1721_v35 = vld [vmem:[#allocation8 + $0x13b0] sm:$0xff] }
 0x305   :  { %10973 = vmatmul.mubr.bf16.vlgmr.msra.gmra.mrb[12].mxu0 %v15125_v48  ;;  %v1745_v36 = vld [vmem:[#allocation8 + $0x1470] sm:$0xff] }
 0x306   :  { %11059 = vmatmul.mubr.bf16.vlgmr.msra.gmra.mrb[12].mxu1 %v15125_v48  ;;  %11070 = vmatpush1.bf16.msra.mxu0 %v12876_v52  ;;  %v1481_v52 = vld [vmem:[#allocation8 + $0xc30] sm:$0xff] }
 0x307   :  { %11101 = vmatprep.mubr.bf16.mxu0 %v15127_v53  ;;  %11156 = vmatpush1.bf16.msra.mxu1 %v12878_v57  ;;  %v1506_v57 = vld [vmem:[#allocation8 + $0xcf8] sm:$0xff]  ;;  %v13261_v60 = vcombine.high %v1481_v52, %v1505_v55  ;;  %v1769_v43 = vld [vmem:[#allocation8 + $0x1530] sm:$0xff] }
 0x308   :  { %11187 = vmatprep.mubr.bf16.mxu1 %v15127_v53  ;;  %11071 = vmatprep.subr.bf16.mxu0 %v12925_v58  ;;  %v13212_v58 = vcombine.low %v1433_v41, %v1457_v42  ;;  %v13501_v41 = vcombine.high %v1721_v35, %v1745_v36  ;;  %v1793_v46 = vld [vmem:[#allocation8 + $0x15f0] sm:$0xff] }
 0x309   :  { %11157 = vmatprep.subr.bf16.mxu1 %v12927_v61  ;;  %v13263_v61 = vcombine.high %v1482_v56, %v1506_v57 }
 0x30a   :  { %11072 = vmatpush1.bf16.msra.mxu0 %v12924_v0  ;;  %v1530_v0 = vld [vmem:[#allocation8 + $0xdb8] sm:$0xff] }
 0x30b   :  { %11158 = vmatpush1.bf16.msra.mxu1 %v12926_v1  ;;  %11073 = vmatprep.subr.bf16.mxu0 %v12973_v2  ;;  %v1554_v1 = vld [vmem:[#allocation8 + $0xe78] sm:$0xff]  ;;  %v13260_v2 = vcombine.low %v1481_v52, %v1505_v55  ;;  %v13549_v52 = vcombine.high %v1769_v43, %v1793_v46 }
 0x30c   :  { %11159 = vmatprep.subr.bf16.mxu1 %v12975_v3  ;;  %v13262_v3 = vcombine.low %v1482_v56, %v1506_v57  ;;  %v13311_v4 = vcombine.high %v1530_v0, %v1554_v1  ;;  %v1817_v56 = vld [vmem:[#allocation8 + $0x16b0] sm:$0xff] }
 0x30d   :  { %v1841_v57 = vld [vmem:[#allocation8 + $0x1770] sm:$0xff] }
 0x30e   :  { %11074 = vmatpush1.bf16.msra.mxu0 %v12972_v8  ;;  %v1578_v8 = vld [vmem:[#allocation8 + $0xf38] sm:$0xff] }
 0x30f   :  { %11160 = vmatpush1.bf16.msra.mxu1 %v12974_v9  ;;  %11075 = vmatprep.subr.bf16.mxu0 %v13021_v10  ;;  %v1602_v9 = vld [vmem:[#allocation8 + $0xff8] sm:$0xff]  ;;  %v13308_v10 = vcombine.low %v1529_v62, %v1553_v63  ;;  %v13597_v62 = vcombine.high %v1817_v56, %v1841_v57 }
 0x310   :  { %11161 = vmatprep.subr.bf16.mxu1 %v13023_v11  ;;  %v13310_v11 = vcombine.low %v1530_v0, %v1554_v1  ;;  %v13359_v16 = vcombine.high %v1578_v8, %v1602_v9  ;;  %v1865_v0 = vld [vmem:[#allocation8 + $0x1830] sm:$0xff] }
 0x311   :  { %v1889_v1 = vld [vmem:[#allocation8 + $0x18f0] sm:$0xff] }
 0x312   :  { %11076 = vmatpush1.bf16.msra.mxu0 %v13020_v21  ;;  %v1626_v21 = vld [vmem:[#allocation8 + $0x10b8] sm:$0xff] }
 0x313   :  { %11162 = vmatpush1.bf16.msra.mxu1 %v13022_v22  ;;  %11077 = vmatprep.subr.bf16.mxu0 %v13069_v23  ;;  %v1650_v22 = vld [vmem:[#allocation8 + $0x1178] sm:$0xff]  ;;  %v13356_v23 = vcombine.low %v1577_v5, %v1601_v6  ;;  %v13645_v5 = vcombine.high %v1865_v0, %v1889_v1 }
 0x314   :  { %11163 = vmatprep.subr.bf16.mxu1 %v13071_v24  ;;  %v13358_v24 = vcombine.low %v1578_v8, %v1602_v9  ;;  %v13407_v26 = vcombine.high %v1626_v21, %v1650_v22  ;;  %v1913_v8 = vld [vmem:[#allocation8 + $0x19b0] sm:$0xff] }
 0x315   :  { %v1937_v9 = vld [vmem:[#allocation8 + $0x1a70] sm:$0xff] }
 0x316   :  { %11078 = vmatpush1.bf16.msra.mxu0 %v13068_v29  ;;  %v1674_v29 = vld [vmem:[#allocation8 + $0x1238] sm:$0xff] }
 0x317   :  { %11164 = vmatpush1.bf16.msra.mxu1 %v13070_v30  ;;  %11079 = vmatprep.subr.bf16.mxu0 %v13117_v31  ;;  %v1698_v30 = vld [vmem:[#allocation8 + $0x12f8] sm:$0xff]  ;;  %v13404_v31 = vcombine.low %v1625_v19, %v1649_v20  ;;  %v13693_v19 = vcombine.high %v1913_v8, %v1937_v9  ;;  %v1961_v20 = vld [vmem:[#allocation8 + $0x1b30] sm:$0xff] }
 0x318   :  { %11165 = vmatprep.subr.bf16.mxu1 %v13119_v32  ;;  %v13406_v32 = vcombine.low %v1626_v21, %v1650_v22  ;;  %v13455_v34 = vcombine.high %v1674_v29, %v1698_v30  ;;  %v1985_v21 = vld [vmem:[#allocation8 + $0x1bf0] sm:$0xff] }
 0x31a   :  { %11080 = vmatpush1.bf16.msra.mxu0 %v13116_v37  ;;  %v1722_v37 = vld [vmem:[#allocation8 + $0x13b8] sm:$0xff] }
 0x31b   :  { %11166 = vmatpush1.bf16.msra.mxu1 %v13118_v38  ;;  %11081 = vmatprep.subr.bf16.mxu0 %v13165_v39  ;;  %v1746_v38 = vld [vmem:[#allocation8 + $0x1478] sm:$0xff]  ;;  %v13452_v39 = vcombine.low %v1673_v27, %v1697_v28  ;;  %v13741_v27 = vcombine.high %v1961_v20, %v1985_v21 }
 0x31c   :  { %11167 = vmatprep.subr.bf16.mxu1 %v13167_v40  ;;  %v13454_v40 = vcombine.low %v1674_v29, %v1698_v30  ;;  %v13503_v42 = vcombine.high %v1722_v37, %v1746_v38  ;;  %v2009_v29 = vld [vmem:[#allocation8 + $0x1cb0] sm:$0xff] }
 0x31d   :  { %v2033_v30 = vld [vmem:[#allocation8 + $0x1d70] sm:$0xff] }
 0x31e   :  { %11082 = vmatpush1.bf16.msra.mxu0 %v13164_v47  ;;  %v1770_v47 = vld [vmem:[#allocation8 + $0x1538] sm:$0xff] }
 0x31f   :  { %11168 = vmatpush1.bf16.msra.mxu1 %v13166_v49  ;;  %11083 = vmatprep.subr.bf16.mxu0 %v13213_v50  ;;  %v1794_v49 = vld [vmem:[#allocation8 + $0x15f8] sm:$0xff]  ;;  %v13500_v50 = vcombine.low %v1721_v35, %v1745_v36  ;;  %v13789_v35 = vcombine.high %v2009_v29, %v2033_v30 }
 0x320   :  { %11169 = vmatprep.subr.bf16.mxu1 %v13215_v51  ;;  %v13502_v51 = vcombine.low %v1722_v37, %v1746_v38  ;;  %v13551_v55 = vcombine.high %v1770_v47, %v1794_v49  ;;  %v2057_v37 = vld [vmem:[#allocation8 + $0x1e30] sm:$0xff] }
 0x321   :  { %v2081_v38 = vld [vmem:[#allocation8 + $0x1ef0] sm:$0xff] }
 0x322   :  { %11084 = vmatpush1.bf16.msra.mxu0 %v13212_v58  ;;  %v1818_v58 = vld [vmem:[#allocation8 + $0x16b8] sm:$0xff] }
 0x323   :  { %11170 = vmatpush1.bf16.msra.mxu1 %v13214_v59  ;;  %11085 = vmatprep.subr.bf16.mxu0 %v13261_v60  ;;  %v1842_v59 = vld [vmem:[#allocation8 + $0x1778] sm:$0xff]  ;;  %v13548_v60 = vcombine.low %v1769_v43, %v1793_v46  ;;  %v13837_v43 = vcombine.high %v2057_v37, %v2081_v38 }
 0x324   :  { %11171 = vmatprep.subr.bf16.mxu1 %v13263_v61  ;;  %v13550_v61 = vcombine.low %v1770_v47, %v1794_v49  ;;  %v13599_v63 = vcombine.high %v1818_v58, %v1842_v59  ;;  %v2105_v47 = vld [vmem:[#allocation8 + $0x1fb0] sm:$0xff] }
 0x325   :  { %v2129_v49 = vld [vmem:[#allocation8 + $0x2070] sm:$0xff] }
 0x326   :  { %11086 = vmatpush1.bf16.msra.mxu0 %v13260_v2  ;;  %v1866_v2 = vld [vmem:[#allocation8 + $0x1838] sm:$0xff] }
 0x327   :  { %11172 = vmatpush1.bf16.msra.mxu1 %v13262_v3  ;;  %11087 = vmatprep.subr.bf16.mxu0 %v13309_v7  ;;  %v1890_v3 = vld [vmem:[#allocation8 + $0x18f8] sm:$0xff]  ;;  %v13596_v7 = vcombine.low %v1817_v56, %v1841_v57  ;;  %v15181_v56 = vsub.s32 6, %v15105_v13  ;;  %v15184_v57 = vsub.s32 5, %v15105_v13 }
 0x328   :  { %11173 = vmatprep.subr.bf16.mxu1 %v13311_v4  ;;  %v13598_v4 = vcombine.low %v1818_v58, %v1842_v59  ;;  %v13647_v6 = vcombine.high %v1866_v2, %v1890_v3  ;;  %v15187_v59 = vsub.s32 7, %v15105_v13 }
 0x32a   :  { %11088 = vmatpush1.bf16.msra.mxu0 %v13308_v10  ;;  %v13644_v10 = vcombine.low %v1865_v0, %v1889_v1  ;;  %v2154_v1 = vld [vmem:[#allocation8 + $0x2138] sm:$0xff] }
 0x32b   :  { %11174 = vmatpush1.bf16.msra.mxu1 %v13310_v11  ;;  %11089 = vmatprep.subr.bf16.mxu0 %v13357_v12  ;;  %v1914_v11 = vld [vmem:[#allocation8 + $0x19b8] sm:$0xff] }
 0x32c   :  { %11175 = vmatprep.subr.bf16.mxu1 %v13359_v16  ;;  %v1938_v12 = vld [vmem:[#allocation8 + $0x1a78] sm:$0xff]  ;;  %v13646_v16 = vcombine.low %v1866_v2, %v1890_v3  ;;  %v2660_v3 = vrot.slane %v15159_v44, %v15181_v56 }
 0x32d   :  { %v13695_v22 = vcombine.high %v1914_v11, %v1938_v12  ;;  %v2178_v2 = vld [vmem:[#allocation8 + $0x21f8] sm:$0xff] }
 0x32e   :  { %11090 = vmatpush1.bf16.msra.mxu0 %v13356_v23  ;;  %v1962_v23 = vld [vmem:[#allocation8 + $0x1b38] sm:$0xff] }
 0x32f   :  { %11176 = vmatpush1.bf16.msra.mxu1 %v13358_v24  ;;  %11091 = vmatprep.subr.bf16.mxu0 %v13405_v25  ;;  %v1986_v24 = vld [vmem:[#allocation8 + $0x1bf8] sm:$0xff]  ;;  %v13692_v25 = vcombine.low %v1913_v8, %v1937_v9  ;;  %v13935_v9 = vcombine.high %v2154_v1, %v2178_v2 }
 0x330   :  { %11177 = vmatprep.subr.bf16.mxu1 %v13407_v26  ;;  %v13694_v26 = vcombine.low %v1914_v11, %v1938_v12  ;;  %v13743_v28 = vcombine.high %v1962_v23, %v1986_v24  ;;  %v2225_v11 = vld [vmem:[#allocation8 + $0x2370] sm:$0xff] }
 0x332   :  { %11092 = vmatpush1.bf16.msra.mxu0 %v13404_v31  ;;  %v2010_v31 = vld [vmem:[#allocation8 + $0x1cb8] sm:$0xff] }
 0x333   :  { %11178 = vmatpush1.bf16.msra.mxu1 %v13406_v32  ;;  %11093 = vmatprep.subr.bf16.mxu0 %v13453_v33  ;;  %v2034_v32 = vld [vmem:[#allocation8 + $0x1d78] sm:$0xff]  ;;  %v13740_v33 = vcombine.low %v1961_v20, %v1985_v21 }
 0x334   :  { %11179 = vmatprep.subr.bf16.mxu1 %v13455_v34  ;;  %v13742_v34 = vcombine.low %v1962_v23, %v1986_v24  ;;  %v13791_v36 = vcombine.high %v2010_v31, %v2034_v32  ;;  %v2202_v20 = vld [vmem:[#allocation8 + $0x22b8] sm:$0xff] }
 0x335   :  { %v2226_v21 = vld [vmem:[#allocation8 + $0x2378] sm:$0xff] }
 0x336   :  { %11094 = vmatpush1.bf16.msra.mxu0 %v13452_v39  ;;  %v2058_v39 = vld [vmem:[#allocation8 + $0x1e38] sm:$0xff] }
 0x337   :  { %11180 = vmatpush1.bf16.msra.mxu1 %v13454_v40  ;;  %11095 = vmatprep.subr.bf16.mxu0 %v13501_v41  ;;  %v2082_v40 = vld [vmem:[#allocation8 + $0x1ef8] sm:$0xff]  ;;  %v13788_v41 = vcombine.low %v2009_v29, %v2033_v30 }
 0x338   :  { %11181 = vmatprep.subr.bf16.mxu1 %v13503_v42  ;;  %v13790_v42 = vcombine.low %v2010_v31, %v2034_v32  ;;  %v13839_v46 = vcombine.high %v2058_v39, %v2082_v40  ;;  %v13838_v58 = vcombine.low %v2058_v39, %v2082_v40  ;;  %v2250_v39 = vld [vmem:[#allocation8 + $0x2438] sm:$0xff] }
 0x339   :  { %v2274_v40 = vld [vmem:[#allocation8 + $0x24f8] sm:$0xff] }
 0x33a   :  { %11096 = vmatpush1.bf16.msra.mxu0 %v13500_v50  ;;  %v15178_v50 = vsub.s32 4, %v15105_v13  ;;  %v2664_v13 = vrot.slane %v15159_v44, %v15187_v59 }
 0x33b   :  { %11182 = vmatpush1.bf16.msra.mxu1 %v13502_v51  ;;  %11097 = vmatprep.subr.bf16.mxu0 %v13549_v52  ;;  %v2106_v51 = vld [vmem:[#allocation8 + $0x1fb8] sm:$0xff] }
 0x33c   :  { %11183 = vmatprep.subr.bf16.mxu1 %v13551_v55  ;;  %v2130_v52 = vld [vmem:[#allocation8 + $0x2078] sm:$0xff]  ;;  %v13836_v55 = vcombine.low %v2057_v37, %v2081_v38  ;;  %v2652_v0 = vrot.slane %v15159_v44, %v15178_v50  ;;  %v2273_v37 = vld [vmem:[#allocation8 + $0x24f0] sm:$0xff] }
 0x33e   :  { %11098 = vmatpush1.bf16.msra.mxu0 %v13548_v60  ;;  %v13885_v60 = vcombine.high %v2105_v47, %v2129_v49 }
 0x33f   :  { %11184 = vmatpush1.bf16.msra.mxu1 %v13550_v61  ;;  %11099 = vmatprep.subr.bf16.mxu0 %v13597_v62  ;;  %v13887_v61 = vcombine.high %v2106_v51, %v2130_v52  ;;  %v2153_v62 = vld [vmem:[#allocation8 + $0x2130] sm:$0xff] }
 0x340   :  { %11185 = vmatprep.subr.bf16.mxu1 %v13599_v63  ;;  %v2177_v63 = vld [vmem:[#allocation8 + $0x21f0] sm:$0xff] }
 0x342   :  { %11100 = vmatpush1.bf16.msra.mxu0 %v13596_v7  ;;  %v2656_v7 = vrot.slane %v15159_v44, %v15184_v57  ;;  %v13934_v44 = vcombine.low %v2154_v1, %v2178_v2  ;;  %v2370_v1 = vld [vmem:[#allocation8 + $0x27f8] sm:$0xff] }
 0x343   :  { %11186 = vmatpush1.bf16.msra.mxu1 %v13598_v4  ;;  %11112 = vmatprep.subr.bf16.mxu0 %v13645_v5  ;;  %v13884_v4 = vcombine.low %v2105_v47, %v2129_v49  ;;  %v13886_v5 = vcombine.low %v2106_v51, %v2130_v52  ;;  %v2297_v47 = vld [vmem:[#allocation8 + $0x25b0] sm:$0xff]  ;;  %v2298_v51 = vld [vmem:[#allocation8 + $0x25b8] sm:$0xff] }
 0x344   :  { %11198 = vmatprep.subr.bf16.mxu1 %v13647_v6  ;;  %v13933_v6 = vcombine.high %v2153_v62, %v2177_v63  ;;  %v2321_v49 = vld [vmem:[#allocation8 + $0x2670] sm:$0xff]  ;;  %v2322_v52 = vld [vmem:[#allocation8 + $0x2678] sm:$0xff] }
 0x345   :  { %11102 = vmatmul.mubr.bf16.vlgmr.msra.gmra.mrb[16].mxu0 %v15123_v45  ;;  %v14076_v2 = vcombine.low %v2297_v47, %v2321_v49 }
 0x346   :  { %11188 = vmatmul.mubr.bf16.vlgmr.msra.gmra.mrb[16].mxu1 %v15123_v45  ;;  %11113 = vmatpush1.bf16.msra.mxu0 %v13644_v10  ;;  %v2201_v10 = vld [vmem:[#allocation8 + $0x22b0] sm:$0xff] }
 0x347   :  { %11144 = vmatprep.mubr.bf16.mxu0 %v15129_v54  ;;  %11199 = vmatpush1.bf16.msra.mxu1 %v13646_v16  ;;  %v13981_v31 = vcombine.high %v2201_v10, %v2225_v11 }
 0x348   :  { %11230 = vmatprep.mubr.bf16.mxu1 %v15129_v54  ;;  %11114 = vmatprep.subr.bf16.mxu0 %v13693_v19 }
 0x349   :  { %11200 = vmatprep.subr.bf16.mxu1 %v13695_v22 }
 0x34a   :  { %11115 = vmatpush1.bf16.msra.mxu0 %v13692_v25 }
 0x34b   :  { %11201 = vmatpush1.bf16.msra.mxu1 %v13694_v26  ;;  %11116 = vmatprep.subr.bf16.mxu0 %v13741_v27  ;;  %v13932_v26 = vcombine.low %v2153_v62, %v2177_v63  ;;  %v2345_v62 = vld [vmem:[#allocation8 + $0x2730] sm:$0xff] }
 0x34c   :  { %11202 = vmatprep.subr.bf16.mxu1 %v13743_v28  ;;  %v2369_v63 = vld [vmem:[#allocation8 + $0x27f0] sm:$0xff] }
 0x34e   :  { %11117 = vmatpush1.bf16.msra.mxu0 %v13740_v33 }
 0x34f   :  { %11203 = vmatpush1.bf16.msra.mxu1 %v13742_v34  ;;  %11118 = vmatprep.subr.bf16.mxu0 %v13789_v35  ;;  %v13983_v35 = vcombine.high %v2202_v20, %v2226_v21 }
 0x350   :  { %11204 = vmatprep.subr.bf16.mxu1 %v13791_v36  ;;  %v2249_v36 = vld [vmem:[#allocation8 + $0x2430] sm:$0xff] }
 0x352   :  { %11119 = vmatpush1.bf16.msra.mxu0 %v13788_v41  ;;  %v13980_v41 = vcombine.low %v2201_v10, %v2225_v11 }
 0x353   :  { %11205 = vmatpush1.bf16.msra.mxu1 %v13790_v42  ;;  %11120 = vmatprep.subr.bf16.mxu0 %v13837_v43  ;;  %v13982_v42 = vcombine.low %v2202_v20, %v2226_v21  ;;  %v14029_v43 = vcombine.high %v2249_v36, %v2273_v37  ;;  %v2442_v20 = vld [vmem:[#allocation8 + $0x2a38] sm:$0xff] }
 0x354   :  { %11206 = vmatprep.subr.bf16.mxu1 %v13839_v46  ;;  %v14031_v46 = vcombine.high %v2250_v39, %v2274_v40  ;;  %v2466_v21 = vld [vmem:[#allocation8 + $0x2af8] sm:$0xff] }
 0x356   :  { %11121 = vmatpush1.bf16.msra.mxu0 %v13836_v55  ;;  %v14028_v55 = vcombine.low %v2249_v36, %v2273_v37  ;;  %v2562_v36 = vld [vmem:[#allocation8 + $0x2df8] sm:$0xff] }
 0x357   :  { %11207 = vmatpush1.bf16.msra.mxu1 %v13838_v58  ;;  %11122 = vmatprep.subr.bf16.mxu0 %v13885_v60  ;;  %v14030_v58 = vcombine.low %v2250_v39, %v2274_v40  ;;  %v14077_v60 = vcombine.high %v2297_v47, %v2321_v49 }
 0x358   :  { %v10802_v8 = vpop.f32.mrb[8].mxu0  ;;  %11208 = vmatprep.subr.bf16.mxu1 %v13887_v61  ;;  %v14079_v61 = vcombine.high %v2298_v51, %v2322_v52 }
 0x359   :  { %v14416_v12 = vadd.f32 %v10802_v8, %v2652_v0  ;;  %v10888_v16 = vpop.f32.mrb[8].mxu1  ;;  %v10804_v19 = vpop.f32.mrb[9].mxu0  ;;  %v2418_v8 = vld [vmem:[#allocation8 + $0x2978] sm:$0xff] }
 0x35a   :  { %v14420_v22 = vadd.f32 %v10888_v16, %v2660_v3  ;;  %v14417_v23 = vadd.f32 %v10804_v19, %v2656_v7  ;;  %v10890_v24 = vpop.f32.mrb[9].mxu1  ;;  %v10806_v25 = vpop.f32.mrb[10].mxu0  ;;  %11123 = vmatpush1.bf16.msra.mxu0 %v13884_v4  ;;  %v2441_v16 = vld [vmem:[#allocation8 + $0x2a30] sm:$0xff] }
 0x35b   :  { %12621 = vst [vmem:[#allocation11 + $0x20] sm:$0xff] %v14416_v12  ;;  %v14421_v27 = vadd.f32 %v10890_v24, %v2664_v13  ;;  %v14418_v28 = vadd.f32 %v10806_v25, %v2652_v0  ;;  %v10892_v29 = vpop.f32.mrb[10].mxu1  ;;  %11209 = vmatpush1.bf16.msra.mxu1 %v13886_v5  ;;  %v10808_v30 = vpop.f32.mrb[11].mxu0  ;;  %11124 = vmatprep.subr.bf16.mxu0 %v13933_v6  ;;  %v2346_v0 = vld [vmem:[#allocation8 + $0x2738] sm:$0xff]  ;;  %v2417_v5 = vld [vmem:[#allocation8 + $0x2970] sm:$0xff] }
 0x35c   :  { %12623 = vst [vmem:[#allocation11 + $0x30] sm:$0xff] %v14420_v22  ;;  %12622 = vst [vmem:[#allocation11 + $0x28] sm:$0xff] %v14417_v23  ;;  %v14422_v32 = vadd.f32 %v10892_v29, %v2660_v3  ;;  %v14419_v33 = vadd.f32 %v10808_v30, %v2656_v7  ;;  %v10894_v34 = vpop.f32.mrb[11].mxu1  ;;  %11210 = vmatprep.subr.bf16.mxu1 %v13935_v9  ;;  %v14078_v3 = vcombine.low %v2298_v51, %v2322_v52  ;;  %v2394_v6 = vld [vmem:[#allocation8 + $0x28b8] sm:$0xff]  ;;  %v2465_v19 = vld [vmem:[#allocation8 + $0x2af0] sm:$0xff] }
 0x35d   :  { %12624 = vst [vmem:[#allocation11 + $0x38] sm:$0xff] %v14421_v27  ;;  %12669 = vst [vmem:[#allocation11 + $0x1a0] sm:$0xff] %v14418_v28  ;;  %v14423_v38 = vadd.f32 %v10894_v34, %v2664_v13  ;;  %v14125_v7 = vcombine.high %v2345_v62, %v2369_v63  ;;  %v14127_v4 = vcombine.high %v2346_v0, %v2370_v1  ;;  %v2393_v13 = vld [vmem:[#allocation8 + $0x28b0] sm:$0xff]  ;;  %v2490_v27 = vld [vmem:[#allocation8 + $0x2bb8] sm:$0xff] }
 0x35e   :  { %12671 = vst [vmem:[#allocation11 + $0x1b0] sm:$0xff] %v14422_v32  ;;  %12670 = vst [vmem:[#allocation11 + $0x1a8] sm:$0xff] %v14419_v33  ;;  %11125 = vmatpush1.bf16.msra.mxu0 %v13932_v26  ;;  %v14124_v9 = vcombine.low %v2345_v62, %v2369_v63  ;;  %v14126_v10 = vcombine.low %v2346_v0, %v2370_v1  ;;  %v14173_v11 = vcombine.high %v2393_v13, %v2417_v5  ;;  %v2489_v26 = vld [vmem:[#allocation8 + $0x2bb0] sm:$0xff]  ;;  %v2514_v28 = vld [vmem:[#allocation8 + $0x2c78] sm:$0xff] }
 0x35f   :  { %12672 = vst [vmem:[#allocation11 + $0x1b8] sm:$0xff] %v14423_v38  ;;  %11211 = vmatpush1.bf16.msra.mxu1 %v13934_v44  ;;  %11126 = vmatprep.subr.bf16.mxu0 %v13981_v31  ;;  %v14175_v12 = vcombine.high %v2394_v6, %v2418_v8  ;;  %v14172_v22 = vcombine.low %v2393_v13, %v2417_v5  ;;  %v2513_v44 = vld [vmem:[#allocation8 + $0x2c70] sm:$0xff]  ;;  %v1172_v13 = vld [vmem:[#allocation8 + $0x288] sm:$0xff] }
 0x360   :  { %11212 = vmatprep.subr.bf16.mxu1 %v13983_v35  ;;  %v14174_v23 = vcombine.low %v2394_v6, %v2418_v8  ;;  %v14221_v24 = vcombine.high %v2441_v16, %v2465_v19  ;;  %v14223_v25 = vcombine.high %v2442_v20, %v2466_v21  ;;  %v14220_v29 = vcombine.low %v2441_v16, %v2465_v19  ;;  %v2537_v33 = vld [vmem:[#allocation8 + $0x2d30] sm:$0xff]  ;;  %v2538_v35 = vld [vmem:[#allocation8 + $0x2d38] sm:$0xff]  ;;  %v1195_v8 = vld [vmem:[#allocation8 + $0x340] sm:$0xff] }
 0x361   :  { %v14222_v30 = vcombine.low %v2442_v20, %v2466_v21  ;;  %v14269_v31 = vcombine.high %v2489_v26, %v2513_v44  ;;  %v14271_v32 = vcombine.high %v2490_v27, %v2514_v28  ;;  %v2561_v34 = vld [vmem:[#allocation8 + $0x2df0] sm:$0xff]  ;;  %v14268_v37 = vcombine.low %v2489_v26, %v2513_v44 }
 0x362   :  { %11127 = vmatpush1.bf16.msra.mxu0 %v13980_v41  ;;  %v14270_v38 = vcombine.low %v2490_v27, %v2514_v28  ;;  %v14317_v39 = vcombine.high %v2537_v33, %v2561_v34  ;;  %v14319_v40 = vcombine.high %v2538_v35, %v2562_v36  ;;  %v2585_v41 = vld [vmem:[#allocation8 + $0x2eb0] sm:$0xff]  ;;  %v14316_v47 = vcombine.low %v2537_v33, %v2561_v34 }
 0x363   :  { %11213 = vmatpush1.bf16.msra.mxu1 %v13982_v42  ;;  %11128 = vmatprep.subr.bf16.mxu0 %v14029_v43  ;;  %v2609_v42 = vld [vmem:[#allocation8 + $0x2f70] sm:$0xff]  ;;  %v2586_v43 = vld [vmem:[#allocation8 + $0x2eb8] sm:$0xff]  ;;  %v14318_v49 = vcombine.low %v2538_v35, %v2562_v36 }
 0x364   :  { %11214 = vmatprep.subr.bf16.mxu1 %v14031_v46  ;;  %v2610_v46 = vld [vmem:[#allocation8 + $0x2f78] sm:$0xff]  ;;  %v14365_v51 = vcombine.high %v2585_v41, %v2609_v42  ;;  %v14364_v62 = vcombine.low %v2585_v41, %v2609_v42 }
 0x365   :  { %v14367_v52 = vcombine.high %v2586_v43, %v2610_v46  ;;  %v14366_v63 = vcombine.low %v2586_v43, %v2610_v46 }
 0x366   :  { %11129 = vmatpush1.bf16.msra.mxu0 %v14028_v55  ;;  %v1099_v55 = vld [vmem:[#allocation8 + $0x40] sm:$0xff] }
 0x367   :  { %11215 = vmatpush1.bf16.msra.mxu1 %v14030_v58  ;;  %11130 = vmatprep.subr.bf16.mxu0 %v14077_v60  ;;  %v1123_v58 = vld [vmem:[#allocation8 + $0x100] sm:$0xff]  ;;  %v1100_v60 = vld [vmem:[#allocation8 + $0x48] sm:$0xff] }
 0x368   :  { %11216 = vmatprep.subr.bf16.mxu1 %v14079_v61  ;;  %v1124_v61 = vld [vmem:[#allocation8 + $0x108] sm:$0xff]  ;;  %v12881_v0 = vcombine.high %v1099_v55, %v1123_v58 }
 0x369   :  { %v12883_v1 = vcombine.high %v1100_v60, %v1124_v61  ;;  %v12882_v5 = vcombine.low %v1100_v60, %v1124_v61 }
 0x36a   :  { %11131 = vmatpush1.bf16.msra.mxu0 %v14076_v2  ;;  %v1147_v2 = vld [vmem:[#allocation8 + $0x1c0] sm:$0xff] }
 0x36b   :  { %11217 = vmatpush1.bf16.msra.mxu1 %v14078_v3  ;;  %11132 = vmatprep.subr.bf16.mxu0 %v14125_v7  ;;  %v1171_v3 = vld [vmem:[#allocation8 + $0x280] sm:$0xff]  ;;  %v12880_v7 = vcombine.low %v1099_v55, %v1123_v58 }
 0x36c   :  { %11218 = vmatprep.subr.bf16.mxu1 %v14127_v4  ;;  %v1148_v4 = vld [vmem:[#allocation8 + $0x1c8] sm:$0xff]  ;;  %v12929_v6 = vcombine.high %v1147_v2, %v1171_v3  ;;  %v12928_v16 = vcombine.low %v1147_v2, %v1171_v3 }
 0x36d   :  { %v12930_v19 = vcombine.low %v1148_v4, %v1172_v13 }
 0x36e   :  { %11133 = vmatpush1.bf16.msra.mxu0 %v14124_v9  ;;  %v1219_v9 = vld [vmem:[#allocation8 + $0x400] sm:$0xff] }
 0x36f   :  { %11219 = vmatpush1.bf16.msra.mxu1 %v14126_v10  ;;  %11134 = vmatprep.subr.bf16.mxu0 %v14173_v11  ;;  %v12931_v10 = vcombine.high %v1148_v4, %v1172_v13  ;;  %v1196_v11 = vld [vmem:[#allocation8 + $0x348] sm:$0xff]  ;;  %v12977_v20 = vcombine.high %v1195_v8, %v1219_v9  ;;  %v12976_v26 = vcombine.low %v1195_v8, %v1219_v9  ;;  %v1483_v13 = vld [vmem:[#allocation8 + $0xc40] sm:$0xff] }
 0x370   :  { %11220 = vmatprep.subr.bf16.mxu1 %v14175_v12  ;;  %v1220_v12 = vld [vmem:[#allocation8 + $0x408] sm:$0xff] }
 0x371   :  { %v12979_v21 = vcombine.high %v1196_v11, %v1220_v12  ;;  %v12978_v44 = vcombine.low %v1196_v11, %v1220_v12  ;;  %v1508_v8 = vld [vmem:[#allocation8 + $0xd08] sm:$0xff] }
 0x372   :  { %11135 = vmatpush1.bf16.msra.mxu0 %v14172_v22  ;;  %v1243_v22 = vld [vmem:[#allocation8 + $0x4c0] sm:$0xff] }
 0x373   :  { %11221 = vmatpush1.bf16.msra.mxu1 %v14174_v23  ;;  %11136 = vmatprep.subr.bf16.mxu0 %v14221_v24  ;;  %v1267_v23 = vld [vmem:[#allocation8 + $0x580] sm:$0xff]  ;;  %v1244_v24 = vld [vmem:[#allocation8 + $0x4c8] sm:$0xff] }
 0x374   :  { %11222 = vmatprep.subr.bf16.mxu1 %v14223_v25  ;;  %v1268_v25 = vld [vmem:[#allocation8 + $0x588] sm:$0xff]  ;;  %v13025_v27 = vcombine.high %v1243_v22, %v1267_v23  ;;  %v13024_v33 = vcombine.low %v1243_v22, %v1267_v23 }
 0x375   :  { %v13027_v28 = vcombine.high %v1244_v24, %v1268_v25  ;;  %v13026_v34 = vcombine.low %v1244_v24, %v1268_v25 }
 0x376   :  { %11137 = vmatpush1.bf16.msra.mxu0 %v14220_v29  ;;  %v1291_v29 = vld [vmem:[#allocation8 + $0x640] sm:$0xff] }
 0x377   :  { %11223 = vmatpush1.bf16.msra.mxu1 %v14222_v30  ;;  %11138 = vmatprep.subr.bf16.mxu0 %v14269_v31  ;;  %v1315_v30 = vld [vmem:[#allocation8 + $0x700] sm:$0xff]  ;;  %v1292_v31 = vld [vmem:[#allocation8 + $0x648] sm:$0xff] }
 0x378   :  { %11224 = vmatprep.subr.bf16.mxu1 %v14271_v32  ;;  %v1316_v32 = vld [vmem:[#allocation8 + $0x708] sm:$0xff]  ;;  %v13073_v35 = vcombine.high %v1291_v29, %v1315_v30  ;;  %v13072_v41 = vcombine.low %v1291_v29, %v1315_v30 }
 0x379   :  { %v13075_v36 = vcombine.high %v1292_v31, %v1316_v32  ;;  %v13074_v42 = vcombine.low %v1292_v31, %v1316_v32 }
 0x37a   :  { %11139 = vmatpush1.bf16.msra.mxu0 %v14268_v37  ;;  %v1339_v37 = vld [vmem:[#allocation8 + $0x7c0] sm:$0xff] }
 0x37b   :  { %11225 = vmatpush1.bf16.msra.mxu1 %v14270_v38  ;;  %11140 = vmatprep.subr.bf16.mxu0 %v14317_v39  ;;  %v1363_v38 = vld [vmem:[#allocation8 + $0x880] sm:$0xff]  ;;  %v1340_v39 = vld [vmem:[#allocation8 + $0x7c8] sm:$0xff] }
 0x37c   :  { %11226 = vmatprep.subr.bf16.mxu1 %v14319_v40  ;;  %v1364_v40 = vld [vmem:[#allocation8 + $0x888] sm:$0xff]  ;;  %v13121_v43 = vcombine.high %v1339_v37, %v1363_v38  ;;  %v13120_v55 = vcombine.low %v1339_v37, %v1363_v38 }
 0x37d   :  { %v13123_v46 = vcombine.high %v1340_v39, %v1364_v40  ;;  %v13122_v58 = vcombine.low %v1340_v39, %v1364_v40 }
 0x37e   :  { %11141 = vmatpush1.bf16.msra.mxu0 %v14316_v47  ;;  %v1387_v47 = vld [vmem:[#allocation8 + $0x940] sm:$0xff] }
 0x37f   :  { %11227 = vmatpush1.bf16.msra.mxu1 %v14318_v49  ;;  %11142 = vmatprep.subr.bf16.mxu0 %v14365_v51  ;;  %v1411_v49 = vld [vmem:[#allocation8 + $0xa00] sm:$0xff]  ;;  %v1388_v51 = vld [vmem:[#allocation8 + $0x948] sm:$0xff] }
 0x380   :  { %11228 = vmatprep.subr.bf16.mxu1 %v14367_v52  ;;  %v1412_v52 = vld [vmem:[#allocation8 + $0xa08] sm:$0xff]  ;;  %v13169_v60 = vcombine.high %v1387_v47, %v1411_v49  ;;  %v13168_v2 = vcombine.low %v1387_v47, %v1411_v49 }
 0x381   :  { %v13171_v61 = vcombine.high %v1388_v51, %v1412_v52  ;;  %v13170_v3 = vcombine.low %v1388_v51, %v1412_v52 }
 0x382   :  { %11143 = vmatpush1.bf16.msra.mxu0 %v14364_v62  ;;  %v1435_v62 = vld [vmem:[#allocation8 + $0xac0] sm:$0xff] }
 0x383   :  { %11229 = vmatpush1.bf16.msra.mxu1 %v14366_v63  ;;  %11241 = vmatprep.subr.bf16.mxu0 %v12881_v0  ;;  %v1459_v63 = vld [vmem:[#allocation8 + $0xb80] sm:$0xff]  ;;  %v1436_v0 = vld [vmem:[#allocation8 + $0xac8] sm:$0xff] }
 0x384   :  { %11327 = vmatprep.subr.bf16.mxu1 %v12883_v1  ;;  %v1460_v1 = vld [vmem:[#allocation8 + $0xb88] sm:$0xff]  ;;  %v13216_v9 = vcombine.low %v1435_v62, %v1459_v63 }
 0x385   :  { %11145 = vmatmul.mubr.bf16.vlgmr.msra.gmra.mrb[16].mxu0 %v15125_v48  ;;  %v13219_v4 = vcombine.high %v1436_v0, %v1460_v1 }
 0x386   :  { %11231 = vmatmul.mubr.bf16.vlgmr.msra.gmra.mrb[16].mxu1 %v15125_v48  ;;  %11242 = vmatpush1.bf16.msra.mxu0 %v12880_v7  ;;  %v13217_v7 = vcombine.high %v1435_v62, %v1459_v63 }
 0x387   :  { %11273 = vmatprep.mubr.bf16.mxu0 %v15127_v53  ;;  %11328 = vmatpush1.bf16.msra.mxu1 %v12882_v5  ;;  %v1507_v5 = vld [vmem:[#allocation8 + $0xd00] sm:$0xff] }
 0x388   :  { %11359 = vmatprep.mubr.bf16.mxu1 %v15127_v53  ;;  %11243 = vmatprep.subr.bf16.mxu0 %v12929_v6  ;;  %v1484_v6 = vld [vmem:[#allocation8 + $0xc48] sm:$0xff]  ;;  %v13265_v11 = vcombine.high %v1483_v13, %v1507_v5  ;;  %v13264_v22 = vcombine.low %v1483_v13, %v1507_v5 }
 0x389   :  { %11329 = vmatprep.subr.bf16.mxu1 %v12931_v10  ;;  %v13218_v10 = vcombine.low %v1436_v0, %v1460_v1  ;;  %v13267_v12 = vcombine.high %v1484_v6, %v1508_v8  ;;  %v13266_v23 = vcombine.low %v1484_v6, %v1508_v8 }
 0x38a   :  { %11244 = vmatpush1.bf16.msra.mxu0 %v12928_v16  ;;  %v1531_v16 = vld [vmem:[#allocation8 + $0xdc0] sm:$0xff] }
 0x38b   :  { %11330 = vmatpush1.bf16.msra.mxu1 %v12930_v19  ;;  %11245 = vmatprep.subr.bf16.mxu0 %v12977_v20  ;;  %v1555_v19 = vld [vmem:[#allocation8 + $0xe80] sm:$0xff]  ;;  %v1532_v20 = vld [vmem:[#allocation8 + $0xdc8] sm:$0xff] }
 0x38c   :  { %11331 = vmatprep.subr.bf16.mxu1 %v12979_v21  ;;  %v1556_v21 = vld [vmem:[#allocation8 + $0xe88] sm:$0xff]  ;;  %v13313_v24 = vcombine.high %v1531_v16, %v1555_v19  ;;  %v13312_v29 = vcombine.low %v1531_v16, %v1555_v19 }
 0x38d   :  { %v13315_v25 = vcombine.high %v1532_v20, %v1556_v21  ;;  %v13314_v30 = vcombine.low %v1532_v20, %v1556_v21 }
 0x38e   :  { %11246 = vmatpush1.bf16.msra.mxu0 %v12976_v26  ;;  %v1579_v26 = vld [vmem:[#allocation8 + $0xf40] sm:$0xff] }
 0x38f   :  { %11332 = vmatpush1.bf16.msra.mxu1 %v12978_v44  ;;  %11247 = vmatprep.subr.bf16.mxu0 %v13025_v27  ;;  %v1603_v44 = vld [vmem:[#allocation8 + $0x1000] sm:$0xff]  ;;  %v1580_v27 = vld [vmem:[#allocation8 + $0xf48] sm:$0xff] }
 0x390   :  { %11333 = vmatprep.subr.bf16.mxu1 %v13027_v28  ;;  %v1604_v28 = vld [vmem:[#allocation8 + $0x1008] sm:$0xff]  ;;  %v13361_v31 = vcombine.high %v1579_v26, %v1603_v44  ;;  %v13360_v37 = vcombine.low %v1579_v26, %v1603_v44 }
 0x391   :  { %v13363_v32 = vcombine.high %v1580_v27, %v1604_v28  ;;  %v13362_v38 = vcombine.low %v1580_v27, %v1604_v28 }
 0x392   :  { %11248 = vmatpush1.bf16.msra.mxu0 %v13024_v33  ;;  %v1627_v33 = vld [vmem:[#allocation8 + $0x10c0] sm:$0xff] }
 0x393   :  { %11334 = vmatpush1.bf16.msra.mxu1 %v13026_v34  ;;  %11249 = vmatprep.subr.bf16.mxu0 %v13073_v35  ;;  %v1651_v34 = vld [vmem:[#allocation8 + $0x1180] sm:$0xff]  ;;  %v1628_v35 = vld [vmem:[#allocation8 + $0x10c8] sm:$0xff] }
 0x394   :  { %11335 = vmatprep.subr.bf16.mxu1 %v13075_v36  ;;  %v1652_v36 = vld [vmem:[#allocation8 + $0x1188] sm:$0xff]  ;;  %v13409_v39 = vcombine.high %v1627_v33, %v1651_v34  ;;  %v13408_v47 = vcombine.low %v1627_v33, %v1651_v34 }
 0x395   :  { %v13411_v40 = vcombine.high %v1628_v35, %v1652_v36  ;;  %v13410_v49 = vcombine.low %v1628_v35, %v1652_v36  ;;  %v1940_v33 = vld [vmem:[#allocation8 + $0x1a88] sm:$0xff]  ;;  %v1963_v36 = vld [vmem:[#allocation8 + $0x1b40] sm:$0xff] }
 0x396   :  { %11250 = vmatpush1.bf16.msra.mxu0 %v13072_v41  ;;  %v1675_v41 = vld [vmem:[#allocation8 + $0x1240] sm:$0xff] }
 0x397   :  { %11336 = vmatpush1.bf16.msra.mxu1 %v13074_v42  ;;  %11251 = vmatprep.subr.bf16.mxu0 %v13121_v43  ;;  %v1699_v42 = vld [vmem:[#allocation8 + $0x1300] sm:$0xff]  ;;  %v1676_v43 = vld [vmem:[#allocation8 + $0x1248] sm:$0xff] }
 0x398   :  { %11337 = vmatprep.subr.bf16.mxu1 %v13123_v46  ;;  %v1700_v46 = vld [vmem:[#allocation8 + $0x1308] sm:$0xff]  ;;  %v13457_v51 = vcombine.high %v1675_v41, %v1699_v42  ;;  %v13456_v62 = vcombine.low %v1675_v41, %v1699_v42 }
 0x399   :  { %v13459_v52 = vcombine.high %v1676_v43, %v1700_v46  ;;  %v13458_v63 = vcombine.low %v1676_v43, %v1700_v46 }
 0x39a   :  { %11252 = vmatpush1.bf16.msra.mxu0 %v13120_v55  ;;  %v1723_v55 = vld [vmem:[#allocation8 + $0x13c0] sm:$0xff] }
 0x39b   :  { %11338 = vmatpush1.bf16.msra.mxu1 %v13122_v58  ;;  %11253 = vmatprep.subr.bf16.mxu0 %v13169_v60  ;;  %v1747_v58 = vld [vmem:[#allocation8 + $0x1480] sm:$0xff]  ;;  %v1724_v60 = vld [vmem:[#allocation8 + $0x13c8] sm:$0xff] }
 0x39c   :  { %11339 = vmatprep.subr.bf16.mxu1 %v13171_v61  ;;  %v1748_v61 = vld [vmem:[#allocation8 + $0x1488] sm:$0xff]  ;;  %v13505_v0 = vcombine.high %v1723_v55, %v1747_v58  ;;  %v13504_v13 = vcombine.low %v1723_v55, %v1747_v58 }
 0x39d   :  { %v13507_v1 = vcombine.high %v1724_v60, %v1748_v61  ;;  %v13506_v5 = vcombine.low %v1724_v60, %v1748_v61 }
 0x39e   :  { %11254 = vmatpush1.bf16.msra.mxu0 %v13168_v2  ;;  %v1771_v2 = vld [vmem:[#allocation8 + $0x1540] sm:$0xff] }
 0x39f   :  { %11340 = vmatpush1.bf16.msra.mxu1 %v13170_v3  ;;  %11255 = vmatprep.subr.bf16.mxu0 %v13217_v7  ;;  %v1795_v3 = vld [vmem:[#allocation8 + $0x1600] sm:$0xff]  ;;  %v1772_v7 = vld [vmem:[#allocation8 + $0x1548] sm:$0xff] }
 0x3a0   :  { %11341 = vmatprep.subr.bf16.mxu1 %v13219_v4  ;;  %v1796_v4 = vld [vmem:[#allocation8 + $0x1608] sm:$0xff]  ;;  %v13553_v6 = vcombine.high %v1771_v2, %v1795_v3  ;;  %v13552_v16 = vcombine.low %v1771_v2, %v1795_v3 }
 0x3a1   :  { %v13555_v8 = vcombine.high %v1772_v7, %v1796_v4  ;;  %v13554_v19 = vcombine.low %v1772_v7, %v1796_v4 }
 0x3a2   :  { %11256 = vmatpush1.bf16.msra.mxu0 %v13216_v9  ;;  %v1819_v9 = vld [vmem:[#allocation8 + $0x16c0] sm:$0xff] }
 0x3a3   :  { %11342 = vmatpush1.bf16.msra.mxu1 %v13218_v10  ;;  %11257 = vmatprep.subr.bf16.mxu0 %v13265_v11  ;;  %v1843_v10 = vld [vmem:[#allocation8 + $0x1780] sm:$0xff]  ;;  %v1820_v11 = vld [vmem:[#allocation8 + $0x16c8] sm:$0xff] }
 0x3a4   :  { %11343 = vmatprep.subr.bf16.mxu1 %v13267_v12  ;;  %v1844_v12 = vld [vmem:[#allocation8 + $0x1788] sm:$0xff]  ;;  %v13601_v20 = vcombine.high %v1819_v9, %v1843_v10  ;;  %v13600_v26 = vcombine.low %v1819_v9, %v1843_v10 }
 0x3a5   :  { %v13603_v21 = vcombine.high %v1820_v11, %v1844_v12  ;;  %v13602_v44 = vcombine.low %v1820_v11, %v1844_v12  ;;  %v15205_v10 = vld [vmem:[#allocation10 + $0x8] sm:$0xff] }
 0x3a6   :  { %11258 = vmatpush1.bf16.msra.mxu0 %v13264_v22  ;;  %v1867_v22 = vld [vmem:[#allocation8 + $0x1840] sm:$0xff] }
 0x3a7   :  { %11344 = vmatpush1.bf16.msra.mxu1 %v13266_v23  ;;  %11259 = vmatprep.subr.bf16.mxu0 %v13313_v24  ;;  %v1891_v23 = vld [vmem:[#allocation8 + $0x1900] sm:$0xff]  ;;  %v1868_v24 = vld [vmem:[#allocation8 + $0x1848] sm:$0xff] }
 0x3a8   :  { %11345 = vmatprep.subr.bf16.mxu1 %v13315_v25  ;;  %v1892_v25 = vld [vmem:[#allocation8 + $0x1908] sm:$0xff]  ;;  %v13649_v27 = vcombine.high %v1867_v22, %v1891_v23 }
 0x3a9   :  { %v13651_v28 = vcombine.high %v1868_v24, %v1892_v25  ;;  %v13650_v34 = vcombine.low %v1868_v24, %v1892_v25  ;;  %v2676_v24 = vrot.slane %v15205_v10, %v15111_v15  ;;  %v2672_v25 = vrot.slane %v15205_v10, %v15114_v17 }
 0x3aa   :  { %11260 = vmatpush1.bf16.msra.mxu0 %v13312_v29  ;;  %v1915_v29 = vld [vmem:[#allocation8 + $0x19c0] sm:$0xff] }
 0x3ab   :  { %11346 = vmatpush1.bf16.msra.mxu1 %v13314_v30  ;;  %11261 = vmatprep.subr.bf16.mxu0 %v13361_v31  ;;  %v1939_v30 = vld [vmem:[#allocation8 + $0x1a80] sm:$0xff]  ;;  %v13648_v31 = vcombine.low %v1867_v22, %v1891_v23  ;;  %v2156_v22 = vld [vmem:[#allocation8 + $0x2148] sm:$0xff] }
 0x3ac   :  { %11347 = vmatprep.subr.bf16.mxu1 %v13363_v32  ;;  %v1916_v32 = vld [vmem:[#allocation8 + $0x19c8] sm:$0xff]  ;;  %v13697_v35 = vcombine.high %v1915_v29, %v1939_v30  ;;  %v13696_v41 = vcombine.low %v1915_v29, %v1939_v30 }
 0x3ad   :  { %v13698_v42 = vcombine.low %v1916_v32, %v1940_v33  ;;  %v2180_v23 = vld [vmem:[#allocation8 + $0x2208] sm:$0xff] }
 0x3ae   :  { %11262 = vmatpush1.bf16.msra.mxu0 %v13360_v37  ;;  %v1987_v37 = vld [vmem:[#allocation8 + $0x1c00] sm:$0xff]  ;;  %v13939_v30 = vcombine.high %v2156_v22, %v2180_v23 }
 0x3af   :  { %11348 = vmatpush1.bf16.msra.mxu1 %v13362_v38  ;;  %11263 = vmatprep.subr.bf16.mxu0 %v13409_v39  ;;  %v13699_v38 = vcombine.high %v1916_v32, %v1940_v33  ;;  %v1964_v39 = vld [vmem:[#allocation8 + $0x1b48] sm:$0xff]  ;;  %v13745_v43 = vcombine.high %v1963_v36, %v1987_v37  ;;  %v13744_v55 = vcombine.low %v1963_v36, %v1987_v37  ;;  %v2227_v32 = vld [vmem:[#allocation8 + $0x2380] sm:$0xff] }
 0x3b0   :  { %11349 = vmatprep.subr.bf16.mxu1 %v13411_v40  ;;  %v1988_v40 = vld [vmem:[#allocation8 + $0x1c08] sm:$0xff] }
 0x3b1   :  { %v13747_v46 = vcombine.high %v1964_v39, %v1988_v40  ;;  %v13746_v58 = vcombine.low %v1964_v39, %v1988_v40  ;;  %v2204_v36 = vld [vmem:[#allocation8 + $0x22c8] sm:$0xff] }
 0x3b2   :  { %11264 = vmatpush1.bf16.msra.mxu0 %v13408_v47  ;;  %v2011_v47 = vld [vmem:[#allocation8 + $0x1cc0] sm:$0xff]  ;;  %v2228_v37 = vld [vmem:[#allocation8 + $0x2388] sm:$0xff] }
 0x3b3   :  { %11350 = vmatpush1.bf16.msra.mxu1 %v13410_v49  ;;  %11265 = vmatprep.subr.bf16.mxu0 %v13457_v51  ;;  %v2035_v49 = vld [vmem:[#allocation8 + $0x1d80] sm:$0xff]  ;;  %v2012_v51 = vld [vmem:[#allocation8 + $0x1cc8] sm:$0xff] }
 0x3b4   :  { %11351 = vmatprep.subr.bf16.mxu1 %v13459_v52  ;;  %v2036_v52 = vld [vmem:[#allocation8 + $0x1d88] sm:$0xff]  ;;  %v13793_v60 = vcombine.high %v2011_v47, %v2035_v49  ;;  %v13792_v2 = vcombine.low %v2011_v47, %v2035_v49 }
 0x3b5   :  { %v13795_v61 = vcombine.high %v2012_v51, %v2036_v52  ;;  %v13794_v3 = vcombine.low %v2012_v51, %v2036_v52 }
 0x3b6   :  { %11266 = vmatpush1.bf16.msra.mxu0 %v13456_v62  ;;  %v2059_v62 = vld [vmem:[#allocation8 + $0x1e40] sm:$0xff] }
 0x3b7   :  { %11352 = vmatpush1.bf16.msra.mxu1 %v13458_v63  ;;  %11267 = vmatprep.subr.bf16.mxu0 %v13505_v0  ;;  %v2083_v63 = vld [vmem:[#allocation8 + $0x1f00] sm:$0xff]  ;;  %v2060_v0 = vld [vmem:[#allocation8 + $0x1e48] sm:$0xff] }
 0x3b8   :  { %11353 = vmatprep.subr.bf16.mxu1 %v13507_v1  ;;  %v2084_v1 = vld [vmem:[#allocation8 + $0x1f08] sm:$0xff]  ;;  %v13841_v7 = vcombine.high %v2059_v62, %v2083_v63  ;;  %v13840_v9 = vcombine.low %v2059_v62, %v2083_v63  ;;  %v2251_v62 = vld [vmem:[#allocation8 + $0x2440] sm:$0xff] }
 0x3b9   :  { %v13843_v4 = vcombine.high %v2060_v0, %v2084_v1  ;;  %v13842_v11 = vcombine.low %v2060_v0, %v2084_v1  ;;  %v2275_v63 = vld [vmem:[#allocation8 + $0x2500] sm:$0xff]  ;;  %v2252_v1 = vld [vmem:[#allocation8 + $0x2448] sm:$0xff] }
 0x3ba   :  { %11268 = vmatpush1.bf16.msra.mxu0 %v13504_v13  ;;  %v2107_v13 = vld [vmem:[#allocation8 + $0x1fc0] sm:$0xff] }
 0x3bb   :  { %11354 = vmatpush1.bf16.msra.mxu1 %v13506_v5  ;;  %11269 = vmatprep.subr.bf16.mxu0 %v13553_v6  ;;  %v2131_v5 = vld [vmem:[#allocation8 + $0x2080] sm:$0xff]  ;;  %v2108_v6 = vld [vmem:[#allocation8 + $0x1fc8] sm:$0xff] }
 0x3bc   :  { %11355 = vmatprep.subr.bf16.mxu1 %v13555_v8  ;;  %v2132_v8 = vld [vmem:[#allocation8 + $0x2088] sm:$0xff]  ;;  %v13889_v12 = vcombine.high %v2107_v13, %v2131_v5 }
 0x3be   :  { %11270 = vmatpush1.bf16.msra.mxu0 %v13552_v16  ;;  %v13891_v16 = vcombine.high %v2108_v6, %v2132_v8 }
 0x3bf   :  { %11356 = vmatpush1.bf16.msra.mxu1 %v13554_v19  ;;  %11271 = vmatprep.subr.bf16.mxu0 %v13601_v20  ;;  %v2155_v19 = vld [vmem:[#allocation8 + $0x2140] sm:$0xff] }
 0x3c0   :  { %11357 = vmatprep.subr.bf16.mxu1 %v13603_v21  ;;  %v2179_v20 = vld [vmem:[#allocation8 + $0x2200] sm:$0xff]  ;;  %v2668_v21 = vrot.slane %v15205_v10, %v15108_v14 }
 0x3c2   :  { %11272 = vmatpush1.bf16.msra.mxu0 %v13600_v26  ;;  %v13888_v26 = vcombine.low %v2107_v13, %v2131_v5  ;;  %v2299_v5 = vld [vmem:[#allocation8 + $0x25c0] sm:$0xff] }
 0x3c3   :  { %11358 = vmatpush1.bf16.msra.mxu1 %v13602_v44  ;;  %11284 = vmatprep.subr.bf16.mxu0 %v13649_v27  ;;  %v2680_v44 = vrot.slane %v15205_v10, %v15117_v18  ;;  %v13890_v27 = vcombine.low %v2108_v6, %v2132_v8  ;;  %v2323_v6 = vld [vmem:[#allocation8 + $0x2680] sm:$0xff]  ;;  %v2300_v8 = vld [vmem:[#allocation8 + $0x25c8] sm:$0xff] }
 0x3c4   :  { %11370 = vmatprep.subr.bf16.mxu1 %v13651_v28  ;;  %v13937_v28 = vcombine.high %v2155_v19, %v2179_v20 }
 0x3c5   :  { %11274 = vmatmul.mubr.bf16.vlgmr.msra.gmra.mrb[20].mxu0 %v15123_v45 }
 0x3c6   :  { %11360 = vmatmul.mubr.bf16.vlgmr.msra.gmra.mrb[20].mxu1 %v15123_v45  ;;  %11285 = vmatpush1.bf16.msra.mxu0 %v13648_v31  ;;  %v2203_v31 = vld [vmem:[#allocation8 + $0x22c0] sm:$0xff] }
 0x3c7   :  { %11316 = vmatprep.mubr.bf16.mxu0 %v15129_v54  ;;  %11371 = vmatpush1.bf16.msra.mxu1 %v13650_v34  ;;  %v13985_v52 = vcombine.high %v2203_v31, %v2227_v32 }
 0x3c8   :  { %11402 = vmatprep.mubr.bf16.mxu1 %v15129_v54  ;;  %11286 = vmatprep.subr.bf16.mxu0 %v13697_v35 }
 0x3c9   :  { %11372 = vmatprep.subr.bf16.mxu1 %v13699_v38 }
 0x3ca   :  { %11287 = vmatpush1.bf16.msra.mxu0 %v13696_v41 }
 0x3cb   :  { %11373 = vmatpush1.bf16.msra.mxu1 %v13698_v42  ;;  %11288 = vmatprep.subr.bf16.mxu0 %v13745_v43  ;;  %v13936_v42 = vcombine.low %v2155_v19, %v2179_v20  ;;  %v13938_v43 = vcombine.low %v2156_v22, %v2180_v23  ;;  %v2347_v20 = vld [vmem:[#allocation8 + $0x2740] sm:$0xff]  ;;  %v2348_v22 = vld [vmem:[#allocation8 + $0x2748] sm:$0xff] }
 0x3cc   :  { %11374 = vmatprep.subr.bf16.mxu1 %v13747_v46  ;;  %v2372_v23 = vld [vmem:[#allocation8 + $0x2808] sm:$0xff] }
 0x3ce   :  { %11289 = vmatpush1.bf16.msra.mxu0 %v13744_v55 }
 0x3cf   :  { %11375 = vmatpush1.bf16.msra.mxu1 %v13746_v58  ;;  %11290 = vmatprep.subr.bf16.mxu0 %v13793_v60 }
 0x3d0   :  { %11376 = vmatprep.subr.bf16.mxu1 %v13795_v61  ;;  %v13987_v61 = vcombine.high %v2204_v36, %v2228_v37 }
 0x3d2   :  { %11291 = vmatpush1.bf16.msra.mxu0 %v13792_v2  ;;  %v2276_v2 = vld [vmem:[#allocation8 + $0x2508] sm:$0xff] }
 0x3d3   :  { %11377 = vmatpush1.bf16.msra.mxu1 %v13794_v3  ;;  %11292 = vmatprep.subr.bf16.mxu0 %v13841_v7  ;;  %v13984_v3 = vcombine.low %v2203_v31, %v2227_v32  ;;  %v13986_v7 = vcombine.low %v2204_v36, %v2228_v37  ;;  %v14035_v13 = vcombine.high %v2252_v1, %v2276_v2  ;;  %v2467_v36 = vld [vmem:[#allocation8 + $0x2b00] sm:$0xff]  ;;  %v2444_v37 = vld [vmem:[#allocation8 + $0x2a48] sm:$0xff] }
 0x3d4   :  { %11378 = vmatprep.subr.bf16.mxu1 %v13843_v4  ;;  %v14033_v4 = vcombine.high %v2251_v62, %v2275_v63  ;;  %v14130_v32 = vcombine.low %v2348_v22, %v2372_v23 }
 0x3d6   :  { %11293 = vmatpush1.bf16.msra.mxu0 %v13840_v9  ;;  %v2324_v9 = vld [vmem:[#allocation8 + $0x2688] sm:$0xff] }
 0x3d7   :  { %11379 = vmatpush1.bf16.msra.mxu1 %v13842_v11  ;;  %11294 = vmatprep.subr.bf16.mxu0 %v13889_v12  ;;  %v14032_v11 = vcombine.low %v2251_v62, %v2275_v63  ;;  %v14034_v12 = vcombine.low %v2252_v1, %v2276_v2  ;;  %v14083_v19 = vcombine.high %v2300_v8, %v2324_v9  ;;  %v2540_v62 = vld [vmem:[#allocation8 + $0x2d48] sm:$0xff] }
 0x3d8   :  { %v10974_v29 = vpop.f32.mrb[12].mxu0  ;;  %11380 = vmatprep.subr.bf16.mxu1 %v13891_v16  ;;  %v14081_v16 = vcombine.high %v2299_v5, %v2323_v6  ;;  %v2564_v63 = vld [vmem:[#allocation8 + $0x2e08] sm:$0xff] }
 0x3d9   :  { %v14424_v33 = vadd.f32 %v10974_v29, %v2668_v21  ;;  %v11060_v34 = vpop.f32.mrb[12].mxu1  ;;  %v10976_v35 = vpop.f32.mrb[13].mxu0  ;;  %v2396_v29 = vld [vmem:[#allocation8 + $0x28c8] sm:$0xff] }
 0x3da   :  { %v14428_v38 = vadd.f32 %v11060_v34, %v2676_v24  ;;  %v14425_v39 = vadd.f32 %v10976_v35, %v2672_v25  ;;  %v11062_v40 = vpop.f32.mrb[13].mxu1  ;;  %v10978_v41 = vpop.f32.mrb[14].mxu0  ;;  %11295 = vmatpush1.bf16.msra.mxu0 %v13888_v26  ;;  %v2443_v35 = vld [vmem:[#allocation8 + $0x2a40] sm:$0xff] }
 0x3db   :  { %12625 = vst [vmem:[#allocation11 + $0x40] sm:$0xff] %v14424_v33  ;;  %v14429_v46 = vadd.f32 %v11062_v40, %v2680_v44  ;;  %v14426_v47 = vadd.f32 %v10978_v41, %v2668_v21  ;;  %v11064_v49 = vpop.f32.mrb[14].mxu1  ;;  %11381 = vmatpush1.bf16.msra.mxu1 %v13890_v27  ;;  %v10980_v51 = vpop.f32.mrb[15].mxu0  ;;  %11296 = vmatprep.subr.bf16.mxu0 %v13937_v28  ;;  %v2371_v21 = vld [vmem:[#allocation8 + $0x2800] sm:$0xff] }
 0x3dc   :  { %12627 = vst [vmem:[#allocation11 + $0x50] sm:$0xff] %v14428_v38  ;;  %12626 = vst [vmem:[#allocation11 + $0x48] sm:$0xff] %v14425_v39  ;;  %v14430_v55 = vadd.f32 %v11064_v49, %v2676_v24  ;;  %v14427_v58 = vadd.f32 %v10980_v51, %v2672_v25  ;;  %v11066_v60 = vpop.f32.mrb[15].mxu1  ;;  %11382 = vmatprep.subr.bf16.mxu1 %v13939_v30  ;;  %v14080_v24 = vcombine.low %v2299_v5, %v2323_v6  ;;  %v2395_v27 = vld [vmem:[#allocation8 + $0x28c0] sm:$0xff]  ;;  %v2420_v30 = vld [vmem:[#allocation8 + $0x2988] sm:$0xff] }
 0x3dd   :  { %12628 = vst [vmem:[#allocation11 + $0x58] sm:$0xff] %v14429_v46  ;;  %12673 = vst [vmem:[#allocation11 + $0x1c0] sm:$0xff] %v14426_v47  ;;  %v14431_v0 = vadd.f32 %v11066_v60, %v2680_v44  ;;  %v14082_v25 = vcombine.low %v2300_v8, %v2324_v9  ;;  %v14129_v26 = vcombine.high %v2347_v20, %v2371_v21  ;;  %v2419_v28 = vld [vmem:[#allocation8 + $0x2980] sm:$0xff]  ;;  %v2468_v38 = vld [vmem:[#allocation8 + $0x2b08] sm:$0xff] }
 0x3de   :  { %12675 = vst [vmem:[#allocation11 + $0x1d0] sm:$0xff] %v14430_v55  ;;  %12674 = vst [vmem:[#allocation11 + $0x1c8] sm:$0xff] %v14427_v58  ;;  %11297 = vmatpush1.bf16.msra.mxu0 %v13936_v42  ;;  %v14131_v44 = vcombine.high %v2348_v22, %v2372_v23  ;;  %v14128_v31 = vcombine.low %v2347_v20, %v2371_v21  ;;  %v14177_v33 = vcombine.high %v2395_v27, %v2419_v28  ;;  %v2515_v46 = vld [vmem:[#allocation8 + $0x2c80] sm:$0xff]  ;;  %v2492_v47 = vld [vmem:[#allocation8 + $0x2bc8] sm:$0xff] }
 0x3df   :  { %12676 = vst [vmem:[#allocation11 + $0x1d8] sm:$0xff] %v14431_v0  ;;  %11383 = vmatpush1.bf16.msra.mxu1 %v13938_v43  ;;  %11298 = vmatprep.subr.bf16.mxu0 %v13985_v52  ;;  %v14179_v34 = vcombine.high %v2396_v29, %v2420_v30  ;;  %v14176_v39 = vcombine.low %v2395_v27, %v2419_v28  ;;  %v2491_v43 = vld [vmem:[#allocation8 + $0x2bc0] sm:$0xff]  ;;  %v2516_v49 = vld [vmem:[#allocation8 + $0x2c88] sm:$0xff]  ;;  %v1126_v20 = vld [vmem:[#allocation8 + $0x118] sm:$0xff] }
 0x3e0   :  { %11384 = vmatprep.subr.bf16.mxu1 %v13987_v61  ;;  %v14178_v40 = vcombine.low %v2396_v29, %v2420_v30  ;;  %v14225_v41 = vcombine.high %v2443_v35, %v2467_v36  ;;  %v14227_v42 = vcombine.high %v2444_v37, %v2468_v38  ;;  %v14224_v51 = vcombine.low %v2443_v35, %v2467_v36  ;;  %v2539_v60 = vld [vmem:[#allocation8 + $0x2d40] sm:$0xff]  ;;  %v2612_v5 = vld [vmem:[#allocation8 + $0x2f88] sm:$0xff]  ;;  %v1150_v27 = vld [vmem:[#allocation8 + $0x1d8] sm:$0xff] }
 0x3e1   :  { %v14226_v52 = vcombine.low %v2444_v37, %v2468_v38  ;;  %v14273_v55 = vcombine.high %v2491_v43, %v2515_v46  ;;  %v14275_v58 = vcombine.high %v2492_v47, %v2516_v49  ;;  %v2563_v61 = vld [vmem:[#allocation8 + $0x2e00] sm:$0xff]  ;;  %v14272_v0 = vcombine.low %v2491_v43, %v2515_v46  ;;  %v1174_v28 = vld [vmem:[#allocation8 + $0x298] sm:$0xff] }
 0x3e2   :  { %11299 = vmatpush1.bf16.msra.mxu0 %v13984_v3  ;;  %v14274_v1 = vcombine.low %v2492_v47, %v2516_v49  ;;  %v14321_v2 = vcombine.high %v2539_v60, %v2563_v61  ;;  %v14323_v3 = vcombine.high %v2540_v62, %v2564_v63  ;;  %v14320_v6 = vcombine.low %v2539_v60, %v2563_v61  ;;  %v1222_v35 = vld [vmem:[#allocation8 + $0x418] sm:$0xff] }
 0x3e3   :  { %11385 = vmatpush1.bf16.msra.mxu1 %v13986_v7  ;;  %11300 = vmatprep.subr.bf16.mxu0 %v14033_v4  ;;  %v2587_v7 = vld [vmem:[#allocation8 + $0x2ec0] sm:$0xff]  ;;  %v14322_v8 = vcombine.low %v2540_v62, %v2564_v63  ;;  %v12934_v37 = vcombine.low %v1150_v27, %v1174_v28  ;;  %v1270_v43 = vld [vmem:[#allocation8 + $0x598] sm:$0xff] }
 0x3e4   :  { %11386 = vmatprep.subr.bf16.mxu1 %v14035_v13  ;;  %v2611_v4 = vld [vmem:[#allocation8 + $0x2f80] sm:$0xff]  ;;  %v2588_v13 = vld [vmem:[#allocation8 + $0x2ec8] sm:$0xff]  ;;  %v1318_v60 = vld [vmem:[#allocation8 + $0x718] sm:$0xff] }
 0x3e5   :  { %v14369_v9 = vcombine.high %v2587_v7, %v2611_v4  ;;  %v14368_v21 = vcombine.low %v2587_v7, %v2611_v4  ;;  %v14370_v22 = vcombine.low %v2588_v13, %v2612_v5  ;;  %v1366_v7 = vld [vmem:[#allocation8 + $0x898] sm:$0xff] }
 0x3e6   :  { %11301 = vmatpush1.bf16.msra.mxu0 %v14032_v11  ;;  %v14371_v11 = vcombine.high %v2588_v13, %v2612_v5 }
 0x3e7   :  { %11387 = vmatpush1.bf16.msra.mxu1 %v14034_v12  ;;  %11302 = vmatprep.subr.bf16.mxu0 %v14081_v16  ;;  %v1101_v12 = vld [vmem:[#allocation8 + $0x50] sm:$0xff] }
 0x3e8   :  { %11388 = vmatprep.subr.bf16.mxu1 %v14083_v19  ;;  %v1125_v16 = vld [vmem:[#allocation8 + $0x110] sm:$0xff]  ;;  %v1102_v19 = vld [vmem:[#allocation8 + $0x58] sm:$0xff] }
 0x3e9   :  { %v12885_v23 = vcombine.high %v1101_v12, %v1125_v16  ;;  %v12886_v29 = vcombine.low %v1102_v19, %v1126_v20 }
 0x3ea   :  { %11303 = vmatpush1.bf16.msra.mxu0 %v14080_v24  ;;  %v12887_v24 = vcombine.high %v1102_v19, %v1126_v20 }
 0x3eb   :  { %11389 = vmatpush1.bf16.msra.mxu1 %v14082_v25  ;;  %11304 = vmatprep.subr.bf16.mxu0 %v14129_v26  ;;  %v1149_v25 = vld [vmem:[#allocation8 + $0x1d0] sm:$0xff] }
 0x3ec   :  { %11390 = vmatprep.subr.bf16.mxu1 %v14131_v44  ;;  %v1173_v26 = vld [vmem:[#allocation8 + $0x290] sm:$0xff]  ;;  %v12884_v44 = vcombine.low %v1101_v12, %v1125_v16  ;;  %v1414_v12 = vld [vmem:[#allocation8 + $0xa18] sm:$0xff] }
 0x3ed   :  { %v12933_v30 = vcombine.high %v1149_v25, %v1173_v26  ;;  %v12932_v36 = vcombine.low %v1149_v25, %v1173_v26  ;;  %v1462_v25 = vld [vmem:[#allocation8 + $0xb98] sm:$0xff] }
 0x3ee   :  { %11305 = vmatpush1.bf16.msra.mxu0 %v14128_v31  ;;  %v1197_v31 = vld [vmem:[#allocation8 + $0x350] sm:$0xff] }
 0x3ef   :  { %11391 = vmatpush1.bf16.msra.mxu1 %v14130_v32  ;;  %11306 = vmatprep.subr.bf16.mxu0 %v14177_v33  ;;  %v1221_v32 = vld [vmem:[#allocation8 + $0x410] sm:$0xff]  ;;  %v12935_v33 = vcombine.high %v1150_v27, %v1174_v28 }
 0x3f0   :  { %11392 = vmatprep.subr.bf16.mxu1 %v14179_v34  ;;  %v1198_v34 = vld [vmem:[#allocation8 + $0x358] sm:$0xff]  ;;  %v12981_v38 = vcombine.high %v1197_v31, %v1221_v32  ;;  %v12980_v46 = vcombine.low %v1197_v31, %v1221_v32 }
 0x3f1   :  { %v12982_v47 = vcombine.low %v1198_v34, %v1222_v35  ;;  %v1486_v31 = vld [vmem:[#allocation8 + $0xc58] sm:$0xff] }
 0x3f2   :  { %11307 = vmatpush1.bf16.msra.mxu0 %v14176_v39  ;;  %v12983_v39 = vcombine.high %v1198_v34, %v1222_v35  ;;  %v1510_v32 = vld [vmem:[#allocation8 + $0xd18] sm:$0xff] }
 0x3f3   :  { %11393 = vmatpush1.bf16.msra.mxu1 %v14178_v40  ;;  %11308 = vmatprep.subr.bf16.mxu0 %v14225_v41  ;;  %v1245_v40 = vld [vmem:[#allocation8 + $0x4d0] sm:$0xff] }
 0x3f4   :  { %11394 = vmatprep.subr.bf16.mxu1 %v14227_v42  ;;  %v1269_v41 = vld [vmem:[#allocation8 + $0x590] sm:$0xff]  ;;  %v1246_v42 = vld [vmem:[#allocation8 + $0x4d8] sm:$0xff] }
 0x3f5   :  { %v13029_v49 = vcombine.high %v1245_v40, %v1269_v41  ;;  %v13028_v61 = vcombine.low %v1245_v40, %v1269_v41  ;;  %v13030_v62 = vcombine.low %v1246_v42, %v1270_v43  ;;  %v1558_v40 = vld [vmem:[#allocation8 + $0xe98] sm:$0xff] }
 0x3f6   :  { %11309 = vmatpush1.bf16.msra.mxu0 %v14224_v51  ;;  %v13031_v51 = vcombine.high %v1246_v42, %v1270_v43  ;;  %v13270_v42 = vcombine.low %v1486_v31, %v1510_v32 }
 0x3f7   :  { %11395 = vmatpush1.bf16.msra.mxu1 %v14226_v52  ;;  %11310 = vmatprep.subr.bf16.mxu0 %v14273_v55  ;;  %v1293_v52 = vld [vmem:[#allocation8 + $0x650] sm:$0xff] }
 0x3f8   :  { %11396 = vmatprep.subr.bf16.mxu1 %v14275_v58  ;;  %v1317_v55 = vld [vmem:[#allocation8 + $0x710] sm:$0xff]  ;;  %v1294_v58 = vld [vmem:[#allocation8 + $0x658] sm:$0xff] }
 0x3f9   :  { %v13077_v63 = vcombine.high %v1293_v52, %v1317_v55  ;;  %v13076_v4 = vcombine.low %v1293_v52, %v1317_v55  ;;  %v13078_v13 = vcombine.low %v1294_v58, %v1318_v60  ;;  %v1606_v52 = vld [vmem:[#allocation8 + $0x1018] sm:$0xff] }
 0x3fa   :  { %11311 = vmatpush1.bf16.msra.mxu0 %v14272_v0  ;;  %v13079_v0 = vcombine.high %v1294_v58, %v1318_v60 }
 0x3fb   :  { %11397 = vmatpush1.bf16.msra.mxu1 %v14274_v1  ;;  %11312 = vmatprep.subr.bf16.mxu0 %v14321_v2  ;;  %v1341_v1 = vld [vmem:[#allocation8 + $0x7d0] sm:$0xff] }
 0x3fc   :  { %11398 = vmatprep.subr.bf16.mxu1 %v14323_v3  ;;  %v1365_v2 = vld [vmem:[#allocation8 + $0x890] sm:$0xff]  ;;  %v1342_v3 = vld [vmem:[#allocation8 + $0x7d8] sm:$0xff] }
 0x3fd   :  { %v13125_v5 = vcombine.high %v1341_v1, %v1365_v2  ;;  %v13124_v16 = vcombine.low %v1341_v1, %v1365_v2  ;;  %v13126_v19 = vcombine.low %v1342_v3, %v1366_v7  ;;  %v1654_v1 = vld [vmem:[#allocation8 + $0x1198] sm:$0xff] }
 0x3fe   :  { %11313 = vmatpush1.bf16.msra.mxu0 %v14320_v6  ;;  %v13127_v6 = vcombine.high %v1342_v3, %v1366_v7 }
 0x3ff   :  { %11399 = vmatpush1.bf16.msra.mxu1 %v14322_v8  ;;  %11314 = vmatprep.subr.bf16.mxu0 %v14369_v9  ;;  %v1389_v8 = vld [vmem:[#allocation8 + $0x950] sm:$0xff] }
 0x400   :  { %11400 = vmatprep.subr.bf16.mxu1 %v14371_v11  ;;  %v1413_v9 = vld [vmem:[#allocation8 + $0xa10] sm:$0xff]  ;;  %v1390_v11 = vld [vmem:[#allocation8 + $0x958] sm:$0xff] }
 0x401   :  { %v13173_v20 = vcombine.high %v1389_v8, %v1413_v9  ;;  %v13172_v26 = vcombine.low %v1389_v8, %v1413_v9  ;;  %v1702_v8 = vld [vmem:[#allocation8 + $0x1318] sm:$0xff] }
 0x402   :  { %11315 = vmatpush1.bf16.msra.mxu0 %v14368_v21  ;;  %v13175_v21 = vcombine.high %v1390_v11, %v1414_v12 }
 0x403   :  { %11401 = vmatpush1.bf16.msra.mxu1 %v14370_v22  ;;  %11413 = vmatprep.subr.bf16.mxu0 %v12885_v23  ;;  %v1437_v22 = vld [vmem:[#allocation8 + $0xad0] sm:$0xff] }
 0x404   :  { %11499 = vmatprep.subr.bf16.mxu1 %v12887_v24  ;;  %v1461_v23 = vld [vmem:[#allocation8 + $0xb90] sm:$0xff]  ;;  %v1438_v24 = vld [vmem:[#allocation8 + $0xad8] sm:$0xff] }
 0x405   :  { %11317 = vmatmul.mubr.bf16.vlgmr.msra.gmra.mrb[20].mxu0 %v15125_v48  ;;  %v13221_v27 = vcombine.high %v1437_v22, %v1461_v23  ;;  %v13223_v28 = vcombine.high %v1438_v24, %v1462_v25  ;;  %v13222_v34 = vcombine.low %v1438_v24, %v1462_v25 }
 0x406   :  { %11403 = vmatmul.mubr.bf16.vlgmr.msra.gmra.mrb[20].mxu1 %v15125_v48  ;;  %11414 = vmatpush1.bf16.msra.mxu0 %v12884_v44  ;;  %v13174_v44 = vcombine.low %v1390_v11, %v1414_v12 }
 0x407   :  { %11445 = vmatprep.mubr.bf16.mxu0 %v15127_v53  ;;  %11500 = vmatpush1.bf16.msra.mxu1 %v12886_v29  ;;  %v1485_v29 = vld [vmem:[#allocation8 + $0xc50] sm:$0xff] }
 0x408   :  { %11531 = vmatprep.mubr.bf16.mxu1 %v15127_v53  ;;  %11415 = vmatprep.subr.bf16.mxu0 %v12933_v30  ;;  %v1509_v30 = vld [vmem:[#allocation8 + $0xd10] sm:$0xff] }
 0x409   :  { %11501 = vmatprep.subr.bf16.mxu1 %v12935_v33  ;;  %v13220_v33 = vcombine.low %v1437_v22, %v1461_v23  ;;  %v13269_v35 = vcombine.high %v1485_v29, %v1509_v30  ;;  %v13268_v41 = vcombine.low %v1485_v29, %v1509_v30  ;;  %v1750_v22 = vld [vmem:[#allocation8 + $0x1498] sm:$0xff] }
 0x40a   :  { %11416 = vmatpush1.bf16.msra.mxu0 %v12932_v36  ;;  %v13271_v36 = vcombine.high %v1486_v31, %v1510_v32  ;;  %v1798_v29 = vld [vmem:[#allocation8 + $0x1618] sm:$0xff] }
 0x40b   :  { %11502 = vmatpush1.bf16.msra.mxu1 %v12934_v37  ;;  %11417 = vmatprep.subr.bf16.mxu0 %v12981_v38  ;;  %v1533_v37 = vld [vmem:[#allocation8 + $0xdd0] sm:$0xff] }
 0x40c   :  { %11503 = vmatprep.subr.bf16.mxu1 %v12983_v39  ;;  %v1557_v38 = vld [vmem:[#allocation8 + $0xe90] sm:$0xff]  ;;  %v1534_v39 = vld [vmem:[#allocation8 + $0xdd8] sm:$0xff] }
 0x40d   :  { %v13317_v43 = vcombine.high %v1533_v37, %v1557_v38  ;;  %v13316_v55 = vcombine.low %v1533_v37, %v1557_v38  ;;  %v13318_v58 = vcombine.low %v1534_v39, %v1558_v40  ;;  %v1846_v37 = vld [vmem:[#allocation8 + $0x1798] sm:$0xff] }
 0x40e   :  { %11418 = vmatpush1.bf16.msra.mxu0 %v12980_v46  ;;  %v13319_v46 = vcombine.high %v1534_v39, %v1558_v40 }
 0x40f   :  { %11504 = vmatpush1.bf16.msra.mxu1 %v12982_v47  ;;  %11419 = vmatprep.subr.bf16.mxu0 %v13029_v49  ;;  %v1581_v47 = vld [vmem:[#allocation8 + $0xf50] sm:$0xff] }
 0x410   :  { %11505 = vmatprep.subr.bf16.mxu1 %v13031_v51  ;;  %v1605_v49 = vld [vmem:[#allocation8 + $0x1010] sm:$0xff]  ;;  %v1582_v51 = vld [vmem:[#allocation8 + $0xf58] sm:$0xff] }
 0x411   :  { %v13365_v60 = vcombine.high %v1581_v47, %v1605_v49  ;;  %v13364_v2 = vcombine.low %v1581_v47, %v1605_v49  ;;  %v13366_v3 = vcombine.low %v1582_v51, %v1606_v52  ;;  %v1894_v47 = vld [vmem:[#allocation8 + $0x1918] sm:$0xff] }
 0x412   :  { %11420 = vmatpush1.bf16.msra.mxu0 %v13028_v61  ;;  %v13367_v61 = vcombine.high %v1582_v51, %v1606_v52 }
 0x413   :  { %11506 = vmatpush1.bf16.msra.mxu1 %v13030_v62  ;;  %11421 = vmatprep.subr.bf16.mxu0 %v13077_v63  ;;  %v1629_v62 = vld [vmem:[#allocation8 + $0x10d0] sm:$0xff] }
 0x414   :  { %11507 = vmatprep.subr.bf16.mxu1 %v13079_v0  ;;  %v1653_v63 = vld [vmem:[#allocation8 + $0x1190] sm:$0xff]  ;;  %v1630_v0 = vld [vmem:[#allocation8 + $0x10d8] sm:$0xff] }
 0x415   :  { %v13413_v7 = vcombine.high %v1629_v62, %v1653_v63  ;;  %v13412_v9 = vcombine.low %v1629_v62, %v1653_v63  ;;  %v13414_v11 = vcombine.low %v1630_v0, %v1654_v1  ;;  %v1918_v62 = vld [vmem:[#allocation8 + $0x19d8] sm:$0xff] }
 0x416   :  { %11422 = vmatpush1.bf16.msra.mxu0 %v13076_v4  ;;  %v13415_v4 = vcombine.high %v1630_v0, %v1654_v1  ;;  %v1942_v63 = vld [vmem:[#allocation8 + $0x1a98] sm:$0xff] }
 0x417   :  { %11508 = vmatpush1.bf16.msra.mxu1 %v13078_v13  ;;  %11423 = vmatprep.subr.bf16.mxu0 %v13125_v5  ;;  %v1677_v13 = vld [vmem:[#allocation8 + $0x1250] sm:$0xff] }
 0x418   :  { %11509 = vmatprep.subr.bf16.mxu1 %v13127_v6  ;;  %v1701_v5 = vld [vmem:[#allocation8 + $0x1310] sm:$0xff]  ;;  %v1678_v6 = vld [vmem:[#allocation8 + $0x1258] sm:$0xff] }
 0x419   :  { %v13461_v12 = vcombine.high %v1677_v13, %v1701_v5  ;;  %v13460_v23 = vcombine.low %v1677_v13, %v1701_v5  ;;  %v13462_v24 = vcombine.low %v1678_v6, %v1702_v8  ;;  %v1990_v13 = vld [vmem:[#allocation8 + $0x1c18] sm:$0xff] }
 0x41a   :  { %11424 = vmatpush1.bf16.msra.mxu0 %v13124_v16  ;;  %v13463_v16 = vcombine.high %v1678_v6, %v1702_v8  ;;  %v13702_v6 = vcombine.low %v1918_v62, %v1942_v63 }
 0x41b   :  { %11510 = vmatpush1.bf16.msra.mxu1 %v13126_v19  ;;  %11425 = vmatprep.subr.bf16.mxu0 %v13173_v20  ;;  %v1725_v19 = vld [vmem:[#allocation8 + $0x13d0] sm:$0xff] }
 0x41c   :  { %11511 = vmatprep.subr.bf16.mxu1 %v13175_v21  ;;  %v1749_v20 = vld [vmem:[#allocation8 + $0x1490] sm:$0xff]  ;;  %v1726_v21 = vld [vmem:[#allocation8 + $0x13d8] sm:$0xff] }
 0x41d   :  { %v13509_v25 = vcombine.high %v1725_v19, %v1749_v20  ;;  %v13508_v30 = vcombine.low %v1725_v19, %v1749_v20  ;;  %v13510_v31 = vcombine.low %v1726_v21, %v1750_v22  ;;  %v2038_v19 = vld [vmem:[#allocation8 + $0x1d98] sm:$0xff] }
 0x41e   :  { %11426 = vmatpush1.bf16.msra.mxu0 %v13172_v26  ;;  %v13511_v26 = vcombine.high %v1726_v21, %v1750_v22 }
 0x41f   :  { %11512 = vmatpush1.bf16.msra.mxu1 %v13174_v44  ;;  %11427 = vmatprep.subr.bf16.mxu0 %v13221_v27  ;;  %v1773_v44 = vld [vmem:[#allocation8 + $0x1550] sm:$0xff] }
 0x420   :  { %11513 = vmatprep.subr.bf16.mxu1 %v13223_v28  ;;  %v1797_v27 = vld [vmem:[#allocation8 + $0x1610] sm:$0xff]  ;;  %v1774_v28 = vld [vmem:[#allocation8 + $0x1558] sm:$0xff] }
 0x421   :  { %v13557_v32 = vcombine.high %v1773_v44, %v1797_v27  ;;  %v13556_v38 = vcombine.low %v1773_v44, %v1797_v27  ;;  %v13558_v39 = vcombine.low %v1774_v28, %v1798_v29  ;;  %v2086_v44 = vld [vmem:[#allocation8 + $0x1f18] sm:$0xff] }
 0x422   :  { %11428 = vmatpush1.bf16.msra.mxu0 %v13220_v33  ;;  %v13559_v33 = vcombine.high %v1774_v28, %v1798_v29 }
 0x423   :  { %11514 = vmatpush1.bf16.msra.mxu1 %v13222_v34  ;;  %11429 = vmatprep.subr.bf16.mxu0 %v13269_v35  ;;  %v1821_v34 = vld [vmem:[#allocation8 + $0x16d0] sm:$0xff] }
 0x424   :  { %11515 = vmatprep.subr.bf16.mxu1 %v13271_v36  ;;  %v1845_v35 = vld [vmem:[#allocation8 + $0x1790] sm:$0xff]  ;;  %v1822_v36 = vld [vmem:[#allocation8 + $0x16d8] sm:$0xff] }
 0x425   :  { %v13605_v40 = vcombine.high %v1821_v34, %v1845_v35  ;;  %v13604_v49 = vcombine.low %v1821_v34, %v1845_v35  ;;  %v13606_v51 = vcombine.low %v1822_v36, %v1846_v37  ;;  %v2134_v34 = vld [vmem:[#allocation8 + $0x2098] sm:$0xff] }
 0x426   :  { %11430 = vmatpush1.bf16.msra.mxu0 %v13268_v41  ;;  %v13607_v41 = vcombine.high %v1822_v36, %v1846_v37 }
 0x427   :  { %11516 = vmatpush1.bf16.msra.mxu1 %v13270_v42  ;;  %11431 = vmatprep.subr.bf16.mxu0 %v13317_v43  ;;  %v1869_v42 = vld [vmem:[#allocation8 + $0x1850] sm:$0xff] }
 0x428   :  { %11517 = vmatprep.subr.bf16.mxu1 %v13319_v46  ;;  %v1893_v43 = vld [vmem:[#allocation8 + $0x1910] sm:$0xff]  ;;  %v1870_v46 = vld [vmem:[#allocation8 + $0x1858] sm:$0xff] }
 0x429   :  { %v13653_v52 = vcombine.high %v1869_v42, %v1893_v43  ;;  %v13654_v0 = vcombine.low %v1870_v46, %v1894_v47 }
 0x42a   :  { %11432 = vmatpush1.bf16.msra.mxu0 %v13316_v55  ;;  %v13655_v55 = vcombine.high %v1870_v46, %v1894_v47  ;;  %v2692_v46 = vrot.slane %v15205_v10, %v15181_v56  ;;  %v2688_v47 = vrot.slane %v15205_v10, %v15184_v57 }
 0x42b   :  { %11518 = vmatpush1.bf16.msra.mxu1 %v13318_v58  ;;  %11433 = vmatprep.subr.bf16.mxu0 %v13365_v60  ;;  %v1917_v58 = vld [vmem:[#allocation8 + $0x19d0] sm:$0xff] }
 0x42c   :  { %11519 = vmatprep.subr.bf16.mxu1 %v13367_v61  ;;  %v1941_v60 = vld [vmem:[#allocation8 + $0x1a90] sm:$0xff]  ;;  %v13652_v61 = vcombine.low %v1869_v42, %v1893_v43  ;;  %v2158_v42 = vld [vmem:[#allocation8 + $0x2158] sm:$0xff] }
 0x42d   :  { %v13701_v1 = vcombine.high %v1917_v58, %v1941_v60  ;;  %v13700_v5 = vcombine.low %v1917_v58, %v1941_v60  ;;  %v2182_v43 = vld [vmem:[#allocation8 + $0x2218] sm:$0xff] }
 0x42e   :  { %11434 = vmatpush1.bf16.msra.mxu0 %v13364_v2  ;;  %v1965_v2 = vld [vmem:[#allocation8 + $0x1b50] sm:$0xff]  ;;  %v13943_v60 = vcombine.high %v2158_v42, %v2182_v43 }
 0x42f   :  { %11520 = vmatpush1.bf16.msra.mxu1 %v13366_v3  ;;  %11435 = vmatprep.subr.bf16.mxu0 %v13413_v7  ;;  %v1989_v3 = vld [vmem:[#allocation8 + $0x1c10] sm:$0xff]  ;;  %v13703_v7 = vcombine.high %v1918_v62, %v1942_v63 }
 0x430   :  { %11521 = vmatprep.subr.bf16.mxu1 %v13415_v4  ;;  %v1966_v4 = vld [vmem:[#allocation8 + $0x1b58] sm:$0xff]  ;;  %v13749_v8 = vcombine.high %v1965_v2, %v1989_v3  ;;  %v13748_v20 = vcombine.low %v1965_v2, %v1989_v3  ;;  %v2229_v62 = vld [vmem:[#allocation8 + $0x2390] sm:$0xff] }
 0x431   :  { %v13750_v21 = vcombine.low %v1966_v4, %v1990_v13  ;;  %v2206_v2 = vld [vmem:[#allocation8 + $0x22d8] sm:$0xff] }
 0x432   :  { %11436 = vmatpush1.bf16.msra.mxu0 %v13412_v9  ;;  %v13751_v9 = vcombine.high %v1966_v4, %v1990_v13  ;;  %v2230_v3 = vld [vmem:[#allocation8 + $0x2398] sm:$0xff] }
 0x433   :  { %11522 = vmatpush1.bf16.msra.mxu1 %v13414_v11  ;;  %11437 = vmatprep.subr.bf16.mxu0 %v13461_v12  ;;  %v2013_v11 = vld [vmem:[#allocation8 + $0x1cd0] sm:$0xff] }
 0x434   :  { %11523 = vmatprep.subr.bf16.mxu1 %v13463_v16  ;;  %v2037_v12 = vld [vmem:[#allocation8 + $0x1d90] sm:$0xff]  ;;  %v2014_v16 = vld [vmem:[#allocation8 + $0x1cd8] sm:$0xff] }
 0x435   :  { %v13797_v22 = vcombine.high %v2013_v11, %v2037_v12  ;;  %v13796_v27 = vcombine.low %v2013_v11, %v2037_v12  ;;  %v13798_v28 = vcombine.low %v2014_v16, %v2038_v19 }
 0x436   :  { %11438 = vmatpush1.bf16.msra.mxu0 %v13460_v23  ;;  %v13799_v23 = vcombine.high %v2014_v16, %v2038_v19 }
 0x437   :  { %11524 = vmatpush1.bf16.msra.mxu1 %v13462_v24  ;;  %11439 = vmatprep.subr.bf16.mxu0 %v13509_v25  ;;  %v2061_v24 = vld [vmem:[#allocation8 + $0x1e50] sm:$0xff] }
 0x438   :  { %11525 = vmatprep.subr.bf16.mxu1 %v13511_v26  ;;  %v2085_v25 = vld [vmem:[#allocation8 + $0x1f10] sm:$0xff]  ;;  %v2062_v26 = vld [vmem:[#allocation8 + $0x1e58] sm:$0xff] }
 0x439   :  { %v13845_v29 = vcombine.high %v2061_v24, %v2085_v25  ;;  %v13844_v35 = vcombine.low %v2061_v24, %v2085_v25  ;;  %v13846_v36 = vcombine.low %v2062_v26, %v2086_v44  ;;  %v2277_v24 = vld [vmem:[#allocation8 + $0x2510] sm:$0xff] }
 0x43a   :  { %11440 = vmatpush1.bf16.msra.mxu0 %v13508_v30  ;;  %v13847_v30 = vcombine.high %v2062_v26, %v2086_v44  ;;  %v2254_v26 = vld [vmem:[#allocation8 + $0x2458] sm:$0xff] }
 0x43b   :  { %11526 = vmatpush1.bf16.msra.mxu1 %v13510_v31  ;;  %11441 = vmatprep.subr.bf16.mxu0 %v13557_v32  ;;  %v2109_v31 = vld [vmem:[#allocation8 + $0x1fd0] sm:$0xff]  ;;  %v2278_v44 = vld [vmem:[#allocation8 + $0x2518] sm:$0xff] }
 0x43c   :  { %11527 = vmatprep.subr.bf16.mxu1 %v13559_v33  ;;  %v2133_v32 = vld [vmem:[#allocation8 + $0x2090] sm:$0xff]  ;;  %v2110_v33 = vld [vmem:[#allocation8 + $0x1fd8] sm:$0xff] }
 0x43d   :  { %v13893_v37 = vcombine.high %v2109_v31, %v2133_v32 }
 0x43e   :  { %11442 = vmatpush1.bf16.msra.mxu0 %v13556_v38  ;;  %v13895_v38 = vcombine.high %v2110_v33, %v2134_v34 }
 0x43f   :  { %11528 = vmatpush1.bf16.msra.mxu1 %v13558_v39  ;;  %11443 = vmatprep.subr.bf16.mxu0 %v13605_v40  ;;  %v2157_v39 = vld [vmem:[#allocation8 + $0x2150] sm:$0xff] }
 0x440   :  { %11529 = vmatprep.subr.bf16.mxu1 %v13607_v41  ;;  %v2181_v40 = vld [vmem:[#allocation8 + $0x2210] sm:$0xff]  ;;  %v2684_v41 = vrot.slane %v15205_v10, %v15178_v50 }
 0x442   :  { %11444 = vmatpush1.bf16.msra.mxu0 %v13604_v49  ;;  %v13892_v49 = vcombine.low %v2109_v31, %v2133_v32  ;;  %v2301_v31 = vld [vmem:[#allocation8 + $0x25d0] sm:$0xff] }
 0x443   :  { %11530 = vmatpush1.bf16.msra.mxu1 %v13606_v51  ;;  %11456 = vmatprep.subr.bf16.mxu0 %v13653_v52  ;;  %v2696_v51 = vrot.slane %v15205_v10, %v15187_v59  ;;  %v13894_v52 = vcombine.low %v2110_v33, %v2134_v34  ;;  %v13942_v10 = vcombine.low %v2158_v42, %v2182_v43  ;;  %v2325_v32 = vld [vmem:[#allocation8 + $0x2690] sm:$0xff]  ;;  %v2302_v33 = vld [vmem:[#allocation8 + $0x25d8] sm:$0xff] }
 0x444   :  { %11542 = vmatprep.subr.bf16.mxu1 %v13655_v55  ;;  %v13941_v55 = vcombine.high %v2157_v39, %v2181_v40  ;;  %v2326_v34 = vld [vmem:[#allocation8 + $0x2698] sm:$0xff]  ;;  %v14084_v43 = vcombine.low %v2301_v31, %v2325_v32 }
 0x445   :  { %11446 = vmatmul.mubr.bf16.vlgmr.msra.gmra.mrb[24].mxu0 %v15123_v45  ;;  %v2374_v42 = vld [vmem:[#allocation8 + $0x2818] sm:$0xff] }
 0x446   :  { %11532 = vmatmul.mubr.bf16.vlgmr.msra.gmra.mrb[24].mxu1 %v15123_v45  ;;  %11457 = vmatpush1.bf16.msra.mxu0 %v13652_v61  ;;  %v2205_v61 = vld [vmem:[#allocation8 + $0x22d0] sm:$0xff] }
 0x447   :  { %11488 = vmatprep.mubr.bf16.mxu0 %v15129_v54  ;;  %11543 = vmatpush1.bf16.msra.mxu1 %v13654_v0  ;;  %v13989_v16 = vcombine.high %v2205_v61, %v2229_v62 }
 0x448   :  { %11574 = vmatprep.mubr.bf16.mxu1 %v15129_v54  ;;  %11458 = vmatprep.subr.bf16.mxu0 %v13701_v1 }
 0x449   :  { %11544 = vmatprep.subr.bf16.mxu1 %v13703_v7 }
 0x44a   :  { %11459 = vmatpush1.bf16.msra.mxu0 %v13700_v5 }
 0x44b   :  { %11545 = vmatpush1.bf16.msra.mxu1 %v13702_v6  ;;  %11460 = vmatprep.subr.bf16.mxu0 %v13749_v8  ;;  %v13940_v6 = vcombine.low %v2157_v39, %v2181_v40  ;;  %v2349_v39 = vld [vmem:[#allocation8 + $0x2750] sm:$0xff] }
 0x44c   :  { %11546 = vmatprep.subr.bf16.mxu1 %v13751_v9  ;;  %v2373_v40 = vld [vmem:[#allocation8 + $0x2810] sm:$0xff] }
 0x44e   :  { %11461 = vmatpush1.bf16.msra.mxu0 %v13748_v20 }
 0x44f   :  { %11547 = vmatpush1.bf16.msra.mxu1 %v13750_v21  ;;  %11462 = vmatprep.subr.bf16.mxu0 %v13797_v22  ;;  %v13991_v22 = vcombine.high %v2206_v2, %v2230_v3 }
 0x450   :  { %11548 = vmatprep.subr.bf16.mxu1 %v13799_v23  ;;  %v2253_v23 = vld [vmem:[#allocation8 + $0x2450] sm:$0xff] }
 0x452   :  { %11463 = vmatpush1.bf16.msra.mxu0 %v13796_v27  ;;  %v13988_v27 = vcombine.low %v2205_v61, %v2229_v62 }
 0x453   :  { %11549 = vmatpush1.bf16.msra.mxu1 %v13798_v28  ;;  %11464 = vmatprep.subr.bf16.mxu0 %v13845_v29  ;;  %v13990_v28 = vcombine.low %v2206_v2, %v2230_v3  ;;  %v14037_v29 = vcombine.high %v2253_v23, %v2277_v24  ;;  %v2446_v2 = vld [vmem:[#allocation8 + $0x2a58] sm:$0xff] }
 0x454   :  { %11550 = vmatprep.subr.bf16.mxu1 %v13847_v30  ;;  %v14039_v30 = vcombine.high %v2254_v26, %v2278_v44  ;;  %v2470_v3 = vld [vmem:[#allocation8 + $0x2b18] sm:$0xff] }
 0x456   :  { %11465 = vmatpush1.bf16.msra.mxu0 %v13844_v35  ;;  %v14036_v35 = vcombine.low %v2253_v23, %v2277_v24  ;;  %v2566_v23 = vld [vmem:[#allocation8 + $0x2e18] sm:$0xff] }
 0x457   :  { %11551 = vmatpush1.bf16.msra.mxu1 %v13846_v36  ;;  %11466 = vmatprep.subr.bf16.mxu0 %v13893_v37  ;;  %v14038_v36 = vcombine.low %v2254_v26, %v2278_v44  ;;  %v14085_v37 = vcombine.high %v2301_v31, %v2325_v32 }
 0x458   :  { %v11146_v58 = vpop.f32.mrb[16].mxu0  ;;  %11552 = vmatprep.subr.bf16.mxu1 %v13895_v38  ;;  %v14087_v38 = vcombine.high %v2302_v33, %v2326_v34 }
 0x459   :  { %v14432_v63 = vadd.f32 %v11146_v58, %v2684_v41  ;;  %v11232_v0 = vpop.f32.mrb[16].mxu1  ;;  %v11148_v1 = vpop.f32.mrb[17].mxu0  ;;  %v2422_v58 = vld [vmem:[#allocation8 + $0x2998] sm:$0xff] }
 0x45a   :  { %v14436_v7 = vadd.f32 %v11232_v0, %v2692_v46  ;;  %v14433_v4 = vadd.f32 %v11148_v1, %v2688_v47  ;;  %v11234_v13 = vpop.f32.mrb[17].mxu1  ;;  %v11150_v5 = vpop.f32.mrb[18].mxu0  ;;  %11467 = vmatpush1.bf16.msra.mxu0 %v13892_v49  ;;  %v2445_v0 = vld [vmem:[#allocation8 + $0x2a50] sm:$0xff] }
 0x45b   :  { %12629 = vst [vmem:[#allocation11 + $0x60] sm:$0xff] %v14432_v63  ;;  %v14437_v8 = vadd.f32 %v11234_v13, %v2696_v51  ;;  %v14434_v9 = vadd.f32 %v11150_v5, %v2684_v41  ;;  %v11236_v11 = vpop.f32.mrb[18].mxu1  ;;  %11553 = vmatpush1.bf16.msra.mxu1 %v13894_v52  ;;  %v11152_v12 = vpop.f32.mrb[19].mxu0  ;;  %11468 = vmatprep.subr.bf16.mxu0 %v13941_v55  ;;  %v2350_v41 = vld [vmem:[#allocation8 + $0x2758] sm:$0xff]  ;;  %v2421_v52 = vld [vmem:[#allocation8 + $0x2990] sm:$0xff] }
 0x45c   :  { %12631 = vst [vmem:[#allocation11 + $0x70] sm:$0xff] %v14436_v7  ;;  %12630 = vst [vmem:[#allocation11 + $0x68] sm:$0xff] %v14433_v4  ;;  %v14438_v19 = vadd.f32 %v11236_v11, %v2692_v46  ;;  %v14435_v20 = vadd.f32 %v11152_v12, %v2688_v47  ;;  %v11238_v21 = vpop.f32.mrb[19].mxu1  ;;  %11554 = vmatprep.subr.bf16.mxu1 %v13943_v60  ;;  %v14086_v46 = vcombine.low %v2302_v33, %v2326_v34  ;;  %v2398_v55 = vld [vmem:[#allocation8 + $0x28d8] sm:$0xff]  ;;  %v2469_v1 = vld [vmem:[#allocation8 + $0x2b10] sm:$0xff] }
 0x45d   :  { %12632 = vst [vmem:[#allocation11 + $0x78] sm:$0xff] %v14437_v8  ;;  %12677 = vst [vmem:[#allocation11 + $0x1e0] sm:$0xff] %v14434_v9  ;;  %v14439_v25 = vadd.f32 %v11238_v21, %v2696_v51  ;;  %v14133_v47 = vcombine.high %v2349_v39, %v2373_v40  ;;  %v14135_v49 = vcombine.high %v2350_v41, %v2374_v42  ;;  %v2397_v51 = vld [vmem:[#allocation8 + $0x28d0] sm:$0xff]  ;;  %v2494_v8 = vld [vmem:[#allocation8 + $0x2bd8] sm:$0xff] }
 0x45e   :  { %12679 = vst [vmem:[#allocation11 + $0x1f0] sm:$0xff] %v14438_v19  ;;  %12678 = vst [vmem:[#allocation11 + $0x1e8] sm:$0xff] %v14435_v20  ;;  %11469 = vmatpush1.bf16.msra.mxu0 %v13940_v6  ;;  %v14132_v60 = vcombine.low %v2349_v39, %v2373_v40  ;;  %v14134_v61 = vcombine.low %v2350_v41, %v2374_v42  ;;  %v14181_v62 = vcombine.high %v2397_v51, %v2421_v52  ;;  %v2493_v6 = vld [vmem:[#allocation8 + $0x2bd0] sm:$0xff]  ;;  %v2518_v9 = vld [vmem:[#allocation8 + $0x2c98] sm:$0xff] }
 0x45f   :  { %12680 = vst [vmem:[#allocation11 + $0x1f8] sm:$0xff] %v14439_v25  ;;  %11555 = vmatpush1.bf16.msra.mxu1 %v13942_v10  ;;  %11470 = vmatprep.subr.bf16.mxu0 %v13989_v16  ;;  %v14183_v63 = vcombine.high %v2398_v55, %v2422_v58  ;;  %v14180_v7 = vcombine.low %v2397_v51, %v2421_v52  ;;  %v2517_v10 = vld [vmem:[#allocation8 + $0x2c90] sm:$0xff]  ;;  %v1176_v51 = vld [vmem:[#allocation8 + $0x2a8] sm:$0xff] }
 0x460   :  { %11556 = vmatprep.subr.bf16.mxu1 %v13991_v22  ;;  %v14182_v4 = vcombine.low %v2398_v55, %v2422_v58  ;;  %v14229_v13 = vcombine.high %v2445_v0, %v2469_v1  ;;  %v14231_v5 = vcombine.high %v2446_v2, %v2470_v3  ;;  %v14228_v11 = vcombine.low %v2445_v0, %v2469_v1  ;;  %v2541_v20 = vld [vmem:[#allocation8 + $0x2d50] sm:$0xff]  ;;  %v2542_v22 = vld [vmem:[#allocation8 + $0x2d58] sm:$0xff]  ;;  %v1199_v58 = vld [vmem:[#allocation8 + $0x360] sm:$0xff] }
 0x461   :  { %v14230_v12 = vcombine.low %v2446_v2, %v2470_v3  ;;  %v14277_v16 = vcombine.high %v2493_v6, %v2517_v10  ;;  %v14279_v19 = vcombine.high %v2494_v8, %v2518_v9  ;;  %v2565_v21 = vld [vmem:[#allocation8 + $0x2e10] sm:$0xff]  ;;  %v14276_v24 = vcombine.low %v2493_v6, %v2517_v10 }
 0x462   :  { %11471 = vmatpush1.bf16.msra.mxu0 %v13988_v27  ;;  %v14278_v25 = vcombine.low %v2494_v8, %v2518_v9  ;;  %v14325_v26 = vcombine.high %v2541_v20, %v2565_v21  ;;  %v14327_v44 = vcombine.high %v2542_v22, %v2566_v23  ;;  %v2589_v27 = vld [vmem:[#allocation8 + $0x2ed0] sm:$0xff]  ;;  %v14324_v31 = vcombine.low %v2541_v20, %v2565_v21 }
 0x463   :  { %11557 = vmatpush1.bf16.msra.mxu1 %v13990_v28  ;;  %11472 = vmatprep.subr.bf16.mxu0 %v14037_v29  ;;  %v2613_v28 = vld [vmem:[#allocation8 + $0x2f90] sm:$0xff]  ;;  %v2590_v29 = vld [vmem:[#allocation8 + $0x2ed8] sm:$0xff]  ;;  %v14326_v32 = vcombine.low %v2542_v22, %v2566_v23 }
 0x464   :  { %11558 = vmatprep.subr.bf16.mxu1 %v14039_v30  ;;  %v2614_v30 = vld [vmem:[#allocation8 + $0x2f98] sm:$0xff]  ;;  %v14373_v33 = vcombine.high %v2589_v27, %v2613_v28  ;;  %v14372_v39 = vcombine.low %v2589_v27, %v2613_v28 }
 0x465   :  { %v14375_v34 = vcombine.high %v2590_v29, %v2614_v30  ;;  %v14374_v40 = vcombine.low %v2590_v29, %v2614_v30 }
 0x466   :  { %11473 = vmatpush1.bf16.msra.mxu0 %v14036_v35  ;;  %v1103_v35 = vld [vmem:[#allocation8 + $0x60] sm:$0xff] }
 0x467   :  { %11559 = vmatpush1.bf16.msra.mxu1 %v14038_v36  ;;  %11474 = vmatprep.subr.bf16.mxu0 %v14085_v37  ;;  %v1127_v36 = vld [vmem:[#allocation8 + $0x120] sm:$0xff]  ;;  %v1104_v37 = vld [vmem:[#allocation8 + $0x68] sm:$0xff] }
 0x468   :  { %11560 = vmatprep.subr.bf16.mxu1 %v14087_v38  ;;  %v1128_v38 = vld [vmem:[#allocation8 + $0x128] sm:$0xff]  ;;  %v12889_v41 = vcombine.high %v1103_v35, %v1127_v36 }
 0x469   :  { %v12891_v42 = vcombine.high %v1104_v37, %v1128_v38  ;;  %v12890_v52 = vcombine.low %v1104_v37, %v1128_v38 }
 0x46a   :  { %11475 = vmatpush1.bf16.msra.mxu0 %v14084_v43  ;;  %v1151_v43 = vld [vmem:[#allocation8 + $0x1e0] sm:$0xff] }
 0x46b   :  { %11561 = vmatpush1.bf16.msra.mxu1 %v14086_v46  ;;  %11476 = vmatprep.subr.bf16.mxu0 %v14133_v47  ;;  %v1175_v46 = vld [vmem:[#allocation8 + $0x2a0] sm:$0xff]  ;;  %v12888_v47 = vcombine.low %v1103_v35, %v1127_v36 }
 0x46c   :  { %11562 = vmatprep.subr.bf16.mxu1 %v14135_v49  ;;  %v1152_v49 = vld [vmem:[#allocation8 + $0x1e8] sm:$0xff]  ;;  %v12937_v55 = vcombine.high %v1151_v43, %v1175_v46  ;;  %v12936_v0 = vcombine.low %v1151_v43, %v1175_v46 }
 0x46d   :  { %v12938_v1 = vcombine.low %v1152_v49, %v1176_v51 }
 0x46e   :  { %11477 = vmatpush1.bf16.msra.mxu0 %v14132_v60  ;;  %v1223_v60 = vld [vmem:[#allocation8 + $0x420] sm:$0xff] }
 0x46f   :  { %11563 = vmatpush1.bf16.msra.mxu1 %v14134_v61  ;;  %11478 = vmatprep.subr.bf16.mxu0 %v14181_v62  ;;  %v12939_v61 = vcombine.high %v1152_v49, %v1176_v51  ;;  %v1200_v62 = vld [vmem:[#allocation8 + $0x368] sm:$0xff]  ;;  %v12985_v2 = vcombine.high %v1199_v58, %v1223_v60  ;;  %v12984_v6 = vcombine.low %v1199_v58, %v1223_v60  ;;  %v1487_v51 = vld [vmem:[#allocation8 + $0xc60] sm:$0xff] }
 0x470   :  { %11564 = vmatprep.subr.bf16.mxu1 %v14183_v63  ;;  %v1224_v63 = vld [vmem:[#allocation8 + $0x428] sm:$0xff] }
 0x471   :  { %v12987_v3 = vcombine.high %v1200_v62, %v1224_v63  ;;  %v12986_v10 = vcombine.low %v1200_v62, %v1224_v63  ;;  %v1512_v58 = vld [vmem:[#allocation8 + $0xd28] sm:$0xff] }
 0x472   :  { %11479 = vmatpush1.bf16.msra.mxu0 %v14180_v7  ;;  %v1247_v7 = vld [vmem:[#allocation8 + $0x4e0] sm:$0xff] }
 0x473   :  { %11565 = vmatpush1.bf16.msra.mxu1 %v14182_v4  ;;  %11480 = vmatprep.subr.bf16.mxu0 %v14229_v13  ;;  %v1271_v4 = vld [vmem:[#allocation8 + $0x5a0] sm:$0xff]  ;;  %v1248_v13 = vld [vmem:[#allocation8 + $0x4e8] sm:$0xff] }
 0x474   :  { %11566 = vmatprep.subr.bf16.mxu1 %v14231_v5  ;;  %v1272_v5 = vld [vmem:[#allocation8 + $0x5a8] sm:$0xff]  ;;  %v13033_v8 = vcombine.high %v1247_v7, %v1271_v4  ;;  %v13032_v20 = vcombine.low %v1247_v7, %v1271_v4 }
 0x475   :  { %v13035_v9 = vcombine.high %v1248_v13, %v1272_v5  ;;  %v13034_v21 = vcombine.low %v1248_v13, %v1272_v5 }
 0x476   :  { %11481 = vmatpush1.bf16.msra.mxu0 %v14228_v11  ;;  %v1295_v11 = vld [vmem:[#allocation8 + $0x660] sm:$0xff] }
 0x477   :  { %11567 = vmatpush1.bf16.msra.mxu1 %v14230_v12  ;;  %11482 = vmatprep.subr.bf16.mxu0 %v14277_v16  ;;  %v1319_v12 = vld [vmem:[#allocation8 + $0x720] sm:$0xff]  ;;  %v1296_v16 = vld [vmem:[#allocation8 + $0x668] sm:$0xff] }
 0x478   :  { %11568 = vmatprep.subr.bf16.mxu1 %v14279_v19  ;;  %v1320_v19 = vld [vmem:[#allocation8 + $0x728] sm:$0xff]  ;;  %v13081_v22 = vcombine.high %v1295_v11, %v1319_v12  ;;  %v13080_v27 = vcombine.low %v1295_v11, %v1319_v12 }
 0x479   :  { %v13083_v23 = vcombine.high %v1296_v16, %v1320_v19  ;;  %v13082_v28 = vcombine.low %v1296_v16, %v1320_v19 }
 0x47a   :  { %11483 = vmatpush1.bf16.msra.mxu0 %v14276_v24  ;;  %v1343_v24 = vld [vmem:[#allocation8 + $0x7e0] sm:$0xff] }
 0x47b   :  { %11569 = vmatpush1.bf16.msra.mxu1 %v14278_v25  ;;  %11484 = vmatprep.subr.bf16.mxu0 %v14325_v26  ;;  %v1367_v25 = vld [vmem:[#allocation8 + $0x8a0] sm:$0xff]  ;;  %v1344_v26 = vld [vmem:[#allocation8 + $0x7e8] sm:$0xff] }
 0x47c   :  { %11570 = vmatprep.subr.bf16.mxu1 %v14327_v44  ;;  %v1368_v44 = vld [vmem:[#allocation8 + $0x8a8] sm:$0xff]  ;;  %v13129_v29 = vcombine.high %v1343_v24, %v1367_v25  ;;  %v13128_v35 = vcombine.low %v1343_v24, %v1367_v25 }
 0x47d   :  { %v13131_v30 = vcombine.high %v1344_v26, %v1368_v44  ;;  %v13130_v36 = vcombine.low %v1344_v26, %v1368_v44 }
 0x47e   :  { %11485 = vmatpush1.bf16.msra.mxu0 %v14324_v31  ;;  %v1391_v31 = vld [vmem:[#allocation8 + $0x960] sm:$0xff] }
 0x47f   :  { %11571 = vmatpush1.bf16.msra.mxu1 %v14326_v32  ;;  %11486 = vmatprep.subr.bf16.mxu0 %v14373_v33  ;;  %v1415_v32 = vld [vmem:[#allocation8 + $0xa20] sm:$0xff]  ;;  %v1392_v33 = vld [vmem:[#allocation8 + $0x968] sm:$0xff] }
 0x480   :  { %11572 = vmatprep.subr.bf16.mxu1 %v14375_v34  ;;  %v1416_v34 = vld [vmem:[#allocation8 + $0xa28] sm:$0xff]  ;;  %v13177_v37 = vcombine.high %v1391_v31, %v1415_v32  ;;  %v13176_v43 = vcombine.low %v1391_v31, %v1415_v32 }
 0x481   :  { %v13179_v38 = vcombine.high %v1392_v33, %v1416_v34  ;;  %v13178_v46 = vcombine.low %v1392_v33, %v1416_v34 }
 0x482   :  { %11487 = vmatpush1.bf16.msra.mxu0 %v14372_v39  ;;  %v1439_v39 = vld [vmem:[#allocation8 + $0xae0] sm:$0xff] }
 0x483   :  { %11573 = vmatpush1.bf16.msra.mxu1 %v14374_v40  ;;  %11585 = vmatprep.subr.bf16.mxu0 %v12889_v41  ;;  %v1463_v40 = vld [vmem:[#allocation8 + $0xba0] sm:$0xff]  ;;  %v1440_v41 = vld [vmem:[#allocation8 + $0xae8] sm:$0xff] }
 0x484   :  { %11671 = vmatprep.subr.bf16.mxu1 %v12891_v42  ;;  %v1464_v42 = vld [vmem:[#allocation8 + $0xba8] sm:$0xff]  ;;  %v13224_v60 = vcombine.low %v1439_v39, %v1463_v40 }
 0x485   :  { %11489 = vmatmul.mubr.bf16.vlgmr.msra.gmra.mrb[24].mxu0 %v15125_v48  ;;  %v13227_v49 = vcombine.high %v1440_v41, %v1464_v42 }
 0x486   :  { %11575 = vmatmul.mubr.bf16.vlgmr.msra.gmra.mrb[24].mxu1 %v15125_v48  ;;  %11586 = vmatpush1.bf16.msra.mxu0 %v12888_v47  ;;  %v13225_v47 = vcombine.high %v1439_v39, %v1463_v40 }
 0x487   :  { %11617 = vmatprep.mubr.bf16.mxu0 %v15127_v53  ;;  %11672 = vmatpush1.bf16.msra.mxu1 %v12890_v52  ;;  %v1511_v52 = vld [vmem:[#allocation8 + $0xd20] sm:$0xff] }
 0x488   :  { %11703 = vmatprep.mubr.bf16.mxu1 %v15127_v53  ;;  %11587 = vmatprep.subr.bf16.mxu0 %v12937_v55  ;;  %v1488_v55 = vld [vmem:[#allocation8 + $0xc68] sm:$0xff]  ;;  %v13273_v62 = vcombine.high %v1487_v51, %v1511_v52  ;;  %v13272_v7 = vcombine.low %v1487_v51, %v1511_v52 }
 0x489   :  { %11673 = vmatprep.subr.bf16.mxu1 %v12939_v61  ;;  %v13226_v61 = vcombine.low %v1440_v41, %v1464_v42  ;;  %v13275_v63 = vcombine.high %v1488_v55, %v1512_v58  ;;  %v13274_v4 = vcombine.low %v1488_v55, %v1512_v58 }
 0x48a   :  { %11588 = vmatpush1.bf16.msra.mxu0 %v12936_v0  ;;  %v1535_v0 = vld [vmem:[#allocation8 + $0xde0] sm:$0xff] }
 0x48b   :  { %11674 = vmatpush1.bf16.msra.mxu1 %v12938_v1  ;;  %11589 = vmatprep.subr.bf16.mxu0 %v12985_v2  ;;  %v1559_v1 = vld [vmem:[#allocation8 + $0xea0] sm:$0xff]  ;;  %v1536_v2 = vld [vmem:[#allocation8 + $0xde8] sm:$0xff] }
 0x48c   :  { %11675 = vmatprep.subr.bf16.mxu1 %v12987_v3  ;;  %v1560_v3 = vld [vmem:[#allocation8 + $0xea8] sm:$0xff]  ;;  %v13321_v13 = vcombine.high %v1535_v0, %v1559_v1  ;;  %v13320_v11 = vcombine.low %v1535_v0, %v1559_v1 }
 0x48d   :  { %v13323_v5 = vcombine.high %v1536_v2, %v1560_v3  ;;  %v13322_v12 = vcombine.low %v1536_v2, %v1560_v3 }
 0x48e   :  { %11590 = vmatpush1.bf16.msra.mxu0 %v12984_v6  ;;  %v1583_v6 = vld [vmem:[#allocation8 + $0xf60] sm:$0xff] }
 0x48f   :  { %11676 = vmatpush1.bf16.msra.mxu1 %v12986_v10  ;;  %11591 = vmatprep.subr.bf16.mxu0 %v13033_v8  ;;  %v1607_v10 = vld [vmem:[#allocation8 + $0x1020] sm:$0xff]  ;;  %v1584_v8 = vld [vmem:[#allocation8 + $0xf68] sm:$0xff] }
 0x490   :  { %11677 = vmatprep.subr.bf16.mxu1 %v13035_v9  ;;  %v1608_v9 = vld [vmem:[#allocation8 + $0x1028] sm:$0xff]  ;;  %v13369_v16 = vcombine.high %v1583_v6, %v1607_v10  ;;  %v13368_v24 = vcombine.low %v1583_v6, %v1607_v10 }
 0x491   :  { %v13371_v19 = vcombine.high %v1584_v8, %v1608_v9  ;;  %v13370_v25 = vcombine.low %v1584_v8, %v1608_v9 }
 0x492   :  { %11592 = vmatpush1.bf16.msra.mxu0 %v13032_v20  ;;  %v1631_v20 = vld [vmem:[#allocation8 + $0x10e0] sm:$0xff] }
 0x493   :  { %11678 = vmatpush1.bf16.msra.mxu1 %v13034_v21  ;;  %11593 = vmatprep.subr.bf16.mxu0 %v13081_v22  ;;  %v1655_v21 = vld [vmem:[#allocation8 + $0x11a0] sm:$0xff]  ;;  %v1632_v22 = vld [vmem:[#allocation8 + $0x10e8] sm:$0xff] }
 0x494   :  { %11679 = vmatprep.subr.bf16.mxu1 %v13083_v23  ;;  %v1656_v23 = vld [vmem:[#allocation8 + $0x11a8] sm:$0xff]  ;;  %v13417_v26 = vcombine.high %v1631_v20, %v1655_v21  ;;  %v13416_v31 = vcombine.low %v1631_v20, %v1655_v21 }
 0x495   :  { %v13419_v44 = vcombine.high %v1632_v22, %v1656_v23  ;;  %v13418_v32 = vcombine.low %v1632_v22, %v1656_v23  ;;  %v1944_v20 = vld [vmem:[#allocation8 + $0x1aa8] sm:$0xff]  ;;  %v1967_v23 = vld [vmem:[#allocation8 + $0x1b60] sm:$0xff] }
 0x496   :  { %11594 = vmatpush1.bf16.msra.mxu0 %v13080_v27  ;;  %v1679_v27 = vld [vmem:[#allocation8 + $0x1260] sm:$0xff] }
 0x497   :  { %11680 = vmatpush1.bf16.msra.mxu1 %v13082_v28  ;;  %11595 = vmatprep.subr.bf16.mxu0 %v13129_v29  ;;  %v1703_v28 = vld [vmem:[#allocation8 + $0x1320] sm:$0xff]  ;;  %v1680_v29 = vld [vmem:[#allocation8 + $0x1268] sm:$0xff] }
 0x498   :  { %11681 = vmatprep.subr.bf16.mxu1 %v13131_v30  ;;  %v1704_v30 = vld [vmem:[#allocation8 + $0x1328] sm:$0xff]  ;;  %v13465_v33 = vcombine.high %v1679_v27, %v1703_v28  ;;  %v13464_v39 = vcombine.low %v1679_v27, %v1703_v28 }
 0x499   :  { %v13467_v34 = vcombine.high %v1680_v29, %v1704_v30  ;;  %v13466_v40 = vcombine.low %v1680_v29, %v1704_v30 }
 0x49a   :  { %11596 = vmatpush1.bf16.msra.mxu0 %v13128_v35  ;;  %v1727_v35 = vld [vmem:[#allocation8 + $0x13e0] sm:$0xff] }
 0x49b   :  { %11682 = vmatpush1.bf16.msra.mxu1 %v13130_v36  ;;  %11597 = vmatprep.subr.bf16.mxu0 %v13177_v37  ;;  %v1751_v36 = vld [vmem:[#allocation8 + $0x14a0] sm:$0xff]  ;;  %v1728_v37 = vld [vmem:[#allocation8 + $0x13e8] sm:$0xff] }
 0x49c   :  { %11683 = vmatprep.subr.bf16.mxu1 %v13179_v38  ;;  %v1752_v38 = vld [vmem:[#allocation8 + $0x14a8] sm:$0xff]  ;;  %v13513_v41 = vcombine.high %v1727_v35, %v1751_v36  ;;  %v13512_v51 = vcombine.low %v1727_v35, %v1751_v36 }
 0x49d   :  { %v13515_v42 = vcombine.high %v1728_v37, %v1752_v38  ;;  %v13514_v52 = vcombine.low %v1728_v37, %v1752_v38 }
 0x49e   :  { %11598 = vmatpush1.bf16.msra.mxu0 %v13176_v43  ;;  %v1775_v43 = vld [vmem:[#allocation8 + $0x1560] sm:$0xff] }
 0x49f   :  { %11684 = vmatpush1.bf16.msra.mxu1 %v13178_v46  ;;  %11599 = vmatprep.subr.bf16.mxu0 %v13225_v47  ;;  %v1799_v46 = vld [vmem:[#allocation8 + $0x1620] sm:$0xff]  ;;  %v1776_v47 = vld [vmem:[#allocation8 + $0x1568] sm:$0xff] }
 0x4a0   :  { %11685 = vmatprep.subr.bf16.mxu1 %v13227_v49  ;;  %v1800_v49 = vld [vmem:[#allocation8 + $0x1628] sm:$0xff]  ;;  %v13561_v55 = vcombine.high %v1775_v43, %v1799_v46  ;;  %v13560_v0 = vcombine.low %v1775_v43, %v1799_v46 }
 0x4a1   :  { %v13563_v58 = vcombine.high %v1776_v47, %v1800_v49  ;;  %v13562_v1 = vcombine.low %v1776_v47, %v1800_v49 }
 0x4a2   :  { %11600 = vmatpush1.bf16.msra.mxu0 %v13224_v60  ;;  %v1823_v60 = vld [vmem:[#allocation8 + $0x16e0] sm:$0xff] }
 0x4a3   :  { %11686 = vmatpush1.bf16.msra.mxu1 %v13226_v61  ;;  %11601 = vmatprep.subr.bf16.mxu0 %v13273_v62  ;;  %v1847_v61 = vld [vmem:[#allocation8 + $0x17a0] sm:$0xff]  ;;  %v1824_v62 = vld [vmem:[#allocation8 + $0x16e8] sm:$0xff] }
 0x4a4   :  { %11687 = vmatprep.subr.bf16.mxu1 %v13275_v63  ;;  %v1848_v63 = vld [vmem:[#allocation8 + $0x17a8] sm:$0xff]  ;;  %v13609_v2 = vcombine.high %v1823_v60, %v1847_v61  ;;  %v13608_v6 = vcombine.low %v1823_v60, %v1847_v61  ;;  %v15239_v61 = vld [vmem:[#allocation10 + $0x10] sm:$0xff] }
 0x4a5   :  { %v13611_v3 = vcombine.high %v1824_v62, %v1848_v63  ;;  %v13610_v10 = vcombine.low %v1824_v62, %v1848_v63 }
 0x4a6   :  { %11602 = vmatpush1.bf16.msra.mxu0 %v13272_v7  ;;  %v1871_v7 = vld [vmem:[#allocation8 + $0x1860] sm:$0xff] }
 0x4a7   :  { %11688 = vmatpush1.bf16.msra.mxu1 %v13274_v4  ;;  %11603 = vmatprep.subr.bf16.mxu0 %v13321_v13  ;;  %v1895_v4 = vld [vmem:[#allocation8 + $0x1920] sm:$0xff]  ;;  %v1872_v13 = vld [vmem:[#allocation8 + $0x1868] sm:$0xff] }
 0x4a8   :  { %11689 = vmatprep.subr.bf16.mxu1 %v13323_v5  ;;  %v1896_v5 = vld [vmem:[#allocation8 + $0x1928] sm:$0xff]  ;;  %v13657_v8 = vcombine.high %v1871_v7, %v1895_v4 }
 0x4a9   :  { %v13659_v9 = vcombine.high %v1872_v13, %v1896_v5  ;;  %v13658_v21 = vcombine.low %v1872_v13, %v1896_v5  ;;  %v2708_v13 = vrot.slane %v15239_v61, %v15111_v15  ;;  %v2704_v5 = vrot.slane %v15239_v61, %v15114_v17 }
 0x4aa   :  { %11604 = vmatpush1.bf16.msra.mxu0 %v13320_v11  ;;  %v1919_v11 = vld [vmem:[#allocation8 + $0x19e0] sm:$0xff] }
 0x4ab   :  { %11690 = vmatpush1.bf16.msra.mxu1 %v13322_v12  ;;  %11605 = vmatprep.subr.bf16.mxu0 %v13369_v16  ;;  %v1943_v12 = vld [vmem:[#allocation8 + $0x1aa0] sm:$0xff]  ;;  %v13656_v16 = vcombine.low %v1871_v7, %v1895_v4  ;;  %v2160_v7 = vld [vmem:[#allocation8 + $0x2168] sm:$0xff] }
 0x4ac   :  { %11691 = vmatprep.subr.bf16.mxu1 %v13371_v19  ;;  %v1920_v19 = vld [vmem:[#allocation8 + $0x19e8] sm:$0xff]  ;;  %v13705_v22 = vcombine.high %v1919_v11, %v1943_v12  ;;  %v13704_v27 = vcombine.low %v1919_v11, %v1943_v12 }
 0x4ad   :  { %v13706_v28 = vcombine.low %v1920_v19, %v1944_v20  ;;  %v2184_v4 = vld [vmem:[#allocation8 + $0x2228] sm:$0xff] }
 0x4ae   :  { %11606 = vmatpush1.bf16.msra.mxu0 %v13368_v24  ;;  %v1991_v24 = vld [vmem:[#allocation8 + $0x1c20] sm:$0xff]  ;;  %v13947_v12 = vcombine.high %v2160_v7, %v2184_v4 }
 0x4af   :  { %11692 = vmatpush1.bf16.msra.mxu1 %v13370_v25  ;;  %11607 = vmatprep.subr.bf16.mxu0 %v13417_v26  ;;  %v13707_v25 = vcombine.high %v1920_v19, %v1944_v20  ;;  %v1968_v26 = vld [vmem:[#allocation8 + $0x1b68] sm:$0xff]  ;;  %v13753_v29 = vcombine.high %v1967_v23, %v1991_v24  ;;  %v13752_v35 = vcombine.low %v1967_v23, %v1991_v24  ;;  %v2231_v19 = vld [vmem:[#allocation8 + $0x23a0] sm:$0xff] }
 0x4b0   :  { %11693 = vmatprep.subr.bf16.mxu1 %v13419_v44  ;;  %v1992_v44 = vld [vmem:[#allocation8 + $0x1c28] sm:$0xff] }
 0x4b1   :  { %v13755_v30 = vcombine.high %v1968_v26, %v1992_v44  ;;  %v13754_v36 = vcombine.low %v1968_v26, %v1992_v44  ;;  %v2208_v23 = vld [vmem:[#allocation8 + $0x22e8] sm:$0xff] }
 0x4b2   :  { %11608 = vmatpush1.bf16.msra.mxu0 %v13416_v31  ;;  %v2015_v31 = vld [vmem:[#allocation8 + $0x1ce0] sm:$0xff]  ;;  %v2232_v24 = vld [vmem:[#allocation8 + $0x23a8] sm:$0xff] }
 0x4b3   :  { %11694 = vmatpush1.bf16.msra.mxu1 %v13418_v32  ;;  %11609 = vmatprep.subr.bf16.mxu0 %v13465_v33  ;;  %v2039_v32 = vld [vmem:[#allocation8 + $0x1da0] sm:$0xff]  ;;  %v2016_v33 = vld [vmem:[#allocation8 + $0x1ce8] sm:$0xff] }
 0x4b4   :  { %11695 = vmatprep.subr.bf16.mxu1 %v13467_v34  ;;  %v2040_v34 = vld [vmem:[#allocation8 + $0x1da8] sm:$0xff]  ;;  %v13801_v37 = vcombine.high %v2015_v31, %v2039_v32  ;;  %v13800_v43 = vcombine.low %v2015_v31, %v2039_v32 }
 0x4b5   :  { %v13803_v38 = vcombine.high %v2016_v33, %v2040_v34  ;;  %v13802_v46 = vcombine.low %v2016_v33, %v2040_v34 }
 0x4b6   :  { %11610 = vmatpush1.bf16.msra.mxu0 %v13464_v39  ;;  %v2063_v39 = vld [vmem:[#allocation8 + $0x1e60] sm:$0xff] }
 0x4b7   :  { %11696 = vmatpush1.bf16.msra.mxu1 %v13466_v40  ;;  %11611 = vmatprep.subr.bf16.mxu0 %v13513_v41  ;;  %v2087_v40 = vld [vmem:[#allocation8 + $0x1f20] sm:$0xff]  ;;  %v2064_v41 = vld [vmem:[#allocation8 + $0x1e68] sm:$0xff] }
 0x4b8   :  { %11697 = vmatprep.subr.bf16.mxu1 %v13515_v42  ;;  %v2088_v42 = vld [vmem:[#allocation8 + $0x1f28] sm:$0xff]  ;;  %v13849_v47 = vcombine.high %v2063_v39, %v2087_v40  ;;  %v13848_v60 = vcombine.low %v2063_v39, %v2087_v40  ;;  %v2255_v39 = vld [vmem:[#allocation8 + $0x2460] sm:$0xff] }
 0x4b9   :  { %v13851_v49 = vcombine.high %v2064_v41, %v2088_v42  ;;  %v13850_v62 = vcombine.low %v2064_v41, %v2088_v42  ;;  %v2279_v40 = vld [vmem:[#allocation8 + $0x2520] sm:$0xff]  ;;  %v2256_v42 = vld [vmem:[#allocation8 + $0x2468] sm:$0xff] }
 0x4ba   :  { %11612 = vmatpush1.bf16.msra.mxu0 %v13512_v51  ;;  %v2111_v51 = vld [vmem:[#allocation8 + $0x1fe0] sm:$0xff] }
 0x4bb   :  { %11698 = vmatpush1.bf16.msra.mxu1 %v13514_v52  ;;  %11613 = vmatprep.subr.bf16.mxu0 %v13561_v55  ;;  %v2135_v52 = vld [vmem:[#allocation8 + $0x20a0] sm:$0xff]  ;;  %v2112_v55 = vld [vmem:[#allocation8 + $0x1fe8] sm:$0xff] }
 0x4bc   :  { %11699 = vmatprep.subr.bf16.mxu1 %v13563_v58  ;;  %v2136_v58 = vld [vmem:[#allocation8 + $0x20a8] sm:$0xff]  ;;  %v13897_v63 = vcombine.high %v2111_v51, %v2135_v52 }
 0x4be   :  { %11614 = vmatpush1.bf16.msra.mxu0 %v13560_v0  ;;  %v13899_v0 = vcombine.high %v2112_v55, %v2136_v58 }
 0x4bf   :  { %11700 = vmatpush1.bf16.msra.mxu1 %v13562_v1  ;;  %11615 = vmatprep.subr.bf16.mxu0 %v13609_v2  ;;  %v2159_v1 = vld [vmem:[#allocation8 + $0x2160] sm:$0xff] }
 0x4c0   :  { %11701 = vmatprep.subr.bf16.mxu1 %v13611_v3  ;;  %v2183_v2 = vld [vmem:[#allocation8 + $0x2220] sm:$0xff]  ;;  %v2700_v3 = vrot.slane %v15239_v61, %v15108_v14 }
 0x4c2   :  { %11616 = vmatpush1.bf16.msra.mxu0 %v13608_v6  ;;  %v13896_v6 = vcombine.low %v2111_v51, %v2135_v52  ;;  %v2303_v52 = vld [vmem:[#allocation8 + $0x25e0] sm:$0xff] }
 0x4c3   :  { %11702 = vmatpush1.bf16.msra.mxu1 %v13610_v10  ;;  %11628 = vmatprep.subr.bf16.mxu0 %v13657_v8  ;;  %v2712_v10 = vrot.slane %v15239_v61, %v15117_v18  ;;  %v13898_v8 = vcombine.low %v2112_v55, %v2136_v58  ;;  %v2327_v55 = vld [vmem:[#allocation8 + $0x26a0] sm:$0xff]  ;;  %v2304_v58 = vld [vmem:[#allocation8 + $0x25e8] sm:$0xff] }
 0x4c4   :  { %11714 = vmatprep.subr.bf16.mxu1 %v13659_v9  ;;  %v13945_v9 = vcombine.high %v2159_v1, %v2183_v2 }
 0x4c5   :  { %11618 = vmatmul.mubr.bf16.vlgmr.msra.gmra.mrb[28].mxu0 %v15123_v45 }
 0x4c6   :  { %11704 = vmatmul.mubr.bf16.vlgmr.msra.gmra.mrb[28].mxu1 %v15123_v45  ;;  %11629 = vmatpush1.bf16.msra.mxu0 %v13656_v16  ;;  %v2207_v16 = vld [vmem:[#allocation8 + $0x22e0] sm:$0xff] }
 0x4c7   :  { %11660 = vmatprep.mubr.bf16.mxu0 %v15129_v54  ;;  %11715 = vmatpush1.bf16.msra.mxu1 %v13658_v21  ;;  %v13993_v34 = vcombine.high %v2207_v16, %v2231_v19 }
 0x4c8   :  { %11746 = vmatprep.mubr.bf16.mxu1 %v15129_v54  ;;  %11630 = vmatprep.subr.bf16.mxu0 %v13705_v22 }
 0x4c9   :  { %11716 = vmatprep.subr.bf16.mxu1 %v13707_v25 }
 0x4ca   :  { %11631 = vmatpush1.bf16.msra.mxu0 %v13704_v27 }
 0x4cb   :  { %11717 = vmatpush1.bf16.msra.mxu1 %v13706_v28  ;;  %11632 = vmatprep.subr.bf16.mxu0 %v13753_v29  ;;  %v13944_v28 = vcombine.low %v2159_v1, %v2183_v2  ;;  %v13946_v29 = vcombine.low %v2160_v7, %v2184_v4  ;;  %v2351_v2 = vld [vmem:[#allocation8 + $0x2760] sm:$0xff]  ;;  %v2352_v7 = vld [vmem:[#allocation8 + $0x2768] sm:$0xff] }
 0x4cc   :  { %11718 = vmatprep.subr.bf16.mxu1 %v13755_v30  ;;  %v2376_v4 = vld [vmem:[#allocation8 + $0x2828] sm:$0xff] }
 0x4ce   :  { %11633 = vmatpush1.bf16.msra.mxu0 %v13752_v35 }
 0x4cf   :  { %11719 = vmatpush1.bf16.msra.mxu1 %v13754_v36  ;;  %11634 = vmatprep.subr.bf16.mxu0 %v13801_v37 }
 0x4d0   :  { %11720 = vmatprep.subr.bf16.mxu1 %v13803_v38  ;;  %v13995_v38 = vcombine.high %v2208_v23, %v2232_v24 }
 0x4d2   :  { %11635 = vmatpush1.bf16.msra.mxu0 %v13800_v43  ;;  %v2280_v43 = vld [vmem:[#allocation8 + $0x2528] sm:$0xff] }
 0x4d3   :  { %11721 = vmatpush1.bf16.msra.mxu1 %v13802_v46  ;;  %11636 = vmatprep.subr.bf16.mxu0 %v13849_v47  ;;  %v13992_v46 = vcombine.low %v2207_v16, %v2231_v19  ;;  %v13994_v47 = vcombine.low %v2208_v23, %v2232_v24  ;;  %v14043_v51 = vcombine.high %v2256_v42, %v2280_v43  ;;  %v2471_v23 = vld [vmem:[#allocation8 + $0x2b20] sm:$0xff]  ;;  %v2448_v24 = vld [vmem:[#allocation8 + $0x2a68] sm:$0xff] }
 0x4d4   :  { %11722 = vmatprep.subr.bf16.mxu1 %v13851_v49  ;;  %v14041_v49 = vcombine.high %v2255_v39, %v2279_v40  ;;  %v14138_v19 = vcombine.low %v2352_v7, %v2376_v4 }
 0x4d6   :  { %11637 = vmatpush1.bf16.msra.mxu0 %v13848_v60  ;;  %v2328_v60 = vld [vmem:[#allocation8 + $0x26a8] sm:$0xff] }
 0x4d7   :  { %11723 = vmatpush1.bf16.msra.mxu1 %v13850_v62  ;;  %11638 = vmatprep.subr.bf16.mxu0 %v13897_v63  ;;  %v14040_v62 = vcombine.low %v2255_v39, %v2279_v40  ;;  %v14042_v63 = vcombine.low %v2256_v42, %v2280_v43  ;;  %v14091_v1 = vcombine.high %v2304_v58, %v2328_v60  ;;  %v2544_v39 = vld [vmem:[#allocation8 + $0x2d68] sm:$0xff] }
 0x4d8   :  { %v11318_v11 = vpop.f32.mrb[20].mxu0  ;;  %11724 = vmatprep.subr.bf16.mxu1 %v13899_v0  ;;  %v14089_v0 = vcombine.high %v2303_v52, %v2327_v55  ;;  %v2568_v40 = vld [vmem:[#allocation8 + $0x2e28] sm:$0xff] }
 0x4d9   :  { %v14440_v20 = vadd.f32 %v11318_v11, %v2700_v3  ;;  %v11404_v21 = vpop.f32.mrb[20].mxu1  ;;  %v11320_v22 = vpop.f32.mrb[21].mxu0  ;;  %v2400_v11 = vld [vmem:[#allocation8 + $0x28e8] sm:$0xff] }
 0x4da   :  { %v14444_v25 = vadd.f32 %v11404_v21, %v2708_v13  ;;  %v14441_v26 = vadd.f32 %v11320_v22, %v2704_v5  ;;  %v11406_v44 = vpop.f32.mrb[21].mxu1  ;;  %v11322_v27 = vpop.f32.mrb[22].mxu0  ;;  %11639 = vmatpush1.bf16.msra.mxu0 %v13896_v6  ;;  %v2447_v22 = vld [vmem:[#allocation8 + $0x2a60] sm:$0xff] }
 0x4db   :  { %12633 = vst [vmem:[#allocation11 + $0x80] sm:$0xff] %v14440_v20  ;;  %v14445_v30 = vadd.f32 %v11406_v44, %v2712_v10  ;;  %v14442_v31 = vadd.f32 %v11322_v27, %v2700_v3  ;;  %v11408_v32 = vpop.f32.mrb[22].mxu1  ;;  %11725 = vmatpush1.bf16.msra.mxu1 %v13898_v8  ;;  %v11324_v33 = vpop.f32.mrb[23].mxu0  ;;  %11640 = vmatprep.subr.bf16.mxu0 %v13945_v9  ;;  %v2375_v3 = vld [vmem:[#allocation8 + $0x2820] sm:$0xff] }
 0x4dc   :  { %12635 = vst [vmem:[#allocation11 + $0x90] sm:$0xff] %v14444_v25  ;;  %12634 = vst [vmem:[#allocation11 + $0x88] sm:$0xff] %v14441_v26  ;;  %v14446_v35 = vadd.f32 %v11408_v32, %v2708_v13  ;;  %v14443_v36 = vadd.f32 %v11324_v33, %v2704_v5  ;;  %v11410_v37 = vpop.f32.mrb[23].mxu1  ;;  %11726 = vmatprep.subr.bf16.mxu1 %v13947_v12  ;;  %v14088_v13 = vcombine.low %v2303_v52, %v2327_v55  ;;  %v2399_v8 = vld [vmem:[#allocation8 + $0x28e0] sm:$0xff]  ;;  %v2424_v12 = vld [vmem:[#allocation8 + $0x29a8] sm:$0xff] }
 0x4dd   :  { %12636 = vst [vmem:[#allocation11 + $0x98] sm:$0xff] %v14445_v30  ;;  %12681 = vst [vmem:[#allocation11 + $0x200] sm:$0xff] %v14442_v31  ;;  %v14447_v41 = vadd.f32 %v11410_v37, %v2712_v10  ;;  %v14090_v5 = vcombine.low %v2304_v58, %v2328_v60  ;;  %v14137_v6 = vcombine.high %v2351_v2, %v2375_v3  ;;  %v2423_v9 = vld [vmem:[#allocation8 + $0x29a0] sm:$0xff]  ;;  %v2472_v25 = vld [vmem:[#allocation8 + $0x2b28] sm:$0xff] }
 0x4de   :  { %12683 = vst [vmem:[#allocation11 + $0x210] sm:$0xff] %v14446_v35  ;;  %12682 = vst [vmem:[#allocation11 + $0x208] sm:$0xff] %v14443_v36  ;;  %11641 = vmatpush1.bf16.msra.mxu0 %v13944_v28  ;;  %v14139_v10 = vcombine.high %v2352_v7, %v2376_v4  ;;  %v14136_v16 = vcombine.low %v2351_v2, %v2375_v3  ;;  %v14185_v20 = vcombine.high %v2399_v8, %v2423_v9  ;;  %v2519_v30 = vld [vmem:[#allocation8 + $0x2ca0] sm:$0xff]  ;;  %v2496_v31 = vld [vmem:[#allocation8 + $0x2be8] sm:$0xff] }
 0x4df   :  { %12684 = vst [vmem:[#allocation11 + $0x218] sm:$0xff] %v14447_v41  ;;  %11727 = vmatpush1.bf16.msra.mxu1 %v13946_v29  ;;  %11642 = vmatprep.subr.bf16.mxu0 %v13993_v34  ;;  %v14187_v21 = vcombine.high %v2400_v11, %v2424_v12  ;;  %v14184_v26 = vcombine.low %v2399_v8, %v2423_v9  ;;  %v2495_v29 = vld [vmem:[#allocation8 + $0x2be0] sm:$0xff]  ;;  %v2520_v32 = vld [vmem:[#allocation8 + $0x2ca8] sm:$0xff]  ;;  %v1130_v2 = vld [vmem:[#allocation8 + $0x138] sm:$0xff] }
 0x4e0   :  { %11728 = vmatprep.subr.bf16.mxu1 %v13995_v38  ;;  %v14186_v44 = vcombine.low %v2400_v11, %v2424_v12  ;;  %v14233_v27 = vcombine.high %v2447_v22, %v2471_v23  ;;  %v14235_v28 = vcombine.high %v2448_v24, %v2472_v25  ;;  %v14232_v33 = vcombine.low %v2447_v22, %v2471_v23  ;;  %v2543_v37 = vld [vmem:[#allocation8 + $0x2d60] sm:$0xff]  ;;  %v2616_v52 = vld [vmem:[#allocation8 + $0x2fa8] sm:$0xff]  ;;  %v1154_v8 = vld [vmem:[#allocation8 + $0x1f8] sm:$0xff] }
 0x4e1   :  { %v14234_v34 = vcombine.low %v2448_v24, %v2472_v25  ;;  %v14281_v35 = vcombine.high %v2495_v29, %v2519_v30  ;;  %v14283_v36 = vcombine.high %v2496_v31, %v2520_v32  ;;  %v2567_v38 = vld [vmem:[#allocation8 + $0x2e20] sm:$0xff]  ;;  %v14280_v41 = vcombine.low %v2495_v29, %v2519_v30  ;;  %v1178_v9 = vld [vmem:[#allocation8 + $0x2b8] sm:$0xff] }
 0x4e2   :  { %11643 = vmatpush1.bf16.msra.mxu0 %v13992_v46  ;;  %v14282_v42 = vcombine.low %v2496_v31, %v2520_v32  ;;  %v14329_v43 = vcombine.high %v2543_v37, %v2567_v38  ;;  %v14331_v46 = vcombine.high %v2544_v39, %v2568_v40  ;;  %v14328_v55 = vcombine.low %v2543_v37, %v2567_v38  ;;  %v1226_v22 = vld [vmem:[#allocation8 + $0x438] sm:$0xff] }
 0x4e3   :  { %11729 = vmatpush1.bf16.msra.mxu1 %v13994_v47  ;;  %11644 = vmatprep.subr.bf16.mxu0 %v14041_v49  ;;  %v2591_v47 = vld [vmem:[#allocation8 + $0x2ee0] sm:$0xff]  ;;  %v14330_v58 = vcombine.low %v2544_v39, %v2568_v40  ;;  %v12942_v24 = vcombine.low %v1154_v8, %v1178_v9  ;;  %v1274_v29 = vld [vmem:[#allocation8 + $0x5b8] sm:$0xff] }
 0x4e4   :  { %11730 = vmatprep.subr.bf16.mxu1 %v14043_v51  ;;  %v2615_v49 = vld [vmem:[#allocation8 + $0x2fa0] sm:$0xff]  ;;  %v2592_v51 = vld [vmem:[#allocation8 + $0x2ee8] sm:$0xff]  ;;  %v1322_v37 = vld [vmem:[#allocation8 + $0x738] sm:$0xff] }
 0x4e5   :  { %v14377_v60 = vcombine.high %v2591_v47, %v2615_v49  ;;  %v14376_v3 = vcombine.low %v2591_v47, %v2615_v49  ;;  %v14378_v7 = vcombine.low %v2592_v51, %v2616_v52  ;;  %v1370_v47 = vld [vmem:[#allocation8 + $0x8b8] sm:$0xff] }
 0x4e6   :  { %11645 = vmatpush1.bf16.msra.mxu0 %v14040_v62  ;;  %v14379_v62 = vcombine.high %v2592_v51, %v2616_v52 }
 0x4e7   :  { %11731 = vmatpush1.bf16.msra.mxu1 %v14042_v63  ;;  %11646 = vmatprep.subr.bf16.mxu0 %v14089_v0  ;;  %v1105_v63 = vld [vmem:[#allocation8 + $0x70] sm:$0xff] }
 0x4e8   :  { %11732 = vmatprep.subr.bf16.mxu1 %v14091_v1  ;;  %v1129_v0 = vld [vmem:[#allocation8 + $0x130] sm:$0xff]  ;;  %v1106_v1 = vld [vmem:[#allocation8 + $0x78] sm:$0xff] }
 0x4e9   :  { %v12893_v4 = vcombine.high %v1105_v63, %v1129_v0  ;;  %v12894_v11 = vcombine.low %v1106_v1, %v1130_v2 }
 0x4ea   :  { %11647 = vmatpush1.bf16.msra.mxu0 %v14088_v13  ;;  %v12895_v13 = vcombine.high %v1106_v1, %v1130_v2 }
 0x4eb   :  { %11733 = vmatpush1.bf16.msra.mxu1 %v14090_v5  ;;  %11648 = vmatprep.subr.bf16.mxu0 %v14137_v6  ;;  %v1153_v5 = vld [vmem:[#allocation8 + $0x1f0] sm:$0xff] }
 0x4ec   :  { %11734 = vmatprep.subr.bf16.mxu1 %v14139_v10  ;;  %v1177_v6 = vld [vmem:[#allocation8 + $0x2b0] sm:$0xff]  ;;  %v12892_v10 = vcombine.low %v1105_v63, %v1129_v0  ;;  %v1418_v63 = vld [vmem:[#allocation8 + $0xa38] sm:$0xff] }
 0x4ed   :  { %v12941_v12 = vcombine.high %v1153_v5, %v1177_v6  ;;  %v12940_v23 = vcombine.low %v1153_v5, %v1177_v6  ;;  %v1466_v5 = vld [vmem:[#allocation8 + $0xbb8] sm:$0xff] }
 0x4ee   :  { %11649 = vmatpush1.bf16.msra.mxu0 %v14136_v16  ;;  %v1201_v16 = vld [vmem:[#allocation8 + $0x370] sm:$0xff] }
 0x4ef   :  { %11735 = vmatpush1.bf16.msra.mxu1 %v14138_v19  ;;  %11650 = vmatprep.subr.bf16.mxu0 %v14185_v20  ;;  %v1225_v19 = vld [vmem:[#allocation8 + $0x430] sm:$0xff]  ;;  %v12943_v20 = vcombine.high %v1154_v8, %v1178_v9 }
 0x4f0   :  { %11736 = vmatprep.subr.bf16.mxu1 %v14187_v21  ;;  %v1202_v21 = vld [vmem:[#allocation8 + $0x378] sm:$0xff]  ;;  %v12989_v25 = vcombine.high %v1201_v16, %v1225_v19  ;;  %v12988_v30 = vcombine.low %v1201_v16, %v1225_v19 }
 0x4f1   :  { %v12990_v31 = vcombine.low %v1202_v21, %v1226_v22  ;;  %v1490_v16 = vld [vmem:[#allocation8 + $0xc78] sm:$0xff] }
 0x4f2   :  { %11651 = vmatpush1.bf16.msra.mxu0 %v14184_v26  ;;  %v12991_v26 = vcombine.high %v1202_v21, %v1226_v22  ;;  %v1514_v19 = vld [vmem:[#allocation8 + $0xd38] sm:$0xff] }
 0x4f3   :  { %11737 = vmatpush1.bf16.msra.mxu1 %v14186_v44  ;;  %11652 = vmatprep.subr.bf16.mxu0 %v14233_v27  ;;  %v1249_v44 = vld [vmem:[#allocation8 + $0x4f0] sm:$0xff] }
 0x4f4   :  { %11738 = vmatprep.subr.bf16.mxu1 %v14235_v28  ;;  %v1273_v27 = vld [vmem:[#allocation8 + $0x5b0] sm:$0xff]  ;;  %v1250_v28 = vld [vmem:[#allocation8 + $0x4f8] sm:$0xff] }
 0x4f5   :  { %v13037_v32 = vcombine.high %v1249_v44, %v1273_v27  ;;  %v13036_v38 = vcombine.low %v1249_v44, %v1273_v27  ;;  %v13038_v39 = vcombine.low %v1250_v28, %v1274_v29  ;;  %v1562_v44 = vld [vmem:[#allocation8 + $0xeb8] sm:$0xff] }
 0x4f6   :  { %11653 = vmatpush1.bf16.msra.mxu0 %v14232_v33  ;;  %v13039_v33 = vcombine.high %v1250_v28, %v1274_v29  ;;  %v13278_v28 = vcombine.low %v1490_v16, %v1514_v19 }
 0x4f7   :  { %11739 = vmatpush1.bf16.msra.mxu1 %v14234_v34  ;;  %11654 = vmatprep.subr.bf16.mxu0 %v14281_v35  ;;  %v1297_v34 = vld [vmem:[#allocation8 + $0x670] sm:$0xff] }
 0x4f8   :  { %11740 = vmatprep.subr.bf16.mxu1 %v14283_v36  ;;  %v1321_v35 = vld [vmem:[#allocation8 + $0x730] sm:$0xff]  ;;  %v1298_v36 = vld [vmem:[#allocation8 + $0x678] sm:$0xff] }
 0x4f9   :  { %v13085_v40 = vcombine.high %v1297_v34, %v1321_v35  ;;  %v13084_v49 = vcombine.low %v1297_v34, %v1321_v35  ;;  %v13086_v51 = vcombine.low %v1298_v36, %v1322_v37  ;;  %v1610_v34 = vld [vmem:[#allocation8 + $0x1038] sm:$0xff] }
 0x4fa   :  { %11655 = vmatpush1.bf16.msra.mxu0 %v14280_v41  ;;  %v13087_v41 = vcombine.high %v1298_v36, %v1322_v37 }
 0x4fb   :  { %11741 = vmatpush1.bf16.msra.mxu1 %v14282_v42  ;;  %11656 = vmatprep.subr.bf16.mxu0 %v14329_v43  ;;  %v1345_v42 = vld [vmem:[#allocation8 + $0x7f0] sm:$0xff] }
 0x4fc   :  { %11742 = vmatprep.subr.bf16.mxu1 %v14331_v46  ;;  %v1369_v43 = vld [vmem:[#allocation8 + $0x8b0] sm:$0xff]  ;;  %v1346_v46 = vld [vmem:[#allocation8 + $0x7f8] sm:$0xff] }
 0x4fd   :  { %v13133_v52 = vcombine.high %v1345_v42, %v1369_v43  ;;  %v13132_v0 = vcombine.low %v1345_v42, %v1369_v43  ;;  %v13134_v1 = vcombine.low %v1346_v46, %v1370_v47  ;;  %v1658_v42 = vld [vmem:[#allocation8 + $0x11b8] sm:$0xff] }
 0x4fe   :  { %11657 = vmatpush1.bf16.msra.mxu0 %v14328_v55  ;;  %v13135_v55 = vcombine.high %v1346_v46, %v1370_v47 }
 0x4ff   :  { %11743 = vmatpush1.bf16.msra.mxu1 %v14330_v58  ;;  %11658 = vmatprep.subr.bf16.mxu0 %v14377_v60  ;;  %v1393_v58 = vld [vmem:[#allocation8 + $0x970] sm:$0xff] }
 0x500   :  { %11744 = vmatprep.subr.bf16.mxu1 %v14379_v62  ;;  %v1417_v60 = vld [vmem:[#allocation8 + $0xa30] sm:$0xff]  ;;  %v1394_v62 = vld [vmem:[#allocation8 + $0x978] sm:$0xff] }
 0x501   :  { %v13181_v2 = vcombine.high %v1393_v58, %v1417_v60  ;;  %v13180_v6 = vcombine.low %v1393_v58, %v1417_v60  ;;  %v1706_v58 = vld [vmem:[#allocation8 + $0x1338] sm:$0xff] }
 0x502   :  { %11659 = vmatpush1.bf16.msra.mxu0 %v14376_v3  ;;  %v13183_v3 = vcombine.high %v1394_v62, %v1418_v63 }
 0x503   :  { %11745 = vmatpush1.bf16.msra.mxu1 %v14378_v7  ;;  %11757 = vmatprep.subr.bf16.mxu0 %v12893_v4  ;;  %v1441_v7 = vld [vmem:[#allocation8 + $0xaf0] sm:$0xff] }
 0x504   :  { %11843 = vmatprep.subr.bf16.mxu1 %v12895_v13  ;;  %v1465_v4 = vld [vmem:[#allocation8 + $0xbb0] sm:$0xff]  ;;  %v1442_v13 = vld [vmem:[#allocation8 + $0xaf8] sm:$0xff] }
 0x505   :  { %11661 = vmatmul.mubr.bf16.vlgmr.msra.gmra.mrb[28].mxu0 %v15125_v48  ;;  %v13229_v8 = vcombine.high %v1441_v7, %v1465_v4  ;;  %v13231_v9 = vcombine.high %v1442_v13, %v1466_v5  ;;  %v13230_v21 = vcombine.low %v1442_v13, %v1466_v5 }
 0x506   :  { %11747 = vmatmul.mubr.bf16.vlgmr.msra.gmra.mrb[28].mxu1 %v15125_v48  ;;  %11758 = vmatpush1.bf16.msra.mxu0 %v12892_v10  ;;  %v13182_v10 = vcombine.low %v1394_v62, %v1418_v63 }
 0x507   :  { %11789 = vmatprep.mubr.bf16.mxu0 %v15127_v53  ;;  %11844 = vmatpush1.bf16.msra.mxu1 %v12894_v11  ;;  %v1489_v11 = vld [vmem:[#allocation8 + $0xc70] sm:$0xff] }
 0x508   :  { %11875 = vmatprep.mubr.bf16.mxu1 %v15127_v53  ;;  %11759 = vmatprep.subr.bf16.mxu0 %v12941_v12  ;;  %v1513_v12 = vld [vmem:[#allocation8 + $0xd30] sm:$0xff] }
 0x509   :  { %11845 = vmatprep.subr.bf16.mxu1 %v12943_v20  ;;  %v13228_v20 = vcombine.low %v1441_v7, %v1465_v4  ;;  %v13277_v22 = vcombine.high %v1489_v11, %v1513_v12  ;;  %v13276_v27 = vcombine.low %v1489_v11, %v1513_v12  ;;  %v1754_v7 = vld [vmem:[#allocation8 + $0x14b8] sm:$0xff] }
 0x50a   :  { %11760 = vmatpush1.bf16.msra.mxu0 %v12940_v23  ;;  %v13279_v23 = vcombine.high %v1490_v16, %v1514_v19  ;;  %v1802_v11 = vld [vmem:[#allocation8 + $0x1638] sm:$0xff] }
 0x50b   :  { %11846 = vmatpush1.bf16.msra.mxu1 %v12942_v24  ;;  %11761 = vmatprep.subr.bf16.mxu0 %v12989_v25  ;;  %v1537_v24 = vld [vmem:[#allocation8 + $0xdf0] sm:$0xff] }
 0x50c   :  { %11847 = vmatprep.subr.bf16.mxu1 %v12991_v26  ;;  %v1561_v25 = vld [vmem:[#allocation8 + $0xeb0] sm:$0xff]  ;;  %v1538_v26 = vld [vmem:[#allocation8 + $0xdf8] sm:$0xff] }
 0x50d   :  { %v13325_v29 = vcombine.high %v1537_v24, %v1561_v25  ;;  %v13324_v35 = vcombine.low %v1537_v24, %v1561_v25  ;;  %v13326_v36 = vcombine.low %v1538_v26, %v1562_v44  ;;  %v1850_v24 = vld [vmem:[#allocation8 + $0x17b8] sm:$0xff] }
 0x50e   :  { %11762 = vmatpush1.bf16.msra.mxu0 %v12988_v30  ;;  %v13327_v30 = vcombine.high %v1538_v26, %v1562_v44 }
 0x50f   :  { %11848 = vmatpush1.bf16.msra.mxu1 %v12990_v31  ;;  %11763 = vmatprep.subr.bf16.mxu0 %v13037_v32  ;;  %v1585_v31 = vld [vmem:[#allocation8 + $0xf70] sm:$0xff] }
 0x510   :  { %11849 = vmatprep.subr.bf16.mxu1 %v13039_v33  ;;  %v1609_v32 = vld [vmem:[#allocation8 + $0x1030] sm:$0xff]  ;;  %v1586_v33 = vld [vmem:[#allocation8 + $0xf78] sm:$0xff] }
 0x511   :  { %v13373_v37 = vcombine.high %v1585_v31, %v1609_v32  ;;  %v13372_v43 = vcombine.low %v1585_v31, %v1609_v32  ;;  %v13374_v46 = vcombine.low %v1586_v33, %v1610_v34  ;;  %v1898_v31 = vld [vmem:[#allocation8 + $0x1938] sm:$0xff] }
 0x512   :  { %11764 = vmatpush1.bf16.msra.mxu0 %v13036_v38  ;;  %v13375_v38 = vcombine.high %v1586_v33, %v1610_v34 }
 0x513   :  { %11850 = vmatpush1.bf16.msra.mxu1 %v13038_v39  ;;  %11765 = vmatprep.subr.bf16.mxu0 %v13085_v40  ;;  %v1633_v39 = vld [vmem:[#allocation8 + $0x10f0] sm:$0xff] }
 0x514   :  { %11851 = vmatprep.subr.bf16.mxu1 %v13087_v41  ;;  %v1657_v40 = vld [vmem:[#allocation8 + $0x11b0] sm:$0xff]  ;;  %v1634_v41 = vld [vmem:[#allocation8 + $0x10f8] sm:$0xff] }
 0x515   :  { %v13421_v47 = vcombine.high %v1633_v39, %v1657_v40  ;;  %v13420_v60 = vcombine.low %v1633_v39, %v1657_v40  ;;  %v13422_v62 = vcombine.low %v1634_v41, %v1658_v42  ;;  %v1922_v39 = vld [vmem:[#allocation8 + $0x19f8] sm:$0xff] }
 0x516   :  { %11766 = vmatpush1.bf16.msra.mxu0 %v13084_v49  ;;  %v13423_v49 = vcombine.high %v1634_v41, %v1658_v42  ;;  %v1946_v40 = vld [vmem:[#allocation8 + $0x1ab8] sm:$0xff] }
 0x517   :  { %11852 = vmatpush1.bf16.msra.mxu1 %v13086_v51  ;;  %11767 = vmatprep.subr.bf16.mxu0 %v13133_v52  ;;  %v1681_v51 = vld [vmem:[#allocation8 + $0x1270] sm:$0xff] }
 0x518   :  { %11853 = vmatprep.subr.bf16.mxu1 %v13135_v55  ;;  %v1705_v52 = vld [vmem:[#allocation8 + $0x1330] sm:$0xff]  ;;  %v1682_v55 = vld [vmem:[#allocation8 + $0x1278] sm:$0xff] }
 0x519   :  { %v13469_v63 = vcombine.high %v1681_v51, %v1705_v52  ;;  %v13468_v4 = vcombine.low %v1681_v51, %v1705_v52  ;;  %v13470_v13 = vcombine.low %v1682_v55, %v1706_v58  ;;  %v1994_v51 = vld [vmem:[#allocation8 + $0x1c38] sm:$0xff] }
 0x51a   :  { %11768 = vmatpush1.bf16.msra.mxu0 %v13132_v0  ;;  %v13471_v0 = vcombine.high %v1682_v55, %v1706_v58  ;;  %v13710_v55 = vcombine.low %v1922_v39, %v1946_v40 }
 0x51b   :  { %11854 = vmatpush1.bf16.msra.mxu1 %v13134_v1  ;;  %11769 = vmatprep.subr.bf16.mxu0 %v13181_v2  ;;  %v1729_v1 = vld [vmem:[#allocation8 + $0x13f0] sm:$0xff] }
 0x51c   :  { %11855 = vmatprep.subr.bf16.mxu1 %v13183_v3  ;;  %v1753_v2 = vld [vmem:[#allocation8 + $0x14b0] sm:$0xff]  ;;  %v1730_v3 = vld [vmem:[#allocation8 + $0x13f8] sm:$0xff] }
 0x51d   :  { %v13517_v5 = vcombine.high %v1729_v1, %v1753_v2  ;;  %v13516_v12 = vcombine.low %v1729_v1, %v1753_v2  ;;  %v13518_v16 = vcombine.low %v1730_v3, %v1754_v7  ;;  %v2042_v1 = vld [vmem:[#allocation8 + $0x1db8] sm:$0xff] }
 0x51e   :  { %11770 = vmatpush1.bf16.msra.mxu0 %v13180_v6  ;;  %v13519_v6 = vcombine.high %v1730_v3, %v1754_v7 }
 0x51f   :  { %11856 = vmatpush1.bf16.msra.mxu1 %v13182_v10  ;;  %11771 = vmatprep.subr.bf16.mxu0 %v13229_v8  ;;  %v1777_v10 = vld [vmem:[#allocation8 + $0x1570] sm:$0xff] }
 0x520   :  { %11857 = vmatprep.subr.bf16.mxu1 %v13231_v9  ;;  %v1801_v8 = vld [vmem:[#allocation8 + $0x1630] sm:$0xff]  ;;  %v1778_v9 = vld [vmem:[#allocation8 + $0x1578] sm:$0xff] }
 0x521   :  { %v13565_v19 = vcombine.high %v1777_v10, %v1801_v8  ;;  %v13564_v25 = vcombine.low %v1777_v10, %v1801_v8  ;;  %v13566_v26 = vcombine.low %v1778_v9, %v1802_v11  ;;  %v2090_v10 = vld [vmem:[#allocation8 + $0x1f38] sm:$0xff] }
 0x522   :  { %11772 = vmatpush1.bf16.msra.mxu0 %v13228_v20  ;;  %v13567_v20 = vcombine.high %v1778_v9, %v1802_v11 }
 0x523   :  { %11858 = vmatpush1.bf16.msra.mxu1 %v13230_v21  ;;  %11773 = vmatprep.subr.bf16.mxu0 %v13277_v22  ;;  %v1825_v21 = vld [vmem:[#allocation8 + $0x16f0] sm:$0xff] }
 0x524   :  { %11859 = vmatprep.subr.bf16.mxu1 %v13279_v23  ;;  %v1849_v22 = vld [vmem:[#allocation8 + $0x17b0] sm:$0xff]  ;;  %v1826_v23 = vld [vmem:[#allocation8 + $0x16f8] sm:$0xff] }
 0x525   :  { %v13613_v44 = vcombine.high %v1825_v21, %v1849_v22  ;;  %v13612_v32 = vcombine.low %v1825_v21, %v1849_v22  ;;  %v13614_v33 = vcombine.low %v1826_v23, %v1850_v24  ;;  %v2138_v21 = vld [vmem:[#allocation8 + $0x20b8] sm:$0xff] }
 0x526   :  { %11774 = vmatpush1.bf16.msra.mxu0 %v13276_v27  ;;  %v13615_v27 = vcombine.high %v1826_v23, %v1850_v24 }
 0x527   :  { %11860 = vmatpush1.bf16.msra.mxu1 %v13278_v28  ;;  %11775 = vmatprep.subr.bf16.mxu0 %v13325_v29  ;;  %v1873_v28 = vld [vmem:[#allocation8 + $0x1870] sm:$0xff] }
 0x528   :  { %11861 = vmatprep.subr.bf16.mxu1 %v13327_v30  ;;  %v1897_v29 = vld [vmem:[#allocation8 + $0x1930] sm:$0xff]  ;;  %v1874_v30 = vld [vmem:[#allocation8 + $0x1878] sm:$0xff] }
 0x529   :  { %v13661_v34 = vcombine.high %v1873_v28, %v1897_v29  ;;  %v13662_v41 = vcombine.low %v1874_v30, %v1898_v31 }
 0x52a   :  { %11776 = vmatpush1.bf16.msra.mxu0 %v13324_v35  ;;  %v13663_v35 = vcombine.high %v1874_v30, %v1898_v31  ;;  %v2724_v30 = vrot.slane %v15239_v61, %v15181_v56  ;;  %v2720_v31 = vrot.slane %v15239_v61, %v15184_v57 }
 0x52b   :  { %11862 = vmatpush1.bf16.msra.mxu1 %v13326_v36  ;;  %11777 = vmatprep.subr.bf16.mxu0 %v13373_v37  ;;  %v1921_v36 = vld [vmem:[#allocation8 + $0x19f0] sm:$0xff] }
 0x52c   :  { %11863 = vmatprep.subr.bf16.mxu1 %v13375_v38  ;;  %v1945_v37 = vld [vmem:[#allocation8 + $0x1ab0] sm:$0xff]  ;;  %v13660_v38 = vcombine.low %v1873_v28, %v1897_v29  ;;  %v2162_v28 = vld [vmem:[#allocation8 + $0x2178] sm:$0xff] }
 0x52d   :  { %v13709_v42 = vcombine.high %v1921_v36, %v1945_v37  ;;  %v13708_v52 = vcombine.low %v1921_v36, %v1945_v37  ;;  %v2186_v29 = vld [vmem:[#allocation8 + $0x2238] sm:$0xff] }
 0x52e   :  { %11778 = vmatpush1.bf16.msra.mxu0 %v13372_v43  ;;  %v1969_v43 = vld [vmem:[#allocation8 + $0x1b70] sm:$0xff]  ;;  %v13951_v37 = vcombine.high %v2162_v28, %v2186_v29 }
 0x52f   :  { %11864 = vmatpush1.bf16.msra.mxu1 %v13374_v46  ;;  %11779 = vmatprep.subr.bf16.mxu0 %v13421_v47  ;;  %v1993_v46 = vld [vmem:[#allocation8 + $0x1c30] sm:$0xff]  ;;  %v13711_v47 = vcombine.high %v1922_v39, %v1946_v40 }
 0x530   :  { %11865 = vmatprep.subr.bf16.mxu1 %v13423_v49  ;;  %v1970_v49 = vld [vmem:[#allocation8 + $0x1b78] sm:$0xff]  ;;  %v13757_v58 = vcombine.high %v1969_v43, %v1993_v46  ;;  %v13756_v2 = vcombine.low %v1969_v43, %v1993_v46  ;;  %v2233_v39 = vld [vmem:[#allocation8 + $0x23b0] sm:$0xff] }
 0x531   :  { %v13758_v3 = vcombine.low %v1970_v49, %v1994_v51  ;;  %v2210_v43 = vld [vmem:[#allocation8 + $0x22f8] sm:$0xff] }
 0x532   :  { %11780 = vmatpush1.bf16.msra.mxu0 %v13420_v60  ;;  %v13759_v60 = vcombine.high %v1970_v49, %v1994_v51  ;;  %v2234_v46 = vld [vmem:[#allocation8 + $0x23b8] sm:$0xff] }
 0x533   :  { %11866 = vmatpush1.bf16.msra.mxu1 %v13422_v62  ;;  %11781 = vmatprep.subr.bf16.mxu0 %v13469_v63  ;;  %v2017_v62 = vld [vmem:[#allocation8 + $0x1cf0] sm:$0xff] }
 0x534   :  { %11867 = vmatprep.subr.bf16.mxu1 %v13471_v0  ;;  %v2041_v63 = vld [vmem:[#allocation8 + $0x1db0] sm:$0xff]  ;;  %v2018_v0 = vld [vmem:[#allocation8 + $0x1cf8] sm:$0xff] }
 0x535   :  { %v13805_v7 = vcombine.high %v2017_v62, %v2041_v63  ;;  %v13804_v8 = vcombine.low %v2017_v62, %v2041_v63  ;;  %v13806_v9 = vcombine.low %v2018_v0, %v2042_v1 }
 0x536   :  { %11782 = vmatpush1.bf16.msra.mxu0 %v13468_v4  ;;  %v13807_v4 = vcombine.high %v2018_v0, %v2042_v1 }
 0x537   :  { %11868 = vmatpush1.bf16.msra.mxu1 %v13470_v13  ;;  %11783 = vmatprep.subr.bf16.mxu0 %v13517_v5  ;;  %v2065_v13 = vld [vmem:[#allocation8 + $0x1e70] sm:$0xff] }
 0x538   :  { %11869 = vmatprep.subr.bf16.mxu1 %v13519_v6  ;;  %v2089_v5 = vld [vmem:[#allocation8 + $0x1f30] sm:$0xff]  ;;  %v2066_v6 = vld [vmem:[#allocation8 + $0x1e78] sm:$0xff] }
 0x539   :  { %v13853_v11 = vcombine.high %v2065_v13, %v2089_v5  ;;  %v13852_v22 = vcombine.low %v2065_v13, %v2089_v5  ;;  %v13854_v23 = vcombine.low %v2066_v6, %v2090_v10  ;;  %v2281_v13 = vld [vmem:[#allocation8 + $0x2530] sm:$0xff] }
 0x53a   :  { %11784 = vmatpush1.bf16.msra.mxu0 %v13516_v12  ;;  %v13855_v12 = vcombine.high %v2066_v6, %v2090_v10  ;;  %v2258_v6 = vld [vmem:[#allocation8 + $0x2478] sm:$0xff] }
 0x53b   :  { %11870 = vmatpush1.bf16.msra.mxu1 %v13518_v16  ;;  %11785 = vmatprep.subr.bf16.mxu0 %v13565_v19  ;;  %v2113_v16 = vld [vmem:[#allocation8 + $0x1ff0] sm:$0xff]  ;;  %v2282_v10 = vld [vmem:[#allocation8 + $0x2538] sm:$0xff] }
 0x53c   :  { %11871 = vmatprep.subr.bf16.mxu1 %v13567_v20  ;;  %v2137_v19 = vld [vmem:[#allocation8 + $0x20b0] sm:$0xff]  ;;  %v2114_v20 = vld [vmem:[#allocation8 + $0x1ff8] sm:$0xff] }
 0x53d   :  { %v13901_v24 = vcombine.high %v2113_v16, %v2137_v19 }
 0x53e   :  { %11786 = vmatpush1.bf16.msra.mxu0 %v13564_v25  ;;  %v13903_v25 = vcombine.high %v2114_v20, %v2138_v21 }
 0x53f   :  { %11872 = vmatpush1.bf16.msra.mxu1 %v13566_v26  ;;  %11787 = vmatprep.subr.bf16.mxu0 %v13613_v44  ;;  %v2161_v26 = vld [vmem:[#allocation8 + $0x2170] sm:$0xff] }
 0x540   :  { %11873 = vmatprep.subr.bf16.mxu1 %v13615_v27  ;;  %v2185_v44 = vld [vmem:[#allocation8 + $0x2230] sm:$0xff]  ;;  %v2716_v27 = vrot.slane %v15239_v61, %v15178_v50 }
 0x542   :  { %11788 = vmatpush1.bf16.msra.mxu0 %v13612_v32  ;;  %v13900_v32 = vcombine.low %v2113_v16, %v2137_v19  ;;  %v2305_v16 = vld [vmem:[#allocation8 + $0x25f0] sm:$0xff] }
 0x543   :  { %11874 = vmatpush1.bf16.msra.mxu1 %v13614_v33  ;;  %11800 = vmatprep.subr.bf16.mxu0 %v13661_v34  ;;  %v2728_v33 = vrot.slane %v15239_v61, %v15187_v59  ;;  %v13902_v34 = vcombine.low %v2114_v20, %v2138_v21  ;;  %v13950_v61 = vcombine.low %v2162_v28, %v2186_v29  ;;  %v2329_v19 = vld [vmem:[#allocation8 + $0x26b0] sm:$0xff]  ;;  %v2306_v20 = vld [vmem:[#allocation8 + $0x25f8] sm:$0xff] }
 0x544   :  { %11886 = vmatprep.subr.bf16.mxu1 %v13663_v35  ;;  %v13949_v35 = vcombine.high %v2161_v26, %v2185_v44  ;;  %v2330_v21 = vld [vmem:[#allocation8 + $0x26b8] sm:$0xff]  ;;  %v14092_v29 = vcombine.low %v2305_v16, %v2329_v19 }
 0x545   :  { %11790 = vmatmul.mubr.bf16.vlgmr.msra.gmra.mrb[32].mxu0 %v15123_v45  ;;  %v2378_v28 = vld [vmem:[#allocation8 + $0x2838] sm:$0xff] }
 0x546   :  { %11876 = vmatmul.mubr.bf16.vlgmr.msra.gmra.mrb[32].mxu1 %v15123_v45  ;;  %11801 = vmatpush1.bf16.msra.mxu0 %v13660_v38  ;;  %v2209_v38 = vld [vmem:[#allocation8 + $0x22f0] sm:$0xff] }
 0x547   :  { %11832 = vmatprep.mubr.bf16.mxu0 %v15129_v54  ;;  %11887 = vmatpush1.bf16.msra.mxu1 %v13662_v41  ;;  %v13997_v0 = vcombine.high %v2209_v38, %v2233_v39 }
 0x548   :  { %11918 = vmatprep.mubr.bf16.mxu1 %v15129_v54  ;;  %11802 = vmatprep.subr.bf16.mxu0 %v13709_v42 }
 0x549   :  { %11888 = vmatprep.subr.bf16.mxu1 %v13711_v47 }
 0x54a   :  { %11803 = vmatpush1.bf16.msra.mxu0 %v13708_v52 }
 0x54b   :  { %11889 = vmatpush1.bf16.msra.mxu1 %v13710_v55  ;;  %11804 = vmatprep.subr.bf16.mxu0 %v13757_v58  ;;  %v13948_v55 = vcombine.low %v2161_v26, %v2185_v44  ;;  %v2353_v26 = vld [vmem:[#allocation8 + $0x2770] sm:$0xff] }
 0x54c   :  { %11890 = vmatprep.subr.bf16.mxu1 %v13759_v60  ;;  %v2377_v44 = vld [vmem:[#allocation8 + $0x2830] sm:$0xff] }
 0x54e   :  { %11805 = vmatpush1.bf16.msra.mxu0 %v13756_v2 }
 0x54f   :  { %11891 = vmatpush1.bf16.msra.mxu1 %v13758_v3  ;;  %11806 = vmatprep.subr.bf16.mxu0 %v13805_v7  ;;  %v13999_v7 = vcombine.high %v2210_v43, %v2234_v46 }
 0x550   :  { %11892 = vmatprep.subr.bf16.mxu1 %v13807_v4  ;;  %v2257_v4 = vld [vmem:[#allocation8 + $0x2470] sm:$0xff] }
 0x552   :  { %11807 = vmatpush1.bf16.msra.mxu0 %v13804_v8  ;;  %v13996_v8 = vcombine.low %v2209_v38, %v2233_v39 }
 0x553   :  { %11893 = vmatpush1.bf16.msra.mxu1 %v13806_v9  ;;  %11808 = vmatprep.subr.bf16.mxu0 %v13853_v11  ;;  %v13998_v9 = vcombine.low %v2210_v43, %v2234_v46  ;;  %v14045_v11 = vcombine.high %v2257_v4, %v2281_v13  ;;  %v2450_v43 = vld [vmem:[#allocation8 + $0x2a78] sm:$0xff] }
 0x554   :  { %11894 = vmatprep.subr.bf16.mxu1 %v13855_v12  ;;  %v14047_v12 = vcombine.high %v2258_v6, %v2282_v10  ;;  %v2474_v46 = vld [vmem:[#allocation8 + $0x2b38] sm:$0xff] }
 0x556   :  { %11809 = vmatpush1.bf16.msra.mxu0 %v13852_v22  ;;  %v14044_v22 = vcombine.low %v2257_v4, %v2281_v13  ;;  %v2570_v4 = vld [vmem:[#allocation8 + $0x2e38] sm:$0xff] }
 0x557   :  { %11895 = vmatpush1.bf16.msra.mxu1 %v13854_v23  ;;  %11810 = vmatprep.subr.bf16.mxu0 %v13901_v24  ;;  %v14046_v23 = vcombine.low %v2258_v6, %v2282_v10  ;;  %v14093_v24 = vcombine.high %v2305_v16, %v2329_v19 }
 0x558   :  { %v11490_v36 = vpop.f32.mrb[24].mxu0  ;;  %11896 = vmatprep.subr.bf16.mxu1 %v13903_v25  ;;  %v14095_v25 = vcombine.high %v2306_v20, %v2330_v21 }
 0x559   :  { %v14448_v40 = vadd.f32 %v11490_v36, %v2716_v27  ;;  %v11576_v41 = vpop.f32.mrb[24].mxu1  ;;  %v11492_v42 = vpop.f32.mrb[25].mxu0  ;;  %v2426_v36 = vld [vmem:[#allocation8 + $0x29b8] sm:$0xff] }
 0x55a   :  { %v14452_v47 = vadd.f32 %v11576_v41, %v2724_v30  ;;  %v14449_v49 = vadd.f32 %v11492_v42, %v2720_v31  ;;  %v11578_v51 = vpop.f32.mrb[25].mxu1  ;;  %v11494_v52 = vpop.f32.mrb[26].mxu0  ;;  %11811 = vmatpush1.bf16.msra.mxu0 %v13900_v32  ;;  %v2449_v41 = vld [vmem:[#allocation8 + $0x2a70] sm:$0xff] }
 0x55b   :  { %12637 = vst [vmem:[#allocation11 + $0xa0] sm:$0xff] %v14448_v40  ;;  %v14453_v58 = vadd.f32 %v11578_v51, %v2728_v33  ;;  %v14450_v60 = vadd.f32 %v11494_v52, %v2716_v27  ;;  %v11580_v62 = vpop.f32.mrb[26].mxu1  ;;  %11897 = vmatpush1.bf16.msra.mxu1 %v13902_v34  ;;  %v11496_v63 = vpop.f32.mrb[27].mxu0  ;;  %11812 = vmatprep.subr.bf16.mxu0 %v13949_v35  ;;  %v2354_v27 = vld [vmem:[#allocation8 + $0x2778] sm:$0xff]  ;;  %v2425_v34 = vld [vmem:[#allocation8 + $0x29b0] sm:$0xff] }
 0x55c   :  { %12639 = vst [vmem:[#allocation11 + $0xb0] sm:$0xff] %v14452_v47  ;;  %12638 = vst [vmem:[#allocation11 + $0xa8] sm:$0xff] %v14449_v49  ;;  %v14454_v1 = vadd.f32 %v11580_v62, %v2724_v30  ;;  %v14451_v2 = vadd.f32 %v11496_v63, %v2720_v31  ;;  %v11582_v3 = vpop.f32.mrb[27].mxu1  ;;  %11898 = vmatprep.subr.bf16.mxu1 %v13951_v37  ;;  %v14094_v30 = vcombine.low %v2306_v20, %v2330_v21  ;;  %v2402_v35 = vld [vmem:[#allocation8 + $0x28f8] sm:$0xff]  ;;  %v2473_v42 = vld [vmem:[#allocation8 + $0x2b30] sm:$0xff] }
 0x55d   :  { %12640 = vst [vmem:[#allocation11 + $0xb8] sm:$0xff] %v14453_v58  ;;  %12685 = vst [vmem:[#allocation11 + $0x220] sm:$0xff] %v14450_v60  ;;  %v14455_v5 = vadd.f32 %v11582_v3, %v2728_v33  ;;  %v14141_v31 = vcombine.high %v2353_v26, %v2377_v44  ;;  %v14143_v32 = vcombine.high %v2354_v27, %v2378_v28  ;;  %v2401_v33 = vld [vmem:[#allocation8 + $0x28f0] sm:$0xff]  ;;  %v2498_v58 = vld [vmem:[#allocation8 + $0x2bf8] sm:$0xff] }
 0x55e   :  { %12687 = vst [vmem:[#allocation11 + $0x230] sm:$0xff] %v14454_v1  ;;  %12686 = vst [vmem:[#allocation11 + $0x228] sm:$0xff] %v14451_v2  ;;  %11813 = vmatpush1.bf16.msra.mxu0 %v13948_v55  ;;  %v14140_v37 = vcombine.low %v2353_v26, %v2377_v44  ;;  %v14142_v38 = vcombine.low %v2354_v27, %v2378_v28  ;;  %v14189_v39 = vcombine.high %v2401_v33, %v2425_v34  ;;  %v2497_v55 = vld [vmem:[#allocation8 + $0x2bf0] sm:$0xff]  ;;  %v2522_v60 = vld [vmem:[#allocation8 + $0x2cb8] sm:$0xff] }
 0x55f   :  { %12688 = vst [vmem:[#allocation11 + $0x238] sm:$0xff] %v14455_v5  ;;  %11899 = vmatpush1.bf16.msra.mxu1 %v13950_v61  ;;  %11814 = vmatprep.subr.bf16.mxu0 %v13997_v0  ;;  %v14191_v40 = vcombine.high %v2402_v35, %v2426_v36  ;;  %v14188_v47 = vcombine.low %v2401_v33, %v2425_v34  ;;  %v2521_v61 = vld [vmem:[#allocation8 + $0x2cb0] sm:$0xff]  ;;  %v1180_v33 = vld [vmem:[#allocation8 + $0x2c8] sm:$0xff] }
 0x560   :  { %11900 = vmatprep.subr.bf16.mxu1 %v13999_v7  ;;  %v14190_v49 = vcombine.low %v2402_v35, %v2426_v36  ;;  %v14237_v51 = vcombine.high %v2449_v41, %v2473_v42  ;;  %v14239_v52 = vcombine.high %v2450_v43, %v2474_v46  ;;  %v14236_v62 = vcombine.low %v2449_v41, %v2473_v42  ;;  %v2545_v2 = vld [vmem:[#allocation8 + $0x2d70] sm:$0xff]  ;;  %v2546_v7 = vld [vmem:[#allocation8 + $0x2d78] sm:$0xff]  ;;  %v1203_v36 = vld [vmem:[#allocation8 + $0x380] sm:$0xff] }
 0x561   :  { %v14238_v63 = vcombine.low %v2450_v43, %v2474_v46  ;;  %v14285_v0 = vcombine.high %v2497_v55, %v2521_v61  ;;  %v14287_v1 = vcombine.high %v2498_v58, %v2522_v60  ;;  %v2569_v3 = vld [vmem:[#allocation8 + $0x2e30] sm:$0xff]  ;;  %v14284_v13 = vcombine.low %v2497_v55, %v2521_v61 }
 0x562   :  { %11815 = vmatpush1.bf16.msra.mxu0 %v13996_v8  ;;  %v14286_v5 = vcombine.low %v2498_v58, %v2522_v60  ;;  %v14333_v6 = vcombine.high %v2545_v2, %v2569_v3  ;;  %v14335_v10 = vcombine.high %v2546_v7, %v2570_v4  ;;  %v2593_v8 = vld [vmem:[#allocation8 + $0x2ef0] sm:$0xff]  ;;  %v14332_v16 = vcombine.low %v2545_v2, %v2569_v3 }
 0x563   :  { %11901 = vmatpush1.bf16.msra.mxu1 %v13998_v9  ;;  %11816 = vmatprep.subr.bf16.mxu0 %v14045_v11  ;;  %v2617_v9 = vld [vmem:[#allocation8 + $0x2fb0] sm:$0xff]  ;;  %v2594_v11 = vld [vmem:[#allocation8 + $0x2ef8] sm:$0xff]  ;;  %v14334_v19 = vcombine.low %v2546_v7, %v2570_v4 }
 0x564   :  { %11902 = vmatprep.subr.bf16.mxu1 %v14047_v12  ;;  %v2618_v12 = vld [vmem:[#allocation8 + $0x2fb8] sm:$0xff]  ;;  %v14381_v20 = vcombine.high %v2593_v8, %v2617_v9  ;;  %v14380_v26 = vcombine.low %v2593_v8, %v2617_v9 }
 0x565   :  { %v14383_v21 = vcombine.high %v2594_v11, %v2618_v12  ;;  %v14382_v44 = vcombine.low %v2594_v11, %v2618_v12 }
 0x566   :  { %11817 = vmatpush1.bf16.msra.mxu0 %v14044_v22  ;;  %v1107_v22 = vld [vmem:[#allocation8 + $0x80] sm:$0xff] }
 0x567   :  { %11903 = vmatpush1.bf16.msra.mxu1 %v14046_v23  ;;  %11818 = vmatprep.subr.bf16.mxu0 %v14093_v24  ;;  %v1131_v23 = vld [vmem:[#allocation8 + $0x140] sm:$0xff]  ;;  %v1108_v24 = vld [vmem:[#allocation8 + $0x88] sm:$0xff] }
 0x568   :  { %11904 = vmatprep.subr.bf16.mxu1 %v14095_v25  ;;  %v1132_v25 = vld [vmem:[#allocation8 + $0x148] sm:$0xff]  ;;  %v12897_v27 = vcombine.high %v1107_v22, %v1131_v23 }
 0x569   :  { %v12899_v28 = vcombine.high %v1108_v24, %v1132_v25  ;;  %v12898_v34 = vcombine.low %v1108_v24, %v1132_v25 }
 0x56a   :  { %11819 = vmatpush1.bf16.msra.mxu0 %v14092_v29  ;;  %v1155_v29 = vld [vmem:[#allocation8 + $0x200] sm:$0xff] }
 0x56b   :  { %11905 = vmatpush1.bf16.msra.mxu1 %v14094_v30  ;;  %11820 = vmatprep.subr.bf16.mxu0 %v14141_v31  ;;  %v1179_v30 = vld [vmem:[#allocation8 + $0x2c0] sm:$0xff]  ;;  %v12896_v31 = vcombine.low %v1107_v22, %v1131_v23 }
 0x56c   :  { %11906 = vmatprep.subr.bf16.mxu1 %v14143_v32  ;;  %v1156_v32 = vld [vmem:[#allocation8 + $0x208] sm:$0xff]  ;;  %v12945_v35 = vcombine.high %v1155_v29, %v1179_v30  ;;  %v12944_v41 = vcombine.low %v1155_v29, %v1179_v30 }
 0x56d   :  { %v12946_v42 = vcombine.low %v1156_v32, %v1180_v33 }
 0x56e   :  { %11821 = vmatpush1.bf16.msra.mxu0 %v14140_v37  ;;  %v1227_v37 = vld [vmem:[#allocation8 + $0x440] sm:$0xff] }
 0x56f   :  { %11907 = vmatpush1.bf16.msra.mxu1 %v14142_v38  ;;  %11822 = vmatprep.subr.bf16.mxu0 %v14189_v39  ;;  %v12947_v38 = vcombine.high %v1156_v32, %v1180_v33  ;;  %v1204_v39 = vld [vmem:[#allocation8 + $0x388] sm:$0xff]  ;;  %v12993_v43 = vcombine.high %v1203_v36, %v1227_v37  ;;  %v12992_v55 = vcombine.low %v1203_v36, %v1227_v37  ;;  %v1491_v33 = vld [vmem:[#allocation8 + $0xc80] sm:$0xff] }
 0x570   :  { %11908 = vmatprep.subr.bf16.mxu1 %v14191_v40  ;;  %v1228_v40 = vld [vmem:[#allocation8 + $0x448] sm:$0xff] }
 0x571   :  { %v12995_v46 = vcombine.high %v1204_v39, %v1228_v40  ;;  %v12994_v61 = vcombine.low %v1204_v39, %v1228_v40  ;;  %v1516_v36 = vld [vmem:[#allocation8 + $0xd48] sm:$0xff] }
 0x572   :  { %11823 = vmatpush1.bf16.msra.mxu0 %v14188_v47  ;;  %v1251_v47 = vld [vmem:[#allocation8 + $0x500] sm:$0xff] }
 0x573   :  { %11909 = vmatpush1.bf16.msra.mxu1 %v14190_v49  ;;  %11824 = vmatprep.subr.bf16.mxu0 %v14237_v51  ;;  %v1275_v49 = vld [vmem:[#allocation8 + $0x5c0] sm:$0xff]  ;;  %v1252_v51 = vld [vmem:[#allocation8 + $0x508] sm:$0xff] }
 0x574   :  { %11910 = vmatprep.subr.bf16.mxu1 %v14239_v52  ;;  %v1276_v52 = vld [vmem:[#allocation8 + $0x5c8] sm:$0xff]  ;;  %v13041_v58 = vcombine.high %v1251_v47, %v1275_v49  ;;  %v13040_v2 = vcombine.low %v1251_v47, %v1275_v49 }
 0x575   :  { %v13043_v60 = vcombine.high %v1252_v51, %v1276_v52  ;;  %v13042_v3 = vcombine.low %v1252_v51, %v1276_v52 }
 0x576   :  { %11825 = vmatpush1.bf16.msra.mxu0 %v14236_v62  ;;  %v1299_v62 = vld [vmem:[#allocation8 + $0x680] sm:$0xff] }
 0x577   :  { %11911 = vmatpush1.bf16.msra.mxu1 %v14238_v63  ;;  %11826 = vmatprep.subr.bf16.mxu0 %v14285_v0  ;;  %v1323_v63 = vld [vmem:[#allocation8 + $0x740] sm:$0xff]  ;;  %v1300_v0 = vld [vmem:[#allocation8 + $0x688] sm:$0xff] }
 0x578   :  { %11912 = vmatprep.subr.bf16.mxu1 %v14287_v1  ;;  %v1324_v1 = vld [vmem:[#allocation8 + $0x748] sm:$0xff]  ;;  %v13089_v7 = vcombine.high %v1299_v62, %v1323_v63  ;;  %v13088_v8 = vcombine.low %v1299_v62, %v1323_v63 }
 0x579   :  { %v13091_v4 = vcombine.high %v1300_v0, %v1324_v1  ;;  %v13090_v9 = vcombine.low %v1300_v0, %v1324_v1 }
 0x57a   :  { %11827 = vmatpush1.bf16.msra.mxu0 %v14284_v13  ;;  %v1347_v13 = vld [vmem:[#allocation8 + $0x800] sm:$0xff] }
 0x57b   :  { %11913 = vmatpush1.bf16.msra.mxu1 %v14286_v5  ;;  %11828 = vmatprep.subr.bf16.mxu0 %v14333_v6  ;;  %v1371_v5 = vld [vmem:[#allocation8 + $0x8c0] sm:$0xff]  ;;  %v1348_v6 = vld [vmem:[#allocation8 + $0x808] sm:$0xff] }
 0x57c   :  { %11914 = vmatprep.subr.bf16.mxu1 %v14335_v10  ;;  %v1372_v10 = vld [vmem:[#allocation8 + $0x8c8] sm:$0xff]  ;;  %v13137_v11 = vcombine.high %v1347_v13, %v1371_v5  ;;  %v13136_v22 = vcombine.low %v1347_v13, %v1371_v5 }
 0x57d   :  { %v13139_v12 = vcombine.high %v1348_v6, %v1372_v10  ;;  %v13138_v23 = vcombine.low %v1348_v6, %v1372_v10 }
 0x57e   :  { %11829 = vmatpush1.bf16.msra.mxu0 %v14332_v16  ;;  %v1395_v16 = vld [vmem:[#allocation8 + $0x980] sm:$0xff] }
 0x57f   :  { %11915 = vmatpush1.bf16.msra.mxu1 %v14334_v19  ;;  %11830 = vmatprep.subr.bf16.mxu0 %v14381_v20  ;;  %v1419_v19 = vld [vmem:[#allocation8 + $0xa40] sm:$0xff]  ;;  %v1396_v20 = vld [vmem:[#allocation8 + $0x988] sm:$0xff] }
 0x580   :  { %11916 = vmatprep.subr.bf16.mxu1 %v14383_v21  ;;  %v1420_v21 = vld [vmem:[#allocation8 + $0xa48] sm:$0xff]  ;;  %v13185_v24 = vcombine.high %v1395_v16, %v1419_v19  ;;  %v13184_v29 = vcombine.low %v1395_v16, %v1419_v19 }
 0x581   :  { %v13187_v25 = vcombine.high %v1396_v20, %v1420_v21  ;;  %v13186_v30 = vcombine.low %v1396_v20, %v1420_v21 }
 0x582   :  { %11831 = vmatpush1.bf16.msra.mxu0 %v14380_v26  ;;  %v1443_v26 = vld [vmem:[#allocation8 + $0xb00] sm:$0xff] }
 0x583   :  { %11917 = vmatpush1.bf16.msra.mxu1 %v14382_v44  ;;  %11929 = vmatprep.subr.bf16.mxu0 %v12897_v27  ;;  %v1467_v44 = vld [vmem:[#allocation8 + $0xbc0] sm:$0xff]  ;;  %v1444_v27 = vld [vmem:[#allocation8 + $0xb08] sm:$0xff] }
 0x584   :  { %12015 = vmatprep.subr.bf16.mxu1 %v12899_v28  ;;  %v1468_v28 = vld [vmem:[#allocation8 + $0xbc8] sm:$0xff]  ;;  %v13232_v37 = vcombine.low %v1443_v26, %v1467_v44 }
 0x585   :  { %11833 = vmatmul.mubr.bf16.vlgmr.msra.gmra.mrb[32].mxu0 %v15125_v48  ;;  %v13235_v32 = vcombine.high %v1444_v27, %v1468_v28 }
 0x586   :  { %11919 = vmatmul.mubr.bf16.vlgmr.msra.gmra.mrb[32].mxu1 %v15125_v48  ;;  %11930 = vmatpush1.bf16.msra.mxu0 %v12896_v31  ;;  %v13233_v31 = vcombine.high %v1443_v26, %v1467_v44 }
 0x587   :  { %11961 = vmatprep.mubr.bf16.mxu0 %v15127_v53  ;;  %12016 = vmatpush1.bf16.msra.mxu1 %v12898_v34  ;;  %v1515_v34 = vld [vmem:[#allocation8 + $0xd40] sm:$0xff] }
 0x588   :  { %12047 = vmatprep.mubr.bf16.mxu1 %v15127_v53  ;;  %11931 = vmatprep.subr.bf16.mxu0 %v12945_v35  ;;  %v1492_v35 = vld [vmem:[#allocation8 + $0xc88] sm:$0xff]  ;;  %v13281_v39 = vcombine.high %v1491_v33, %v1515_v34  ;;  %v13280_v47 = vcombine.low %v1491_v33, %v1515_v34 }
 0x589   :  { %12017 = vmatprep.subr.bf16.mxu1 %v12947_v38  ;;  %v13234_v38 = vcombine.low %v1444_v27, %v1468_v28  ;;  %v13283_v40 = vcombine.high %v1492_v35, %v1516_v36  ;;  %v13282_v49 = vcombine.low %v1492_v35, %v1516_v36 }
 0x58a   :  { %11932 = vmatpush1.bf16.msra.mxu0 %v12944_v41  ;;  %v1539_v41 = vld [vmem:[#allocation8 + $0xe00] sm:$0xff] }
 0x58b   :  { %12018 = vmatpush1.bf16.msra.mxu1 %v12946_v42  ;;  %11933 = vmatprep.subr.bf16.mxu0 %v12993_v43  ;;  %v1563_v42 = vld [vmem:[#allocation8 + $0xec0] sm:$0xff]  ;;  %v1540_v43 = vld [vmem:[#allocation8 + $0xe08] sm:$0xff] }
 0x58c   :  { %12019 = vmatprep.subr.bf16.mxu1 %v12995_v46  ;;  %v1564_v46 = vld [vmem:[#allocation8 + $0xec8] sm:$0xff]  ;;  %v13329_v51 = vcombine.high %v1539_v41, %v1563_v42  ;;  %v13328_v62 = vcombine.low %v1539_v41, %v1563_v42 }
 0x58d   :  { %v13331_v52 = vcombine.high %v1540_v43, %v1564_v46  ;;  %v13330_v63 = vcombine.low %v1540_v43, %v1564_v46 }
 0x58e   :  { %11934 = vmatpush1.bf16.msra.mxu0 %v12992_v55  ;;  %v1587_v55 = vld [vmem:[#allocation8 + $0xf80] sm:$0xff] }
 0x58f   :  { %12020 = vmatpush1.bf16.msra.mxu1 %v12994_v61  ;;  %11935 = vmatprep.subr.bf16.mxu0 %v13041_v58  ;;  %v1611_v61 = vld [vmem:[#allocation8 + $0x1040] sm:$0xff]  ;;  %v1588_v58 = vld [vmem:[#allocation8 + $0xf88] sm:$0xff] }
 0x590   :  { %12021 = vmatprep.subr.bf16.mxu1 %v13043_v60  ;;  %v1612_v60 = vld [vmem:[#allocation8 + $0x1048] sm:$0xff]  ;;  %v13377_v0 = vcombine.high %v1587_v55, %v1611_v61  ;;  %v13376_v13 = vcombine.low %v1587_v55, %v1611_v61 }
 0x591   :  { %v13379_v1 = vcombine.high %v1588_v58, %v1612_v60  ;;  %v13378_v5 = vcombine.low %v1588_v58, %v1612_v60 }
 0x592   :  { %11936 = vmatpush1.bf16.msra.mxu0 %v13040_v2  ;;  %v1635_v2 = vld [vmem:[#allocation8 + $0x1100] sm:$0xff] }
 0x593   :  { %12022 = vmatpush1.bf16.msra.mxu1 %v13042_v3  ;;  %11937 = vmatprep.subr.bf16.mxu0 %v13089_v7  ;;  %v1659_v3 = vld [vmem:[#allocation8 + $0x11c0] sm:$0xff]  ;;  %v1636_v7 = vld [vmem:[#allocation8 + $0x1108] sm:$0xff] }
 0x594   :  { %12023 = vmatprep.subr.bf16.mxu1 %v13091_v4  ;;  %v1660_v4 = vld [vmem:[#allocation8 + $0x11c8] sm:$0xff]  ;;  %v13425_v6 = vcombine.high %v1635_v2, %v1659_v3  ;;  %v13424_v16 = vcombine.low %v1635_v2, %v1659_v3 }
 0x595   :  { %v13427_v10 = vcombine.high %v1636_v7, %v1660_v4  ;;  %v13426_v19 = vcombine.low %v1636_v7, %v1660_v4  ;;  %v1948_v2 = vld [vmem:[#allocation8 + $0x1ac8] sm:$0xff]  ;;  %v1971_v4 = vld [vmem:[#allocation8 + $0x1b80] sm:$0xff] }
 0x596   :  { %11938 = vmatpush1.bf16.msra.mxu0 %v13088_v8  ;;  %v1683_v8 = vld [vmem:[#allocation8 + $0x1280] sm:$0xff] }
 0x597   :  { %12024 = vmatpush1.bf16.msra.mxu1 %v13090_v9  ;;  %11939 = vmatprep.subr.bf16.mxu0 %v13137_v11  ;;  %v1707_v9 = vld [vmem:[#allocation8 + $0x1340] sm:$0xff]  ;;  %v1684_v11 = vld [vmem:[#allocation8 + $0x1288] sm:$0xff] }
 0x598   :  { %12025 = vmatprep.subr.bf16.mxu1 %v13139_v12  ;;  %v1708_v12 = vld [vmem:[#allocation8 + $0x1348] sm:$0xff]  ;;  %v13473_v20 = vcombine.high %v1683_v8, %v1707_v9  ;;  %v13472_v26 = vcombine.low %v1683_v8, %v1707_v9 }
 0x599   :  { %v13475_v21 = vcombine.high %v1684_v11, %v1708_v12  ;;  %v13474_v44 = vcombine.low %v1684_v11, %v1708_v12 }
 0x59a   :  { %11940 = vmatpush1.bf16.msra.mxu0 %v13136_v22  ;;  %v1731_v22 = vld [vmem:[#allocation8 + $0x1400] sm:$0xff] }
 0x59b   :  { %12026 = vmatpush1.bf16.msra.mxu1 %v13138_v23  ;;  %11941 = vmatprep.subr.bf16.mxu0 %v13185_v24  ;;  %v1755_v23 = vld [vmem:[#allocation8 + $0x14c0] sm:$0xff]  ;;  %v1732_v24 = vld [vmem:[#allocation8 + $0x1408] sm:$0xff] }
 0x59c   :  { %12027 = vmatprep.subr.bf16.mxu1 %v13187_v25  ;;  %v1756_v25 = vld [vmem:[#allocation8 + $0x14c8] sm:$0xff]  ;;  %v13521_v27 = vcombine.high %v1731_v22, %v1755_v23  ;;  %v13520_v33 = vcombine.low %v1731_v22, %v1755_v23 }
 0x59d   :  { %v13523_v28 = vcombine.high %v1732_v24, %v1756_v25  ;;  %v13522_v34 = vcombine.low %v1732_v24, %v1756_v25 }
 0x59e   :  { %11942 = vmatpush1.bf16.msra.mxu0 %v13184_v29  ;;  %v1779_v29 = vld [vmem:[#allocation8 + $0x1580] sm:$0xff] }
 0x59f   :  { %12028 = vmatpush1.bf16.msra.mxu1 %v13186_v30  ;;  %11943 = vmatprep.subr.bf16.mxu0 %v13233_v31  ;;  %v1803_v30 = vld [vmem:[#allocation8 + $0x1640] sm:$0xff]  ;;  %v1780_v31 = vld [vmem:[#allocation8 + $0x1588] sm:$0xff] }
 0x5a0   :  { %12029 = vmatprep.subr.bf16.mxu1 %v13235_v32  ;;  %v1804_v32 = vld [vmem:[#allocation8 + $0x1648] sm:$0xff]  ;;  %v13569_v35 = vcombine.high %v1779_v29, %v1803_v30  ;;  %v13568_v41 = vcombine.low %v1779_v29, %v1803_v30 }
 0x5a1   :  { %v13571_v36 = vcombine.high %v1780_v31, %v1804_v32  ;;  %v13570_v42 = vcombine.low %v1780_v31, %v1804_v32 }
 0x5a2   :  { %11944 = vmatpush1.bf16.msra.mxu0 %v13232_v37  ;;  %v1827_v37 = vld [vmem:[#allocation8 + $0x1700] sm:$0xff] }
 0x5a3   :  { %12030 = vmatpush1.bf16.msra.mxu1 %v13234_v38  ;;  %11945 = vmatprep.subr.bf16.mxu0 %v13281_v39  ;;  %v1851_v38 = vld [vmem:[#allocation8 + $0x17c0] sm:$0xff]  ;;  %v1828_v39 = vld [vmem:[#allocation8 + $0x1708] sm:$0xff] }
 0x5a4   :  { %12031 = vmatprep.subr.bf16.mxu1 %v13283_v40  ;;  %v1852_v40 = vld [vmem:[#allocation8 + $0x17c8] sm:$0xff]  ;;  %v13617_v43 = vcombine.high %v1827_v37, %v1851_v38  ;;  %v13616_v55 = vcombine.low %v1827_v37, %v1851_v38  ;;  %v15273_v38 = vld [vmem:[#allocation10 + $0x18] sm:$0xff] }
 0x5a5   :  { %v13619_v46 = vcombine.high %v1828_v39, %v1852_v40  ;;  %v13618_v61 = vcombine.low %v1828_v39, %v1852_v40 }
 0x5a6   :  { %11946 = vmatpush1.bf16.msra.mxu0 %v13280_v47  ;;  %v1875_v47 = vld [vmem:[#allocation8 + $0x1880] sm:$0xff] }
 0x5a7   :  { %12032 = vmatpush1.bf16.msra.mxu1 %v13282_v49  ;;  %11947 = vmatprep.subr.bf16.mxu0 %v13329_v51  ;;  %v1899_v49 = vld [vmem:[#allocation8 + $0x1940] sm:$0xff]  ;;  %v1876_v51 = vld [vmem:[#allocation8 + $0x1888] sm:$0xff] }
 0x5a8   :  { %12033 = vmatprep.subr.bf16.mxu1 %v13331_v52  ;;  %v1900_v52 = vld [vmem:[#allocation8 + $0x1948] sm:$0xff]  ;;  %v13665_v58 = vcombine.high %v1875_v47, %v1899_v49 }
 0x5a9   :  { %v13667_v60 = vcombine.high %v1876_v51, %v1900_v52  ;;  %v13666_v3 = vcombine.low %v1876_v51, %v1900_v52  ;;  %v2740_v51 = vrot.slane %v15273_v38, %v15111_v15  ;;  %v2736_v52 = vrot.slane %v15273_v38, %v15114_v17 }
 0x5aa   :  { %11948 = vmatpush1.bf16.msra.mxu0 %v13328_v62  ;;  %v1923_v62 = vld [vmem:[#allocation8 + $0x1a00] sm:$0xff] }
 0x5ab   :  { %12034 = vmatpush1.bf16.msra.mxu1 %v13330_v63  ;;  %11949 = vmatprep.subr.bf16.mxu0 %v13377_v0  ;;  %v1947_v63 = vld [vmem:[#allocation8 + $0x1ac0] sm:$0xff]  ;;  %v13664_v0 = vcombine.low %v1875_v47, %v1899_v49  ;;  %v2164_v47 = vld [vmem:[#allocation8 + $0x2188] sm:$0xff] }
 0x5ac   :  { %12035 = vmatprep.subr.bf16.mxu1 %v13379_v1  ;;  %v1924_v1 = vld [vmem:[#allocation8 + $0x1a08] sm:$0xff]  ;;  %v13713_v7 = vcombine.high %v1923_v62, %v1947_v63  ;;  %v13712_v8 = vcombine.low %v1923_v62, %v1947_v63 }
 0x5ad   :  { %v13714_v9 = vcombine.low %v1924_v1, %v1948_v2  ;;  %v2188_v49 = vld [vmem:[#allocation8 + $0x2248] sm:$0xff] }
 0x5ae   :  { %11950 = vmatpush1.bf16.msra.mxu0 %v13376_v13  ;;  %v1995_v13 = vld [vmem:[#allocation8 + $0x1c40] sm:$0xff]  ;;  %v13955_v63 = vcombine.high %v2164_v47, %v2188_v49 }
 0x5af   :  { %12036 = vmatpush1.bf16.msra.mxu1 %v13378_v5  ;;  %11951 = vmatprep.subr.bf16.mxu0 %v13425_v6  ;;  %v13715_v5 = vcombine.high %v1924_v1, %v1948_v2  ;;  %v1972_v6 = vld [vmem:[#allocation8 + $0x1b88] sm:$0xff]  ;;  %v13761_v11 = vcombine.high %v1971_v4, %v1995_v13  ;;  %v13760_v22 = vcombine.low %v1971_v4, %v1995_v13  ;;  %v2235_v1 = vld [vmem:[#allocation8 + $0x23c0] sm:$0xff] }
 0x5b0   :  { %12037 = vmatprep.subr.bf16.mxu1 %v13427_v10  ;;  %v1996_v10 = vld [vmem:[#allocation8 + $0x1c48] sm:$0xff] }
 0x5b1   :  { %v13763_v12 = vcombine.high %v1972_v6, %v1996_v10  ;;  %v13762_v23 = vcombine.low %v1972_v6, %v1996_v10  ;;  %v2212_v4 = vld [vmem:[#allocation8 + $0x2308] sm:$0xff] }
 0x5b2   :  { %11952 = vmatpush1.bf16.msra.mxu0 %v13424_v16  ;;  %v2019_v16 = vld [vmem:[#allocation8 + $0x1d00] sm:$0xff]  ;;  %v2236_v13 = vld [vmem:[#allocation8 + $0x23c8] sm:$0xff] }
 0x5b3   :  { %12038 = vmatpush1.bf16.msra.mxu1 %v13426_v19  ;;  %11953 = vmatprep.subr.bf16.mxu0 %v13473_v20  ;;  %v2043_v19 = vld [vmem:[#allocation8 + $0x1dc0] sm:$0xff]  ;;  %v2020_v20 = vld [vmem:[#allocation8 + $0x1d08] sm:$0xff] }
 0x5b4   :  { %12039 = vmatprep.subr.bf16.mxu1 %v13475_v21  ;;  %v2044_v21 = vld [vmem:[#allocation8 + $0x1dc8] sm:$0xff]  ;;  %v13809_v24 = vcombine.high %v2019_v16, %v2043_v19  ;;  %v13808_v29 = vcombine.low %v2019_v16, %v2043_v19 }
 0x5b5   :  { %v13811_v25 = vcombine.high %v2020_v20, %v2044_v21  ;;  %v13810_v30 = vcombine.low %v2020_v20, %v2044_v21 }
 0x5b6   :  { %11954 = vmatpush1.bf16.msra.mxu0 %v13472_v26  ;;  %v2067_v26 = vld [vmem:[#allocation8 + $0x1e80] sm:$0xff] }
 0x5b7   :  { %12040 = vmatpush1.bf16.msra.mxu1 %v13474_v44  ;;  %11955 = vmatprep.subr.bf16.mxu0 %v13521_v27  ;;  %v2091_v44 = vld [vmem:[#allocation8 + $0x1f40] sm:$0xff]  ;;  %v2068_v27 = vld [vmem:[#allocation8 + $0x1e88] sm:$0xff] }
 0x5b8   :  { %12041 = vmatprep.subr.bf16.mxu1 %v13523_v28  ;;  %v2092_v28 = vld [vmem:[#allocation8 + $0x1f48] sm:$0xff]  ;;  %v13857_v31 = vcombine.high %v2067_v26, %v2091_v44  ;;  %v13856_v37 = vcombine.low %v2067_v26, %v2091_v44  ;;  %v2259_v26 = vld [vmem:[#allocation8 + $0x2480] sm:$0xff] }
 0x5b9   :  { %v13859_v32 = vcombine.high %v2068_v27, %v2092_v28  ;;  %v13858_v39 = vcombine.low %v2068_v27, %v2092_v28  ;;  %v2283_v44 = vld [vmem:[#allocation8 + $0x2540] sm:$0xff]  ;;  %v2260_v28 = vld [vmem:[#allocation8 + $0x2488] sm:$0xff] }
 0x5ba   :  { %11956 = vmatpush1.bf16.msra.mxu0 %v13520_v33  ;;  %v2115_v33 = vld [vmem:[#allocation8 + $0x2000] sm:$0xff] }
 0x5bb   :  { %12042 = vmatpush1.bf16.msra.mxu1 %v13522_v34  ;;  %11957 = vmatprep.subr.bf16.mxu0 %v13569_v35  ;;  %v2139_v34 = vld [vmem:[#allocation8 + $0x20c0] sm:$0xff]  ;;  %v2116_v35 = vld [vmem:[#allocation8 + $0x2008] sm:$0xff] }
 0x5bc   :  { %12043 = vmatprep.subr.bf16.mxu1 %v13571_v36  ;;  %v2140_v36 = vld [vmem:[#allocation8 + $0x20c8] sm:$0xff]  ;;  %v13905_v40 = vcombine.high %v2115_v33, %v2139_v34 }
 0x5be   :  { %11958 = vmatpush1.bf16.msra.mxu0 %v13568_v41  ;;  %v13907_v41 = vcombine.high %v2116_v35, %v2140_v36 }
 0x5bf   :  { %12044 = vmatpush1.bf16.msra.mxu1 %v13570_v42  ;;  %11959 = vmatprep.subr.bf16.mxu0 %v13617_v43  ;;  %v2163_v42 = vld [vmem:[#allocation8 + $0x2180] sm:$0xff] }
 0x5c0   :  { %12045 = vmatprep.subr.bf16.mxu1 %v13619_v46  ;;  %v2187_v43 = vld [vmem:[#allocation8 + $0x2240] sm:$0xff]  ;;  %v2732_v46 = vrot.slane %v15273_v38, %v15108_v14 }
 0x5c2   :  { %11960 = vmatpush1.bf16.msra.mxu0 %v13616_v55  ;;  %v13904_v55 = vcombine.low %v2115_v33, %v2139_v34  ;;  %v2307_v34 = vld [vmem:[#allocation8 + $0x2600] sm:$0xff] }
 0x5c3   :  { %12046 = vmatpush1.bf16.msra.mxu1 %v13618_v61  ;;  %11972 = vmatprep.subr.bf16.mxu0 %v13665_v58  ;;  %v2744_v61 = vrot.slane %v15273_v38, %v15117_v18  ;;  %v13906_v58 = vcombine.low %v2116_v35, %v2140_v36  ;;  %v2331_v35 = vld [vmem:[#allocation8 + $0x26c0] sm:$0xff]  ;;  %v2308_v36 = vld [vmem:[#allocation8 + $0x2608] sm:$0xff] }
 0x5c4   :  { %12058 = vmatprep.subr.bf16.mxu1 %v13667_v60  ;;  %v13953_v60 = vcombine.high %v2163_v42, %v2187_v43 }
 0x5c5   :  { %11962 = vmatmul.mubr.bf16.vlgmr.msra.gmra.mrb[36].mxu0 %v15123_v45 }
 0x5c6   :  { %12048 = vmatmul.mubr.bf16.vlgmr.msra.gmra.mrb[36].mxu1 %v15123_v45  ;;  %11973 = vmatpush1.bf16.msra.mxu0 %v13664_v0  ;;  %v2211_v0 = vld [vmem:[#allocation8 + $0x2300] sm:$0xff] }
 0x5c7   :  { %12004 = vmatprep.mubr.bf16.mxu0 %v15129_v54  ;;  %12059 = vmatpush1.bf16.msra.mxu1 %v13666_v3  ;;  %v14001_v21 = vcombine.high %v2211_v0, %v2235_v1 }
 0x5c8   :  { %12090 = vmatprep.mubr.bf16.mxu1 %v15129_v54  ;;  %11974 = vmatprep.subr.bf16.mxu0 %v13713_v7 }
 0x5c9   :  { %12060 = vmatprep.subr.bf16.mxu1 %v13715_v5 }
 0x5ca   :  { %11975 = vmatpush1.bf16.msra.mxu0 %v13712_v8 }
 0x5cb   :  { %12061 = vmatpush1.bf16.msra.mxu1 %v13714_v9  ;;  %11976 = vmatprep.subr.bf16.mxu0 %v13761_v11  ;;  %v13952_v9 = vcombine.low %v2163_v42, %v2187_v43  ;;  %v13954_v11 = vcombine.low %v2164_v47, %v2188_v49  ;;  %v2355_v43 = vld [vmem:[#allocation8 + $0x2780] sm:$0xff]  ;;  %v2356_v47 = vld [vmem:[#allocation8 + $0x2788] sm:$0xff] }
 0x5cc   :  { %12062 = vmatprep.subr.bf16.mxu1 %v13763_v12  ;;  %v2380_v49 = vld [vmem:[#allocation8 + $0x2848] sm:$0xff] }
 0x5ce   :  { %11977 = vmatpush1.bf16.msra.mxu0 %v13760_v22 }
 0x5cf   :  { %12063 = vmatpush1.bf16.msra.mxu1 %v13762_v23  ;;  %11978 = vmatprep.subr.bf16.mxu0 %v13809_v24 }
 0x5d0   :  { %12064 = vmatprep.subr.bf16.mxu1 %v13811_v25  ;;  %v14003_v25 = vcombine.high %v2212_v4, %v2236_v13 }
 0x5d2   :  { %11979 = vmatpush1.bf16.msra.mxu0 %v13808_v29  ;;  %v2284_v29 = vld [vmem:[#allocation8 + $0x2548] sm:$0xff] }
 0x5d3   :  { %12065 = vmatpush1.bf16.msra.mxu1 %v13810_v30  ;;  %11980 = vmatprep.subr.bf16.mxu0 %v13857_v31  ;;  %v14000_v30 = vcombine.low %v2211_v0, %v2235_v1  ;;  %v14002_v31 = vcombine.low %v2212_v4, %v2236_v13  ;;  %v14051_v33 = vcombine.high %v2260_v28, %v2284_v29  ;;  %v2475_v4 = vld [vmem:[#allocation8 + $0x2b40] sm:$0xff]  ;;  %v2452_v13 = vld [vmem:[#allocation8 + $0x2a88] sm:$0xff] }
 0x5d4   :  { %12066 = vmatprep.subr.bf16.mxu1 %v13859_v32  ;;  %v14049_v32 = vcombine.high %v2259_v26, %v2283_v44  ;;  %v14146_v1 = vcombine.low %v2356_v47, %v2380_v49 }
 0x5d6   :  { %11981 = vmatpush1.bf16.msra.mxu0 %v13856_v37  ;;  %v2332_v37 = vld [vmem:[#allocation8 + $0x26c8] sm:$0xff] }
 0x5d7   :  { %12067 = vmatpush1.bf16.msra.mxu1 %v13858_v39  ;;  %11982 = vmatprep.subr.bf16.mxu0 %v13905_v40  ;;  %v14048_v39 = vcombine.low %v2259_v26, %v2283_v44  ;;  %v14050_v40 = vcombine.low %v2260_v28, %v2284_v29  ;;  %v14099_v42 = vcombine.high %v2308_v36, %v2332_v37  ;;  %v2548_v26 = vld [vmem:[#allocation8 + $0x2d88] sm:$0xff] }
 0x5d8   :  { %v11662_v62 = vpop.f32.mrb[28].mxu0  ;;  %12068 = vmatprep.subr.bf16.mxu1 %v13907_v41  ;;  %v14097_v41 = vcombine.high %v2307_v34, %v2331_v35  ;;  %v2572_v44 = vld [vmem:[#allocation8 + $0x2e48] sm:$0xff] }
 0x5d9   :  { %v14456_v2 = vadd.f32 %v11662_v62, %v2732_v46  ;;  %v11748_v3 = vpop.f32.mrb[28].mxu1  ;;  %v11664_v7 = vpop.f32.mrb[29].mxu0  ;;  %v2404_v62 = vld [vmem:[#allocation8 + $0x2908] sm:$0xff] }
 0x5da   :  { %v14460_v5 = vadd.f32 %v11748_v3, %v2740_v51  ;;  %v14457_v6 = vadd.f32 %v11664_v7, %v2736_v52  ;;  %v11750_v10 = vpop.f32.mrb[29].mxu1  ;;  %v11666_v8 = vpop.f32.mrb[30].mxu0  ;;  %11983 = vmatpush1.bf16.msra.mxu0 %v13904_v55  ;;  %v2451_v7 = vld [vmem:[#allocation8 + $0x2a80] sm:$0xff] }
 0x5db   :  { %12641 = vst [vmem:[#allocation11 + $0xc0] sm:$0xff] %v14456_v2  ;;  %v14461_v12 = vadd.f32 %v11750_v10, %v2744_v61  ;;  %v14458_v16 = vadd.f32 %v11666_v8, %v2732_v46  ;;  %v11752_v19 = vpop.f32.mrb[30].mxu1  ;;  %12069 = vmatpush1.bf16.msra.mxu1 %v13906_v58  ;;  %v11668_v20 = vpop.f32.mrb[31].mxu0  ;;  %11984 = vmatprep.subr.bf16.mxu0 %v13953_v60  ;;  %v2379_v46 = vld [vmem:[#allocation8 + $0x2840] sm:$0xff] }
 0x5dc   :  { %12643 = vst [vmem:[#allocation11 + $0xd0] sm:$0xff] %v14460_v5  ;;  %12642 = vst [vmem:[#allocation11 + $0xc8] sm:$0xff] %v14457_v6  ;;  %v14462_v22 = vadd.f32 %v11752_v19, %v2740_v51  ;;  %v14459_v23 = vadd.f32 %v11668_v20, %v2736_v52  ;;  %v11754_v24 = vpop.f32.mrb[31].mxu1  ;;  %12070 = vmatprep.subr.bf16.mxu1 %v13955_v63  ;;  %v14096_v51 = vcombine.low %v2307_v34, %v2331_v35  ;;  %v2403_v58 = vld [vmem:[#allocation8 + $0x2900] sm:$0xff]  ;;  %v2428_v63 = vld [vmem:[#allocation8 + $0x29c8] sm:$0xff] }
 0x5dd   :  { %12644 = vst [vmem:[#allocation11 + $0xd8] sm:$0xff] %v14461_v12  ;;  %12689 = vst [vmem:[#allocation11 + $0x240] sm:$0xff] %v14458_v16  ;;  %v14463_v27 = vadd.f32 %v11754_v24, %v2744_v61  ;;  %v14098_v52 = vcombine.low %v2308_v36, %v2332_v37  ;;  %v14145_v55 = vcombine.high %v2355_v43, %v2379_v46  ;;  %v2427_v60 = vld [vmem:[#allocation8 + $0x29c0] sm:$0xff]  ;;  %v2476_v5 = vld [vmem:[#allocation8 + $0x2b48] sm:$0xff] }
 0x5de   :  { %12691 = vst [vmem:[#allocation11 + $0x250] sm:$0xff] %v14462_v22  ;;  %12690 = vst [vmem:[#allocation11 + $0x248] sm:$0xff] %v14459_v23  ;;  %11985 = vmatpush1.bf16.msra.mxu0 %v13952_v9  ;;  %v14147_v61 = vcombine.high %v2356_v47, %v2380_v49  ;;  %v14144_v0 = vcombine.low %v2355_v43, %v2379_v46  ;;  %v14193_v2 = vcombine.high %v2403_v58, %v2427_v60  ;;  %v2523_v12 = vld [vmem:[#allocation8 + $0x2cc0] sm:$0xff]  ;;  %v2500_v16 = vld [vmem:[#allocation8 + $0x2c08] sm:$0xff] }
 0x5df   :  { %12692 = vst [vmem:[#allocation11 + $0x258] sm:$0xff] %v14463_v27  ;;  %12071 = vmatpush1.bf16.msra.mxu1 %v13954_v11  ;;  %11986 = vmatprep.subr.bf16.mxu0 %v14001_v21  ;;  %v14195_v3 = vcombine.high %v2404_v62, %v2428_v63  ;;  %v14192_v6 = vcombine.low %v2403_v58, %v2427_v60  ;;  %v2499_v11 = vld [vmem:[#allocation8 + $0x2c00] sm:$0xff]  ;;  %v2524_v19 = vld [vmem:[#allocation8 + $0x2cc8] sm:$0xff]  ;;  %v1134_v43 = vld [vmem:[#allocation8 + $0x158] sm:$0xff] }
 0x5e0   :  { %12072 = vmatprep.subr.bf16.mxu1 %v14003_v25  ;;  %v14194_v10 = vcombine.low %v2404_v62, %v2428_v63  ;;  %v14241_v8 = vcombine.high %v2451_v7, %v2475_v4  ;;  %v14243_v9 = vcombine.high %v2452_v13, %v2476_v5  ;;  %v14240_v20 = vcombine.low %v2451_v7, %v2475_v4  ;;  %v2547_v24 = vld [vmem:[#allocation8 + $0x2d80] sm:$0xff]  ;;  %v2620_v34 = vld [vmem:[#allocation8 + $0x2fc8] sm:$0xff]  ;;  %v1158_v58 = vld [vmem:[#allocation8 + $0x218] sm:$0xff] }
 0x5e1   :  { %v14242_v21 = vcombine.low %v2452_v13, %v2476_v5  ;;  %v14289_v22 = vcombine.high %v2499_v11, %v2523_v12  ;;  %v14291_v23 = vcombine.high %v2500_v16, %v2524_v19  ;;  %v2571_v25 = vld [vmem:[#allocation8 + $0x2e40] sm:$0xff]  ;;  %v14288_v27 = vcombine.low %v2499_v11, %v2523_v12  ;;  %v1182_v60 = vld [vmem:[#allocation8 + $0x2d8] sm:$0xff] }
 0x5e2   :  { %11987 = vmatpush1.bf16.msra.mxu0 %v14000_v30  ;;  %v14290_v28 = vcombine.low %v2500_v16, %v2524_v19  ;;  %v14337_v29 = vcombine.high %v2547_v24, %v2571_v25  ;;  %v14339_v30 = vcombine.high %v2548_v26, %v2572_v44  ;;  %v14336_v35 = vcombine.low %v2547_v24, %v2571_v25  ;;  %v1230_v7 = vld [vmem:[#allocation8 + $0x458] sm:$0xff] }
 0x5e3   :  { %12073 = vmatpush1.bf16.msra.mxu1 %v14002_v31  ;;  %11988 = vmatprep.subr.bf16.mxu0 %v14049_v32  ;;  %v2595_v31 = vld [vmem:[#allocation8 + $0x2f00] sm:$0xff]  ;;  %v14338_v36 = vcombine.low %v2548_v26, %v2572_v44  ;;  %v12950_v13 = vcombine.low %v1158_v58, %v1182_v60  ;;  %v1278_v11 = vld [vmem:[#allocation8 + $0x5d8] sm:$0xff] }
 0x5e4   :  { %12074 = vmatprep.subr.bf16.mxu1 %v14051_v33  ;;  %v2619_v32 = vld [vmem:[#allocation8 + $0x2fc0] sm:$0xff]  ;;  %v2596_v33 = vld [vmem:[#allocation8 + $0x2f08] sm:$0xff]  ;;  %v1326_v24 = vld [vmem:[#allocation8 + $0x758] sm:$0xff] }
 0x5e5   :  { %v14385_v37 = vcombine.high %v2595_v31, %v2619_v32  ;;  %v14384_v46 = vcombine.low %v2595_v31, %v2619_v32  ;;  %v14386_v47 = vcombine.low %v2596_v33, %v2620_v34  ;;  %v1374_v31 = vld [vmem:[#allocation8 + $0x8d8] sm:$0xff] }
 0x5e6   :  { %11989 = vmatpush1.bf16.msra.mxu0 %v14048_v39  ;;  %v14387_v39 = vcombine.high %v2596_v33, %v2620_v34 }
 0x5e7   :  { %12075 = vmatpush1.bf16.msra.mxu1 %v14050_v40  ;;  %11990 = vmatprep.subr.bf16.mxu0 %v14097_v41  ;;  %v1109_v40 = vld [vmem:[#allocation8 + $0x90] sm:$0xff] }
 0x5e8   :  { %12076 = vmatprep.subr.bf16.mxu1 %v14099_v42  ;;  %v1133_v41 = vld [vmem:[#allocation8 + $0x150] sm:$0xff]  ;;  %v1110_v42 = vld [vmem:[#allocation8 + $0x98] sm:$0xff] }
 0x5e9   :  { %v12901_v49 = vcombine.high %v1109_v40, %v1133_v41  ;;  %v12902_v62 = vcombine.low %v1110_v42, %v1134_v43 }
 0x5ea   :  { %11991 = vmatpush1.bf16.msra.mxu0 %v14096_v51  ;;  %v12903_v51 = vcombine.high %v1110_v42, %v1134_v43 }
 0x5eb   :  { %12077 = vmatpush1.bf16.msra.mxu1 %v14098_v52  ;;  %11992 = vmatprep.subr.bf16.mxu0 %v14145_v55  ;;  %v1157_v52 = vld [vmem:[#allocation8 + $0x210] sm:$0xff] }
 0x5ec   :  { %12078 = vmatprep.subr.bf16.mxu1 %v14147_v61  ;;  %v1181_v55 = vld [vmem:[#allocation8 + $0x2d0] sm:$0xff]  ;;  %v12900_v61 = vcombine.low %v1109_v40, %v1133_v41  ;;  %v1422_v40 = vld [vmem:[#allocation8 + $0xa58] sm:$0xff] }
 0x5ed   :  { %v12949_v63 = vcombine.high %v1157_v52, %v1181_v55  ;;  %v12948_v4 = vcombine.low %v1157_v52, %v1181_v55  ;;  %v1470_v52 = vld [vmem:[#allocation8 + $0xbd8] sm:$0xff] }
 0x5ee   :  { %11993 = vmatpush1.bf16.msra.mxu0 %v14144_v0  ;;  %v1205_v0 = vld [vmem:[#allocation8 + $0x390] sm:$0xff] }
 0x5ef   :  { %12079 = vmatpush1.bf16.msra.mxu1 %v14146_v1  ;;  %11994 = vmatprep.subr.bf16.mxu0 %v14193_v2  ;;  %v1229_v1 = vld [vmem:[#allocation8 + $0x450] sm:$0xff]  ;;  %v12951_v2 = vcombine.high %v1158_v58, %v1182_v60 }
 0x5f0   :  { %12080 = vmatprep.subr.bf16.mxu1 %v14195_v3  ;;  %v1206_v3 = vld [vmem:[#allocation8 + $0x398] sm:$0xff]  ;;  %v12997_v5 = vcombine.high %v1205_v0, %v1229_v1  ;;  %v12996_v12 = vcombine.low %v1205_v0, %v1229_v1 }
 0x5f1   :  { %v12998_v16 = vcombine.low %v1206_v3, %v1230_v7  ;;  %v1494_v0 = vld [vmem:[#allocation8 + $0xc98] sm:$0xff] }
 0x5f2   :  { %11995 = vmatpush1.bf16.msra.mxu0 %v14192_v6  ;;  %v12999_v6 = vcombine.high %v1206_v3, %v1230_v7  ;;  %v1518_v1 = vld [vmem:[#allocation8 + $0xd58] sm:$0xff] }
 0x5f3   :  { %12081 = vmatpush1.bf16.msra.mxu1 %v14194_v10  ;;  %11996 = vmatprep.subr.bf16.mxu0 %v14241_v8  ;;  %v1253_v10 = vld [vmem:[#allocation8 + $0x510] sm:$0xff] }
 0x5f4   :  { %12082 = vmatprep.subr.bf16.mxu1 %v14243_v9  ;;  %v1277_v8 = vld [vmem:[#allocation8 + $0x5d0] sm:$0xff]  ;;  %v1254_v9 = vld [vmem:[#allocation8 + $0x518] sm:$0xff] }
 0x5f5   :  { %v13045_v19 = vcombine.high %v1253_v10, %v1277_v8  ;;  %v13044_v25 = vcombine.low %v1253_v10, %v1277_v8  ;;  %v13046_v26 = vcombine.low %v1254_v9, %v1278_v11  ;;  %v1566_v10 = vld [vmem:[#allocation8 + $0xed8] sm:$0xff] }
 0x5f6   :  { %11997 = vmatpush1.bf16.msra.mxu0 %v14240_v20  ;;  %v13047_v20 = vcombine.high %v1254_v9, %v1278_v11  ;;  %v13286_v9 = vcombine.low %v1494_v0, %v1518_v1 }
 0x5f7   :  { %12083 = vmatpush1.bf16.msra.mxu1 %v14242_v21  ;;  %11998 = vmatprep.subr.bf16.mxu0 %v14289_v22  ;;  %v1301_v21 = vld [vmem:[#allocation8 + $0x690] sm:$0xff] }
 0x5f8   :  { %12084 = vmatprep.subr.bf16.mxu1 %v14291_v23  ;;  %v1325_v22 = vld [vmem:[#allocation8 + $0x750] sm:$0xff]  ;;  %v1302_v23 = vld [vmem:[#allocation8 + $0x698] sm:$0xff] }
 0x5f9   :  { %v13093_v44 = vcombine.high %v1301_v21, %v1325_v22  ;;  %v13092_v32 = vcombine.low %v1301_v21, %v1325_v22  ;;  %v13094_v33 = vcombine.low %v1302_v23, %v1326_v24  ;;  %v1614_v21 = vld [vmem:[#allocation8 + $0x1058] sm:$0xff] }
 0x5fa   :  { %11999 = vmatpush1.bf16.msra.mxu0 %v14288_v27  ;;  %v13095_v27 = vcombine.high %v1302_v23, %v1326_v24 }
 0x5fb   :  { %12085 = vmatpush1.bf16.msra.mxu1 %v14290_v28  ;;  %12000 = vmatprep.subr.bf16.mxu0 %v14337_v29  ;;  %v1349_v28 = vld [vmem:[#allocation8 + $0x810] sm:$0xff] }
 0x5fc   :  { %12086 = vmatprep.subr.bf16.mxu1 %v14339_v30  ;;  %v1373_v29 = vld [vmem:[#allocation8 + $0x8d0] sm:$0xff]  ;;  %v1350_v30 = vld [vmem:[#allocation8 + $0x818] sm:$0xff] }
 0x5fd   :  { %v13141_v34 = vcombine.high %v1349_v28, %v1373_v29  ;;  %v13140_v41 = vcombine.low %v1349_v28, %v1373_v29  ;;  %v13142_v42 = vcombine.low %v1350_v30, %v1374_v31  ;;  %v1662_v28 = vld [vmem:[#allocation8 + $0x11d8] sm:$0xff] }
 0x5fe   :  { %12001 = vmatpush1.bf16.msra.mxu0 %v14336_v35  ;;  %v13143_v35 = vcombine.high %v1350_v30, %v1374_v31 }
 0x5ff   :  { %12087 = vmatpush1.bf16.msra.mxu1 %v14338_v36  ;;  %12002 = vmatprep.subr.bf16.mxu0 %v14385_v37  ;;  %v1397_v36 = vld [vmem:[#allocation8 + $0x990] sm:$0xff] }
 0x600   :  { %12088 = vmatprep.subr.bf16.mxu1 %v14387_v39  ;;  %v1421_v37 = vld [vmem:[#allocation8 + $0xa50] sm:$0xff]  ;;  %v1398_v39 = vld [vmem:[#allocation8 + $0x998] sm:$0xff] }
 0x601   :  { %v13189_v43 = vcombine.high %v1397_v36, %v1421_v37  ;;  %v13188_v55 = vcombine.low %v1397_v36, %v1421_v37  ;;  %v1710_v36 = vld [vmem:[#allocation8 + $0x1358] sm:$0xff] }
 0x602   :  { %12003 = vmatpush1.bf16.msra.mxu0 %v14384_v46  ;;  %v13191_v46 = vcombine.high %v1398_v39, %v1422_v40 }
 0x603   :  { %12089 = vmatpush1.bf16.msra.mxu1 %v14386_v47  ;;  %12101 = vmatprep.subr.bf16.mxu0 %v12901_v49  ;;  %v1445_v47 = vld [vmem:[#allocation8 + $0xb10] sm:$0xff] }
 0x604   :  { %12187 = vmatprep.subr.bf16.mxu1 %v12903_v51  ;;  %v1469_v49 = vld [vmem:[#allocation8 + $0xbd0] sm:$0xff]  ;;  %v1446_v51 = vld [vmem:[#allocation8 + $0xb18] sm:$0xff] }
 0x605   :  { %12005 = vmatmul.mubr.bf16.vlgmr.msra.gmra.mrb[36].mxu0 %v15125_v48  ;;  %v13237_v58 = vcombine.high %v1445_v47, %v1469_v49  ;;  %v13239_v60 = vcombine.high %v1446_v51, %v1470_v52  ;;  %v13238_v3 = vcombine.low %v1446_v51, %v1470_v52 }
 0x606   :  { %12091 = vmatmul.mubr.bf16.vlgmr.msra.gmra.mrb[36].mxu1 %v15125_v48  ;;  %12102 = vmatpush1.bf16.msra.mxu0 %v12900_v61  ;;  %v13190_v61 = vcombine.low %v1398_v39, %v1422_v40 }
 0x607   :  { %12133 = vmatprep.mubr.bf16.mxu0 %v15127_v53  ;;  %12188 = vmatpush1.bf16.msra.mxu1 %v12902_v62  ;;  %v1493_v62 = vld [vmem:[#allocation8 + $0xc90] sm:$0xff] }
 0x608   :  { %12219 = vmatprep.mubr.bf16.mxu1 %v15127_v53  ;;  %12103 = vmatprep.subr.bf16.mxu0 %v12949_v63  ;;  %v1517_v63 = vld [vmem:[#allocation8 + $0xd50] sm:$0xff] }
 0x609   :  { %12189 = vmatprep.subr.bf16.mxu1 %v12951_v2  ;;  %v13236_v2 = vcombine.low %v1445_v47, %v1469_v49  ;;  %v13285_v7 = vcombine.high %v1493_v62, %v1517_v63  ;;  %v13284_v8 = vcombine.low %v1493_v62, %v1517_v63  ;;  %v1758_v47 = vld [vmem:[#allocation8 + $0x14d8] sm:$0xff] }
 0x60a   :  { %12104 = vmatpush1.bf16.msra.mxu0 %v12948_v4  ;;  %v13287_v4 = vcombine.high %v1494_v0, %v1518_v1  ;;  %v1806_v62 = vld [vmem:[#allocation8 + $0x1658] sm:$0xff] }
 0x60b   :  { %12190 = vmatpush1.bf16.msra.mxu1 %v12950_v13  ;;  %12105 = vmatprep.subr.bf16.mxu0 %v12997_v5  ;;  %v1541_v13 = vld [vmem:[#allocation8 + $0xe10] sm:$0xff] }
 0x60c   :  { %12191 = vmatprep.subr.bf16.mxu1 %v12999_v6  ;;  %v1565_v5 = vld [vmem:[#allocation8 + $0xed0] sm:$0xff]  ;;  %v1542_v6 = vld [vmem:[#allocation8 + $0xe18] sm:$0xff] }
 0x60d   :  { %v13333_v11 = vcombine.high %v1541_v13, %v1565_v5  ;;  %v13332_v22 = vcombine.low %v1541_v13, %v1565_v5  ;;  %v13334_v23 = vcombine.low %v1542_v6, %v1566_v10  ;;  %v1854_v13 = vld [vmem:[#allocation8 + $0x17d8] sm:$0xff] }
 0x60e   :  { %12106 = vmatpush1.bf16.msra.mxu0 %v12996_v12  ;;  %v13335_v12 = vcombine.high %v1542_v6, %v1566_v10 }
 0x60f   :  { %12192 = vmatpush1.bf16.msra.mxu1 %v12998_v16  ;;  %12107 = vmatprep.subr.bf16.mxu0 %v13045_v19  ;;  %v1589_v16 = vld [vmem:[#allocation8 + $0xf90] sm:$0xff] }
 0x610   :  { %12193 = vmatprep.subr.bf16.mxu1 %v13047_v20  ;;  %v1613_v19 = vld [vmem:[#allocation8 + $0x1050] sm:$0xff]  ;;  %v1590_v20 = vld [vmem:[#allocation8 + $0xf98] sm:$0xff] }
 0x611   :  { %v13381_v24 = vcombine.high %v1589_v16, %v1613_v19  ;;  %v13380_v29 = vcombine.low %v1589_v16, %v1613_v19  ;;  %v13382_v30 = vcombine.low %v1590_v20, %v1614_v21  ;;  %v1902_v16 = vld [vmem:[#allocation8 + $0x1958] sm:$0xff] }
 0x612   :  { %12108 = vmatpush1.bf16.msra.mxu0 %v13044_v25  ;;  %v13383_v25 = vcombine.high %v1590_v20, %v1614_v21 }
 0x613   :  { %12194 = vmatpush1.bf16.msra.mxu1 %v13046_v26  ;;  %12109 = vmatprep.subr.bf16.mxu0 %v13093_v44  ;;  %v1637_v26 = vld [vmem:[#allocation8 + $0x1110] sm:$0xff] }
 0x614   :  { %12195 = vmatprep.subr.bf16.mxu1 %v13095_v27  ;;  %v1661_v44 = vld [vmem:[#allocation8 + $0x11d0] sm:$0xff]  ;;  %v1638_v27 = vld [vmem:[#allocation8 + $0x1118] sm:$0xff] }
 0x615   :  { %v13429_v31 = vcombine.high %v1637_v26, %v1661_v44  ;;  %v13428_v37 = vcombine.low %v1637_v26, %v1661_v44  ;;  %v13430_v39 = vcombine.low %v1638_v27, %v1662_v28  ;;  %v1926_v26 = vld [vmem:[#allocation8 + $0x1a18] sm:$0xff] }
 0x616   :  { %12110 = vmatpush1.bf16.msra.mxu0 %v13092_v32  ;;  %v13431_v32 = vcombine.high %v1638_v27, %v1662_v28  ;;  %v1950_v44 = vld [vmem:[#allocation8 + $0x1ad8] sm:$0xff] }
 0x617   :  { %12196 = vmatpush1.bf16.msra.mxu1 %v13094_v33  ;;  %12111 = vmatprep.subr.bf16.mxu0 %v13141_v34  ;;  %v1685_v33 = vld [vmem:[#allocation8 + $0x1290] sm:$0xff] }
 0x618   :  { %12197 = vmatprep.subr.bf16.mxu1 %v13143_v35  ;;  %v1709_v34 = vld [vmem:[#allocation8 + $0x1350] sm:$0xff]  ;;  %v1686_v35 = vld [vmem:[#allocation8 + $0x1298] sm:$0xff] }
 0x619   :  { %v13477_v40 = vcombine.high %v1685_v33, %v1709_v34  ;;  %v13476_v49 = vcombine.low %v1685_v33, %v1709_v34  ;;  %v13478_v51 = vcombine.low %v1686_v35, %v1710_v36  ;;  %v1998_v33 = vld [vmem:[#allocation8 + $0x1c58] sm:$0xff] }
 0x61a   :  { %12112 = vmatpush1.bf16.msra.mxu0 %v13140_v41  ;;  %v13479_v41 = vcombine.high %v1686_v35, %v1710_v36  ;;  %v13718_v35 = vcombine.low %v1926_v26, %v1950_v44 }
 0x61b   :  { %12198 = vmatpush1.bf16.msra.mxu1 %v13142_v42  ;;  %12113 = vmatprep.subr.bf16.mxu0 %v13189_v43  ;;  %v1733_v42 = vld [vmem:[#allocation8 + $0x1410] sm:$0xff] }
 0x61c   :  { %12199 = vmatprep.subr.bf16.mxu1 %v13191_v46  ;;  %v1757_v43 = vld [vmem:[#allocation8 + $0x14d0] sm:$0xff]  ;;  %v1734_v46 = vld [vmem:[#allocation8 + $0x1418] sm:$0xff] }
 0x61d   :  { %v13525_v52 = vcombine.high %v1733_v42, %v1757_v43  ;;  %v13524_v63 = vcombine.low %v1733_v42, %v1757_v43  ;;  %v13526_v0 = vcombine.low %v1734_v46, %v1758_v47  ;;  %v2046_v42 = vld [vmem:[#allocation8 + $0x1dd8] sm:$0xff] }
 0x61e   :  { %12114 = vmatpush1.bf16.msra.mxu0 %v13188_v55  ;;  %v13527_v55 = vcombine.high %v1734_v46, %v1758_v47 }
 0x61f   :  { %12200 = vmatpush1.bf16.msra.mxu1 %v13190_v61  ;;  %12115 = vmatprep.subr.bf16.mxu0 %v13237_v58  ;;  %v1781_v61 = vld [vmem:[#allocation8 + $0x1590] sm:$0xff] }
 0x620   :  { %12201 = vmatprep.subr.bf16.mxu1 %v13239_v60  ;;  %v1805_v58 = vld [vmem:[#allocation8 + $0x1650] sm:$0xff]  ;;  %v1782_v60 = vld [vmem:[#allocation8 + $0x1598] sm:$0xff] }
 0x621   :  { %v13573_v1 = vcombine.high %v1781_v61, %v1805_v58  ;;  %v13572_v5 = vcombine.low %v1781_v61, %v1805_v58  ;;  %v13574_v6 = vcombine.low %v1782_v60, %v1806_v62  ;;  %v2094_v61 = vld [vmem:[#allocation8 + $0x1f58] sm:$0xff] }
 0x622   :  { %12116 = vmatpush1.bf16.msra.mxu0 %v13236_v2  ;;  %v13575_v2 = vcombine.high %v1782_v60, %v1806_v62 }
 0x623   :  { %12202 = vmatpush1.bf16.msra.mxu1 %v13238_v3  ;;  %12117 = vmatprep.subr.bf16.mxu0 %v13285_v7  ;;  %v1829_v3 = vld [vmem:[#allocation8 + $0x1710] sm:$0xff] }
 0x624   :  { %12203 = vmatprep.subr.bf16.mxu1 %v13287_v4  ;;  %v1853_v7 = vld [vmem:[#allocation8 + $0x17d0] sm:$0xff]  ;;  %v1830_v4 = vld [vmem:[#allocation8 + $0x1718] sm:$0xff] }
 0x625   :  { %v13621_v10 = vcombine.high %v1829_v3, %v1853_v7  ;;  %v13620_v19 = vcombine.low %v1829_v3, %v1853_v7  ;;  %v13622_v20 = vcombine.low %v1830_v4, %v1854_v13  ;;  %v2142_v3 = vld [vmem:[#allocation8 + $0x20d8] sm:$0xff] }
 0x626   :  { %12118 = vmatpush1.bf16.msra.mxu0 %v13284_v8  ;;  %v13623_v8 = vcombine.high %v1830_v4, %v1854_v13 }
 0x627   :  { %12204 = vmatpush1.bf16.msra.mxu1 %v13286_v9  ;;  %12119 = vmatprep.subr.bf16.mxu0 %v13333_v11  ;;  %v1877_v9 = vld [vmem:[#allocation8 + $0x1890] sm:$0xff] }
 0x628   :  { %12205 = vmatprep.subr.bf16.mxu1 %v13335_v12  ;;  %v1901_v11 = vld [vmem:[#allocation8 + $0x1950] sm:$0xff]  ;;  %v1878_v12 = vld [vmem:[#allocation8 + $0x1898] sm:$0xff] }
 0x629   :  { %v13669_v21 = vcombine.high %v1877_v9, %v1901_v11  ;;  %v13670_v27 = vcombine.low %v1878_v12, %v1902_v16 }
 0x62a   :  { %12120 = vmatpush1.bf16.msra.mxu0 %v13332_v22  ;;  %v13671_v22 = vcombine.high %v1878_v12, %v1902_v16  ;;  %v2756_v12 = vrot.slane %v15273_v38, %v15181_v56  ;;  %v2752_v16 = vrot.slane %v15273_v38, %v15184_v57 }
 0x62b   :  { %12206 = vmatpush1.bf16.msra.mxu1 %v13334_v23  ;;  %12121 = vmatprep.subr.bf16.mxu0 %v13381_v24  ;;  %v1925_v23 = vld [vmem:[#allocation8 + $0x1a10] sm:$0xff] }
 0x62c   :  { %12207 = vmatprep.subr.bf16.mxu1 %v13383_v25  ;;  %v1949_v24 = vld [vmem:[#allocation8 + $0x1ad0] sm:$0xff]  ;;  %v13668_v25 = vcombine.low %v1877_v9, %v1901_v11  ;;  %v2166_v9 = vld [vmem:[#allocation8 + $0x2198] sm:$0xff] }
 0x62d   :  { %v13717_v28 = vcombine.high %v1925_v23, %v1949_v24  ;;  %v13716_v34 = vcombine.low %v1925_v23, %v1949_v24  ;;  %v2190_v11 = vld [vmem:[#allocation8 + $0x2258] sm:$0xff] }
 0x62e   :  { %12122 = vmatpush1.bf16.msra.mxu0 %v13380_v29  ;;  %v1973_v29 = vld [vmem:[#allocation8 + $0x1b90] sm:$0xff]  ;;  %v13959_v24 = vcombine.high %v2166_v9, %v2190_v11 }
 0x62f   :  { %12208 = vmatpush1.bf16.msra.mxu1 %v13382_v30  ;;  %12123 = vmatprep.subr.bf16.mxu0 %v13429_v31  ;;  %v1997_v30 = vld [vmem:[#allocation8 + $0x1c50] sm:$0xff]  ;;  %v13719_v31 = vcombine.high %v1926_v26, %v1950_v44 }
 0x630   :  { %12209 = vmatprep.subr.bf16.mxu1 %v13431_v32  ;;  %v1974_v32 = vld [vmem:[#allocation8 + $0x1b98] sm:$0xff]  ;;  %v13765_v36 = vcombine.high %v1973_v29, %v1997_v30  ;;  %v13764_v43 = vcombine.low %v1973_v29, %v1997_v30  ;;  %v2237_v26 = vld [vmem:[#allocation8 + $0x23d0] sm:$0xff] }
 0x631   :  { %v13766_v46 = vcombine.low %v1974_v32, %v1998_v33  ;;  %v2214_v29 = vld [vmem:[#allocation8 + $0x2318] sm:$0xff] }
 0x632   :  { %12124 = vmatpush1.bf16.msra.mxu0 %v13428_v37  ;;  %v13767_v37 = vcombine.high %v1974_v32, %v1998_v33  ;;  %v2238_v30 = vld [vmem:[#allocation8 + $0x23d8] sm:$0xff] }
 0x633   :  { %12210 = vmatpush1.bf16.msra.mxu1 %v13430_v39  ;;  %12125 = vmatprep.subr.bf16.mxu0 %v13477_v40  ;;  %v2021_v39 = vld [vmem:[#allocation8 + $0x1d10] sm:$0xff] }
 0x634   :  { %12211 = vmatprep.subr.bf16.mxu1 %v13479_v41  ;;  %v2045_v40 = vld [vmem:[#allocation8 + $0x1dd0] sm:$0xff]  ;;  %v2022_v41 = vld [vmem:[#allocation8 + $0x1d18] sm:$0xff] }
 0x635   :  { %v13813_v47 = vcombine.high %v2021_v39, %v2045_v40  ;;  %v13812_v58 = vcombine.low %v2021_v39, %v2045_v40  ;;  %v13814_v60 = vcombine.low %v2022_v41, %v2046_v42 }
 0x636   :  { %12126 = vmatpush1.bf16.msra.mxu0 %v13476_v49  ;;  %v13815_v49 = vcombine.high %v2022_v41, %v2046_v42 }
 0x637   :  { %12212 = vmatpush1.bf16.msra.mxu1 %v13478_v51  ;;  %12127 = vmatprep.subr.bf16.mxu0 %v13525_v52  ;;  %v2069_v51 = vld [vmem:[#allocation8 + $0x1e90] sm:$0xff] }
 0x638   :  { %12213 = vmatprep.subr.bf16.mxu1 %v13527_v55  ;;  %v2093_v52 = vld [vmem:[#allocation8 + $0x1f50] sm:$0xff]  ;;  %v2070_v55 = vld [vmem:[#allocation8 + $0x1e98] sm:$0xff] }
 0x639   :  { %v13861_v62 = vcombine.high %v2069_v51, %v2093_v52  ;;  %v13860_v7 = vcombine.low %v2069_v51, %v2093_v52  ;;  %v13862_v4 = vcombine.low %v2070_v55, %v2094_v61  ;;  %v2285_v51 = vld [vmem:[#allocation8 + $0x2550] sm:$0xff] }
 0x63a   :  { %12128 = vmatpush1.bf16.msra.mxu0 %v13524_v63  ;;  %v13863_v63 = vcombine.high %v2070_v55, %v2094_v61  ;;  %v2262_v55 = vld [vmem:[#allocation8 + $0x2498] sm:$0xff] }
 0x63b   :  { %12214 = vmatpush1.bf16.msra.mxu1 %v13526_v0  ;;  %12129 = vmatprep.subr.bf16.mxu0 %v13573_v1  ;;  %v2117_v0 = vld [vmem:[#allocation8 + $0x2010] sm:$0xff]  ;;  %v2286_v61 = vld [vmem:[#allocation8 + $0x2558] sm:$0xff] }
 0x63c   :  { %12215 = vmatprep.subr.bf16.mxu1 %v13575_v2  ;;  %v2141_v1 = vld [vmem:[#allocation8 + $0x20d0] sm:$0xff]  ;;  %v2118_v2 = vld [vmem:[#allocation8 + $0x2018] sm:$0xff] }
 0x63d   :  { %v13909_v13 = vcombine.high %v2117_v0, %v2141_v1 }
 0x63e   :  { %12130 = vmatpush1.bf16.msra.mxu0 %v13572_v5  ;;  %v13911_v5 = vcombine.high %v2118_v2, %v2142_v3 }
 0x63f   :  { %12216 = vmatpush1.bf16.msra.mxu1 %v13574_v6  ;;  %12131 = vmatprep.subr.bf16.mxu0 %v13621_v10  ;;  %v2165_v6 = vld [vmem:[#allocation8 + $0x2190] sm:$0xff] }
 0x640   :  { %12217 = vmatprep.subr.bf16.mxu1 %v13623_v8  ;;  %v2189_v10 = vld [vmem:[#allocation8 + $0x2250] sm:$0xff]  ;;  %v2748_v8 = vrot.slane %v15273_v38, %v15178_v50 }
 0x642   :  { %12132 = vmatpush1.bf16.msra.mxu0 %v13620_v19  ;;  %v13908_v19 = vcombine.low %v2117_v0, %v2141_v1  ;;  %v2309_v0 = vld [vmem:[#allocation8 + $0x2610] sm:$0xff] }
 0x643   :  { %12218 = vmatpush1.bf16.msra.mxu1 %v13622_v20  ;;  %12144 = vmatprep.subr.bf16.mxu0 %v13669_v21  ;;  %v2760_v20 = vrot.slane %v15273_v38, %v15187_v59  ;;  %v13910_v21 = vcombine.low %v2118_v2, %v2142_v3  ;;  %v13958_v38 = vcombine.low %v2166_v9, %v2190_v11  ;;  %v2333_v1 = vld [vmem:[#allocation8 + $0x26d0] sm:$0xff]  ;;  %v2310_v2 = vld [vmem:[#allocation8 + $0x2618] sm:$0xff] }
 0x644   :  { %12230 = vmatprep.subr.bf16.mxu1 %v13671_v22  ;;  %v13957_v22 = vcombine.high %v2165_v6, %v2189_v10  ;;  %v2334_v3 = vld [vmem:[#allocation8 + $0x26d8] sm:$0xff]  ;;  %v14100_v11 = vcombine.low %v2309_v0, %v2333_v1 }
 0x645   :  { %12134 = vmatmul.mubr.bf16.vlgmr.msra.gmra.mrb[40].mxu0 %v15123_v45  ;;  %v2382_v9 = vld [vmem:[#allocation8 + $0x2858] sm:$0xff] }
 0x646   :  { %12220 = vmatmul.mubr.bf16.vlgmr.msra.gmra.mrb[40].mxu1 %v15123_v45  ;;  %12145 = vmatpush1.bf16.msra.mxu0 %v13668_v25  ;;  %v2213_v25 = vld [vmem:[#allocation8 + $0x2310] sm:$0xff] }
 0x647   :  { %12176 = vmatprep.mubr.bf16.mxu0 %v15129_v54  ;;  %12231 = vmatpush1.bf16.msra.mxu1 %v13670_v27  ;;  %v14005_v41 = vcombine.high %v2213_v25, %v2237_v26 }
 0x648   :  { %12262 = vmatprep.mubr.bf16.mxu1 %v15129_v54  ;;  %12146 = vmatprep.subr.bf16.mxu0 %v13717_v28 }
 0x649   :  { %12232 = vmatprep.subr.bf16.mxu1 %v13719_v31 }
 0x64a   :  { %12147 = vmatpush1.bf16.msra.mxu0 %v13716_v34 }
 0x64b   :  { %12233 = vmatpush1.bf16.msra.mxu1 %v13718_v35  ;;  %12148 = vmatprep.subr.bf16.mxu0 %v13765_v36  ;;  %v13956_v35 = vcombine.low %v2165_v6, %v2189_v10  ;;  %v2357_v6 = vld [vmem:[#allocation8 + $0x2790] sm:$0xff] }
 0x64c   :  { %12234 = vmatprep.subr.bf16.mxu1 %v13767_v37  ;;  %v2381_v10 = vld [vmem:[#allocation8 + $0x2850] sm:$0xff] }
 0x64e   :  { %12149 = vmatpush1.bf16.msra.mxu0 %v13764_v43 }
 0x64f   :  { %12235 = vmatpush1.bf16.msra.mxu1 %v13766_v46  ;;  %12150 = vmatprep.subr.bf16.mxu0 %v13813_v47  ;;  %v14007_v47 = vcombine.high %v2214_v29, %v2238_v30 }
 0x650   :  { %12236 = vmatprep.subr.bf16.mxu1 %v13815_v49  ;;  %v2261_v49 = vld [vmem:[#allocation8 + $0x2490] sm:$0xff] }
 0x652   :  { %12151 = vmatpush1.bf16.msra.mxu0 %v13812_v58  ;;  %v14004_v58 = vcombine.low %v2213_v25, %v2237_v26 }
 0x653   :  { %12237 = vmatpush1.bf16.msra.mxu1 %v13814_v60  ;;  %12152 = vmatprep.subr.bf16.mxu0 %v13861_v62  ;;  %v14006_v60 = vcombine.low %v2214_v29, %v2238_v30  ;;  %v14053_v62 = vcombine.high %v2261_v49, %v2285_v51  ;;  %v2454_v29 = vld [vmem:[#allocation8 + $0x2a98] sm:$0xff] }
 0x654   :  { %12238 = vmatprep.subr.bf16.mxu1 %v13863_v63  ;;  %v14055_v63 = vcombine.high %v2262_v55, %v2286_v61  ;;  %v2478_v30 = vld [vmem:[#allocation8 + $0x2b58] sm:$0xff] }
 0x656   :  { %12153 = vmatpush1.bf16.msra.mxu0 %v13860_v7  ;;  %v14052_v7 = vcombine.low %v2261_v49, %v2285_v51  ;;  %v2574_v49 = vld [vmem:[#allocation8 + $0x2e58] sm:$0xff] }
 0x657   :  { %12239 = vmatpush1.bf16.msra.mxu1 %v13862_v4  ;;  %12154 = vmatprep.subr.bf16.mxu0 %v13909_v13  ;;  %v14054_v4 = vcombine.low %v2262_v55, %v2286_v61  ;;  %v14101_v13 = vcombine.high %v2309_v0, %v2333_v1 }
 0x658   :  { %v11834_v23 = vpop.f32.mrb[32].mxu0  ;;  %12240 = vmatprep.subr.bf16.mxu1 %v13911_v5  ;;  %v14103_v5 = vcombine.high %v2310_v2, %v2334_v3 }
 0x659   :  { %v14464_v44 = vadd.f32 %v11834_v23, %v2748_v8  ;;  %v11920_v27 = vpop.f32.mrb[32].mxu1  ;;  %v11836_v28 = vpop.f32.mrb[33].mxu0  ;;  %v2430_v23 = vld [vmem:[#allocation8 + $0x29d8] sm:$0xff] }
 0x65a   :  { %v14468_v31 = vadd.f32 %v11920_v27, %v2756_v12  ;;  %v14465_v32 = vadd.f32 %v11836_v28, %v2752_v16  ;;  %v11922_v33 = vpop.f32.mrb[33].mxu1  ;;  %v11838_v34 = vpop.f32.mrb[34].mxu0  ;;  %12155 = vmatpush1.bf16.msra.mxu0 %v13908_v19  ;;  %v2453_v27 = vld [vmem:[#allocation8 + $0x2a90] sm:$0xff] }
 0x65b   :  { %12645 = vst [vmem:[#allocation11 + $0xe0] sm:$0xff] %v14464_v44  ;;  %v14469_v36 = vadd.f32 %v11922_v33, %v2760_v20  ;;  %v14466_v37 = vadd.f32 %v11838_v34, %v2748_v8  ;;  %v11924_v39 = vpop.f32.mrb[34].mxu1  ;;  %12241 = vmatpush1.bf16.msra.mxu1 %v13910_v21  ;;  %v11840_v40 = vpop.f32.mrb[35].mxu0  ;;  %12156 = vmatprep.subr.bf16.mxu0 %v13957_v22  ;;  %v2358_v8 = vld [vmem:[#allocation8 + $0x2798] sm:$0xff]  ;;  %v2429_v21 = vld [vmem:[#allocation8 + $0x29d0] sm:$0xff] }
 0x65c   :  { %12647 = vst [vmem:[#allocation11 + $0xf0] sm:$0xff] %v14468_v31  ;;  %12646 = vst [vmem:[#allocation11 + $0xe8] sm:$0xff] %v14465_v32  ;;  %v14470_v42 = vadd.f32 %v11924_v39, %v2756_v12  ;;  %v14467_v43 = vadd.f32 %v11840_v40, %v2752_v16  ;;  %v11926_v46 = vpop.f32.mrb[35].mxu1  ;;  %12242 = vmatprep.subr.bf16.mxu1 %v13959_v24  ;;  %v14102_v12 = vcombine.low %v2310_v2, %v2334_v3  ;;  %v2406_v22 = vld [vmem:[#allocation8 + $0x2918] sm:$0xff]  ;;  %v2477_v28 = vld [vmem:[#allocation8 + $0x2b50] sm:$0xff] }
 0x65d   :  { %12648 = vst [vmem:[#allocation11 + $0xf8] sm:$0xff] %v14469_v36  ;;  %12693 = vst [vmem:[#allocation11 + $0x260] sm:$0xff] %v14466_v37  ;;  %v14471_v52 = vadd.f32 %v11926_v46, %v2760_v20  ;;  %v14149_v16 = vcombine.high %v2357_v6, %v2381_v10  ;;  %v14151_v19 = vcombine.high %v2358_v8, %v2382_v9  ;;  %v2405_v20 = vld [vmem:[#allocation8 + $0x2910] sm:$0xff]  ;;  %v2502_v36 = vld [vmem:[#allocation8 + $0x2c18] sm:$0xff] }
 0x65e   :  { %12695 = vst [vmem:[#allocation11 + $0x270] sm:$0xff] %v14470_v42  ;;  %12694 = vst [vmem:[#allocation11 + $0x268] sm:$0xff] %v14467_v43  ;;  %12157 = vmatpush1.bf16.msra.mxu0 %v13956_v35  ;;  %v14148_v24 = vcombine.low %v2357_v6, %v2381_v10  ;;  %v14150_v25 = vcombine.low %v2358_v8, %v2382_v9  ;;  %v14197_v26 = vcombine.high %v2405_v20, %v2429_v21  ;;  %v2501_v35 = vld [vmem:[#allocation8 + $0x2c10] sm:$0xff]  ;;  %v2526_v37 = vld [vmem:[#allocation8 + $0x2cd8] sm:$0xff] }
 0x65f   :  { %12696 = vst [vmem:[#allocation11 + $0x278] sm:$0xff] %v14471_v52  ;;  %12243 = vmatpush1.bf16.msra.mxu1 %v13958_v38  ;;  %12158 = vmatprep.subr.bf16.mxu0 %v14005_v41  ;;  %v14199_v44 = vcombine.high %v2406_v22, %v2430_v23  ;;  %v14196_v31 = vcombine.low %v2405_v20, %v2429_v21  ;;  %v2525_v38 = vld [vmem:[#allocation8 + $0x2cd0] sm:$0xff]  ;;  %v1184_v20 = vld [vmem:[#allocation8 + $0x2e8] sm:$0xff] }
 0x660   :  { %12244 = vmatprep.subr.bf16.mxu1 %v14007_v47  ;;  %v14198_v32 = vcombine.low %v2406_v22, %v2430_v23  ;;  %v14245_v33 = vcombine.high %v2453_v27, %v2477_v28  ;;  %v14247_v34 = vcombine.high %v2454_v29, %v2478_v30  ;;  %v14244_v39 = vcombine.low %v2453_v27, %v2477_v28  ;;  %v2549_v43 = vld [vmem:[#allocation8 + $0x2d90] sm:$0xff]  ;;  %v2550_v47 = vld [vmem:[#allocation8 + $0x2d98] sm:$0xff]  ;;  %v1207_v23 = vld [vmem:[#allocation8 + $0x3a0] sm:$0xff] }
 0x661   :  { %v14246_v40 = vcombine.low %v2454_v29, %v2478_v30  ;;  %v14293_v41 = vcombine.high %v2501_v35, %v2525_v38  ;;  %v14295_v42 = vcombine.high %v2502_v36, %v2526_v37  ;;  %v2573_v46 = vld [vmem:[#allocation8 + $0x2e50] sm:$0xff]  ;;  %v14292_v51 = vcombine.low %v2501_v35, %v2525_v38 }
 0x662   :  { %12159 = vmatpush1.bf16.msra.mxu0 %v14004_v58  ;;  %v14294_v52 = vcombine.low %v2502_v36, %v2526_v37  ;;  %v14341_v55 = vcombine.high %v2549_v43, %v2573_v46  ;;  %v14343_v61 = vcombine.high %v2550_v47, %v2574_v49  ;;  %v2597_v58 = vld [vmem:[#allocation8 + $0x2f10] sm:$0xff]  ;;  %v14340_v0 = vcombine.low %v2549_v43, %v2573_v46 }
 0x663   :  { %12245 = vmatpush1.bf16.msra.mxu1 %v14006_v60  ;;  %12160 = vmatprep.subr.bf16.mxu0 %v14053_v62  ;;  %v2621_v60 = vld [vmem:[#allocation8 + $0x2fd0] sm:$0xff]  ;;  %v2598_v62 = vld [vmem:[#allocation8 + $0x2f18] sm:$0xff]  ;;  %v14342_v1 = vcombine.low %v2550_v47, %v2574_v49 }
 0x664   :  { %12246 = vmatprep.subr.bf16.mxu1 %v14055_v63  ;;  %v2622_v63 = vld [vmem:[#allocation8 + $0x2fd8] sm:$0xff]  ;;  %v14389_v2 = vcombine.high %v2597_v58, %v2621_v60  ;;  %v14388_v6 = vcombine.low %v2597_v58, %v2621_v60 }
 0x665   :  { %v14391_v3 = vcombine.high %v2598_v62, %v2622_v63  ;;  %v14390_v10 = vcombine.low %v2598_v62, %v2622_v63 }
 0x666   :  { %12161 = vmatpush1.bf16.msra.mxu0 %v14052_v7  ;;  %v1111_v7 = vld [vmem:[#allocation8 + $0xa0] sm:$0xff] }
 0x667   :  { %12247 = vmatpush1.bf16.msra.mxu1 %v14054_v4  ;;  %12162 = vmatprep.subr.bf16.mxu0 %v14101_v13  ;;  %v1135_v4 = vld [vmem:[#allocation8 + $0x160] sm:$0xff]  ;;  %v1112_v13 = vld [vmem:[#allocation8 + $0xa8] sm:$0xff] }
 0x668   :  { %12248 = vmatprep.subr.bf16.mxu1 %v14103_v5  ;;  %v1136_v5 = vld [vmem:[#allocation8 + $0x168] sm:$0xff]  ;;  %v12905_v8 = vcombine.high %v1111_v7, %v1135_v4 }
 0x669   :  { %v12907_v9 = vcombine.high %v1112_v13, %v1136_v5  ;;  %v12906_v21 = vcombine.low %v1112_v13, %v1136_v5 }
 0x66a   :  { %12163 = vmatpush1.bf16.msra.mxu0 %v14100_v11  ;;  %v1159_v11 = vld [vmem:[#allocation8 + $0x220] sm:$0xff] }
 0x66b   :  { %12249 = vmatpush1.bf16.msra.mxu1 %v14102_v12  ;;  %12164 = vmatprep.subr.bf16.mxu0 %v14149_v16  ;;  %v1183_v12 = vld [vmem:[#allocation8 + $0x2e0] sm:$0xff]  ;;  %v12904_v16 = vcombine.low %v1111_v7, %v1135_v4 }
 0x66c   :  { %12250 = vmatprep.subr.bf16.mxu1 %v14151_v19  ;;  %v1160_v19 = vld [vmem:[#allocation8 + $0x228] sm:$0xff]  ;;  %v12953_v22 = vcombine.high %v1159_v11, %v1183_v12  ;;  %v12952_v27 = vcombine.low %v1159_v11, %v1183_v12 }
 0x66d   :  { %v12954_v28 = vcombine.low %v1160_v19, %v1184_v20 }
 0x66e   :  { %12165 = vmatpush1.bf16.msra.mxu0 %v14148_v24  ;;  %v1231_v24 = vld [vmem:[#allocation8 + $0x460] sm:$0xff] }
 0x66f   :  { %12251 = vmatpush1.bf16.msra.mxu1 %v14150_v25  ;;  %12166 = vmatprep.subr.bf16.mxu0 %v14197_v26  ;;  %v12955_v25 = vcombine.high %v1160_v19, %v1184_v20  ;;  %v1208_v26 = vld [vmem:[#allocation8 + $0x3a8] sm:$0xff]  ;;  %v13001_v29 = vcombine.high %v1207_v23, %v1231_v24  ;;  %v13000_v35 = vcombine.low %v1207_v23, %v1231_v24  ;;  %v1495_v20 = vld [vmem:[#allocation8 + $0xca0] sm:$0xff] }
 0x670   :  { %12252 = vmatprep.subr.bf16.mxu1 %v14199_v44  ;;  %v1232_v44 = vld [vmem:[#allocation8 + $0x468] sm:$0xff] }
 0x671   :  { %v13003_v30 = vcombine.high %v1208_v26, %v1232_v44  ;;  %v13002_v38 = vcombine.low %v1208_v26, %v1232_v44  ;;  %v1520_v23 = vld [vmem:[#allocation8 + $0xd68] sm:$0xff] }
 0x672   :  { %12167 = vmatpush1.bf16.msra.mxu0 %v14196_v31  ;;  %v1255_v31 = vld [vmem:[#allocation8 + $0x520] sm:$0xff] }
 0x673   :  { %12253 = vmatpush1.bf16.msra.mxu1 %v14198_v32  ;;  %12168 = vmatprep.subr.bf16.mxu0 %v14245_v33  ;;  %v1279_v32 = vld [vmem:[#allocation8 + $0x5e0] sm:$0xff]  ;;  %v1256_v33 = vld [vmem:[#allocation8 + $0x528] sm:$0xff] }
 0x674   :  { %12254 = vmatprep.subr.bf16.mxu1 %v14247_v34  ;;  %v1280_v34 = vld [vmem:[#allocation8 + $0x5e8] sm:$0xff]  ;;  %v13049_v36 = vcombine.high %v1255_v31, %v1279_v32  ;;  %v13048_v43 = vcombine.low %v1255_v31, %v1279_v32 }
 0x675   :  { %v13051_v37 = vcombine.high %v1256_v33, %v1280_v34  ;;  %v13050_v46 = vcombine.low %v1256_v33, %v1280_v34 }
 0x676   :  { %12169 = vmatpush1.bf16.msra.mxu0 %v14244_v39  ;;  %v1303_v39 = vld [vmem:[#allocation8 + $0x6a0] sm:$0xff] }
 0x677   :  { %12255 = vmatpush1.bf16.msra.mxu1 %v14246_v40  ;;  %12170 = vmatprep.subr.bf16.mxu0 %v14293_v41  ;;  %v1327_v40 = vld [vmem:[#allocation8 + $0x760] sm:$0xff]  ;;  %v1304_v41 = vld [vmem:[#allocation8 + $0x6a8] sm:$0xff] }
 0x678   :  { %12256 = vmatprep.subr.bf16.mxu1 %v14295_v42  ;;  %v1328_v42 = vld [vmem:[#allocation8 + $0x768] sm:$0xff]  ;;  %v13097_v47 = vcombine.high %v1303_v39, %v1327_v40  ;;  %v13096_v58 = vcombine.low %v1303_v39, %v1327_v40 }
 0x679   :  { %v13099_v49 = vcombine.high %v1304_v41, %v1328_v42  ;;  %v13098_v60 = vcombine.low %v1304_v41, %v1328_v42 }
 0x67a   :  { %12171 = vmatpush1.bf16.msra.mxu0 %v14292_v51  ;;  %v1351_v51 = vld [vmem:[#allocation8 + $0x820] sm:$0xff] }
 0x67b   :  { %12257 = vmatpush1.bf16.msra.mxu1 %v14294_v52  ;;  %12172 = vmatprep.subr.bf16.mxu0 %v14341_v55  ;;  %v1375_v52 = vld [vmem:[#allocation8 + $0x8e0] sm:$0xff]  ;;  %v1352_v55 = vld [vmem:[#allocation8 + $0x828] sm:$0xff] }
 0x67c   :  { %12258 = vmatprep.subr.bf16.mxu1 %v14343_v61  ;;  %v1376_v61 = vld [vmem:[#allocation8 + $0x8e8] sm:$0xff]  ;;  %v13145_v62 = vcombine.high %v1351_v51, %v1375_v52  ;;  %v13144_v7 = vcombine.low %v1351_v51, %v1375_v52 }
 0x67d   :  { %v13147_v63 = vcombine.high %v1352_v55, %v1376_v61  ;;  %v13146_v4 = vcombine.low %v1352_v55, %v1376_v61 }
 0x67e   :  { %12173 = vmatpush1.bf16.msra.mxu0 %v14340_v0  ;;  %v1399_v0 = vld [vmem:[#allocation8 + $0x9a0] sm:$0xff] }
 0x67f   :  { %12259 = vmatpush1.bf16.msra.mxu1 %v14342_v1  ;;  %12174 = vmatprep.subr.bf16.mxu0 %v14389_v2  ;;  %v1423_v1 = vld [vmem:[#allocation8 + $0xa60] sm:$0xff]  ;;  %v1400_v2 = vld [vmem:[#allocation8 + $0x9a8] sm:$0xff] }
 0x680   :  { %12260 = vmatprep.subr.bf16.mxu1 %v14391_v3  ;;  %v1424_v3 = vld [vmem:[#allocation8 + $0xa68] sm:$0xff]  ;;  %v13193_v13 = vcombine.high %v1399_v0, %v1423_v1  ;;  %v13192_v11 = vcombine.low %v1399_v0, %v1423_v1 }
 0x681   :  { %v13195_v5 = vcombine.high %v1400_v2, %v1424_v3  ;;  %v13194_v12 = vcombine.low %v1400_v2, %v1424_v3 }
 0x682   :  { %12175 = vmatpush1.bf16.msra.mxu0 %v14388_v6  ;;  %v1447_v6 = vld [vmem:[#allocation8 + $0xb20] sm:$0xff] }
 0x683   :  { %12261 = vmatpush1.bf16.msra.mxu1 %v14390_v10  ;;  %12273 = vmatprep.subr.bf16.mxu0 %v12905_v8  ;;  %v1471_v10 = vld [vmem:[#allocation8 + $0xbe0] sm:$0xff]  ;;  %v1448_v8 = vld [vmem:[#allocation8 + $0xb28] sm:$0xff] }
 0x684   :  { %12359 = vmatprep.subr.bf16.mxu1 %v12907_v9  ;;  %v1472_v9 = vld [vmem:[#allocation8 + $0xbe8] sm:$0xff]  ;;  %v13240_v24 = vcombine.low %v1447_v6, %v1471_v10 }
 0x685   :  { %12177 = vmatmul.mubr.bf16.vlgmr.msra.gmra.mrb[40].mxu0 %v15125_v48  ;;  %v13243_v19 = vcombine.high %v1448_v8, %v1472_v9 }
 0x686   :  { %12263 = vmatmul.mubr.bf16.vlgmr.msra.gmra.mrb[40].mxu1 %v15125_v48  ;;  %12274 = vmatpush1.bf16.msra.mxu0 %v12904_v16  ;;  %v13241_v16 = vcombine.high %v1447_v6, %v1471_v10 }
 0x687   :  { %12305 = vmatprep.mubr.bf16.mxu0 %v15127_v53  ;;  %12360 = vmatpush1.bf16.msra.mxu1 %v12906_v21  ;;  %v1519_v21 = vld [vmem:[#allocation8 + $0xd60] sm:$0xff] }
 0x688   :  { %12391 = vmatprep.mubr.bf16.mxu1 %v15127_v53  ;;  %12275 = vmatprep.subr.bf16.mxu0 %v12953_v22  ;;  %v1496_v22 = vld [vmem:[#allocation8 + $0xca8] sm:$0xff]  ;;  %v13289_v26 = vcombine.high %v1495_v20, %v1519_v21  ;;  %v13288_v31 = vcombine.low %v1495_v20, %v1519_v21 }
 0x689   :  { %12361 = vmatprep.subr.bf16.mxu1 %v12955_v25  ;;  %v13242_v25 = vcombine.low %v1448_v8, %v1472_v9  ;;  %v13291_v44 = vcombine.high %v1496_v22, %v1520_v23  ;;  %v13290_v32 = vcombine.low %v1496_v22, %v1520_v23 }
 0x68a   :  { %12276 = vmatpush1.bf16.msra.mxu0 %v12952_v27  ;;  %v1543_v27 = vld [vmem:[#allocation8 + $0xe20] sm:$0xff] }
 0x68b   :  { %12362 = vmatpush1.bf16.msra.mxu1 %v12954_v28  ;;  %12277 = vmatprep.subr.bf16.mxu0 %v13001_v29  ;;  %v1567_v28 = vld [vmem:[#allocation8 + $0xee0] sm:$0xff]  ;;  %v1544_v29 = vld [vmem:[#allocation8 + $0xe28] sm:$0xff] }
 0x68c   :  { %12363 = vmatprep.subr.bf16.mxu1 %v13003_v30  ;;  %v1568_v30 = vld [vmem:[#allocation8 + $0xee8] sm:$0xff]  ;;  %v13337_v33 = vcombine.high %v1543_v27, %v1567_v28  ;;  %v13336_v39 = vcombine.low %v1543_v27, %v1567_v28 }
 0x68d   :  { %v13339_v34 = vcombine.high %v1544_v29, %v1568_v30  ;;  %v13338_v40 = vcombine.low %v1544_v29, %v1568_v30 }
 0x68e   :  { %12278 = vmatpush1.bf16.msra.mxu0 %v13000_v35  ;;  %v1591_v35 = vld [vmem:[#allocation8 + $0xfa0] sm:$0xff] }
 0x68f   :  { %12364 = vmatpush1.bf16.msra.mxu1 %v13002_v38  ;;  %12279 = vmatprep.subr.bf16.mxu0 %v13049_v36  ;;  %v1615_v38 = vld [vmem:[#allocation8 + $0x1060] sm:$0xff]  ;;  %v1592_v36 = vld [vmem:[#allocation8 + $0xfa8] sm:$0xff] }
 0x690   :  { %12365 = vmatprep.subr.bf16.mxu1 %v13051_v37  ;;  %v1616_v37 = vld [vmem:[#allocation8 + $0x1068] sm:$0xff]  ;;  %v13385_v41 = vcombine.high %v1591_v35, %v1615_v38  ;;  %v13384_v51 = vcombine.low %v1591_v35, %v1615_v38 }
 0x691   :  { %v13387_v42 = vcombine.high %v1592_v36, %v1616_v37  ;;  %v13386_v52 = vcombine.low %v1592_v36, %v1616_v37 }
 0x692   :  { %12280 = vmatpush1.bf16.msra.mxu0 %v13048_v43  ;;  %v1639_v43 = vld [vmem:[#allocation8 + $0x1120] sm:$0xff] }
 0x693   :  { %12366 = vmatpush1.bf16.msra.mxu1 %v13050_v46  ;;  %12281 = vmatprep.subr.bf16.mxu0 %v13097_v47  ;;  %v1663_v46 = vld [vmem:[#allocation8 + $0x11e0] sm:$0xff]  ;;  %v1640_v47 = vld [vmem:[#allocation8 + $0x1128] sm:$0xff] }
 0x694   :  { %12367 = vmatprep.subr.bf16.mxu1 %v13099_v49  ;;  %v1664_v49 = vld [vmem:[#allocation8 + $0x11e8] sm:$0xff]  ;;  %v13433_v55 = vcombine.high %v1639_v43, %v1663_v46  ;;  %v13432_v0 = vcombine.low %v1639_v43, %v1663_v46 }
 0x695   :  { %v13435_v61 = vcombine.high %v1640_v47, %v1664_v49  ;;  %v13434_v1 = vcombine.low %v1640_v47, %v1664_v49  ;;  %v1952_v43 = vld [vmem:[#allocation8 + $0x1ae8] sm:$0xff]  ;;  %v1975_v49 = vld [vmem:[#allocation8 + $0x1ba0] sm:$0xff] }
 0x696   :  { %12282 = vmatpush1.bf16.msra.mxu0 %v13096_v58  ;;  %v1687_v58 = vld [vmem:[#allocation8 + $0x12a0] sm:$0xff] }
 0x697   :  { %12368 = vmatpush1.bf16.msra.mxu1 %v13098_v60  ;;  %12283 = vmatprep.subr.bf16.mxu0 %v13145_v62  ;;  %v1711_v60 = vld [vmem:[#allocation8 + $0x1360] sm:$0xff]  ;;  %v1688_v62 = vld [vmem:[#allocation8 + $0x12a8] sm:$0xff] }
 0x698   :  { %12369 = vmatprep.subr.bf16.mxu1 %v13147_v63  ;;  %v1712_v63 = vld [vmem:[#allocation8 + $0x1368] sm:$0xff]  ;;  %v13481_v2 = vcombine.high %v1687_v58, %v1711_v60  ;;  %v13480_v6 = vcombine.low %v1687_v58, %v1711_v60 }
 0x699   :  { %v13483_v3 = vcombine.high %v1688_v62, %v1712_v63  ;;  %v13482_v10 = vcombine.low %v1688_v62, %v1712_v63 }
 0x69a   :  { %12284 = vmatpush1.bf16.msra.mxu0 %v13144_v7  ;;  %v1735_v7 = vld [vmem:[#allocation8 + $0x1420] sm:$0xff] }
 0x69b   :  { %12370 = vmatpush1.bf16.msra.mxu1 %v13146_v4  ;;  %12285 = vmatprep.subr.bf16.mxu0 %v13193_v13  ;;  %v1759_v4 = vld [vmem:[#allocation8 + $0x14e0] sm:$0xff]  ;;  %v1736_v13 = vld [vmem:[#allocation8 + $0x1428] sm:$0xff] }
 0x69c   :  { %12371 = vmatprep.subr.bf16.mxu1 %v13195_v5  ;;  %v1760_v5 = vld [vmem:[#allocation8 + $0x14e8] sm:$0xff]  ;;  %v13529_v8 = vcombine.high %v1735_v7, %v1759_v4  ;;  %v13528_v20 = vcombine.low %v1735_v7, %v1759_v4 }
 0x69d   :  { %v13531_v9 = vcombine.high %v1736_v13, %v1760_v5  ;;  %v13530_v21 = vcombine.low %v1736_v13, %v1760_v5 }
 0x69e   :  { %12286 = vmatpush1.bf16.msra.mxu0 %v13192_v11  ;;  %v1783_v11 = vld [vmem:[#allocation8 + $0x15a0] sm:$0xff] }
 0x69f   :  { %12372 = vmatpush1.bf16.msra.mxu1 %v13194_v12  ;;  %12287 = vmatprep.subr.bf16.mxu0 %v13241_v16  ;;  %v1807_v12 = vld [vmem:[#allocation8 + $0x1660] sm:$0xff]  ;;  %v1784_v16 = vld [vmem:[#allocation8 + $0x15a8] sm:$0xff] }
 0x6a0   :  { %12373 = vmatprep.subr.bf16.mxu1 %v13243_v19  ;;  %v1808_v19 = vld [vmem:[#allocation8 + $0x1668] sm:$0xff]  ;;  %v13577_v22 = vcombine.high %v1783_v11, %v1807_v12  ;;  %v13576_v27 = vcombine.low %v1783_v11, %v1807_v12 }
 0x6a1   :  { %v13579_v23 = vcombine.high %v1784_v16, %v1808_v19  ;;  %v13578_v28 = vcombine.low %v1784_v16, %v1808_v19 }
 0x6a2   :  { %12288 = vmatpush1.bf16.msra.mxu0 %v13240_v24  ;;  %v1831_v24 = vld [vmem:[#allocation8 + $0x1720] sm:$0xff] }
 0x6a3   :  { %12374 = vmatpush1.bf16.msra.mxu1 %v13242_v25  ;;  %12289 = vmatprep.subr.bf16.mxu0 %v13289_v26  ;;  %v1855_v25 = vld [vmem:[#allocation8 + $0x17e0] sm:$0xff]  ;;  %v1832_v26 = vld [vmem:[#allocation8 + $0x1728] sm:$0xff] }
 0x6a4   :  { %12375 = vmatprep.subr.bf16.mxu1 %v13291_v44  ;;  %v1856_v44 = vld [vmem:[#allocation8 + $0x17e8] sm:$0xff]  ;;  %v13625_v29 = vcombine.high %v1831_v24, %v1855_v25  ;;  %v13624_v35 = vcombine.low %v1831_v24, %v1855_v25  ;;  %v15307_v25 = vld [vmem:[#allocation10 + $0x20] sm:$0xff] }
 0x6a5   :  { %v13627_v30 = vcombine.high %v1832_v26, %v1856_v44  ;;  %v13626_v38 = vcombine.low %v1832_v26, %v1856_v44 }
 0x6a6   :  { %12290 = vmatpush1.bf16.msra.mxu0 %v13288_v31  ;;  %v1879_v31 = vld [vmem:[#allocation8 + $0x18a0] sm:$0xff] }
 0x6a7   :  { %12376 = vmatpush1.bf16.msra.mxu1 %v13290_v32  ;;  %12291 = vmatprep.subr.bf16.mxu0 %v13337_v33  ;;  %v1903_v32 = vld [vmem:[#allocation8 + $0x1960] sm:$0xff]  ;;  %v1880_v33 = vld [vmem:[#allocation8 + $0x18a8] sm:$0xff] }
 0x6a8   :  { %12377 = vmatprep.subr.bf16.mxu1 %v13339_v34  ;;  %v1904_v34 = vld [vmem:[#allocation8 + $0x1968] sm:$0xff]  ;;  %v13673_v36 = vcombine.high %v1879_v31, %v1903_v32 }
 0x6a9   :  { %v13675_v37 = vcombine.high %v1880_v33, %v1904_v34  ;;  %v13674_v46 = vcombine.low %v1880_v33, %v1904_v34  ;;  %v2772_v33 = vrot.slane %v15307_v25, %v15111_v15  ;;  %v2768_v34 = vrot.slane %v15307_v25, %v15114_v17 }
 0x6aa   :  { %12292 = vmatpush1.bf16.msra.mxu0 %v13336_v39  ;;  %v1927_v39 = vld [vmem:[#allocation8 + $0x1a20] sm:$0xff] }
 0x6ab   :  { %12378 = vmatpush1.bf16.msra.mxu1 %v13338_v40  ;;  %12293 = vmatprep.subr.bf16.mxu0 %v13385_v41  ;;  %v1951_v40 = vld [vmem:[#allocation8 + $0x1ae0] sm:$0xff]  ;;  %v13672_v41 = vcombine.low %v1879_v31, %v1903_v32  ;;  %v2168_v31 = vld [vmem:[#allocation8 + $0x21a8] sm:$0xff] }
 0x6ac   :  { %12379 = vmatprep.subr.bf16.mxu1 %v13387_v42  ;;  %v1928_v42 = vld [vmem:[#allocation8 + $0x1a28] sm:$0xff]  ;;  %v13721_v47 = vcombine.high %v1927_v39, %v1951_v40  ;;  %v13720_v58 = vcombine.low %v1927_v39, %v1951_v40 }
 0x6ad   :  { %v13722_v60 = vcombine.low %v1928_v42, %v1952_v43  ;;  %v2192_v32 = vld [vmem:[#allocation8 + $0x2268] sm:$0xff] }
 0x6ae   :  { %12294 = vmatpush1.bf16.msra.mxu0 %v13384_v51  ;;  %v1999_v51 = vld [vmem:[#allocation8 + $0x1c60] sm:$0xff]  ;;  %v13963_v40 = vcombine.high %v2168_v31, %v2192_v32 }
 0x6af   :  { %12380 = vmatpush1.bf16.msra.mxu1 %v13386_v52  ;;  %12295 = vmatprep.subr.bf16.mxu0 %v13433_v55  ;;  %v13723_v52 = vcombine.high %v1928_v42, %v1952_v43  ;;  %v1976_v55 = vld [vmem:[#allocation8 + $0x1ba8] sm:$0xff]  ;;  %v13769_v62 = vcombine.high %v1975_v49, %v1999_v51  ;;  %v13768_v7 = vcombine.low %v1975_v49, %v1999_v51  ;;  %v2239_v42 = vld [vmem:[#allocation8 + $0x23e0] sm:$0xff] }
 0x6b0   :  { %12381 = vmatprep.subr.bf16.mxu1 %v13435_v61  ;;  %v2000_v61 = vld [vmem:[#allocation8 + $0x1c68] sm:$0xff] }
 0x6b1   :  { %v13771_v63 = vcombine.high %v1976_v55, %v2000_v61  ;;  %v13770_v4 = vcombine.low %v1976_v55, %v2000_v61  ;;  %v2216_v49 = vld [vmem:[#allocation8 + $0x2328] sm:$0xff] }
 0x6b2   :  { %12296 = vmatpush1.bf16.msra.mxu0 %v13432_v0  ;;  %v2023_v0 = vld [vmem:[#allocation8 + $0x1d20] sm:$0xff]  ;;  %v2240_v51 = vld [vmem:[#allocation8 + $0x23e8] sm:$0xff] }
 0x6b3   :  { %12382 = vmatpush1.bf16.msra.mxu1 %v13434_v1  ;;  %12297 = vmatprep.subr.bf16.mxu0 %v13481_v2  ;;  %v2047_v1 = vld [vmem:[#allocation8 + $0x1de0] sm:$0xff]  ;;  %v2024_v2 = vld [vmem:[#allocation8 + $0x1d28] sm:$0xff] }
 0x6b4   :  { %12383 = vmatprep.subr.bf16.mxu1 %v13483_v3  ;;  %v2048_v3 = vld [vmem:[#allocation8 + $0x1de8] sm:$0xff]  ;;  %v13817_v13 = vcombine.high %v2023_v0, %v2047_v1  ;;  %v13816_v11 = vcombine.low %v2023_v0, %v2047_v1 }
 0x6b5   :  { %v13819_v5 = vcombine.high %v2024_v2, %v2048_v3  ;;  %v13818_v12 = vcombine.low %v2024_v2, %v2048_v3 }
 0x6b6   :  { %12298 = vmatpush1.bf16.msra.mxu0 %v13480_v6  ;;  %v2071_v6 = vld [vmem:[#allocation8 + $0x1ea0] sm:$0xff] }
 0x6b7   :  { %12384 = vmatpush1.bf16.msra.mxu1 %v13482_v10  ;;  %12299 = vmatprep.subr.bf16.mxu0 %v13529_v8  ;;  %v2095_v10 = vld [vmem:[#allocation8 + $0x1f60] sm:$0xff]  ;;  %v2072_v8 = vld [vmem:[#allocation8 + $0x1ea8] sm:$0xff] }
 0x6b8   :  { %12385 = vmatprep.subr.bf16.mxu1 %v13531_v9  ;;  %v2096_v9 = vld [vmem:[#allocation8 + $0x1f68] sm:$0xff]  ;;  %v13865_v16 = vcombine.high %v2071_v6, %v2095_v10  ;;  %v13864_v24 = vcombine.low %v2071_v6, %v2095_v10  ;;  %v2263_v6 = vld [vmem:[#allocation8 + $0x24a0] sm:$0xff] }
 0x6b9   :  { %v13867_v19 = vcombine.high %v2072_v8, %v2096_v9  ;;  %v13866_v26 = vcombine.low %v2072_v8, %v2096_v9  ;;  %v2287_v10 = vld [vmem:[#allocation8 + $0x2560] sm:$0xff]  ;;  %v2264_v9 = vld [vmem:[#allocation8 + $0x24a8] sm:$0xff] }
 0x6ba   :  { %12300 = vmatpush1.bf16.msra.mxu0 %v13528_v20  ;;  %v2119_v20 = vld [vmem:[#allocation8 + $0x2020] sm:$0xff] }
 0x6bb   :  { %12386 = vmatpush1.bf16.msra.mxu1 %v13530_v21  ;;  %12301 = vmatprep.subr.bf16.mxu0 %v13577_v22  ;;  %v2143_v21 = vld [vmem:[#allocation8 + $0x20e0] sm:$0xff]  ;;  %v2120_v22 = vld [vmem:[#allocation8 + $0x2028] sm:$0xff] }
 0x6bc   :  { %12387 = vmatprep.subr.bf16.mxu1 %v13579_v23  ;;  %v2144_v23 = vld [vmem:[#allocation8 + $0x20e8] sm:$0xff]  ;;  %v13913_v44 = vcombine.high %v2119_v20, %v2143_v21 }
 0x6be   :  { %12302 = vmatpush1.bf16.msra.mxu0 %v13576_v27  ;;  %v13915_v27 = vcombine.high %v2120_v22, %v2144_v23 }
 0x6bf   :  { %12388 = vmatpush1.bf16.msra.mxu1 %v13578_v28  ;;  %12303 = vmatprep.subr.bf16.mxu0 %v13625_v29  ;;  %v2167_v28 = vld [vmem:[#allocation8 + $0x21a0] sm:$0xff] }
 0x6c0   :  { %12389 = vmatprep.subr.bf16.mxu1 %v13627_v30  ;;  %v2191_v29 = vld [vmem:[#allocation8 + $0x2260] sm:$0xff]  ;;  %v2764_v30 = vrot.slane %v15307_v25, %v15108_v14 }
 0x6c2   :  { %12304 = vmatpush1.bf16.msra.mxu0 %v13624_v35  ;;  %v13912_v35 = vcombine.low %v2119_v20, %v2143_v21  ;;  %v2311_v21 = vld [vmem:[#allocation8 + $0x2620] sm:$0xff] }
 0x6c3   :  { %12390 = vmatpush1.bf16.msra.mxu1 %v13626_v38  ;;  %12316 = vmatprep.subr.bf16.mxu0 %v13673_v36  ;;  %v2776_v38 = vrot.slane %v15307_v25, %v15117_v18  ;;  %v13914_v36 = vcombine.low %v2120_v22, %v2144_v23  ;;  %v2335_v22 = vld [vmem:[#allocation8 + $0x26e0] sm:$0xff]  ;;  %v2312_v23 = vld [vmem:[#allocation8 + $0x2628] sm:$0xff] }
 0x6c4   :  { %12402 = vmatprep.subr.bf16.mxu1 %v13675_v37  ;;  %v13961_v37 = vcombine.high %v2167_v28, %v2191_v29 }
 0x6c5   :  { %12306 = vmatmul.mubr.bf16.vlgmr.msra.gmra.mrb[44].mxu0 %v15123_v45 }
 0x6c6   :  { %12392 = vmatmul.mubr.bf16.vlgmr.msra.gmra.mrb[44].mxu1 %v15123_v45  ;;  %12317 = vmatpush1.bf16.msra.mxu0 %v13672_v41  ;;  %v2215_v41 = vld [vmem:[#allocation8 + $0x2320] sm:$0xff] }
 0x6c7   :  { %12348 = vmatprep.mubr.bf16.mxu0 %v15129_v54  ;;  %12403 = vmatpush1.bf16.msra.mxu1 %v13674_v46  ;;  %v14009_v3 = vcombine.high %v2215_v41, %v2239_v42 }
 0x6c8   :  { %12434 = vmatprep.mubr.bf16.mxu1 %v15129_v54  ;;  %12318 = vmatprep.subr.bf16.mxu0 %v13721_v47 }
 0x6c9   :  { %12404 = vmatprep.subr.bf16.mxu1 %v13723_v52 }
 0x6ca   :  { %12319 = vmatpush1.bf16.msra.mxu0 %v13720_v58 }
 0x6cb   :  { %12405 = vmatpush1.bf16.msra.mxu1 %v13722_v60  ;;  %12320 = vmatprep.subr.bf16.mxu0 %v13769_v62  ;;  %v13960_v60 = vcombine.low %v2167_v28, %v2191_v29  ;;  %v13962_v62 = vcombine.low %v2168_v31, %v2192_v32  ;;  %v2359_v29 = vld [vmem:[#allocation8 + $0x27a0] sm:$0xff]  ;;  %v2360_v31 = vld [vmem:[#allocation8 + $0x27a8] sm:$0xff] }
 0x6cc   :  { %12406 = vmatprep.subr.bf16.mxu1 %v13771_v63  ;;  %v2384_v32 = vld [vmem:[#allocation8 + $0x2868] sm:$0xff] }
 0x6ce   :  { %12321 = vmatpush1.bf16.msra.mxu0 %v13768_v7 }
 0x6cf   :  { %12407 = vmatpush1.bf16.msra.mxu1 %v13770_v4  ;;  %12322 = vmatprep.subr.bf16.mxu0 %v13817_v13 }
 0x6d0   :  { %12408 = vmatprep.subr.bf16.mxu1 %v13819_v5  ;;  %v14011_v5 = vcombine.high %v2216_v49, %v2240_v51 }
 0x6d2   :  { %12323 = vmatpush1.bf16.msra.mxu0 %v13816_v11  ;;  %v2288_v11 = vld [vmem:[#allocation8 + $0x2568] sm:$0xff] }
 0x6d3   :  { %12409 = vmatpush1.bf16.msra.mxu1 %v13818_v12  ;;  %12324 = vmatprep.subr.bf16.mxu0 %v13865_v16  ;;  %v14008_v12 = vcombine.low %v2215_v41, %v2239_v42  ;;  %v14010_v16 = vcombine.low %v2216_v49, %v2240_v51  ;;  %v14059_v20 = vcombine.high %v2264_v9, %v2288_v11  ;;  %v2479_v49 = vld [vmem:[#allocation8 + $0x2b60] sm:$0xff]  ;;  %v2456_v51 = vld [vmem:[#allocation8 + $0x2aa8] sm:$0xff] }
 0x6d4   :  { %12410 = vmatprep.subr.bf16.mxu1 %v13867_v19  ;;  %v14057_v19 = vcombine.high %v2263_v6, %v2287_v10  ;;  %v14154_v42 = vcombine.low %v2360_v31, %v2384_v32 }
 0x6d6   :  { %12325 = vmatpush1.bf16.msra.mxu0 %v13864_v24  ;;  %v2336_v24 = vld [vmem:[#allocation8 + $0x26e8] sm:$0xff] }
 0x6d7   :  { %12411 = vmatpush1.bf16.msra.mxu1 %v13866_v26  ;;  %12326 = vmatprep.subr.bf16.mxu0 %v13913_v44  ;;  %v14056_v26 = vcombine.low %v2263_v6, %v2287_v10  ;;  %v14058_v44 = vcombine.low %v2264_v9, %v2288_v11  ;;  %v14107_v28 = vcombine.high %v2312_v23, %v2336_v24  ;;  %v2552_v6 = vld [vmem:[#allocation8 + $0x2da8] sm:$0xff] }
 0x6d8   :  { %v12006_v39 = vpop.f32.mrb[36].mxu0  ;;  %12412 = vmatprep.subr.bf16.mxu1 %v13915_v27  ;;  %v14105_v27 = vcombine.high %v2311_v21, %v2335_v22  ;;  %v2576_v10 = vld [vmem:[#allocation8 + $0x2e68] sm:$0xff] }
 0x6d9   :  { %v14472_v43 = vadd.f32 %v12006_v39, %v2764_v30  ;;  %v12092_v46 = vpop.f32.mrb[36].mxu1  ;;  %v12008_v47 = vpop.f32.mrb[37].mxu0  ;;  %v2408_v39 = vld [vmem:[#allocation8 + $0x2928] sm:$0xff] }
 0x6da   :  { %v14476_v52 = vadd.f32 %v12092_v46, %v2772_v33  ;;  %v14473_v55 = vadd.f32 %v12008_v47, %v2768_v34  ;;  %v12094_v61 = vpop.f32.mrb[37].mxu1  ;;  %v12010_v58 = vpop.f32.mrb[38].mxu0  ;;  %12327 = vmatpush1.bf16.msra.mxu0 %v13912_v35  ;;  %v2455_v47 = vld [vmem:[#allocation8 + $0x2aa0] sm:$0xff] }
 0x6db   :  { %12649 = vst [vmem:[#allocation11 + $0x100] sm:$0xff] %v14472_v43  ;;  %v14477_v63 = vadd.f32 %v12094_v61, %v2776_v38  ;;  %v14474_v0 = vadd.f32 %v12010_v58, %v2764_v30  ;;  %v12096_v1 = vpop.f32.mrb[38].mxu1  ;;  %12413 = vmatpush1.bf16.msra.mxu1 %v13914_v36  ;;  %v12012_v2 = vpop.f32.mrb[39].mxu0  ;;  %12328 = vmatprep.subr.bf16.mxu0 %v13961_v37  ;;  %v2383_v30 = vld [vmem:[#allocation8 + $0x2860] sm:$0xff] }
 0x6dc   :  { %12651 = vst [vmem:[#allocation11 + $0x110] sm:$0xff] %v14476_v52  ;;  %12650 = vst [vmem:[#allocation11 + $0x108] sm:$0xff] %v14473_v55  ;;  %v14478_v7 = vadd.f32 %v12096_v1, %v2772_v33  ;;  %v14475_v4 = vadd.f32 %v12012_v2, %v2768_v34  ;;  %v12098_v13 = vpop.f32.mrb[39].mxu1  ;;  %12414 = vmatprep.subr.bf16.mxu1 %v13963_v40  ;;  %v14104_v33 = vcombine.low %v2311_v21, %v2335_v22  ;;  %v2407_v36 = vld [vmem:[#allocation8 + $0x2920] sm:$0xff]  ;;  %v2432_v40 = vld [vmem:[#allocation8 + $0x29e8] sm:$0xff] }
 0x6dd   :  { %12652 = vst [vmem:[#allocation11 + $0x118] sm:$0xff] %v14477_v63  ;;  %12697 = vst [vmem:[#allocation11 + $0x280] sm:$0xff] %v14474_v0  ;;  %v14479_v8 = vadd.f32 %v12098_v13, %v2776_v38  ;;  %v14106_v34 = vcombine.low %v2312_v23, %v2336_v24  ;;  %v14153_v35 = vcombine.high %v2359_v29, %v2383_v30  ;;  %v2431_v37 = vld [vmem:[#allocation8 + $0x29e0] sm:$0xff]  ;;  %v2480_v52 = vld [vmem:[#allocation8 + $0x2b68] sm:$0xff] }
 0x6de   :  { %12699 = vst [vmem:[#allocation11 + $0x290] sm:$0xff] %v14478_v7  ;;  %12698 = vst [vmem:[#allocation11 + $0x288] sm:$0xff] %v14475_v4  ;;  %12329 = vmatpush1.bf16.msra.mxu0 %v13960_v60  ;;  %v14155_v38 = vcombine.high %v2360_v31, %v2384_v32  ;;  %v14152_v41 = vcombine.low %v2359_v29, %v2383_v30  ;;  %v14201_v43 = vcombine.high %v2407_v36, %v2431_v37  ;;  %v2527_v63 = vld [vmem:[#allocation8 + $0x2ce0] sm:$0xff]  ;;  %v2504_v0 = vld [vmem:[#allocation8 + $0x2c28] sm:$0xff] }
 0x6df   :  { %12700 = vst [vmem:[#allocation11 + $0x298] sm:$0xff] %v14479_v8  ;;  %12415 = vmatpush1.bf16.msra.mxu1 %v13962_v62  ;;  %12330 = vmatprep.subr.bf16.mxu0 %v14009_v3  ;;  %v14203_v46 = vcombine.high %v2408_v39, %v2432_v40  ;;  %v14200_v55 = vcombine.low %v2407_v36, %v2431_v37  ;;  %v2503_v62 = vld [vmem:[#allocation8 + $0x2c20] sm:$0xff]  ;;  %v2528_v1 = vld [vmem:[#allocation8 + $0x2ce8] sm:$0xff]  ;;  %v1138_v29 = vld [vmem:[#allocation8 + $0x178] sm:$0xff] }
 0x6e0   :  { %12416 = vmatprep.subr.bf16.mxu1 %v14011_v5  ;;  %v14202_v61 = vcombine.low %v2408_v39, %v2432_v40  ;;  %v14249_v58 = vcombine.high %v2455_v47, %v2479_v49  ;;  %v14251_v60 = vcombine.high %v2456_v51, %v2480_v52  ;;  %v14248_v2 = vcombine.low %v2455_v47, %v2479_v49  ;;  %v2551_v13 = vld [vmem:[#allocation8 + $0x2da0] sm:$0xff]  ;;  %v2624_v21 = vld [vmem:[#allocation8 + $0x2fe8] sm:$0xff]  ;;  %v1162_v36 = vld [vmem:[#allocation8 + $0x238] sm:$0xff] }
 0x6e1   :  { %v14250_v3 = vcombine.low %v2456_v51, %v2480_v52  ;;  %v14297_v7 = vcombine.high %v2503_v62, %v2527_v63  ;;  %v14299_v4 = vcombine.high %v2504_v0, %v2528_v1  ;;  %v2575_v5 = vld [vmem:[#allocation8 + $0x2e60] sm:$0xff]  ;;  %v14296_v8 = vcombine.low %v2503_v62, %v2527_v63  ;;  %v1186_v37 = vld [vmem:[#allocation8 + $0x2f8] sm:$0xff] }
 0x6e2   :  { %12331 = vmatpush1.bf16.msra.mxu0 %v14008_v12  ;;  %v14298_v9 = vcombine.low %v2504_v0, %v2528_v1  ;;  %v14345_v11 = vcombine.high %v2551_v13, %v2575_v5  ;;  %v14347_v12 = vcombine.high %v2552_v6, %v2576_v10  ;;  %v14344_v22 = vcombine.low %v2551_v13, %v2575_v5  ;;  %v1234_v47 = vld [vmem:[#allocation8 + $0x478] sm:$0xff] }
 0x6e3   :  { %12417 = vmatpush1.bf16.msra.mxu1 %v14010_v16  ;;  %12332 = vmatprep.subr.bf16.mxu0 %v14057_v19  ;;  %v2599_v16 = vld [vmem:[#allocation8 + $0x2f20] sm:$0xff]  ;;  %v14346_v23 = vcombine.low %v2552_v6, %v2576_v10  ;;  %v12958_v51 = vcombine.low %v1162_v36, %v1186_v37  ;;  %v1282_v62 = vld [vmem:[#allocation8 + $0x5f8] sm:$0xff] }
 0x6e4   :  { %12418 = vmatprep.subr.bf16.mxu1 %v14059_v20  ;;  %v2623_v19 = vld [vmem:[#allocation8 + $0x2fe0] sm:$0xff]  ;;  %v2600_v20 = vld [vmem:[#allocation8 + $0x2f28] sm:$0xff]  ;;  %v1330_v13 = vld [vmem:[#allocation8 + $0x778] sm:$0xff] }
 0x6e5   :  { %v14393_v24 = vcombine.high %v2599_v16, %v2623_v19  ;;  %v14392_v30 = vcombine.low %v2599_v16, %v2623_v19  ;;  %v14394_v31 = vcombine.low %v2600_v20, %v2624_v21 }
 0x6e6   :  { %12333 = vmatpush1.bf16.msra.mxu0 %v14056_v26  ;;  %v14395_v26 = vcombine.high %v2600_v20, %v2624_v21 }
 0x6e7   :  { %12419 = vmatpush1.bf16.msra.mxu1 %v14058_v44  ;;  %12334 = vmatprep.subr.bf16.mxu0 %v14105_v27  ;;  %v1113_v44 = vld [vmem:[#allocation8 + $0xb0] sm:$0xff] }
 0x6e8   :  { %12420 = vmatprep.subr.bf16.mxu1 %v14107_v28  ;;  %v1137_v27 = vld [vmem:[#allocation8 + $0x170] sm:$0xff]  ;;  %v1114_v28 = vld [vmem:[#allocation8 + $0xb8] sm:$0xff] }
 0x6e9   :  { %v12909_v32 = vcombine.high %v1113_v44, %v1137_v27  ;;  %v12910_v39 = vcombine.low %v1114_v28, %v1138_v29 }
 0x6ea   :  { %12335 = vmatpush1.bf16.msra.mxu0 %v14104_v33  ;;  %v12911_v33 = vcombine.high %v1114_v28, %v1138_v29 }
 0x6eb   :  { %12421 = vmatpush1.bf16.msra.mxu1 %v14106_v34  ;;  %12336 = vmatprep.subr.bf16.mxu0 %v14153_v35  ;;  %v1161_v34 = vld [vmem:[#allocation8 + $0x230] sm:$0xff] }
 0x6ec   :  { %12422 = vmatprep.subr.bf16.mxu1 %v14155_v38  ;;  %v1185_v35 = vld [vmem:[#allocation8 + $0x2f0] sm:$0xff]  ;;  %v12908_v38 = vcombine.low %v1113_v44, %v1137_v27 }
 0x6ed   :  { %v12957_v40 = vcombine.high %v1161_v34, %v1185_v35  ;;  %v12956_v49 = vcombine.low %v1161_v34, %v1185_v35 }
 0x6ee   :  { %12337 = vmatpush1.bf16.msra.mxu0 %v14152_v41  ;;  %v1209_v41 = vld [vmem:[#allocation8 + $0x3b0] sm:$0xff] }
 0x6ef   :  { %12423 = vmatpush1.bf16.msra.mxu1 %v14154_v42  ;;  %12338 = vmatprep.subr.bf16.mxu0 %v14201_v43  ;;  %v1233_v42 = vld [vmem:[#allocation8 + $0x470] sm:$0xff]  ;;  %v12959_v43 = vcombine.high %v1162_v36, %v1186_v37 }
 0x6f0   :  { %12424 = vmatprep.subr.bf16.mxu1 %v14203_v46  ;;  %v1210_v46 = vld [vmem:[#allocation8 + $0x3b8] sm:$0xff]  ;;  %v13005_v52 = vcombine.high %v1209_v41, %v1233_v42  ;;  %v13004_v63 = vcombine.low %v1209_v41, %v1233_v42  ;;  %v1497_v37 = vld [vmem:[#allocation8 + $0xcb0] sm:$0xff] }
 0x6f1   :  { %v13006_v0 = vcombine.low %v1210_v46, %v1234_v47  ;;  %v1522_v41 = vld [vmem:[#allocation8 + $0xd78] sm:$0xff] }
 0x6f2   :  { %12339 = vmatpush1.bf16.msra.mxu0 %v14200_v55  ;;  %v13007_v55 = vcombine.high %v1210_v46, %v1234_v47 }
 0x6f3   :  { %12425 = vmatpush1.bf16.msra.mxu1 %v14202_v61  ;;  %12340 = vmatprep.subr.bf16.mxu0 %v14249_v58  ;;  %v1257_v61 = vld [vmem:[#allocation8 + $0x530] sm:$0xff] }
 0x6f4   :  { %12426 = vmatprep.subr.bf16.mxu1 %v14251_v60  ;;  %v1281_v58 = vld [vmem:[#allocation8 + $0x5f0] sm:$0xff]  ;;  %v1258_v60 = vld [vmem:[#allocation8 + $0x538] sm:$0xff] }
 0x6f5   :  { %v13053_v1 = vcombine.high %v1257_v61, %v1281_v58  ;;  %v13054_v5 = vcombine.low %v1258_v60, %v1282_v62 }
 0x6f6   :  { %12341 = vmatpush1.bf16.msra.mxu0 %v14248_v2  ;;  %v13055_v2 = vcombine.high %v1258_v60, %v1282_v62 }
 0x6f7   :  { %12427 = vmatpush1.bf16.msra.mxu1 %v14250_v3  ;;  %12342 = vmatprep.subr.bf16.mxu0 %v14297_v7  ;;  %v1305_v3 = vld [vmem:[#allocation8 + $0x6b0] sm:$0xff] }
 0x6f8   :  { %12428 = vmatprep.subr.bf16.mxu1 %v14299_v4  ;;  %v1329_v7 = vld [vmem:[#allocation8 + $0x770] sm:$0xff]  ;;  %v1306_v4 = vld [vmem:[#allocation8 + $0x6b8] sm:$0xff] }
 0x6f9   :  { %v13101_v6 = vcombine.high %v1305_v3, %v1329_v7  ;;  %v13103_v10 = vcombine.high %v1306_v4, %v1330_v13  ;;  %v13100_v16 = vcombine.low %v1305_v3, %v1329_v7  ;;  %v13102_v19 = vcombine.low %v1306_v4, %v1330_v13 }
 0x6fa   :  { %12343 = vmatpush1.bf16.msra.mxu0 %v14296_v8  ;;  %v1353_v8 = vld [vmem:[#allocation8 + $0x830] sm:$0xff] }
 0x6fb   :  { %12429 = vmatpush1.bf16.msra.mxu1 %v14298_v9  ;;  %12344 = vmatprep.subr.bf16.mxu0 %v14345_v11  ;;  %v1377_v9 = vld [vmem:[#allocation8 + $0x8f0] sm:$0xff]  ;;  %v1354_v11 = vld [vmem:[#allocation8 + $0x838] sm:$0xff] }
 0x6fc   :  { %12430 = vmatprep.subr.bf16.mxu1 %v14347_v12  ;;  %v1378_v12 = vld [vmem:[#allocation8 + $0x8f8] sm:$0xff]  ;;  %v13149_v20 = vcombine.high %v1353_v8, %v1377_v9  ;;  %v13148_v44 = vcombine.low %v1353_v8, %v1377_v9 }
 0x6fd   :  { %v13151_v21 = vcombine.high %v1354_v11, %v1378_v12  ;;  %v13150_v27 = vcombine.low %v1354_v11, %v1378_v12 }
 0x6fe   :  { %12345 = vmatpush1.bf16.msra.mxu0 %v14344_v22  ;;  %v1401_v22 = vld [vmem:[#allocation8 + $0x9b0] sm:$0xff] }
 0x6ff   :  { %12431 = vmatpush1.bf16.msra.mxu1 %v14346_v23  ;;  %12346 = vmatprep.subr.bf16.mxu0 %v14393_v24  ;;  %v1425_v23 = vld [vmem:[#allocation8 + $0xa70] sm:$0xff]  ;;  %v1402_v24 = vld [vmem:[#allocation8 + $0x9b8] sm:$0xff] }
 0x700   :  { %12432 = vmatprep.subr.bf16.mxu1 %v14395_v26  ;;  %v1426_v26 = vld [vmem:[#allocation8 + $0xa78] sm:$0xff]  ;;  %v13197_v28 = vcombine.high %v1401_v22, %v1425_v23  ;;  %v13196_v34 = vcombine.low %v1401_v22, %v1425_v23 }
 0x701   :  { %v13199_v29 = vcombine.high %v1402_v24, %v1426_v26  ;;  %v13198_v35 = vcombine.low %v1402_v24, %v1426_v26 }
 0x702   :  { %12347 = vmatpush1.bf16.msra.mxu0 %v14392_v30  ;;  %v1449_v30 = vld [vmem:[#allocation8 + $0xb30] sm:$0xff] }
 0x703   :  { %12433 = vmatpush1.bf16.msra.mxu1 %v14394_v31  ;;  %12445 = vmatprep.subr.bf16.mxu0 %v12909_v32  ;;  %v1473_v31 = vld [vmem:[#allocation8 + $0xbf0] sm:$0xff]  ;;  %v1450_v32 = vld [vmem:[#allocation8 + $0xb38] sm:$0xff] }
 0x704   :  { %12531 = vmatprep.subr.bf16.mxu1 %v12911_v33  ;;  %v1474_v33 = vld [vmem:[#allocation8 + $0xbf8] sm:$0xff]  ;;  %v13244_v42 = vcombine.low %v1449_v30, %v1473_v31 }
 0x705   :  { %12349 = vmatmul.mubr.bf16.vlgmr.msra.gmra.mrb[44].mxu0 %v15125_v48  ;;  %v13247_v36 = vcombine.high %v1450_v32, %v1474_v33 }
 0x706   :  { %12435 = vmatmul.mubr.bf16.vlgmr.msra.gmra.mrb[44].mxu1 %v15125_v48  ;;  %12446 = vmatpush1.bf16.msra.mxu0 %v12908_v38  ;;  %v13245_v38 = vcombine.high %v1449_v30, %v1473_v31 }
 0x707   :  { %12477 = vmatprep.mubr.bf16.mxu0 %v15127_v53  ;;  %12532 = vmatpush1.bf16.msra.mxu1 %v12910_v39  ;;  %v1521_v39 = vld [vmem:[#allocation8 + $0xd70] sm:$0xff] }
 0x708   :  { %12563 = vmatprep.mubr.bf16.mxu1 %v15127_v53  ;;  %12447 = vmatprep.subr.bf16.mxu0 %v12957_v40  ;;  %v13052_v53 = vcombine.low %v1257_v61, %v1281_v58  ;;  %v1498_v40 = vld [vmem:[#allocation8 + $0xcb8] sm:$0xff]  ;;  %v13293_v46 = vcombine.high %v1497_v37, %v1521_v39  ;;  %v13292_v61 = vcombine.low %v1497_v37, %v1521_v39 }
 0x709   :  { %12533 = vmatprep.subr.bf16.mxu1 %v12959_v43  ;;  %v13246_v43 = vcombine.low %v1450_v32, %v1474_v33  ;;  %v13295_v47 = vcombine.high %v1498_v40, %v1522_v41  ;;  %v13294_v58 = vcombine.low %v1498_v40, %v1522_v41 }
 0x70a   :  { %12448 = vmatpush1.bf16.msra.mxu0 %v12956_v49  ;;  %v1545_v49 = vld [vmem:[#allocation8 + $0xe30] sm:$0xff] }
 0x70b   :  { %12534 = vmatpush1.bf16.msra.mxu1 %v12958_v51  ;;  %12449 = vmatprep.subr.bf16.mxu0 %v13005_v52  ;;  %v1569_v51 = vld [vmem:[#allocation8 + $0xef0] sm:$0xff]  ;;  %v1546_v52 = vld [vmem:[#allocation8 + $0xe38] sm:$0xff] }
 0x70c   :  { %12535 = vmatprep.subr.bf16.mxu1 %v13007_v55  ;;  %v1570_v55 = vld [vmem:[#allocation8 + $0xef8] sm:$0xff]  ;;  %v13341_v60 = vcombine.high %v1545_v49, %v1569_v51  ;;  %v13340_v3 = vcombine.low %v1545_v49, %v1569_v51 }
 0x70d   :  { %v13343_v62 = vcombine.high %v1546_v52, %v1570_v55  ;;  %v13342_v7 = vcombine.low %v1546_v52, %v1570_v55 }
 0x70e   :  { %12450 = vmatpush1.bf16.msra.mxu0 %v13004_v63  ;;  %v1593_v63 = vld [vmem:[#allocation8 + $0xfb0] sm:$0xff] }
 0x70f   :  { %12536 = vmatpush1.bf16.msra.mxu1 %v13006_v0  ;;  %12451 = vmatprep.subr.bf16.mxu0 %v13053_v1  ;;  %v1617_v0 = vld [vmem:[#allocation8 + $0x1070] sm:$0xff]  ;;  %v1594_v1 = vld [vmem:[#allocation8 + $0xfb8] sm:$0xff] }
 0x710   :  { %12537 = vmatprep.subr.bf16.mxu1 %v13055_v2  ;;  %v1618_v2 = vld [vmem:[#allocation8 + $0x1078] sm:$0xff]  ;;  %v13389_v4 = vcombine.high %v1593_v63, %v1617_v0  ;;  %v13388_v8 = vcombine.low %v1593_v63, %v1617_v0 }
 0x711   :  { %v13391_v13 = vcombine.high %v1594_v1, %v1618_v2  ;;  %v13390_v9 = vcombine.low %v1594_v1, %v1618_v2 }
 0x712   :  { %12452 = vmatpush1.bf16.msra.mxu0 %v13052_v53  ;;  %v1641_v53 = vld [vmem:[#allocation8 + $0x1130] sm:$0xff] }
 0x713   :  { %12538 = vmatpush1.bf16.msra.mxu1 %v13054_v5  ;;  %12453 = vmatprep.subr.bf16.mxu0 %v13101_v6  ;;  %v1665_v5 = vld [vmem:[#allocation8 + $0x11f0] sm:$0xff]  ;;  %v1642_v6 = vld [vmem:[#allocation8 + $0x1138] sm:$0xff] }
 0x714   :  { %12539 = vmatprep.subr.bf16.mxu1 %v13103_v10  ;;  %v1666_v10 = vld [vmem:[#allocation8 + $0x11f8] sm:$0xff]  ;;  %v13437_v11 = vcombine.high %v1641_v53, %v1665_v5  ;;  %v13436_v22 = vcombine.low %v1641_v53, %v1665_v5 }
 0x715   :  { %v13439_v12 = vcombine.high %v1642_v6, %v1666_v10  ;;  %v13438_v23 = vcombine.low %v1642_v6, %v1666_v10  ;;  %v1954_v53 = vld [vmem:[#allocation8 + $0x1af8] sm:$0xff]  ;;  %v1977_v10 = vld [vmem:[#allocation8 + $0x1bb0] sm:$0xff] }
 0x716   :  { %12454 = vmatpush1.bf16.msra.mxu0 %v13100_v16  ;;  %v1689_v16 = vld [vmem:[#allocation8 + $0x12b0] sm:$0xff] }
 0x717   :  { %12540 = vmatpush1.bf16.msra.mxu1 %v13102_v19  ;;  %12455 = vmatprep.subr.bf16.mxu0 %v13149_v20  ;;  %v1713_v19 = vld [vmem:[#allocation8 + $0x1370] sm:$0xff]  ;;  %v1690_v20 = vld [vmem:[#allocation8 + $0x12b8] sm:$0xff] }
 0x718   :  { %12541 = vmatprep.subr.bf16.mxu1 %v13151_v21  ;;  %v1714_v21 = vld [vmem:[#allocation8 + $0x1378] sm:$0xff]  ;;  %v13485_v24 = vcombine.high %v1689_v16, %v1713_v19  ;;  %v13484_v30 = vcombine.low %v1689_v16, %v1713_v19 }
 0x719   :  { %v13487_v26 = vcombine.high %v1690_v20, %v1714_v21  ;;  %v13486_v31 = vcombine.low %v1690_v20, %v1714_v21 }
 0x71a   :  { %12456 = vmatpush1.bf16.msra.mxu0 %v13148_v44  ;;  %v1737_v44 = vld [vmem:[#allocation8 + $0x1430] sm:$0xff] }
 0x71b   :  { %12542 = vmatpush1.bf16.msra.mxu1 %v13150_v27  ;;  %12457 = vmatprep.subr.bf16.mxu0 %v13197_v28  ;;  %v1761_v27 = vld [vmem:[#allocation8 + $0x14f0] sm:$0xff]  ;;  %v1738_v28 = vld [vmem:[#allocation8 + $0x1438] sm:$0xff] }
 0x71c   :  { %12543 = vmatprep.subr.bf16.mxu1 %v13199_v29  ;;  %v1762_v29 = vld [vmem:[#allocation8 + $0x14f8] sm:$0xff]  ;;  %v13533_v32 = vcombine.high %v1737_v44, %v1761_v27  ;;  %v13532_v37 = vcombine.low %v1737_v44, %v1761_v27 }
 0x71d   :  { %v13535_v33 = vcombine.high %v1738_v28, %v1762_v29  ;;  %v13534_v39 = vcombine.low %v1738_v28, %v1762_v29  ;;  %v2073_v29 = vld [vmem:[#allocation8 + $0x1eb0] sm:$0xff] }
 0x71e   :  { %12458 = vmatpush1.bf16.msra.mxu0 %v13196_v34  ;;  %v1785_v34 = vld [vmem:[#allocation8 + $0x15b0] sm:$0xff] }
 0x71f   :  { %12544 = vmatpush1.bf16.msra.mxu1 %v13198_v35  ;;  %12459 = vmatprep.subr.bf16.mxu0 %v13245_v38  ;;  %v1809_v35 = vld [vmem:[#allocation8 + $0x1670] sm:$0xff]  ;;  %v1786_v38 = vld [vmem:[#allocation8 + $0x15b8] sm:$0xff] }
 0x720   :  { %12545 = vmatprep.subr.bf16.mxu1 %v13247_v36  ;;  %v1810_v36 = vld [vmem:[#allocation8 + $0x1678] sm:$0xff]  ;;  %v13581_v40 = vcombine.high %v1785_v34, %v1809_v35  ;;  %v13580_v49 = vcombine.low %v1785_v34, %v1809_v35 }
 0x721   :  { %v13583_v41 = vcombine.high %v1786_v38, %v1810_v36  ;;  %v13582_v51 = vcombine.low %v1786_v38, %v1810_v36  ;;  %v2121_v38 = vld [vmem:[#allocation8 + $0x2030] sm:$0xff] }
 0x722   :  { %12460 = vmatpush1.bf16.msra.mxu0 %v13244_v42  ;;  %v1833_v42 = vld [vmem:[#allocation8 + $0x1730] sm:$0xff] }
 0x723   :  { %12546 = vmatpush1.bf16.msra.mxu1 %v13246_v43  ;;  %12461 = vmatprep.subr.bf16.mxu0 %v13293_v46  ;;  %v1857_v43 = vld [vmem:[#allocation8 + $0x17f0] sm:$0xff]  ;;  %v1834_v46 = vld [vmem:[#allocation8 + $0x1738] sm:$0xff] }
 0x724   :  { %12547 = vmatprep.subr.bf16.mxu1 %v13295_v47  ;;  %v1858_v47 = vld [vmem:[#allocation8 + $0x17f8] sm:$0xff]  ;;  %v13629_v52 = vcombine.high %v1833_v42, %v1857_v43  ;;  %v13628_v63 = vcombine.low %v1833_v42, %v1857_v43  ;;  %v2145_v36 = vld [vmem:[#allocation8 + $0x20f0] sm:$0xff] }
 0x725   :  { %v13631_v55 = vcombine.high %v1834_v46, %v1858_v47  ;;  %v13630_v0 = vcombine.low %v1834_v46, %v1858_v47  ;;  %v13917_v42 = vcombine.high %v2121_v38, %v2145_v36  ;;  %v2169_v46 = vld [vmem:[#allocation8 + $0x21b0] sm:$0xff] }
 0x726   :  { %12462 = vmatpush1.bf16.msra.mxu0 %v13292_v61  ;;  %v1881_v61 = vld [vmem:[#allocation8 + $0x18b0] sm:$0xff] }
 0x727   :  { %12548 = vmatpush1.bf16.msra.mxu1 %v13294_v58  ;;  %12463 = vmatprep.subr.bf16.mxu0 %v13341_v60  ;;  %v1905_v58 = vld [vmem:[#allocation8 + $0x1970] sm:$0xff]  ;;  %v1882_v60 = vld [vmem:[#allocation8 + $0x18b8] sm:$0xff] }
 0x728   :  { %12549 = vmatprep.subr.bf16.mxu1 %v13343_v62  ;;  %v1906_v62 = vld [vmem:[#allocation8 + $0x1978] sm:$0xff]  ;;  %v13677_v1 = vcombine.high %v1881_v61, %v1905_v58  ;;  %v2193_v47 = vld [vmem:[#allocation8 + $0x2270] sm:$0xff] }
 0x729   :  { %v13679_v2 = vcombine.high %v1882_v60, %v1906_v62  ;;  %v13678_v5 = vcombine.low %v1882_v60, %v1906_v62  ;;  %v2792_v60 = vrot.slane %v15307_v25, %v15187_v59 }
 0x72a   :  { %12464 = vmatpush1.bf16.msra.mxu0 %v13340_v3  ;;  %v1929_v3 = vld [vmem:[#allocation8 + $0x1a30] sm:$0xff] }
 0x72b   :  { %12550 = vmatpush1.bf16.msra.mxu1 %v13342_v7  ;;  %12465 = vmatprep.subr.bf16.mxu0 %v13389_v4  ;;  %v1953_v7 = vld [vmem:[#allocation8 + $0x1af0] sm:$0xff]  ;;  %v13676_v4 = vcombine.low %v1881_v61, %v1905_v58  ;;  %v2784_v61 = vrot.slane %v15307_v25, %v15184_v57  ;;  %v13916_v58 = vcombine.low %v2121_v38, %v2145_v36  ;;  %v2338_v38 = vld [vmem:[#allocation8 + $0x26f8] sm:$0xff] }
 0x72c   :  { %12551 = vmatprep.subr.bf16.mxu1 %v13391_v13  ;;  %v1930_v13 = vld [vmem:[#allocation8 + $0x1a38] sm:$0xff]  ;;  %v13725_v6 = vcombine.high %v1929_v3, %v1953_v7  ;;  %v13724_v16 = vcombine.low %v1929_v3, %v1953_v7  ;;  %v2241_v3 = vld [vmem:[#allocation8 + $0x23f0] sm:$0xff] }
 0x72d   :  { %v13726_v19 = vcombine.low %v1930_v13, %v1954_v53 }
 0x72e   :  { %12466 = vmatpush1.bf16.msra.mxu0 %v13388_v8  ;;  %v2001_v8 = vld [vmem:[#allocation8 + $0x1c70] sm:$0xff] }
 0x72f   :  { %12552 = vmatpush1.bf16.msra.mxu1 %v13390_v9  ;;  %12467 = vmatprep.subr.bf16.mxu0 %v13437_v11  ;;  %v13727_v9 = vcombine.high %v1930_v13, %v1954_v53  ;;  %v1978_v11 = vld [vmem:[#allocation8 + $0x1bb8] sm:$0xff]  ;;  %v13773_v20 = vcombine.high %v1977_v10, %v2001_v8  ;;  %v13772_v44 = vcombine.low %v1977_v10, %v2001_v8 }
 0x730   :  { %12553 = vmatprep.subr.bf16.mxu1 %v13439_v12  ;;  %v2002_v12 = vld [vmem:[#allocation8 + $0x1c78] sm:$0xff] }
 0x731   :  { %v13775_v21 = vcombine.high %v1978_v11, %v2002_v12  ;;  %v2218_v53 = vld [vmem:[#allocation8 + $0x2338] sm:$0xff] }
 0x732   :  { %12468 = vmatpush1.bf16.msra.mxu0 %v13436_v22  ;;  %v2025_v22 = vld [vmem:[#allocation8 + $0x1d30] sm:$0xff] }
 0x733   :  { %12554 = vmatpush1.bf16.msra.mxu1 %v13438_v23  ;;  %12469 = vmatprep.subr.bf16.mxu0 %v13485_v24  ;;  %v2049_v23 = vld [vmem:[#allocation8 + $0x1df0] sm:$0xff]  ;;  %v2026_v24 = vld [vmem:[#allocation8 + $0x1d38] sm:$0xff] }
 0x734   :  { %12555 = vmatprep.subr.bf16.mxu1 %v13487_v26  ;;  %v2050_v26 = vld [vmem:[#allocation8 + $0x1df8] sm:$0xff]  ;;  %v13821_v27 = vcombine.high %v2025_v22, %v2049_v23 }
 0x735   :  { %v13823_v28 = vcombine.high %v2026_v24, %v2050_v26 }
 0x736   :  { %12470 = vmatpush1.bf16.msra.mxu0 %v13484_v30  ;;  %v2097_v30 = vld [vmem:[#allocation8 + $0x1f70] sm:$0xff] }
 0x737   :  { %12556 = vmatpush1.bf16.msra.mxu1 %v13486_v31  ;;  %12471 = vmatprep.subr.bf16.mxu0 %v13533_v32  ;;  %v2074_v31 = vld [vmem:[#allocation8 + $0x1eb8] sm:$0xff]  ;;  %v13869_v34 = vcombine.high %v2073_v29, %v2097_v30 }
 0x738   :  { %12557 = vmatprep.subr.bf16.mxu1 %v13535_v33  ;;  %v2098_v32 = vld [vmem:[#allocation8 + $0x1f78] sm:$0xff]  ;;  %v13822_v33 = vcombine.low %v2026_v24, %v2050_v26 }
 0x739   :  { %v13871_v35 = vcombine.high %v2074_v31, %v2098_v32 }
 0x73a   :  { %12472 = vmatpush1.bf16.msra.mxu0 %v13532_v37  ;;  %v2122_v37 = vld [vmem:[#allocation8 + $0x2038] sm:$0xff] }
 0x73b   :  { %12558 = vmatpush1.bf16.msra.mxu1 %v13534_v39  ;;  %12473 = vmatprep.subr.bf16.mxu0 %v13581_v40  ;;  %v2146_v39 = vld [vmem:[#allocation8 + $0x20f8] sm:$0xff]  ;;  %v13868_v40 = vcombine.low %v2073_v29, %v2097_v30 }
 0x73c   :  { %12559 = vmatprep.subr.bf16.mxu1 %v13583_v41  ;;  %v13870_v41 = vcombine.low %v2074_v31, %v2098_v32  ;;  %v13919_v43 = vcombine.high %v2122_v37, %v2146_v39  ;;  %v13918_v62 = vcombine.low %v2122_v37, %v2146_v39  ;;  %v2290_v29 = vld [vmem:[#allocation8 + $0x2578] sm:$0xff] }
 0x73e   :  { %12474 = vmatpush1.bf16.msra.mxu0 %v13580_v49  ;;  %v2780_v49 = vrot.slane %v15307_v25, %v15178_v50 }
 0x73f   :  { %12560 = vmatpush1.bf16.msra.mxu1 %v13582_v51  ;;  %12475 = vmatprep.subr.bf16.mxu0 %v13629_v52  ;;  %v2170_v51 = vld [vmem:[#allocation8 + $0x21b8] sm:$0xff] }
 0x740   :  { %12561 = vmatprep.subr.bf16.mxu1 %v13631_v55  ;;  %v2194_v52 = vld [vmem:[#allocation8 + $0x2278] sm:$0xff]  ;;  %v2788_v55 = vrot.slane %v15307_v25, %v15181_v56 }
 0x741   :  { %v13966_v25 = vcombine.low %v2170_v51, %v2194_v52 }
 0x742   :  { %12476 = vmatpush1.bf16.msra.mxu0 %v13628_v63  ;;  %v13965_v63 = vcombine.high %v2169_v46, %v2193_v47 }
 0x743   :  { %12562 = vmatpush1.bf16.msra.mxu1 %v13630_v0  ;;  %12488 = vmatprep.subr.bf16.mxu0 %v13677_v1  ;;  %v13967_v1 = vcombine.high %v2170_v51, %v2194_v52 }
 0x744   :  { %12574 = vmatprep.subr.bf16.mxu1 %v13679_v2  ;;  %v2217_v2 = vld [vmem:[#allocation8 + $0x2330] sm:$0xff] }
 0x745   :  { %12478 = vmatmul.mubr.bf16.vlgmr.msra.gmra.mrb[48].mxu0 %v15123_v45  ;;  %v14012_v30 = vcombine.low %v2217_v2, %v2241_v3 }
 0x746   :  { %12564 = vmatmul.mubr.bf16.vlgmr.msra.gmra.mrb[48].mxu1 %v15123_v45  ;;  %12489 = vmatpush1.bf16.msra.mxu0 %v13676_v4  ;;  %v13774_v45 = vcombine.low %v1978_v11, %v2002_v12  ;;  %v13964_v11 = vcombine.low %v2169_v46, %v2193_v47  ;;  %v2386_v46 = vld [vmem:[#allocation8 + $0x2878] sm:$0xff] }
 0x747   :  { %12520 = vmatprep.mubr.bf16.mxu0 %v15129_v54  ;;  %12575 = vmatpush1.bf16.msra.mxu1 %v13678_v5  ;;  %v2242_v5 = vld [vmem:[#allocation8 + $0x23f8] sm:$0xff] }
 0x748   :  { %12606 = vmatprep.mubr.bf16.mxu1 %v15129_v54  ;;  %12490 = vmatprep.subr.bf16.mxu0 %v13725_v6  ;;  %v13820_v54 = vcombine.low %v2025_v22, %v2049_v23  ;;  %v14015_v26 = vcombine.high %v2218_v53, %v2242_v5  ;;  %v14014_v31 = vcombine.low %v2218_v53, %v2242_v5 }
 0x749   :  { %12576 = vmatprep.subr.bf16.mxu1 %v13727_v9 }
 0x74a   :  { %12491 = vmatpush1.bf16.msra.mxu0 %v13724_v16 }
 0x74b   :  { %12577 = vmatpush1.bf16.msra.mxu1 %v13726_v19  ;;  %12492 = vmatprep.subr.bf16.mxu0 %v13773_v20 }
 0x74c   :  { %12578 = vmatprep.subr.bf16.mxu1 %v13775_v21  ;;  %v14013_v21 = vcombine.high %v2217_v2, %v2241_v3  ;;  %v2457_v2 = vld [vmem:[#allocation8 + $0x2ab0] sm:$0xff] }
 0x74d   :  { %v2481_v3 = vld [vmem:[#allocation8 + $0x2b70] sm:$0xff] }
 0x74e   :  { %12493 = vmatpush1.bf16.msra.mxu0 %v13772_v44  ;;  %v2265_v44 = vld [vmem:[#allocation8 + $0x24b0] sm:$0xff]  ;;  %v14253_v5 = vcombine.high %v2457_v2, %v2481_v3 }
 0x74f   :  { %12579 = vmatpush1.bf16.msra.mxu1 %v13774_v45  ;;  %12494 = vmatprep.subr.bf16.mxu0 %v13821_v27  ;;  %v2289_v45 = vld [vmem:[#allocation8 + $0x2570] sm:$0xff] }
 0x750   :  { %12580 = vmatprep.subr.bf16.mxu1 %v13823_v28  ;;  %v2266_v28 = vld [vmem:[#allocation8 + $0x24b8] sm:$0xff]  ;;  %v14061_v32 = vcombine.high %v2265_v44, %v2289_v45  ;;  %v14060_v36 = vcombine.low %v2265_v44, %v2289_v45 }
 0x751   :  { %v14062_v37 = vcombine.low %v2266_v28, %v2290_v29 }
 0x752   :  { %12495 = vmatpush1.bf16.msra.mxu0 %v13820_v54  ;;  %v14063_v54 = vcombine.high %v2266_v28, %v2290_v29  ;;  %v2625_v28 = vld [vmem:[#allocation8 + $0x2ff0] sm:$0xff]  ;;  %v2602_v29 = vld [vmem:[#allocation8 + $0x2f38] sm:$0xff] }
 0x753   :  { %12581 = vmatpush1.bf16.msra.mxu1 %v13822_v33  ;;  %12496 = vmatprep.subr.bf16.mxu0 %v13869_v34  ;;  %v2313_v33 = vld [vmem:[#allocation8 + $0x2630] sm:$0xff] }
 0x754   :  { %12582 = vmatprep.subr.bf16.mxu1 %v13871_v35  ;;  %v2337_v34 = vld [vmem:[#allocation8 + $0x26f0] sm:$0xff]  ;;  %v2314_v35 = vld [vmem:[#allocation8 + $0x2638] sm:$0xff] }
 0x755   :  { %v14109_v39 = vcombine.high %v2313_v33, %v2337_v34  ;;  %v14108_v47 = vcombine.low %v2313_v33, %v2337_v34 }
 0x756   :  { %12497 = vmatpush1.bf16.msra.mxu0 %v13868_v40  ;;  %v14111_v40 = vcombine.high %v2314_v35, %v2338_v38 }
 0x757   :  { %12583 = vmatpush1.bf16.msra.mxu1 %v13870_v41  ;;  %12498 = vmatprep.subr.bf16.mxu0 %v13917_v42  ;;  %v2361_v41 = vld [vmem:[#allocation8 + $0x27b0] sm:$0xff] }
 0x758   :  { %v12178_v0 = vpop.f32.mrb[40].mxu0  ;;  %12584 = vmatprep.subr.bf16.mxu1 %v13919_v43  ;;  %v2385_v42 = vld [vmem:[#allocation8 + $0x2870] sm:$0xff]  ;;  %v2362_v43 = vld [vmem:[#allocation8 + $0x27b8] sm:$0xff] }
 0x759   :  { %v14480_v7 = vadd.f32 %v12178_v0, %v2780_v49  ;;  %v12264_v4 = vpop.f32.mrb[40].mxu1  ;;  %v12180_v13 = vpop.f32.mrb[41].mxu0  ;;  %v14157_v51 = vcombine.high %v2361_v41, %v2385_v42  ;;  %v14159_v52 = vcombine.high %v2362_v43, %v2386_v46 }
 0x75a   :  { %v14484_v6 = vadd.f32 %v12264_v4, %v2788_v55  ;;  %v14481_v10 = vadd.f32 %v12180_v13, %v2784_v61  ;;  %v12266_v8 = vpop.f32.mrb[41].mxu1  ;;  %v12182_v9 = vpop.f32.mrb[42].mxu0  ;;  %12499 = vmatpush1.bf16.msra.mxu0 %v13916_v58  ;;  %v2410_v58 = vld [vmem:[#allocation8 + $0x2938] sm:$0xff] }
 0x75b   :  { %12653 = vst [vmem:[#allocation11 + $0x120] sm:$0xff] %v14480_v7  ;;  %v14485_v12 = vadd.f32 %v12266_v8, %v2792_v60  ;;  %v14482_v16 = vadd.f32 %v12182_v9, %v2780_v49  ;;  %v12268_v19 = vpop.f32.mrb[42].mxu1  ;;  %12585 = vmatpush1.bf16.msra.mxu1 %v13918_v62  ;;  %v12184_v20 = vpop.f32.mrb[43].mxu0  ;;  %12500 = vmatprep.subr.bf16.mxu0 %v13965_v63  ;;  %v2458_v7 = vld [vmem:[#allocation8 + $0x2ab8] sm:$0xff]  ;;  %v2529_v8 = vld [vmem:[#allocation8 + $0x2cf0] sm:$0xff] }
 0x75c   :  { %12655 = vst [vmem:[#allocation11 + $0x130] sm:$0xff] %v14484_v6  ;;  %12654 = vst [vmem:[#allocation11 + $0x128] sm:$0xff] %v14481_v10  ;;  %v14486_v22 = vadd.f32 %v12268_v19, %v2788_v55  ;;  %v14483_v23 = vadd.f32 %v12184_v20, %v2784_v61  ;;  %v12270_v24 = vpop.f32.mrb[43].mxu1  ;;  %12586 = vmatprep.subr.bf16.mxu1 %v13967_v1  ;;  %v14110_v49 = vcombine.low %v2314_v35, %v2338_v38  ;;  %v2409_v55 = vld [vmem:[#allocation8 + $0x2930] sm:$0xff]  ;;  %v2482_v4 = vld [vmem:[#allocation8 + $0x2b78] sm:$0xff] }
 0x75d   :  { %12656 = vst [vmem:[#allocation11 + $0x138] sm:$0xff] %v14485_v12  ;;  %12701 = vst [vmem:[#allocation11 + $0x2a0] sm:$0xff] %v14482_v16  ;;  %v14487_v27 = vadd.f32 %v12270_v24, %v2792_v60  ;;  %v2433_v61 = vld [vmem:[#allocation8 + $0x29f0] sm:$0xff]  ;;  %v2434_v60 = vld [vmem:[#allocation8 + $0x29f8] sm:$0xff]  ;;  %v14156_v62 = vcombine.low %v2361_v41, %v2385_v42  ;;  %v14158_v63 = vcombine.low %v2362_v43, %v2386_v46 }
 0x75e   :  { %12703 = vst [vmem:[#allocation11 + $0x2b0] sm:$0xff] %v14486_v22  ;;  %12702 = vst [vmem:[#allocation11 + $0x2a8] sm:$0xff] %v14483_v23  ;;  %12501 = vmatpush1.bf16.msra.mxu0 %v13964_v11  ;;  %v14205_v0 = vcombine.high %v2409_v55, %v2433_v61  ;;  %v14207_v1 = vcombine.high %v2410_v58, %v2434_v60  ;;  %v14204_v13 = vcombine.low %v2409_v55, %v2433_v61  ;;  %v2505_v10 = vld [vmem:[#allocation8 + $0x2c30] sm:$0xff]  ;;  %v2506_v9 = vld [vmem:[#allocation8 + $0x2c38] sm:$0xff] }
 0x75f   :  { %12704 = vst [vmem:[#allocation11 + $0x2b8] sm:$0xff] %v14487_v27  ;;  %12587 = vmatpush1.bf16.msra.mxu1 %v13966_v25  ;;  %12502 = vmatprep.subr.bf16.mxu0 %v14013_v21  ;;  %v14206_v53 = vcombine.low %v2410_v58, %v2434_v60  ;;  %v14255_v6 = vcombine.high %v2458_v7, %v2482_v4  ;;  %v2530_v11 = vld [vmem:[#allocation8 + $0x2cf8] sm:$0xff]  ;;  %v2553_v20 = vld [vmem:[#allocation8 + $0x2db0] sm:$0xff]  ;;  %v1086_v38 = vld [vmem:[#allocation10 + $0x28] sm:$0xff] }
 0x760   :  { %12588 = vmatprep.subr.bf16.mxu1 %v14015_v26  ;;  %v14252_v25 = vcombine.low %v2457_v2, %v2481_v3  ;;  %v14254_v12 = vcombine.low %v2458_v7, %v2482_v4  ;;  %v14301_v16 = vcombine.high %v2505_v10, %v2529_v8  ;;  %v14303_v19 = vcombine.high %v2506_v9, %v2530_v11  ;;  %v2577_v21 = vld [vmem:[#allocation8 + $0x2e70] sm:$0xff]  ;;  %v2554_v22 = vld [vmem:[#allocation8 + $0x2db8] sm:$0xff] }
 0x761   :  { %v2578_v23 = vld [vmem:[#allocation8 + $0x2e78] sm:$0xff]  ;;  %v14300_v24 = vcombine.low %v2505_v10, %v2529_v8  ;;  %v14302_v26 = vcombine.low %v2506_v9, %v2530_v11  ;;  %v14349_v44 = vcombine.high %v2553_v20, %v2577_v21  ;;  %v2601_v27 = vld [vmem:[#allocation8 + $0x2f30] sm:$0xff]  ;;  %v2812_v60 = vrot.slane %v1086_v38, %v15178_v50 }
 0x762   :  { %12503 = vmatpush1.bf16.msra.mxu0 %v14012_v30  ;;  %v14351_v45 = vcombine.high %v2554_v22, %v2578_v23  ;;  %v2626_v30 = vld [vmem:[#allocation8 + $0x2ff8] sm:$0xff]  ;;  %v14396_v34 = vcombine.low %v2601_v27, %v2625_v28 }
 0x763   :  { %12589 = vmatpush1.bf16.msra.mxu1 %v14014_v31  ;;  %12504 = vmatprep.subr.bf16.mxu0 %v14061_v32  ;;  %v14348_v31 = vcombine.low %v2553_v20, %v2577_v21  ;;  %v14350_v32 = vcombine.low %v2554_v22, %v2578_v23  ;;  %v14399_v33 = vcombine.high %v2602_v29, %v2626_v30 }
 0x764   :  { %12590 = vmatprep.subr.bf16.mxu1 %v14063_v54  ;;  %v14397_v54 = vcombine.high %v2601_v27, %v2625_v28  ;;  %v14398_v35 = vcombine.low %v2602_v29, %v2626_v30 }
 0x766   :  { %12505 = vmatpush1.bf16.msra.mxu0 %v14060_v36  ;;  %v2796_v36 = vrot.slane %v1086_v38, %v15108_v14 }
 0x767   :  { %12591 = vmatpush1.bf16.msra.mxu1 %v14062_v37  ;;  %12506 = vmatprep.subr.bf16.mxu0 %v14109_v39  ;;  %v2804_v37 = vrot.slane %v1086_v38, %v15111_v15  ;;  %v2800_v39 = vrot.slane %v1086_v38, %v15114_v17 }
 0x768   :  { %12592 = vmatprep.subr.bf16.mxu1 %v14111_v40  ;;  %v2808_v40 = vrot.slane %v1086_v38, %v15117_v18 }
 0x76a   :  { %12507 = vmatpush1.bf16.msra.mxu0 %v14108_v47 }
 0x76b   :  { %12593 = vmatpush1.bf16.msra.mxu1 %v14110_v49  ;;  %12508 = vmatprep.subr.bf16.mxu0 %v14157_v51 }
 0x76c   :  { %12594 = vmatprep.subr.bf16.mxu1 %v14159_v52 }
 0x76e   :  { %12509 = vmatpush1.bf16.msra.mxu0 %v14156_v62  ;;  %v2820_v62 = vrot.slane %v1086_v38, %v15181_v56 }
 0x76f   :  { %12595 = vmatpush1.bf16.msra.mxu1 %v14158_v63  ;;  %12510 = vmatprep.subr.bf16.mxu0 %v14205_v0  ;;  %v2816_v63 = vrot.slane %v1086_v38, %v15184_v57  ;;  %v2824_v0 = vrot.slane %v1086_v38, %v15187_v59 }
 0x770   :  { %12596 = vmatprep.subr.bf16.mxu1 %v14207_v1 }
 0x772   :  { %12511 = vmatpush1.bf16.msra.mxu0 %v14204_v13 }
 0x773   :  { %12597 = vmatpush1.bf16.msra.mxu1 %v14206_v53  ;;  %12512 = vmatprep.subr.bf16.mxu0 %v14253_v5 }
 0x774   :  { %12598 = vmatprep.subr.bf16.mxu1 %v14255_v6 }
 0x776   :  { %12513 = vmatpush1.bf16.msra.mxu0 %v14252_v25 }
 0x777   :  { %12599 = vmatpush1.bf16.msra.mxu1 %v14254_v12  ;;  %12514 = vmatprep.subr.bf16.mxu0 %v14301_v16 }
 0x778   :  { %12600 = vmatprep.subr.bf16.mxu1 %v14303_v19 }
 0x77a   :  { %12515 = vmatpush1.bf16.msra.mxu0 %v14300_v24 }
 0x77b   :  { %12601 = vmatpush1.bf16.msra.mxu1 %v14302_v26  ;;  %12516 = vmatprep.subr.bf16.mxu0 %v14349_v44 }
 0x77c   :  { %12602 = vmatprep.subr.bf16.mxu1 %v14351_v45 }
 0x77e   :  { %12517 = vmatpush1.bf16.msra.mxu0 %v14348_v31 }
 0x77f   :  { %12603 = vmatpush1.bf16.msra.mxu1 %v14350_v32  ;;  %12518 = vmatprep.subr.bf16.mxu0 %v14397_v54 }
 0x780   :  { %12604 = vmatprep.subr.bf16.mxu1 %v14399_v33 }
 0x782   :  { %12519 = vmatpush1.bf16.msra.mxu0 %v14396_v34 }
 0x783   :  { %12605 = vmatpush1.bf16.msra.mxu1 %v14398_v35 }
 0x785   :  { %12521 = vmatmul.mubr.bf16.vlgmr.msra.gmra.mrb[48].mxu0 %v15125_v48 }
 0x786   :  { %12607 = vmatmul.mubr.bf16.vlgmr.msra.gmra.mrb[48].mxu1 %v15125_v48 }
 0x7d8   :  { %v12350_v41 = vpop.f32.mrb[44].mxu0 }
 0x7d9   :  { %v14488_v42 = vadd.f32 %v12350_v41, %v2796_v36  ;;  %v12436_v43 = vpop.f32.mrb[44].mxu1  ;;  %v12352_v46 = vpop.f32.mrb[45].mxu0 }
 0x7da   :  { %v14492_v47 = vadd.f32 %v12436_v43, %v2804_v37  ;;  %v14489_v49 = vadd.f32 %v12352_v46, %v2800_v39  ;;  %v12438_v51 = vpop.f32.mrb[45].mxu1  ;;  %v12354_v52 = vpop.f32.mrb[46].mxu0 }
 0x7db   :  { %12657 = vst [vmem:[#allocation11 + $0x140] sm:$0xff] %v14488_v42  ;;  %v14493_v55 = vadd.f32 %v12438_v51, %v2808_v40  ;;  %v14490_v48 = vadd.f32 %v12354_v52, %v2796_v36  ;;  %v12440_v61 = vpop.f32.mrb[46].mxu1  ;;  %v12356_v58 = vpop.f32.mrb[47].mxu0 }
 0x7dc   :  { %12659 = vst [vmem:[#allocation11 + $0x150] sm:$0xff] %v14492_v47  ;;  %12658 = vst [vmem:[#allocation11 + $0x148] sm:$0xff] %v14489_v49  ;;  %v14494_v14 = vadd.f32 %v12440_v61, %v2804_v37  ;;  %v14491_v15 = vadd.f32 %v12356_v58, %v2800_v39  ;;  %v12442_v17 = vpop.f32.mrb[47].mxu1 }
 0x7dd   :  { %12660 = vst [vmem:[#allocation11 + $0x158] sm:$0xff] %v14493_v55  ;;  %12705 = vst [vmem:[#allocation11 + $0x2c0] sm:$0xff] %v14490_v48  ;;  %v14495_v18 = vadd.f32 %v12442_v17, %v2808_v40 }
 0x7de   :  { %12707 = vst [vmem:[#allocation11 + $0x2d0] sm:$0xff] %v14494_v14  ;;  %12706 = vst [vmem:[#allocation11 + $0x2c8] sm:$0xff] %v14491_v15 }
 0x7df   :  { %12708 = vst [vmem:[#allocation11 + $0x2d8] sm:$0xff] %v14495_v18 }
 0x858   :  { %v12522_v1 = vpop.f32.mrb[48].mxu0 }
 0x859   :  { %v14496_v2 = vadd.f32 %v12522_v1, %v2812_v60  ;;  %v12608_v3 = vpop.f32.mrb[48].mxu1  ;;  %v12524_v7 = vpop.f32.mrb[49].mxu0 }
 0x85a   :  { %v14500_v4 = vadd.f32 %v12608_v3, %v2820_v62  ;;  %v14497_v13 = vadd.f32 %v12524_v7, %v2816_v63  ;;  %v12610_v53 = vpop.f32.mrb[49].mxu1  ;;  %v12526_v5 = vpop.f32.mrb[50].mxu0 }
 0x85b   :  { %12661 = vst [vmem:[#allocation11 + $0x160] sm:$0xff] %v14496_v2  ;;  %v14501_v6 = vadd.f32 %v12610_v53, %v2824_v0  ;;  %v14498_v10 = vadd.f32 %v12526_v5, %v2812_v60  ;;  %v12612_v50 = vpop.f32.mrb[50].mxu1  ;;  %v12528_v8 = vpop.f32.mrb[51].mxu0 }
 0x85c   :  { %12663 = vst [vmem:[#allocation11 + $0x170] sm:$0xff] %v14500_v4  ;;  %12662 = vst [vmem:[#allocation11 + $0x168] sm:$0xff] %v14497_v13  ;;  %v14502_v56 = vadd.f32 %v12612_v50, %v2820_v62  ;;  %v14499_v57 = vadd.f32 %v12528_v8, %v2816_v63  ;;  %v12614_v59 = vpop.f32.mrb[51].mxu1 }
 0x85d   :  { %12664 = vst [vmem:[#allocation11 + $0x178] sm:$0xff] %v14501_v6  ;;  %12709 = vst [vmem:[#allocation11 + $0x2e0] sm:$0xff] %v14498_v10  ;;  %v14503_v9 = vadd.f32 %v12614_v59, %v2824_v0 }
 0x85e   :  { %12711 = vst [vmem:[#allocation11 + $0x2f0] sm:$0xff] %v14502_v56  ;;  %12710 = vst [vmem:[#allocation11 + $0x2e8] sm:$0xff] %v14499_v57 }
 0x85f   :  { %12712 = vst [vmem:[#allocation11 + $0x2f8] sm:$0xff] %v14503_v9 }
 0x860   :  { %14955 = shalt.err (!%p14952_p2)
}
 0x861   :  { %s14956_s3 = scalar_lea.hbm %s15360_s5, 12288 }
 0x862   :  { %p14957_p3 = scmp.ne.s32.totalorder %s15360_s5, %s14956_s3  ;;  %p14960_p4 = scmp.lt.u32.totalorder %s14956_s3, %s15360_s5 }
 0x864   :  { %p14962_p5 = pnand %p14960_p4, %p14957_p3 }
 0x866   :  { %14965 = shalt.err (!%p14962_p5)
}
 0x867   :  { %s14984_s12 = smov 6144   ;;  %s14985_s13 = smov 384  }
 0x868   :  { %12724 = dma.vmem_to_hbm [thread:$0]  %s12719_s28, 12288, %s15360_s5, [#allocation4], %s14984_s12, %s14984_s12, %s14985_s13  }
 0x869   :  { %14972 = dma.done.wait [#allocation4], 12288  }
 0x86a   :  { %14973 = vsyncadd [#allocation4], 4294955008 }
 0x86b   :  { %12728 = vsyncpa [#allocation3], 1 }
 0x86c   :  { %12729 = vsyncpa [#allocation6], 1 }
 0x86d   :  { %12730 = vsyncpa [#allocation9], 1 }
 0x86e   :  { %12731 = vsyncpa [#allocation4], 1 }

</bundles_post_ra>
